<compile_context>
chip_gen: v7x
topology: tpu7x:2x2x1
jax: 0.10.0
libtpu: 0.0.40
codegen_flags: <defaults>
</compile_context>

<pallas_src>
import jax
import jax.numpy as jnp
import numpy as np
from jax.experimental import pallas as pl
from jax.experimental.pallas import tpu as pltpu

C1_PAD = 128   # conv1 out channels padded 36 -> 128 (lane dense)
C2_PAD = 128   # conv2 out channels padded 48 -> 128 (lane dense)
S2_PAD = 32    # conv2 pooled spatial 5*5=25 -> 32 rows (sublane aligned)


# ----------------- fused conv (im2col matmul) + ReLU + maxpool ----------------

def _conv_relu_pool_kernel(p_ref, w_ref, b_ref, o_ref):
    ib, g, s, k = p_ref.shape
    co = w_ref.shape[1]
    a = p_ref[...].reshape(ib * g * s, k)                        # bf16 patches
    acc = jnp.dot(a, w_ref[...], preferred_element_type=jnp.float32)
    y = jnp.maximum(acc + b_ref[...], 0.0)                       # bias + ReLU (f32)
    y = y.reshape(ib, g, s, co)
    o_ref[...] = jnp.max(y, axis=1)                              # 2x2 max-pool over the 4 offsets


def conv_relu_pool(patches, w, b, *, img_block=8):
    """patches: [N, 4, S, K] pool-grouped im2col rows; w: [K, Co] bf16; b: [1, Co] f32.

    Returns the pooled ReLU(conv) activation [N, S, Co] in f32
    (S = pooled_h * pooled_w, possibly sublane-padded)."""
    n, g, s, k = patches.shape
    co = w.shape[1]
    ib = min(n, img_block)
    cost = pl.CostEstimate(
        flops=2 * n * g * s * k * co,
        transcendentals=0,
        bytes_accessed=n * g * s * k * 2 + k * co * 2 + n * s * co * 4)
    return pl.pallas_call(
        _conv_relu_pool_kernel,
        out_shape=jax.ShapeDtypeStruct((n, s, co), jnp.float32),
        grid=(pl.cdiv(n, ib),),
        in_specs=[
            pl.BlockSpec((ib, g, s, k), lambda i: (i, 0, 0, 0)),
            pl.BlockSpec((k, co), lambda i: (0, 0)),
            pl.BlockSpec((1, co), lambda i: (0, 0)),
        ],
        out_specs=pl.BlockSpec((ib, s, co), lambda i: (i, 0, 0)),
        compiler_params=pltpu.CompilerParams(dimension_semantics=("parallel",)),
        cost_estimate=cost,
    )(patches.astype(jnp.bfloat16), w, b)


# ----------------------- row-tiled matmul + bias + ReLU -----------------------

def _mm_bias_relu_kernel(a_ref, w_ref, b_ref, o_ref):
    acc = jnp.dot(a_ref[...], w_ref[...], preferred_element_type=jnp.float32)
    o_ref[...] = jnp.maximum(acc + b_ref[...], 0.0)


def matmul_bias_relu(a, w, b, *, row_tile=256):
    """relu(a @ w + b), tiled over rows.  a: [M, K]; w: [K, N] bf16; b: [1, N] f32."""
    m, k = a.shape
    n = w.shape[1]
    tm = m if m <= row_tile else row_tile          # row_tile is a multiple of 8
    cost = pl.CostEstimate(flops=2 * m * k * n, transcendentals=0,
                           bytes_accessed=m * k * 2 + k * n * 2 + m * n * 4)
    return pl.pallas_call(
        _mm_bias_relu_kernel,
        out_shape=jax.ShapeDtypeStruct((m, n), jnp.float32),
        grid=(pl.cdiv(m, tm),),
        in_specs=[
            pl.BlockSpec((tm, k), lambda i: (i, 0)),
            pl.BlockSpec((k, n), lambda i: (0, 0)),
            pl.BlockSpec((1, n), lambda i: (0, 0)),
        ],
        out_specs=pl.BlockSpec((tm, n), lambda i: (i, 0)),
        compiler_params=pltpu.CompilerParams(dimension_semantics=("parallel",)),
        cost_estimate=cost,
    )(a.astype(jnp.bfloat16), w, b)


# --------------------------------- glue ---------------------------------------

def im2col_pooled(x_nhwc, k, s_pad):
    """[N,H,W,C] -> [N, 4, s_pad, C*k*k] patch rows grouped by 2x2 pool offset.

    Group g = dh*2 + dw; within a group row s = ph*PW + pw indexes the pooled
    output position, covering conv output position (2*ph + dh, 2*pw + dw).
    Column order is (c_in, kh, kw) matching PyTorch Conv2d weight flattening.
    Rows [PH*PW, s_pad) are zero padding (folded away downstream).
    """
    nb, h, w, c = x_nhwc.shape
    oh, ow = h - k + 1, w - k + 1
    ph, pw = oh // 2, ow // 2
    cols = [x_nhwc[:, di:di + oh, dj:dj + ow, :] for di in range(k) for dj in range(k)]
    p = jnp.stack(cols, axis=3)                                 # [N, oh, ow, k*k, C]
    p = p.transpose(0, 1, 2, 4, 3).reshape(nb, oh, ow, c * k * k)
    p = p[:, :2 * ph, :2 * pw, :]
    p = p.reshape(nb, ph, 2, pw, 2, c * k * k).transpose(0, 2, 4, 1, 3, 5)
    p = p.reshape(nb, 4, ph * pw, c * k * k)
    if s_pad > ph * pw:
        p = jnp.pad(p, ((0, 0), (0, 0), (0, s_pad - ph * pw), (0, 0)))
    return p


def encoder_cc_forward(x_nchw, prep):
    n = x_nchw.shape[0]
    x = jnp.transpose(x_nchw, (0, 2, 3, 1)).astype(jnp.float32)      # NHWC [N,28,28,3]

    # part1a: Conv2d(3,36,k=4) + ReLU + MaxPool(2,2), fused; out channels padded to 128.
    # TODO(synk): im2col is still built in XLA glue (k*k HBM blow-up); an in-kernel
    # im2col with manual DMA would cut conv HBM reads a further ~9-16x.
    p1 = im2col_pooled(x, 4, 144)                                    # [N, 4, 144, 48]
    h = conv_relu_pool(p1, prep["w1"], prep["b1"])                   # [N, 144, 128]
    h = h.reshape(n, 12, 12, C1_PAD)

    # part1b: Conv2d(36,48,k=3) + ReLU + MaxPool(2,2), fused (channel padding folded into w2).
    p2 = im2col_pooled(h, 3, S2_PAD)                                 # [N, 4, 32, 1152]
    h = conv_relu_pool(p2, prep["w2"], prep["b2"])                   # [N, 32, 128]

    # Flatten.  PyTorch's H.view(-1, 48*5*5) NCHW ordering plus the channel / pooled-row
    # padding are folded into prep["wf1"], so the lane-dense activation is flattened as-is.
    h = h.reshape(n, S2_PAD * C2_PAD)                                # [N, 4096]

    # part2: Linear(1200,512)+ReLU+Dropout, Linear(512,512)+ReLU+Dropout
    # TODO(synk): nn.Dropout is stochastic in train mode; implemented as eval-mode identity.
    h = matmul_bias_relu(h, prep["wf1"], prep["bf1"])                # [N, 512]
    h = matmul_bias_relu(h, prep["wf2"], prep["bf2"])                # [N, 512]
    return h


# --------------------------- params & preprocessing ---------------------------

def init_params(key):
    ks = jax.random.split(key, 8)

    def u(k, shape, fan_in):
        bound = 1.0 / np.sqrt(fan_in)
        return jax.random.uniform(k, shape, jnp.float32, -bound, bound)

    return {
        "w1": u(ks[0], (36, 3, 4, 4), 3 * 4 * 4),
        "b1": u(ks[1], (36,), 3 * 4 * 4),
        "w2": u(ks[2], (48, 36, 3, 3), 36 * 3 * 3),
        "b2": u(ks[3], (48,), 36 * 3 * 3),
        "wf1": u(ks[4], (512, 1200), 1200),   # PyTorch Linear weight [out, in]
        "bf1": u(ks[5], (512,), 1200),
        "wf2": u(ks[6], (512, 512), 512),
        "bf2": u(ks[7], (512,), 512),
    }


def prepare_params(p):
    """One-time weight preprocessing (reshape / transpose / pad / bf16) outside the forward."""
    # conv1: [36,3,4,4] -> [48, 128], rows in (c_in, kh, kw) order, out channels padded.
    w1 = p["w1"].reshape(36, 3 * 4 * 4).T
    w1 = jnp.pad(w1, ((0, 0), (0, C1_PAD - 36)))
    b1 = jnp.pad(p["b1"], (0, C1_PAD - 36)).reshape(1, C1_PAD)
    # conv2: pad input channels 36->128 (consumes the lane-dense conv1 output directly)
    # and output channels 48->128; rows in (c_in_padded, kh, kw) order.
    w2 = jnp.pad(p["w2"], ((0, 0), (0, C1_PAD - 36), (0, 0), (0, 0)))    # [48,128,3,3]
    w2 = w2.reshape(48, C1_PAD * 9).T                                    # [1152, 48]
    w2 = jnp.pad(w2, ((0, 0), (0, C2_PAD - 48)))                         # [1152, 128]
    b2 = jnp.pad(p["b2"], (0, C2_PAD - 48)).reshape(1, C2_PAD)
    # fc1: fold the NCHW flatten order (c*25 + h*5 + w) plus channel / pooled-row padding
    # into the weight so the activation needs no transpose / slice before fc1.
    wf1 = p["wf1"].reshape(512, 48, 5, 5).transpose(0, 2, 3, 1)          # [512, h, w, c]
    wf1 = wf1.reshape(512, 25, 48)
    wf1_full = jnp.zeros((512, S2_PAD, C2_PAD), jnp.float32).at[:, :25, :48].set(wf1)
    wf1_full = wf1_full.reshape(512, S2_PAD * C2_PAD).T                  # [4096, 512]
    bf1 = p["bf1"].reshape(1, 512)
    wf2 = p["wf2"].T
    bf2 = p["bf2"].reshape(1, 512)
    bf16 = jnp.bfloat16
    return {
        "w1": w1.astype(bf16), "b1": b1.astype(jnp.float32),
        "w2": w2.astype(bf16), "b2": b2.astype(jnp.float32),
        "wf1": wf1_full.astype(bf16), "bf1": bf1.astype(jnp.float32),
        "wf2": wf2.astype(bf16), "bf2": bf2.astype(jnp.float32),
    }


# ------------------------ plain-JAX reference (check) -------------------------

def ref_forward(x_nchw, params):
    P = jax.lax.Precision.HIGHEST
    y = jax.lax.conv_general_dilated(
        x_nchw, params["w1"], (1, 1), "VALID",
        dimension_numbers=("NCHW", "OIHW", "NCHW"), precision=P)
    y = jnp.maximum(y + params["b1"][None, :, None, None], 0.0)
    y = jax.lax.reduce_window(y, -jnp.inf, jax.lax.max,
                              (1, 1, 2, 2), (1, 1, 2, 2), "VALID")
    y = jax.lax.conv_general_dilated(
        y, params["w2"], (1, 1), "VALID",
        dimension_numbers=("NCHW", "OIHW", "NCHW"), precision=P)
    y = jnp.maximum(y + params["b2"][None, :, None, None], 0.0)
    y = jax.lax.reduce_window(y, -jnp.inf, jax.lax.max,
                              (1, 1, 2, 2), (1, 1, 2, 2), "VALID")
    y = y.reshape(y.shape[0], -1)
    y = jnp.maximum(jnp.dot(y, params["wf1"].T, precision=P) + params["bf1"], 0.0)
    y = jnp.maximum(jnp.dot(y, params["wf2"].T, precision=P) + params["bf2"], 0.0)
    return y


if __name__ == "__main__":
    key = jax.random.PRNGKey(0)
    kx, kp = jax.random.split(key)
    # Input spatial size must be 28x28 so the flatten is exactly 48*5*5.
    x = jax.random.normal(kx, (2, 3, 28, 28), jnp.float32)
    params = init_params(kp)
    prep = prepare_params(params)

    fwd = jax.jit(encoder_cc_forward)
    out = jax.block_until_ready(fwd(x, prep))
    assert out.shape == (2, 512), out.shape

    ref = jax.block_until_ready(ref_forward(x, params))
    # Tolerance covers the bf16 MXU operands (f32 accumulation) vs the f32 HIGHEST reference.
    np.testing.assert_allclose(np.asarray(out), np.asarray(ref), rtol=3e-2, atol=3e-2)
    print("KERNEL_OK")
</pallas_src>

<mosaic_0001>
module attributes {stable_mosaic.version = 11 : i64} {
  func.func @_conv_relu_pool_kernel(%arg0: i32, %arg1: memref<2x4x144x48xbf16, #tpu.memory_space<vmem>>, %arg2: memref<48x128xbf16, #tpu.memory_space<vmem>>, %arg3: memref<1x128xf32, #tpu.memory_space<vmem>>, %arg4: memref<2x144x128xf32, #tpu.memory_space<vmem>>) attributes {dimension_semantics = [#tpu.dimension_semantics<parallel>], iteration_bounds = array<i64: 1>, scalar_prefetch = 0 : i64, scratch_operands = 0 : i64, tpu.core_type = #tpu.core_type<tc>, window_params = [{transform_indices = @transform_0, window_bounds = array<i64: 2, 4, 144, 48>}, {pipeline_mode = #tpu.pipeline_mode<synchronous>, transform_indices = @transform_1, window_bounds = array<i64: 48, 128>}, {pipeline_mode = #tpu.pipeline_mode<synchronous>, transform_indices = @transform_2, window_bounds = array<i64: 1, 128>}, {transform_indices = @transform_3, window_bounds = array<i64: 2, 144, 128>}]} {
    %c0 = arith.constant 0 : index
    %c0_0 = arith.constant 0 : index
    %c0_1 = arith.constant 0 : index
    %c0_2 = arith.constant 0 : index
    %0 = vector.load %arg1[%c0, %c0_0, %c0_1, %c0_2] : memref<2x4x144x48xbf16, #tpu.memory_space<vmem>>, vector<2x4x144x48xbf16>
    %1 = vector.shape_cast %0 : vector<2x4x144x48xbf16> to vector<1152x48xbf16>
    %c0_3 = arith.constant 0 : index
    %c0_4 = arith.constant 0 : index
    %2 = vector.load %arg2[%c0_3, %c0_4] : memref<48x128xbf16, #tpu.memory_space<vmem>>, vector<48x128xbf16>
    %cst = arith.constant dense<0.000000e+00> : vector<1152x128xf32>
    %3 = tpu.matmul %1, %2, %cst {dimension_numbers = #tpu.dot_dimension_numbers<[1], [0], [0], [1], [0, 0, 1, 1], [], []>} : vector<1152x48xbf16>, vector<48x128xbf16>, vector<1152x128xf32> -> vector<1152x128xf32>
    %c0_5 = arith.constant 0 : index
    %c0_6 = arith.constant 0 : index
    %4 = vector.load %arg3[%c0_5, %c0_6] : memref<1x128xf32, #tpu.memory_space<vmem>>, vector<1x128xf32>
    %5 = vector.broadcast %4 : vector<1x128xf32> to vector<1152x128xf32>
    %6 = arith.addf %3, %5 : vector<1152x128xf32>
    %cst_7 = arith.constant 0.000000e+00 : f32
    %7 = vector.broadcast %cst_7 : f32 to vector<1152x128xf32>
    %8 = arith.maximumf %6, %7 : vector<1152x128xf32>
    %9 = vector.shape_cast %8 : vector<1152x128xf32> to vector<2x4x144x128xf32>
    %cst_8 = arith.constant dense<0xFF800000> : vector<2x144x128xf32>
    %10 = vector.multi_reduction <maximumf>, %9, %cst_8 [1] : vector<2x4x144x128xf32> to vector<2x144x128xf32>
    %c0_9 = arith.constant 0 : index
    %c0_10 = arith.constant 0 : index
    %c0_11 = arith.constant 0 : index
    %11 = vector.load %arg4[%c0_9, %c0_10, %c0_11] : memref<2x144x128xf32, #tpu.memory_space<vmem>>, vector<2x144x128xf32>
    tpu.vector_store %arg4[%c0_9, %c0_10, %c0_11], %10 {strides = array<i32>} : memref<2x144x128xf32, #tpu.memory_space<vmem>>, vector<2x144x128xf32>,
    return
  }
  func.func @transform_0(%arg0: i32) -> (i32, i32, i32, i32) {
    %c0_i32 = arith.constant 0 : i32
    %c0_i32_0 = arith.constant 0 : i32
    %c0_i32_1 = arith.constant 0 : i32
    %c0_i32_2 = arith.constant 0 : i32
    return %arg0, %c0_i32, %c0_i32_0, %c0_i32_1 : i32, i32, i32, i32
  }
  func.func @transform_1(%arg0: i32) -> (i32, i32) {
    %c0_i32 = arith.constant 0 : i32
    %c0_i32_0 = arith.constant 0 : i32
    %c0_i32_1 = arith.constant 0 : i32
    return %c0_i32, %c0_i32_0 : i32, i32
  }
  func.func @transform_2(%arg0: i32) -> (i32, i32) {
    %c0_i32 = arith.constant 0 : i32
    %c0_i32_0 = arith.constant 0 : i32
    %c0_i32_1 = arith.constant 0 : i32
    return %c0_i32, %c0_i32_0 : i32, i32
  }
  func.func @transform_3(%arg0: i32) -> (i32, i32, i32) {
    %c0_i32 = arith.constant 0 : i32
    %c0_i32_0 = arith.constant 0 : i32
    %c0_i32_1 = arith.constant 0 : i32
    return %arg0, %c0_i32, %c0_i32_0 : i32, i32, i32
  }
}

module attributes {stable_mosaic.version = 11 : i64} {
  func.func @_conv_relu_pool_kernel(%arg0: i32, %arg1: memref<2x4x32x1152xbf16, #tpu.memory_space<vmem>>, %arg2: memref<1152x128xbf16, #tpu.memory_space<vmem>>, %arg3: memref<1x128xf32, #tpu.memory_space<vmem>>, %arg4: memref<2x32x128xf32, #tpu.memory_space<vmem>>) attributes {dimension_semantics = [#tpu.dimension_semantics<parallel>], iteration_bounds = array<i64: 1>, scalar_prefetch = 0 : i64, scratch_operands = 0 : i64, tpu.core_type = #tpu.core_type<tc>, window_params = [{transform_indices = @transform_0, window_bounds = array<i64: 2, 4, 32, 1152>}, {pipeline_mode = #tpu.pipeline_mode<synchronous>, transform_indices = @transform_1, window_bounds = array<i64: 1152, 128>}, {pipeline_mode = #tpu.pipeline_mode<synchronous>, transform_indices = @transform_2, window_bounds = array<i64: 1, 128>}, {transform_indices = @transform_3, window_bounds = array<i64: 2, 32, 128>}]} {
    %c0 = arith.constant 0 : index
    %c0_0 = arith.constant 0 : index
    %c0_1 = arith.constant 0 : index
    %c0_2 = arith.constant 0 : index
    %0 = vector.load %arg1[%c0, %c0_0, %c0_1, %c0_2] : memref<2x4x32x1152xbf16, #tpu.memory_space<vmem>>, vector<2x4x32x1152xbf16>
    %1 = vector.shape_cast %0 : vector<2x4x32x1152xbf16> to vector<256x1152xbf16>
    %c0_3 = arith.constant 0 : index
    %c0_4 = arith.constant 0 : index
    %2 = vector.load %arg2[%c0_3, %c0_4] : memref<1152x128xbf16, #tpu.memory_space<vmem>>, vector<1152x128xbf16>
    %cst = arith.constant dense<0.000000e+00> : vector<256x128xf32>
    %3 = tpu.matmul %1, %2, %cst {dimension_numbers = #tpu.dot_dimension_numbers<[1], [0], [0], [1], [0, 0, 1, 1], [], []>} : vector<256x1152xbf16>, vector<1152x128xbf16>, vector<256x128xf32> -> vector<256x128xf32>
    %c0_5 = arith.constant 0 : index
    %c0_6 = arith.constant 0 : index
    %4 = vector.load %arg3[%c0_5, %c0_6] : memref<1x128xf32, #tpu.memory_space<vmem>>, vector<1x128xf32>
    %5 = vector.broadcast %4 : vector<1x128xf32> to vector<256x128xf32>
    %6 = arith.addf %3, %5 : vector<256x128xf32>
    %cst_7 = arith.constant 0.000000e+00 : f32
    %7 = vector.broadcast %cst_7 : f32 to vector<256x128xf32>
    %8 = arith.maximumf %6, %7 : vector<256x128xf32>
    %9 = vector.shape_cast %8 : vector<256x128xf32> to vector<2x4x32x128xf32>
    %cst_8 = arith.constant dense<0xFF800000> : vector<2x32x128xf32>
    %10 = vector.multi_reduction <maximumf>, %9, %cst_8 [1] : vector<2x4x32x128xf32> to vector<2x32x128xf32>
    %c0_9 = arith.constant 0 : index
    %c0_10 = arith.constant 0 : index
    %c0_11 = arith.constant 0 : index
    %11 = vector.load %arg4[%c0_9, %c0_10, %c0_11] : memref<2x32x128xf32, #tpu.memory_space<vmem>>, vector<2x32x128xf32>
    tpu.vector_store %arg4[%c0_9, %c0_10, %c0_11], %10 {strides = array<i32>} : memref<2x32x128xf32, #tpu.memory_space<vmem>>, vector<2x32x128xf32>,
    return
  }
  func.func @transform_0(%arg0: i32) -> (i32, i32, i32, i32) {
    %c0_i32 = arith.constant 0 : i32
    %c0_i32_0 = arith.constant 0 : i32
    %c0_i32_1 = arith.constant 0 : i32
    %c0_i32_2 = arith.constant 0 : i32
    return %arg0, %c0_i32, %c0_i32_0, %c0_i32_1 : i32, i32, i32, i32
  }
  func.func @transform_1(%arg0: i32) -> (i32, i32) {
    %c0_i32 = arith.constant 0 : i32
    %c0_i32_0 = arith.constant 0 : i32
    %c0_i32_1 = arith.constant 0 : i32
    return %c0_i32, %c0_i32_0 : i32, i32
  }
  func.func @transform_2(%arg0: i32) -> (i32, i32) {
    %c0_i32 = arith.constant 0 : i32
    %c0_i32_0 = arith.constant 0 : i32
    %c0_i32_1 = arith.constant 0 : i32
    return %c0_i32, %c0_i32_0 : i32, i32
  }
  func.func @transform_3(%arg0: i32) -> (i32, i32, i32) {
    %c0_i32 = arith.constant 0 : i32
    %c0_i32_0 = arith.constant 0 : i32
    %c0_i32_1 = arith.constant 0 : i32
    return %arg0, %c0_i32, %c0_i32_0 : i32, i32, i32
  }
}

module attributes {stable_mosaic.version = 11 : i64} {
  func.func @_mm_bias_relu_kernel(%arg0: i32, %arg1: memref<2x4096xbf16, #tpu.memory_space<vmem>>, %arg2: memref<4096x512xbf16, #tpu.memory_space<vmem>>, %arg3: memref<1x512xf32, #tpu.memory_space<vmem>>, %arg4: memref<2x512xf32, #tpu.memory_space<vmem>>) attributes {dimension_semantics = [#tpu.dimension_semantics<parallel>], iteration_bounds = array<i64: 1>, scalar_prefetch = 0 : i64, scratch_operands = 0 : i64, tpu.core_type = #tpu.core_type<tc>, window_params = [{transform_indices = @transform_0, window_bounds = array<i64: 2, 4096>}, {pipeline_mode = #tpu.pipeline_mode<synchronous>, transform_indices = @transform_1, window_bounds = array<i64: 4096, 512>}, {pipeline_mode = #tpu.pipeline_mode<synchronous>, transform_indices = @transform_2, window_bounds = array<i64: 1, 512>}, {transform_indices = @transform_3, window_bounds = array<i64: 2, 512>}]} {
    %c0 = arith.constant 0 : index
    %c0_0 = arith.constant 0 : index
    %0 = vector.load %arg1[%c0, %c0_0] : memref<2x4096xbf16, #tpu.memory_space<vmem>>, vector<2x4096xbf16>
    %c0_1 = arith.constant 0 : index
    %c0_2 = arith.constant 0 : index
    %1 = vector.load %arg2[%c0_1, %c0_2] : memref<4096x512xbf16, #tpu.memory_space<vmem>>, vector<4096x512xbf16>
    %cst = arith.constant dense<0.000000e+00> : vector<2x512xf32>
    %2 = tpu.matmul %0, %1, %cst {dimension_numbers = #tpu.dot_dimension_numbers<[1], [0], [0], [1], [0, 0, 1, 1], [], []>} : vector<2x4096xbf16>, vector<4096x512xbf16>, vector<2x512xf32> -> vector<2x512xf32>
    %c0_3 = arith.constant 0 : index
    %c0_4 = arith.constant 0 : index
    %3 = vector.load %arg3[%c0_3, %c0_4] : memref<1x512xf32, #tpu.memory_space<vmem>>, vector<1x512xf32>
    %4 = vector.broadcast %3 : vector<1x512xf32> to vector<2x512xf32>
    %5 = arith.addf %2, %4 : vector<2x512xf32>
    %cst_5 = arith.constant 0.000000e+00 : f32
    %6 = vector.broadcast %cst_5 : f32 to vector<2x512xf32>
    %7 = arith.maximumf %5, %6 : vector<2x512xf32>
    %c0_6 = arith.constant 0 : index
    %c0_7 = arith.constant 0 : index
    %8 = vector.load %arg4[%c0_6, %c0_7] : memref<2x512xf32, #tpu.memory_space<vmem>>, vector<2x512xf32>
    tpu.vector_store %arg4[%c0_6, %c0_7], %7 {strides = array<i32>} : memref<2x512xf32, #tpu.memory_space<vmem>>, vector<2x512xf32>,
    return
  }
  func.func @transform_0(%arg0: i32) -> (i32, i32) {
    %c0_i32 = arith.constant 0 : i32
    %c0_i32_0 = arith.constant 0 : i32
    return %arg0, %c0_i32 : i32, i32
  }
  func.func @transform_1(%arg0: i32) -> (i32, i32) {
    %c0_i32 = arith.constant 0 : i32
    %c0_i32_0 = arith.constant 0 : i32
    %c0_i32_1 = arith.constant 0 : i32
    return %c0_i32, %c0_i32_0 : i32, i32
  }
  func.func @transform_2(%arg0: i32) -> (i32, i32) {
    %c0_i32 = arith.constant 0 : i32
    %c0_i32_0 = arith.constant 0 : i32
    %c0_i32_1 = arith.constant 0 : i32
    return %c0_i32, %c0_i32_0 : i32, i32
  }
  func.func @transform_3(%arg0: i32) -> (i32, i32) {
    %c0_i32 = arith.constant 0 : i32
    %c0_i32_0 = arith.constant 0 : i32
    return %arg0, %c0_i32 : i32, i32
  }
}

module attributes {stable_mosaic.version = 11 : i64} {
  func.func @_mm_bias_relu_kernel(%arg0: i32, %arg1: memref<2x512xbf16, #tpu.memory_space<vmem>>, %arg2: memref<512x512xbf16, #tpu.memory_space<vmem>>, %arg3: memref<1x512xf32, #tpu.memory_space<vmem>>, %arg4: memref<2x512xf32, #tpu.memory_space<vmem>>) attributes {dimension_semantics = [#tpu.dimension_semantics<parallel>], iteration_bounds = array<i64: 1>, scalar_prefetch = 0 : i64, scratch_operands = 0 : i64, tpu.core_type = #tpu.core_type<tc>, window_params = [{transform_indices = @transform_0, window_bounds = array<i64: 2, 512>}, {pipeline_mode = #tpu.pipeline_mode<synchronous>, transform_indices = @transform_1, window_bounds = array<i64: 512, 512>}, {pipeline_mode = #tpu.pipeline_mode<synchronous>, transform_indices = @transform_2, window_bounds = array<i64: 1, 512>}, {transform_indices = @transform_3, window_bounds = array<i64: 2, 512>}]} {
    %c0 = arith.constant 0 : index
    %c0_0 = arith.constant 0 : index
    %0 = vector.load %arg1[%c0, %c0_0] : memref<2x512xbf16, #tpu.memory_space<vmem>>, vector<2x512xbf16>
    %c0_1 = arith.constant 0 : index
    %c0_2 = arith.constant 0 : index
    %1 = vector.load %arg2[%c0_1, %c0_2] : memref<512x512xbf16, #tpu.memory_space<vmem>>, vector<512x512xbf16>
    %cst = arith.constant dense<0.000000e+00> : vector<2x512xf32>
    %2 = tpu.matmul %0, %1, %cst {dimension_numbers = #tpu.dot_dimension_numbers<[1], [0], [0], [1], [0, 0, 1, 1], [], []>} : vector<2x512xbf16>, vector<512x512xbf16>, vector<2x512xf32> -> vector<2x512xf32>
    %c0_3 = arith.constant 0 : index
    %c0_4 = arith.constant 0 : index
    %3 = vector.load %arg3[%c0_3, %c0_4] : memref<1x512xf32, #tpu.memory_space<vmem>>, vector<1x512xf32>
    %4 = vector.broadcast %3 : vector<1x512xf32> to vector<2x512xf32>
    %5 = arith.addf %2, %4 : vector<2x512xf32>
    %cst_5 = arith.constant 0.000000e+00 : f32
    %6 = vector.broadcast %cst_5 : f32 to vector<2x512xf32>
    %7 = arith.maximumf %5, %6 : vector<2x512xf32>
    %c0_6 = arith.constant 0 : index
    %c0_7 = arith.constant 0 : index
    %8 = vector.load %arg4[%c0_6, %c0_7] : memref<2x512xf32, #tpu.memory_space<vmem>>, vector<2x512xf32>
    tpu.vector_store %arg4[%c0_6, %c0_7], %7 {strides = array<i32>} : memref<2x512xf32, #tpu.memory_space<vmem>>, vector<2x512xf32>,
    return
  }
  func.func @transform_0(%arg0: i32) -> (i32, i32) {
    %c0_i32 = arith.constant 0 : i32
    %c0_i32_0 = arith.constant 0 : i32
    return %arg0, %c0_i32 : i32, i32
  }
  func.func @transform_1(%arg0: i32) -> (i32, i32) {
    %c0_i32 = arith.constant 0 : i32
    %c0_i32_0 = arith.constant 0 : i32
    %c0_i32_1 = arith.constant 0 : i32
    return %c0_i32, %c0_i32_0 : i32, i32
  }
  func.func @transform_2(%arg0: i32) -> (i32, i32) {
    %c0_i32 = arith.constant 0 : i32
    %c0_i32_0 = arith.constant 0 : i32
    %c0_i32_1 = arith.constant 0 : i32
    return %c0_i32, %c0_i32_0 : i32, i32
  }
  func.func @transform_3(%arg0: i32) -> (i32, i32) {
    %c0_i32 = arith.constant 0 : i32
    %c0_i32_0 = arith.constant 0 : i32
    return %arg0, %c0_i32 : i32, i32
  }
}

</mosaic_0001>

<bundles_post_ra>
// kernel: encoder_cc_forward.4
= control target key start
LH: loop header
LB: loop body
LE: loop exit
PB: predicated region body
PF: predicated region fallthrough
CT: control target
= control target key end

     0   :  { %8 = vsyncpa [#allocation3], 0  ;;  %s3171_s0 = inlined_call_operand.vmem [shape: bf16[2,4,144,48], index: 0, kind: input, shape index: {}]   ;;  %s3172_s1 = inlined_call_operand.hbm [shape: bf16[48,128], index: 1, kind: input, shape index: {}]   ;;  %s3173_s2 = inlined_call_operand.hbm [shape: f32[1,128], index: 2, kind: input, shape index: {}]   ;;  %s3174_s3 = inlined_call_operand.vmem [shape: f32[2,144,128], index: 3, kind: output, shape index: {}]  }
   0x1   :  { %9 = vsyncpa [#allocation5], 0  ;;  %s2203_s12 = smov [#allocation2]   ;;  %s2155_s16 = scalar_lea.hbm %s3172_s1, 384 }
   0x2   :  { %s17_s13 = sshll.u32 %s2203_s12, 4  ;;  %p2156_p0 = scmp.ne.s32.totalorder %s3172_s1, %s2155_s16  ;;  %s18_s13 = int_to_ptr.vmem [resolvable:$true] %s17_s13 }
   0x3   :  { %p2159_p1 = scmp.lt.u32.totalorder %s2155_s16, %s3172_s1 }
   0x5   :  { %p2161_p2 = pnand %p2159_p1, %p2156_p0 }
   0x7   :  { %2164 = shalt.err (!%p2161_p2)
}
   0x8   :  { %s2165_s21 = scalar_lea.vmem %s18_s13, 384  ;;  %p2170_p4 = scmp.lt.s32.totalorder %s18_s13, %s18_s13 }
   0x9   :  { %p2166_p3 = scmp.ne.s32.totalorder %s18_s13, %s2165_s21  ;;  %p2171_p5 = scmp.lt.s32.totalorder %s2165_s21, %s2165_s21 }
   0xb   :  { %p2172_p6 = por %p2171_p5, %p2170_p4 }
   0xd   :  { %p2173_p7 = pnand %p2172_p6, %p2166_p3 }
   0xf   :  { %2176 = shalt.err (!%p2173_p7)
}
  0x10   :  { %s2204_s22 = smov 64   ;;  %s2205_s23 = smov 4  }
  0x11   :  { %23 = dma.hbm_to_vmem [thread:$0]  %s3172_s1, 384, %s18_s13, [#allocation3], %s2204_s22, %s2204_s22, %s2205_s23  }
  0x12   :  { %s2206_s26 = smov [#allocation4]   ;;  %s2177_s30 = scalar_lea.hbm %s3173_s2, 16 }
  0x13   :  { %s30_s27 = sshll.u32 %s2206_s26, 4  ;;  %p2178_p8 = scmp.ne.s32.totalorder %s3173_s2, %s2177_s30  ;;  %s31_s27 = int_to_ptr.vmem [resolvable:$true] %s30_s27 }
  0x14   :  { %p2181_p9 = scmp.lt.u32.totalorder %s2177_s30, %s3173_s2 }
  0x16   :  { %p2183_p10 = pnand %p2181_p9, %p2178_p8 }
  0x18   :  { %2186 = shalt.err (!%p2183_p10)
}
  0x19   :  { %s2187_s8 = scalar_lea.vmem %s31_s27, 16  ;;  %s2191_s1 = scalar_lea.vmem %s31_s27, 32 }
  0x1a   :  { %p2188_p11 = scmp.ne.s32.totalorder %s31_s27, %s2187_s8  ;;  %p2192_p12 = scmp.lt.s32.totalorder %s31_s27, %s31_s27 }
  0x1b   :  { %p2193_p13 = scmp.lt.s32.totalorder %s2191_s1, %s2187_s8 }
  0x1d   :  { %p2194_p0 = por %p2193_p13, %p2192_p12 }
  0x1f   :  { %p2195_p1 = pnand %p2194_p0, %p2188_p11 }
  0x21   :  { %2198 = shalt.err (!%p2195_p1)
}
  0x22   :  { %33 = dma.hbm_to_vmem [thread:$0]  %s3173_s2, 16, %s31_s27, [#allocation5]  }
  0x23   :  { %2199 = dma.done.wait [#allocation3], 384  }
  0x24   :  { %2200 = vsyncadd [#allocation3], 4294966912 }
  0x25   :  { %2201 = dma.done.wait [#allocation5], 16  }
  0x26   :  { %2202 = vsyncadd [#allocation5], 4294967280  ;;  %v2079_v0 = vld [vmem:[#allocation2] sm:$0xff]   ;;  %v2080_v1 = vld [vmem:[#allocation2 + $0x8] sm:$0xff]   ;;  %vm576_vm0 = vcmask 392192  }
  0x27   :  { %1919 = vmatprep.subr.bf16.mxu0 %v2079_v0  ;;  %2069 = vmatprep.subr.bf16.mxu1 %v2079_v0  ;;  %v2081_v2 = vld [vmem:[#allocation2 + $0x10] sm:$0xff]   ;;  %v2082_v3 = vld [vmem:[%s3171_s0] sm:$0xff]   ;;  %v2084_v5 = vld [vmem:[%s3171_s0 + $0x8] sm:$0xff]  }
  0x28   :  { %1920 = vmatpush3.bf16.msra.mxu0 %v2079_v0  ;;  %2072 = vmatpush3.bf16.msra.mxu1 %v2079_v0  ;;  %v2083_v4 = vld [vmem:[%s3171_s0 + $0x120] sm:$0xff]   ;;  %v2085_v6 = vld [vmem:[%s3171_s0 + $0x128] sm:$0xff]   ;;  %v2086_v7 = vld [vmem:[%s3171_s0 + $0x10] sm:$0xff]  }
  0x29   :  { %1921 = vmatprep.subr.bf16.mxu0 %v2080_v1  ;;  %2070 = vmatprep.subr.bf16.mxu1 %v2080_v1  ;;  %v2087_v8 = vld [vmem:[%s3171_s0 + $0x130] sm:$0xff]   ;;  %v2088_v9 = vld [vmem:[%s3171_s0 + $0x18] sm:$0xff]   ;;  %v2090_v11 = vld [vmem:[%s3171_s0 + $0x20] sm:$0xff]  }
  0x2a   :  { %1925 = vmatprep.mubr.msk.bf16.mxu0 %vm576_vm0, %v2082_v3  ;;  %1997 = vmatprep.mubr.msk.bf16.mxu1 %vm576_vm0, %v2083_v4  ;;  %v2089_v10 = vld [vmem:[%s3171_s0 + $0x138] sm:$0xff]   ;;  %v2091_v12 = vld [vmem:[%s3171_s0 + $0x140] sm:$0xff]   ;;  %v2092_v13 = vld [vmem:[%s3171_s0 + $0x28] sm:$0xff]  }
  0x2b   :  { %v2093_v14 = vld [vmem:[%s3171_s0 + $0x148] sm:$0xff]   ;;  %v2094_v15 = vld [vmem:[%s3171_s0 + $0x30] sm:$0xff]   ;;  %v2096_v17 = vld [vmem:[%s3171_s0 + $0x38] sm:$0xff]  }
  0x2c   :  { %1922 = vmatpush3.bf16.msra.mxu0 %v2080_v1  ;;  %2073 = vmatpush3.bf16.msra.mxu1 %v2080_v1  ;;  %v2095_v16 = vld [vmem:[%s3171_s0 + $0x150] sm:$0xff]   ;;  %v2097_v18 = vld [vmem:[%s3171_s0 + $0x158] sm:$0xff]   ;;  %v2098_v19 = vld [vmem:[%s3171_s0 + $0x40] sm:$0xff]  }
  0x2d   :  { %1923 = vmatprep.subr.bf16.mxu0 %v2081_v2  ;;  %2071 = vmatprep.subr.bf16.mxu1 %v2081_v2  ;;  %v2099_v20 = vld [vmem:[%s3171_s0 + $0x160] sm:$0xff]   ;;  %v2100_v21 = vld [vmem:[%s3171_s0 + $0x48] sm:$0xff]   ;;  %v2102_v23 = vld [vmem:[%s3171_s0 + $0x50] sm:$0xff]  }
  0x2e   :  { %v2101_v22 = vld [vmem:[%s3171_s0 + $0x168] sm:$0xff]   ;;  %v2103_v24 = vld [vmem:[%s3171_s0 + $0x170] sm:$0xff]   ;;  %v2104_v25 = vld [vmem:[%s3171_s0 + $0x58] sm:$0xff]  }
  0x2f   :  { %v2105_v26 = vld [vmem:[%s3171_s0 + $0x178] sm:$0xff]   ;;  %v2106_v27 = vld [vmem:[%s3171_s0 + $0x60] sm:$0xff]   ;;  %v2108_v29 = vld [vmem:[%s3171_s0 + $0x68] sm:$0xff]  }
  0x30   :  { %1924 = vmatpush3.bf16.msra.mxu0 %v2081_v2  ;;  %2074 = vmatpush3.bf16.msra.mxu1 %v2081_v2  ;;  %v2107_v28 = vld [vmem:[%s3171_s0 + $0x180] sm:$0xff]   ;;  %v2109_v30 = vld [vmem:[%s3171_s0 + $0x188] sm:$0xff]   ;;  %v2110_v31 = vld [vmem:[%s3171_s0 + $0x70] sm:$0xff]  }
  0x31   :  { %v2111_v32 = vld [vmem:[%s3171_s0 + $0x190] sm:$0xff]   ;;  %v2112_v33 = vld [vmem:[%s3171_s0 + $0x78] sm:$0xff]   ;;  %v2114_v35 = vld [vmem:[%s3171_s0 + $0x80] sm:$0xff]  }
  0x32   :  { %v2113_v34 = vld [vmem:[%s3171_s0 + $0x198] sm:$0xff]   ;;  %v2115_v36 = vld [vmem:[%s3171_s0 + $0x1a0] sm:$0xff]   ;;  %v2116_v37 = vld [vmem:[%s3171_s0 + $0x88] sm:$0xff]  }
  0x33   :  { %1926 = vmatmul.mubr.msk.bf16.vlgmr.msra.gmra.mrb[0].mxu0 %vm576_vm0, %v2084_v5  ;;  %1998 = vmatmul.mubr.msk.bf16.vlgmr.msra.gmra.mrb[0].mxu1 %vm576_vm0, %v2085_v6  ;;  %v2117_v38 = vld [vmem:[%s3171_s0 + $0x1a8] sm:$0xff]   ;;  %v2118_v39 = vld [vmem:[%s3171_s0 + $0x90] sm:$0xff]   ;;  %v2120_v41 = vld [vmem:[%s3171_s0 + $0x98] sm:$0xff]  }
  0x34   :  { %1929 = vmatprep.mubr.msk.bf16.mxu0 %vm576_vm0, %v2086_v7  ;;  %2001 = vmatprep.mubr.msk.bf16.mxu1 %vm576_vm0, %v2087_v8  ;;  %v2119_v40 = vld [vmem:[%s3171_s0 + $0x1b0] sm:$0xff]   ;;  %v2121_v42 = vld [vmem:[%s3171_s0 + $0x1b8] sm:$0xff]   ;;  %v2122_v43 = vld [vmem:[%s3171_s0 + $0xa0] sm:$0xff]  }
  0x35   :  { %v2123_v44 = vld [vmem:[%s3171_s0 + $0x1c0] sm:$0xff]   ;;  %v2124_v45 = vld [vmem:[%s3171_s0 + $0xa8] sm:$0xff]   ;;  %v2126_v47 = vld [vmem:[%s3171_s0 + $0xb0] sm:$0xff]  }
  0x36   :  { %v2125_v46 = vld [vmem:[%s3171_s0 + $0x1c8] sm:$0xff]   ;;  %v2127_v48 = vld [vmem:[%s3171_s0 + $0x1d0] sm:$0xff]   ;;  %v2128_v49 = vld [vmem:[%s3171_s0 + $0xb8] sm:$0xff]  }
  0x37   :  { %v2129_v50 = vld [vmem:[%s3171_s0 + $0x1d8] sm:$0xff]   ;;  %v2130_v51 = vld [vmem:[%s3171_s0 + $0xc0] sm:$0xff]   ;;  %v2132_v53 = vld [vmem:[%s3171_s0 + $0xc8] sm:$0xff]  }
  0x38   :  { %v2131_v52 = vld [vmem:[%s3171_s0 + $0x1e0] sm:$0xff]   ;;  %v2133_v54 = vld [vmem:[%s3171_s0 + $0x1e8] sm:$0xff]   ;;  %v2134_v55 = vld [vmem:[%s3171_s0 + $0xd0] sm:$0xff]  }
  0x39   :  { %v2135_v56 = vld [vmem:[%s3171_s0 + $0x1f0] sm:$0xff]   ;;  %v2136_v57 = vld [vmem:[%s3171_s0 + $0xd8] sm:$0xff]   ;;  %v2138_v59 = vld [vmem:[%s3171_s0 + $0xe0] sm:$0xff]  }
  0x3a   :  { %v2137_v58 = vld [vmem:[%s3171_s0 + $0x1f8] sm:$0xff]   ;;  %v2139_v60 = vld [vmem:[%s3171_s0 + $0x200] sm:$0xff]   ;;  %v2140_v61 = vld [vmem:[%s3171_s0 + $0xe8] sm:$0xff]  }
  0x3b   :  { %1930 = vmatmul.mubr.msk.bf16.gmra.mrb[4].mxu0 %vm576_vm0, %v2088_v9  ;;  %2002 = vmatmul.mubr.msk.bf16.gmra.mrb[4].mxu1 %vm576_vm0, %v2089_v10  ;;  %v2141_v62 = vld [vmem:[%s3171_s0 + $0x208] sm:$0xff]   ;;  %v2142_v63 = vld [vmem:[%s3171_s0 + $0xf0] sm:$0xff]   ;;  %v2144_v1 = vld [vmem:[%s3171_s0 + $0xf8] sm:$0xff]  }
  0x3c   :  { %1933 = vmatprep.mubr.msk.bf16.mxu0 %vm576_vm0, %v2090_v11  ;;  %2005 = vmatprep.mubr.msk.bf16.mxu1 %vm576_vm0, %v2091_v12  ;;  %v2143_v0 = vld [vmem:[%s3171_s0 + $0x210] sm:$0xff]   ;;  %v2145_v2 = vld [vmem:[%s3171_s0 + $0x218] sm:$0xff]   ;;  %v2146_v3 = vld [vmem:[%s3171_s0 + $0x100] sm:$0xff]  }
  0x3d   :  { %v2147_v4 = vld [vmem:[%s3171_s0 + $0x220] sm:$0xff]   ;;  %v2148_v5 = vld [vmem:[%s3171_s0 + $0x108] sm:$0xff]   ;;  %v2150_v7 = vld [vmem:[%s3171_s0 + $0x110] sm:$0xff]  }
  0x3e   :  { %v2149_v6 = vld [vmem:[%s3171_s0 + $0x228] sm:$0xff]   ;;  %v2151_v8 = vld [vmem:[%s3171_s0 + $0x230] sm:$0xff]   ;;  %v2152_v9 = vld [vmem:[%s3171_s0 + $0x118] sm:$0xff]  }
  0x3f   :  { %v2153_v10 = vld [vmem:[%s3171_s0 + $0x238] sm:$0xff]  }
  0x43   :  { %1934 = vmatmul.mubr.msk.bf16.gmra.mrb[8].mxu0 %vm576_vm0, %v2092_v13  ;;  %2006 = vmatmul.mubr.msk.bf16.gmra.mrb[8].mxu1 %vm576_vm0, %v2093_v14 }
  0x44   :  { %1937 = vmatprep.mubr.msk.bf16.mxu0 %vm576_vm0, %v2094_v15  ;;  %2009 = vmatprep.mubr.msk.bf16.mxu1 %vm576_vm0, %v2095_v16 }
  0x4b   :  { %1938 = vmatmul.mubr.msk.bf16.gmra.mrb[12].mxu0 %vm576_vm0, %v2096_v17  ;;  %2010 = vmatmul.mubr.msk.bf16.gmra.mrb[12].mxu1 %vm576_vm0, %v2097_v18 }
  0x4c   :  { %1941 = vmatprep.mubr.msk.bf16.mxu0 %vm576_vm0, %v2098_v19  ;;  %2013 = vmatprep.mubr.msk.bf16.mxu1 %vm576_vm0, %v2099_v20 }
  0x53   :  { %1942 = vmatmul.mubr.msk.bf16.gmra.mrb[16].mxu0 %vm576_vm0, %v2100_v21  ;;  %2014 = vmatmul.mubr.msk.bf16.gmra.mrb[16].mxu1 %vm576_vm0, %v2101_v22 }
  0x54   :  { %1945 = vmatprep.mubr.msk.bf16.mxu0 %vm576_vm0, %v2102_v23  ;;  %2017 = vmatprep.mubr.msk.bf16.mxu1 %vm576_vm0, %v2103_v24 }
  0x5b   :  { %1946 = vmatmul.mubr.msk.bf16.gmra.mrb[20].mxu0 %vm576_vm0, %v2104_v25  ;;  %2018 = vmatmul.mubr.msk.bf16.gmra.mrb[20].mxu1 %vm576_vm0, %v2105_v26 }
  0x5c   :  { %1949 = vmatprep.mubr.msk.bf16.mxu0 %vm576_vm0, %v2106_v27  ;;  %2021 = vmatprep.mubr.msk.bf16.mxu1 %vm576_vm0, %v2107_v28 }
  0x63   :  { %1950 = vmatmul.mubr.msk.bf16.gmra.mrb[24].mxu0 %vm576_vm0, %v2108_v29  ;;  %2022 = vmatmul.mubr.msk.bf16.gmra.mrb[24].mxu1 %vm576_vm0, %v2109_v30 }
  0x64   :  { %1953 = vmatprep.mubr.msk.bf16.mxu0 %vm576_vm0, %v2110_v31  ;;  %2025 = vmatprep.mubr.msk.bf16.mxu1 %vm576_vm0, %v2111_v32 }
  0x6b   :  { %1954 = vmatmul.mubr.msk.bf16.gmra.mrb[28].mxu0 %vm576_vm0, %v2112_v33  ;;  %2026 = vmatmul.mubr.msk.bf16.gmra.mrb[28].mxu1 %vm576_vm0, %v2113_v34 }
  0x6c   :  { %1957 = vmatprep.mubr.msk.bf16.mxu0 %vm576_vm0, %v2114_v35  ;;  %2029 = vmatprep.mubr.msk.bf16.mxu1 %vm576_vm0, %v2115_v36  ;;  %v2543_v35 = vld [vmem:[#allocation4] ss:$0 sm:$0xff] }
  0x73   :  { %1958 = vmatmul.mubr.msk.bf16.gmra.mrb[32].mxu0 %vm576_vm0, %v2116_v37  ;;  %2030 = vmatmul.mubr.msk.bf16.gmra.mrb[32].mxu1 %vm576_vm0, %v2117_v38 }
  0x74   :  { %1961 = vmatprep.mubr.msk.bf16.mxu0 %vm576_vm0, %v2118_v39  ;;  %2033 = vmatprep.mubr.msk.bf16.mxu1 %vm576_vm0, %v2119_v40 }
  0x7b   :  { %1962 = vmatmul.mubr.msk.bf16.gmra.mrb[36].mxu0 %vm576_vm0, %v2120_v41  ;;  %2034 = vmatmul.mubr.msk.bf16.gmra.mrb[36].mxu1 %vm576_vm0, %v2121_v42 }
  0x7c   :  { %1965 = vmatprep.mubr.msk.bf16.mxu0 %vm576_vm0, %v2122_v43  ;;  %2037 = vmatprep.mubr.msk.bf16.mxu1 %vm576_vm0, %v2123_v44 }
  0x83   :  { %1966 = vmatmul.mubr.msk.bf16.gmra.mrb[40].mxu0 %vm576_vm0, %v2124_v45  ;;  %2038 = vmatmul.mubr.msk.bf16.gmra.mrb[40].mxu1 %vm576_vm0, %v2125_v46 }
  0x84   :  { %1969 = vmatprep.mubr.msk.bf16.mxu0 %vm576_vm0, %v2126_v47  ;;  %2041 = vmatprep.mubr.msk.bf16.mxu1 %vm576_vm0, %v2127_v48 }
  0x8b   :  { %1970 = vmatmul.mubr.msk.bf16.gmra.mrb[44].mxu0 %vm576_vm0, %v2128_v49  ;;  %2042 = vmatmul.mubr.msk.bf16.gmra.mrb[44].mxu1 %vm576_vm0, %v2129_v50 }
  0x8c   :  { %1973 = vmatprep.mubr.msk.bf16.mxu0 %vm576_vm0, %v2130_v51  ;;  %2045 = vmatprep.mubr.msk.bf16.mxu1 %vm576_vm0, %v2131_v52 }
  0x93   :  { %1974 = vmatmul.mubr.msk.bf16.gmra.mrb[48].mxu0 %vm576_vm0, %v2132_v53  ;;  %2046 = vmatmul.mubr.msk.bf16.gmra.mrb[48].mxu1 %vm576_vm0, %v2133_v54 }
  0x94   :  { %1977 = vmatprep.mubr.msk.bf16.mxu0 %vm576_vm0, %v2134_v55  ;;  %2049 = vmatprep.mubr.msk.bf16.mxu1 %vm576_vm0, %v2135_v56 }
  0x9b   :  { %1978 = vmatmul.mubr.msk.bf16.gmra.mrb[52].mxu0 %vm576_vm0, %v2136_v57  ;;  %2050 = vmatmul.mubr.msk.bf16.gmra.mrb[52].mxu1 %vm576_vm0, %v2137_v58 }
  0x9c   :  { %1981 = vmatprep.mubr.msk.bf16.mxu0 %vm576_vm0, %v2138_v59  ;;  %2053 = vmatprep.mubr.msk.bf16.mxu1 %vm576_vm0, %v2139_v60 }
  0xa3   :  { %1982 = vmatmul.mubr.msk.bf16.gmra.mrb[56].mxu0 %vm576_vm0, %v2140_v61  ;;  %2054 = vmatmul.mubr.msk.bf16.gmra.mrb[56].mxu1 %vm576_vm0, %v2141_v62 }
  0xa4   :  { %1985 = vmatprep.mubr.msk.bf16.mxu0 %vm576_vm0, %v2142_v63  ;;  %2057 = vmatprep.mubr.msk.bf16.mxu1 %vm576_vm0, %v2143_v0 }
  0xab   :  { %1986 = vmatmul.mubr.msk.bf16.gmra.mrb[60].mxu0 %vm576_vm0, %v2144_v1  ;;  %2058 = vmatmul.mubr.msk.bf16.gmra.mrb[60].mxu1 %vm576_vm0, %v2145_v2 }
  0xac   :  { %1989 = vmatprep.mubr.msk.bf16.mxu0 %vm576_vm0, %v2146_v3  ;;  %2061 = vmatprep.mubr.msk.bf16.mxu1 %vm576_vm0, %v2147_v4 }
  0xb3   :  { %1990 = vmatmul.mubr.msk.bf16.gmra.mrb[64].mxu0 %vm576_vm0, %v2148_v5  ;;  %2062 = vmatmul.mubr.msk.bf16.gmra.mrb[64].mxu1 %vm576_vm0, %v2149_v6 }
  0xb4   :  { %1993 = vmatprep.mubr.msk.bf16.mxu0 %vm576_vm0, %v2150_v7  ;;  %2065 = vmatprep.mubr.msk.bf16.mxu1 %vm576_vm0, %v2151_v8 }
  0xbb   :  { %1994 = vmatmul.mubr.msk.bf16.gmra.mrb[68].mxu0 %vm576_vm0, %v2152_v9  ;;  %2066 = vmatmul.mubr.msk.bf16.gmra.mrb[68].mxu1 %vm576_vm0, %v2153_v10 }
 0x106   :  { %v1927_v11 = vpop.f32.mrb[0].mxu0  ;;  %v1999_v12 = vpop.f32.mrb[0].mxu1 }
 0x107   :  { %v827_v13 = vpop.f32.mrb[1].mxu0  ;;  %v1115_v14 = vpop.f32.mrb[1].mxu1  ;;  %v2554_v40 = vadd.f32 %v1927_v11, %v2543_v35  ;;  %v2557_v41 = vadd.f32 %v1999_v12, %v2543_v35 }
 0x108   :  { %v1928_v15 = vpop.f32.mrb[2].mxu0  ;;  %v2000_v16 = vpop.f32.mrb[2].mxu1  ;;  %v828_v42 = vadd.f32 %v2543_v35, %v827_v13  ;;  %v1116_v43 = vadd.f32 %v2543_v35, %v1115_v14 }
 0x109   :  { %v830_v17 = vpop.f32.mrb[3].mxu0  ;;  %v1118_v18 = vpop.f32.mrb[3].mxu1  ;;  %v2566_v46 = vadd.f32 %v1928_v15, %v2543_v35  ;;  %v2569_v47 = vadd.f32 %v2000_v16, %v2543_v35  ;;  %v1404_v56 = vmax.f32 %v2554_v40, 0.0  ;;  %v1476_v57 = vmax.f32 %v2557_v41, 0.0 }
 0x10a   :  { %v831_v48 = vadd.f32 %v2543_v35, %v830_v17  ;;  %v1119_v49 = vadd.f32 %v2543_v35, %v1118_v18  ;;  %v1402_v58 = vmax.f32 %v828_v42, 0.0  ;;  %v1474_v59 = vmax.f32 %v1116_v43, 0.0 }
 0x10b   :  { %v1405_v60 = vmax.f32 %v2566_v46, 0.0  ;;  %v1477_v61 = vmax.f32 %v2569_v47, 0.0 }
 0x10c   :  { %v1403_v62 = vmax.f32 %v831_v48, 0.0  ;;  %v1475_v63 = vmax.f32 %v1119_v49, 0.0 }
 0x10e   :  { %v1931_v19 = vpop.f32.mrb[4].mxu0  ;;  %v2003_v20 = vpop.f32.mrb[4].mxu1 }
 0x10f   :  { %v843_v21 = vpop.f32.mrb[5].mxu0  ;;  %v1131_v22 = vpop.f32.mrb[5].mxu1  ;;  %v2578_v52 = vadd.f32 %v1931_v19, %v2543_v35  ;;  %v2581_v53 = vadd.f32 %v2003_v20, %v2543_v35 }
 0x110   :  { %v1932_v23 = vpop.f32.mrb[6].mxu0  ;;  %v2004_v24 = vpop.f32.mrb[6].mxu1  ;;  %v2584_v54 = vadd.f32 %v2543_v35, %v843_v21  ;;  %v2587_v55 = vadd.f32 %v2543_v35, %v1131_v22 }
 0x111   :  { %v846_v25 = vpop.f32.mrb[7].mxu0  ;;  %v1134_v26 = vpop.f32.mrb[7].mxu1  ;;  %v1408_v0 = vmax.f32 %v2578_v52, 0.0  ;;  %v2596_v2 = vadd.f32 %v1932_v23, %v2543_v35  ;;  %v2599_v3 = vadd.f32 %v2004_v24, %v2543_v35 }
 0x112   :  { %v1406_v6 = vmax.f32 %v2584_v54, 0.0  ;;  %v1478_v7 = vmax.f32 %v2587_v55, 0.0  ;;  %v2610_v12 = vadd.f32 %v2543_v35, %v846_v25  ;;  %v2613_v13 = vadd.f32 %v2543_v35, %v1134_v26 }
 0x114   :  { %v1479_v54 = vmax.f32 %v2613_v13, 0.0 }
 0x116   :  { %v1935_v27 = vpop.f32.mrb[8].mxu0  ;;  %v2007_v28 = vpop.f32.mrb[8].mxu1 }
 0x117   :  { %v859_v29 = vpop.f32.mrb[9].mxu0  ;;  %v1147_v30 = vpop.f32.mrb[9].mxu1  ;;  %v2616_v14 = vadd.f32 %v1935_v27, %v2543_v35  ;;  %v2619_v15 = vadd.f32 %v2007_v28, %v2543_v35 }
 0x118   :  { %v1936_v31 = vpop.f32.mrb[10].mxu0  ;;  %v2008_v32 = vpop.f32.mrb[10].mxu1  ;;  %v2628_v24 = vadd.f32 %v2543_v35, %v859_v29  ;;  %v2631_v25 = vadd.f32 %v2543_v35, %v1147_v30 }
 0x119   :  { %v2539_v33 = vpop.f32.mrb[11].mxu0  ;;  %v2541_v34 = vpop.f32.mrb[11].mxu1  ;;  %v2634_v26 = vadd.f32 %v1936_v31, %v2543_v35  ;;  %v2637_v27 = vadd.f32 %v2008_v32, %v2543_v35  ;;  %v1407_v32 = vmax.f32 %v2610_v12, 0.0 }
 0x11a   :  { %v2647_v30 = vadd.f32 %v2543_v35, %v2539_v33  ;;  %v2651_v31 = vadd.f32 %v2543_v35, %v2541_v34  ;;  %v1482_v33 = vmax.f32 %v2631_v25, 0.0 }
 0x11c   :  { %v3176_v25 = vmax.f32 %v2647_v30, 0.0 }
 0x11e   :  { %v2545_v36 = vpop.f32.mrb[12].mxu0  ;;  %v2547_v37 = vpop.f32.mrb[12].mxu1 }
 0x11f   :  { %v2549_v38 = vpop.f32.mrb[13].mxu0  ;;  %v2551_v39 = vpop.f32.mrb[13].mxu1 }
 0x120   :  { %v2561_v44 = vpop.f32.mrb[14].mxu0  ;;  %v2563_v45 = vpop.f32.mrb[14].mxu1  ;;  %v2701_v40 = vadd.f32 %v2543_v35, %v2549_v38  ;;  %v2705_v41 = vadd.f32 %v2543_v35, %v2551_v39 }
 0x121   :  { %v2573_v50 = vpop.f32.mrb[15].mxu0  ;;  %v2575_v51 = vpop.f32.mrb[15].mxu1  ;;  %v2721_v38 = vadd.f32 %v2563_v45, %v2543_v35 }
 0x122   :  { %v2727_v47 = vadd.f32 %v2543_v35, %v2573_v50 }
 0x124   :  { %v1415_v52 = vmax.f32 %v2727_v47, 0.0 }
 0x126   :  { %v1943_v4 = vpop.f32.mrb[16].mxu0  ;;  %v2015_v5 = vpop.f32.mrb[16].mxu1 }
 0x127   :  { %v900_v8 = vadd.f32 %v1943_v4, %v2543_v35  ;;  %v1188_v9 = vadd.f32 %v2015_v5, %v2543_v35  ;;  %v2605_v10 = vpop.f32.mrb[17].mxu0  ;;  %v2607_v11 = vpop.f32.mrb[17].mxu1  ;;  %v1410_v5 = vmax.f32 %v2628_v24, 0.0  ;;  %v1414_v24 = vmax.f32 %v2701_v40, 0.0 }
 0x128   :  { %v1944_v16 = vpop.f32.mrb[18].mxu0  ;;  %v2016_v17 = vpop.f32.mrb[18].mxu1  ;;  %v3179_v40 = vmax.f32 %v2599_v3, 0.0 }
 0x129   :  { %v1420_v18 = vmax.f32 %v900_v8, 0.0  ;;  %v1492_v19 = vmax.f32 %v1188_v9, 0.0  ;;  %v903_v20 = vadd.f32 %v1944_v16, %v2543_v35  ;;  %v1191_v21 = vadd.f32 %v2016_v17, %v2543_v35  ;;  %v2623_v22 = vpop.f32.mrb[19].mxu0  ;;  %v2625_v23 = vpop.f32.mrb[19].mxu1 }
 0x12a   :  { %v2787_v3 = vadd.f32 %v2543_v35, %v2623_v22 }
 0x12b   :  { %v2639_v28 = vmax.f32 %v1402_v58, %v1420_v18  ;;  %v2641_v42 = vmax.f32 %v1474_v59, %v1492_v19  ;;  %v1421_v43 = vmax.f32 %v903_v20, 0.0  ;;  %v1493_v48 = vmax.f32 %v1191_v21, 0.0 }
 0x12d   :  { %v2655_v55 = vmax.f32 %v1403_v62, %v1421_v43  ;;  %v2657_v58 = vmax.f32 %v1475_v63, %v1493_v48 }
 0x12e   :  { %v1947_v8 = vpop.f32.mrb[20].mxu0  ;;  %v2019_v9 = vpop.f32.mrb[20].mxu1 }
 0x12f   :  { %v916_v13 = vadd.f32 %v1947_v8, %v2543_v35  ;;  %v1204_v62 = vadd.f32 %v2019_v9, %v2543_v35  ;;  %v907_v63 = vpop.f32.mrb[21].mxu0  ;;  %v1195_v16 = vpop.f32.mrb[21].mxu1 }
 0x130   :  { %v908_v19 = vadd.f32 %v2543_v35, %v907_v63  ;;  %v1196_v20 = vadd.f32 %v2543_v35, %v1195_v16  ;;  %v1948_v21 = vpop.f32.mrb[22].mxu0  ;;  %v2020_v43 = vpop.f32.mrb[22].mxu1 }
 0x131   :  { %v1424_v48 = vmax.f32 %v916_v13, 0.0  ;;  %v1496_v34 = vmax.f32 %v1204_v62, 0.0  ;;  %v919_v12 = vadd.f32 %v1948_v21, %v2543_v35  ;;  %v1207_v8 = vadd.f32 %v2020_v43, %v2543_v35  ;;  %v910_v4 = vpop.f32.mrb[23].mxu0  ;;  %v1198_v9 = vpop.f32.mrb[23].mxu1 }
 0x132   :  { %v1422_v59 = vmax.f32 %v908_v19, 0.0  ;;  %v1494_v29 = vmax.f32 %v1196_v20, 0.0  ;;  %v911_v49 = vadd.f32 %v2543_v35, %v910_v4  ;;  %v1199_v18 = vadd.f32 %v2543_v35, %v1198_v9 }
 0x133   :  { %v2675_v17 = vmax.f32 %v1406_v6, %v1424_v48  ;;  %v2677_v63 = vmax.f32 %v1478_v7, %v1496_v34  ;;  %v1425_v16 = vmax.f32 %v919_v12, 0.0  ;;  %v1497_v1 = vmax.f32 %v1207_v8, 0.0 }
 0x134   :  { %v2681_v13 = vmax.f32 %v1404_v56, %v1422_v59  ;;  %v2685_v62 = vmax.f32 %v1476_v57, %v1494_v29  ;;  %v1423_v19 = vmax.f32 %v911_v49, 0.0  ;;  %v1495_v20 = vmax.f32 %v1199_v18, 0.0 }
 0x135   :  { %v2689_v4 = vadd.f32 %v2545_v36, %v2543_v35  ;;  %v2693_v6 = vadd.f32 %v2547_v37, %v2543_v35  ;;  %v2695_v7 = vmax.f32 %v1407_v32, %v1425_v16  ;;  %v2697_v34 = vmax.f32 %v1479_v54, %v1497_v1 }
 0x136   :  { %v2709_v36 = vmax.f32 %v1405_v60, %v1423_v19  ;;  %v2713_v37 = vmax.f32 %v1477_v61, %v1495_v20  ;;  %v1951_v56 = vpop.f32.mrb[24].mxu0  ;;  %v2023_v57 = vpop.f32.mrb[24].mxu1  ;;  %v2717_v1 = vadd.f32 %v2561_v44, %v2543_v35  ;;  %v2731_v61 = vadd.f32 %v2543_v35, %v2575_v51 }
 0x137   :  { %v932_v39 = vadd.f32 %v1951_v56, %v2543_v35  ;;  %v1220_v46 = vadd.f32 %v2023_v57, %v2543_v35  ;;  %v923_v60 = vpop.f32.mrb[25].mxu0  ;;  %v1211_v49 = vpop.f32.mrb[25].mxu1  ;;  %v3175_v57 = vmax.f32 %v2581_v53, 0.0 }
 0x138   :  { %v924_v44 = vadd.f32 %v2543_v35, %v923_v60  ;;  %v1212_v29 = vadd.f32 %v2543_v35, %v1211_v49  ;;  %v1952_v45 = vpop.f32.mrb[26].mxu0  ;;  %v2024_v32 = vpop.f32.mrb[26].mxu1  ;;  %v3177_v49 = vmax.f32 %v2651_v31, 0.0  ;;  %v1487_v53 = vmax.f32 %v2731_v61, 0.0 }
 0x139   :  { %v1428_v54 = vmax.f32 %v932_v39, 0.0  ;;  %v1500_v59 = vmax.f32 %v1220_v46, 0.0  ;;  %v935_v12 = vadd.f32 %v1952_v45, %v2543_v35  ;;  %v1223_v18 = vadd.f32 %v2024_v32, %v2543_v35  ;;  %v926_v21 = vpop.f32.mrb[27].mxu0  ;;  %v1214_v43 = vpop.f32.mrb[27].mxu1 }
 0x13a   :  { %v1426_v50 = vmax.f32 %v924_v44, 0.0  ;;  %v1498_v48 = vmax.f32 %v1212_v29, 0.0  ;;  %v927_v8 = vadd.f32 %v2543_v35, %v926_v21  ;;  %v1215_v51 = vadd.f32 %v2543_v35, %v1214_v43 }
 0x13b   :  { %v2741_v9 = vmax.f32 %v1410_v5, %v1428_v54  ;;  %v2745_v16 = vmax.f32 %v1482_v33, %v1500_v59  ;;  %v1429_v19 = vmax.f32 %v935_v12, 0.0  ;;  %v1501_v20 = vmax.f32 %v1223_v18, 0.0 }
 0x13c   :  { %v2749_v56 = vmax.f32 %v1408_v0, %v1426_v50  ;;  %v2753_v39 = vmax.f32 %v3175_v57, %v1498_v48  ;;  %v1427_v46 = vmax.f32 %v927_v8, 0.0  ;;  %v1499_v60 = vmax.f32 %v1215_v51, 0.0 }
 0x13d   :  { %v1486_v5 = vmax.f32 %v2705_v41, 0.0  ;;  %v2759_v33 = vmax.f32 %v3176_v25, %v1429_v19  ;;  %v2763_v44 = vmax.f32 %v3177_v49, %v1501_v20  ;;  %v3178_v0 = vmax.f32 %v2596_v2, 0.0 }
 0x13e   :  { %v2773_v45 = vmax.f32 %v3179_v40, %v1499_v60  ;;  %v1955_v41 = vpop.f32.mrb[28].mxu0  ;;  %v2027_v30 = vpop.f32.mrb[28].mxu1  ;;  %v2777_v32 = vadd.f32 %v2543_v35, %v2605_v10  ;;  %v2781_v31 = vadd.f32 %v2543_v35, %v2607_v11  ;;  %v2791_v59 = vadd.f32 %v2543_v35, %v2625_v23 }
 0x13f   :  { %v2769_v29 = vmax.f32 %v3178_v0, %v1427_v46  ;;  %v948_v47 = vadd.f32 %v1955_v41, %v2543_v35  ;;  %v1236_v2 = vadd.f32 %v2027_v30, %v2543_v35  ;;  %v939_v61 = vpop.f32.mrb[29].mxu0  ;;  %v1227_v54 = vpop.f32.mrb[29].mxu1  ;;  %v3180_v49 = vmax.f32 %v2616_v14, 0.0 }
 0x140   :  { %v940_v10 = vadd.f32 %v2543_v35, %v939_v61  ;;  %v1228_v12 = vadd.f32 %v2543_v35, %v1227_v54  ;;  %v1956_v11 = vpop.f32.mrb[30].mxu0  ;;  %v2028_v18 = vpop.f32.mrb[30].mxu1  ;;  %v3181_v40 = vmax.f32 %v2619_v15, 0.0  ;;  %v1488_v61 = vmax.f32 %v2693_v6, 0.0 }
 0x141   :  { %v1432_v21 = vmax.f32 %v948_v47, 0.0  ;;  %v1504_v43 = vmax.f32 %v1236_v2, 0.0  ;;  %v951_v50 = vadd.f32 %v1956_v11, %v2543_v35  ;;  %v1239_v48 = vadd.f32 %v2028_v18, %v2543_v35  ;;  %v942_v8 = vpop.f32.mrb[31].mxu0  ;;  %v1230_v51 = vpop.f32.mrb[31].mxu1 }
 0x142   :  { %v1430_v22 = vmax.f32 %v940_v10, 0.0  ;;  %v1502_v19 = vmax.f32 %v1228_v12, 0.0  ;;  %v943_v20 = vadd.f32 %v2543_v35, %v942_v8  ;;  %v1231_v23 = vadd.f32 %v2543_v35, %v1230_v51 }
 0x143   :  { %v2799_v57 = vmax.f32 %v1414_v24, %v1432_v21  ;;  %v2801_v46 = vmax.f32 %v1486_v5, %v1504_v43  ;;  %v1433_v60 = vmax.f32 %v951_v50, 0.0  ;;  %v1505_v25 = vmax.f32 %v1239_v48, 0.0 }
 0x144   :  { %v2805_v0 = vmax.f32 %v3180_v49, %v1430_v22  ;;  %v2809_v41 = vmax.f32 %v3181_v40, %v1502_v19  ;;  %v1431_v30 = vmax.f32 %v943_v20, 0.0  ;;  %v1503_v47 = vmax.f32 %v1231_v23, 0.0 }
 0x145   :  { %v1416_v2 = vmax.f32 %v2689_v4, 0.0  ;;  %v2813_v24 = vmax.f32 %v1415_v52, %v1433_v60  ;;  %v2815_v5 = vmax.f32 %v1487_v53, %v1505_v25  ;;  %v1417_v54 = vmax.f32 %v2717_v1, 0.0 }
 0x146   :  { %v1489_v14 = vmax.f32 %v2721_v38, 0.0  ;;  %v3182_v10 = vmax.f32 %v2634_v26, 0.0  ;;  %v3183_v15 = vmax.f32 %v2637_v27, 0.0  ;;  %v1959_v18 = vpop.f32.mrb[32].mxu0  ;;  %v2031_v4 = vpop.f32.mrb[32].mxu1  ;;  %v1418_v6 = vmax.f32 %v2777_v32, 0.0 }
 0x147   :  { %v1490_v52 = vmax.f32 %v2781_v31, 0.0  ;;  %v964_v53 = vadd.f32 %v1959_v18, %v2543_v35  ;;  %v1252_v1 = vadd.f32 %v2031_v4, %v2543_v35  ;;  %v955_v21 = vpop.f32.mrb[33].mxu0  ;;  %v1243_v38 = vpop.f32.mrb[33].mxu1  ;;  %v1419_v26 = vmax.f32 %v2787_v3, 0.0 }
 0x148   :  { %v2821_v12 = vmax.f32 %v3182_v10, %v1431_v30  ;;  %v2825_v11 = vmax.f32 %v3183_v15, %v1503_v47  ;;  %v1491_v43 = vmax.f32 %v2791_v59, 0.0  ;;  %v956_v27 = vadd.f32 %v2543_v35, %v955_v21  ;;  %v1960_v48 = vpop.f32.mrb[34].mxu0  ;;  %v2032_v8 = vpop.f32.mrb[34].mxu1 }
 0x149   :  { %v1244_v50 = vadd.f32 %v2543_v35, %v1243_v38  ;;  %v1436_v51 = vmax.f32 %v964_v53, 0.0  ;;  %v1508_v32 = vmax.f32 %v1252_v1, 0.0  ;;  %v967_v31 = vadd.f32 %v1960_v48, %v2543_v35  ;;  %v958_v19 = vpop.f32.mrb[35].mxu0  ;;  %v1246_v20 = vpop.f32.mrb[35].mxu1 }
 0x14a   :  { %v1255_v22 = vadd.f32 %v2032_v8, %v2543_v35  ;;  %v1434_v23 = vmax.f32 %v956_v27, 0.0  ;;  %v959_v3 = vadd.f32 %v2543_v35, %v958_v19  ;;  %v1247_v59 = vadd.f32 %v2543_v35, %v1246_v20 }
 0x14b   :  { %v1506_v60 = vmax.f32 %v1244_v50, 0.0  ;;  %v2839_v25 = vmax.f32 %v1418_v6, %v1436_v51  ;;  %v2841_v49 = vmax.f32 %v1490_v52, %v1508_v32  ;;  %v1437_v40 = vmax.f32 %v967_v31, 0.0 }
 0x14c   :  { %v1509_v30 = vmax.f32 %v1255_v22, 0.0  ;;  %v2843_v47 = vmax.f32 %v1416_v2, %v1434_v23  ;;  %v1435_v15 = vmax.f32 %v959_v3, 0.0  ;;  %v1507_v18 = vmax.f32 %v1247_v59, 0.0 }
 0x14d   :  { %v2845_v10 = vmax.f32 %v1488_v61, %v1506_v60  ;;  %v2847_v4 = vmax.f32 %v1419_v26, %v1437_v40 }
 0x14e   :  { %v2849_v53 = vmax.f32 %v1491_v43, %v1509_v30  ;;  %v2851_v1 = vmax.f32 %v1417_v54, %v1435_v15  ;;  %v2853_v21 = vmax.f32 %v1489_v14, %v1507_v18  ;;  %v1963_v6 = vpop.f32.mrb[36].mxu0  ;;  %v2035_v38 = vpop.f32.mrb[36].mxu1 }
 0x14f   :  { %v980_v52 = vadd.f32 %v1963_v6, %v2543_v35  ;;  %v1268_v27 = vadd.f32 %v2035_v38, %v2543_v35  ;;  %v971_v2 = vpop.f32.mrb[37].mxu0  ;;  %v1259_v50 = vpop.f32.mrb[37].mxu1 }
 0x150   :  { %v972_v61 = vadd.f32 %v2543_v35, %v971_v2  ;;  %v1260_v48 = vadd.f32 %v2543_v35, %v1259_v50  ;;  %v1964_v26 = vpop.f32.mrb[38].mxu0  ;;  %v2036_v8 = vpop.f32.mrb[38].mxu1 }
 0x151   :  { %v1440_v43 = vmax.f32 %v980_v52, 0.0  ;;  %v1512_v51 = vmax.f32 %v1268_v27, 0.0  ;;  %v983_v54 = vadd.f32 %v1964_v26, %v2543_v35  ;;  %v1271_v14 = vadd.f32 %v2036_v8, %v2543_v35  ;;  %v974_v32 = vpop.f32.mrb[39].mxu0  ;;  %v1262_v31 = vpop.f32.mrb[39].mxu1 }
 0x152   :  { %v1438_v22 = vmax.f32 %v972_v61, 0.0  ;;  %v1510_v19 = vmax.f32 %v1260_v48, 0.0  ;;  %v975_v20 = vadd.f32 %v2543_v35, %v974_v32  ;;  %v1263_v23 = vadd.f32 %v2543_v35, %v1262_v31 }
 0x153   :  { %v2864_v60 = vmax.f32 %v2681_v13, %v1440_v43  ;;  %v2867_v3 = vmax.f32 %v2685_v62, %v1512_v51  ;;  %v1441_v59 = vmax.f32 %v983_v54, 0.0  ;;  %v1513_v40 = vmax.f32 %v1271_v14, 0.0 }
 0x154   :  { %v2870_v30 = vmax.f32 %v2639_v28, %v1438_v22  ;;  %v2873_v15 = vmax.f32 %v2641_v42, %v1510_v19  ;;  %v1439_v18 = vmax.f32 %v975_v20, 0.0  ;;  %v1511_v6 = vmax.f32 %v1263_v23, 0.0 }
 0x155   :  { %v2876_v38 = vmax.f32 %v2709_v36, %v1441_v59  ;;  %v2879_v52 = vmax.f32 %v2713_v37, %v1513_v40 }
 0x156   :  { %v2882_v13 = vmax.f32 %v2655_v55, %v1439_v18  ;;  %v2885_v62 = vmax.f32 %v2657_v58, %v1511_v6  ;;  %v1967_v27 = vpop.f32.mrb[40].mxu0  ;;  %v2039_v28 = vpop.f32.mrb[40].mxu1 }
 0x157   :  { %v996_v2 = vadd.f32 %v1967_v27, %v2543_v35  ;;  %v1284_v42 = vadd.f32 %v2039_v28, %v2543_v35  ;;  %v987_v50 = vpop.f32.mrb[41].mxu0  ;;  %v1275_v61 = vpop.f32.mrb[41].mxu1 }
 0x158   :  { %v988_v36 = vadd.f32 %v2543_v35, %v987_v50  ;;  %v1276_v48 = vadd.f32 %v2543_v35, %v1275_v61  ;;  %v1968_v37 = vpop.f32.mrb[42].mxu0  ;;  %v2040_v26 = vpop.f32.mrb[42].mxu1 }
 0x159   :  { %v1444_v8 = vmax.f32 %v996_v2, 0.0  ;;  %v1516_v55 = vmax.f32 %v1284_v42, 0.0  ;;  %v999_v43 = vadd.f32 %v1968_v37, %v2543_v35  ;;  %v1287_v58 = vadd.f32 %v2040_v26, %v2543_v35  ;;  %v990_v51 = vpop.f32.mrb[43].mxu0  ;;  %v1278_v54 = vpop.f32.mrb[43].mxu1 }
 0x15a   :  { %v1442_v14 = vmax.f32 %v988_v36, 0.0  ;;  %v1514_v32 = vmax.f32 %v1276_v48, 0.0  ;;  %v991_v31 = vadd.f32 %v2543_v35, %v990_v51  ;;  %v1279_v22 = vadd.f32 %v2543_v35, %v1278_v54 }
 0x15b   :  { %v2896_v19 = vmax.f32 %v2749_v56, %v1444_v8  ;;  %v2899_v20 = vmax.f32 %v2753_v39, %v1516_v55  ;;  %v1445_v23 = vmax.f32 %v999_v43, 0.0  ;;  %v1517_v59 = vmax.f32 %v1287_v58, 0.0 }
 0x15c   :  { %v2902_v40 = vmax.f32 %v2675_v17, %v1442_v14  ;;  %v2905_v18 = vmax.f32 %v2677_v63, %v1514_v32  ;;  %v1443_v6 = vmax.f32 %v991_v31, 0.0  ;;  %v1515_v27 = vmax.f32 %v1279_v22, 0.0 }
 0x15d   :  { %v2908_v28 = vmax.f32 %v2769_v29, %v1445_v23  ;;  %v2911_v2 = vmax.f32 %v2773_v45, %v1517_v59 }
 0x15e   :  { %v2914_v56 = vmax.f32 %v2695_v7, %v1443_v6  ;;  %v2917_v39 = vmax.f32 %v2697_v34, %v1515_v27  ;;  %v1971_v42 = vpop.f32.mrb[44].mxu0  ;;  %v2043_v17 = vpop.f32.mrb[44].mxu1 }
 0x15f   :  { %v1012_v50 = vadd.f32 %v1971_v42, %v2543_v35  ;;  %v1300_v63 = vadd.f32 %v2043_v17, %v2543_v35  ;;  %v1003_v61 = vpop.f32.mrb[45].mxu0  ;;  %v1291_v36 = vpop.f32.mrb[45].mxu1 }
 0x160   :  { %v1004_v29 = vadd.f32 %v2543_v35, %v1003_v61  ;;  %v1292_v48 = vadd.f32 %v2543_v35, %v1291_v36  ;;  %v1972_v45 = vpop.f32.mrb[46].mxu0  ;;  %v2044_v37 = vpop.f32.mrb[46].mxu1 }
 0x161   :  { %v1448_v26 = vmax.f32 %v1012_v50, 0.0  ;;  %v1520_v7 = vmax.f32 %v1300_v63, 0.0  ;;  %v1015_v8 = vadd.f32 %v1972_v45, %v2543_v35  ;;  %v1303_v34 = vadd.f32 %v2044_v37, %v2543_v35  ;;  %v1006_v55 = vpop.f32.mrb[47].mxu0  ;;  %v1294_v43 = vpop.f32.mrb[47].mxu1 }
 0x162   :  { %v1446_v58 = vmax.f32 %v1004_v29, 0.0  ;;  %v1518_v51 = vmax.f32 %v1292_v48, 0.0  ;;  %v1007_v54 = vadd.f32 %v2543_v35, %v1006_v55  ;;  %v1295_v14 = vadd.f32 %v2543_v35, %v1294_v43 }
 0x163   :  { %v2928_v32 = vmax.f32 %v2805_v0, %v1448_v26  ;;  %v2931_v31 = vmax.f32 %v2809_v41, %v1520_v7  ;;  %v1449_v22 = vmax.f32 %v1015_v8, 0.0  ;;  %v1521_v23 = vmax.f32 %v1303_v34, 0.0 }
 0x164   :  { %v2934_v59 = vmax.f32 %v2741_v9, %v1446_v58  ;;  %v2937_v6 = vmax.f32 %v2745_v16, %v1518_v51  ;;  %v1447_v27 = vmax.f32 %v1007_v54, 0.0  ;;  %v1519_v42 = vmax.f32 %v1295_v14, 0.0 }
 0x165   :  { %v2940_v17 = vmax.f32 %v2821_v12, %v1449_v22  ;;  %v2943_v50 = vmax.f32 %v2825_v11, %v1521_v23 }
 0x166   :  { %v2946_v0 = vmax.f32 %v2759_v33, %v1447_v27  ;;  %v2949_v41 = vmax.f32 %v2763_v44, %v1519_v42  ;;  %v1975_v63 = vpop.f32.mrb[48].mxu0  ;;  %v2047_v9 = vpop.f32.mrb[48].mxu1 }
 0x167   :  { %v1028_v61 = vadd.f32 %v1975_v63, %v2543_v35  ;;  %v1316_v16 = vadd.f32 %v2047_v9, %v2543_v35  ;;  %v1019_v36 = vpop.f32.mrb[49].mxu0  ;;  %v1307_v29 = vpop.f32.mrb[49].mxu1 }
 0x168   :  { %v1020_v12 = vadd.f32 %v2543_v35, %v1019_v36  ;;  %v1308_v48 = vadd.f32 %v2543_v35, %v1307_v29  ;;  %v1976_v11 = vpop.f32.mrb[50].mxu0  ;;  %v2048_v45 = vpop.f32.mrb[50].mxu1 }
 0x169   :  { %v1452_v37 = vmax.f32 %v1028_v61, 0.0  ;;  %v1524_v33 = vmax.f32 %v1316_v16, 0.0  ;;  %v1031_v26 = vadd.f32 %v1976_v11, %v2543_v35  ;;  %v1319_v44 = vadd.f32 %v2048_v45, %v2543_v35  ;;  %v1022_v7 = vpop.f32.mrb[51].mxu0  ;;  %v1310_v8 = vpop.f32.mrb[51].mxu1 }
 0x16a   :  { %v1450_v34 = vmax.f32 %v1020_v12, 0.0  ;;  %v1522_v55 = vmax.f32 %v1308_v48, 0.0  ;;  %v1023_v43 = vadd.f32 %v2543_v35, %v1022_v7  ;;  %v1311_v58 = vadd.f32 %v2543_v35, %v1310_v8 }
 0x16b   :  { %v2960_v51 = vmax.f32 %v2843_v47, %v1452_v37  ;;  %v2963_v54 = vmax.f32 %v2845_v10, %v1524_v33  ;;  %v1453_v14 = vmax.f32 %v1031_v26, 0.0  ;;  %v1525_v22 = vmax.f32 %v1319_v44, 0.0 }
 0x16c   :  { %v2966_v23 = vmax.f32 %v2799_v57, %v1450_v34  ;;  %v2969_v27 = vmax.f32 %v2801_v46, %v1522_v55  ;;  %v1451_v42 = vmax.f32 %v1023_v43, 0.0  ;;  %v1523_v63 = vmax.f32 %v1311_v58, 0.0 }
 0x16d   :  { %v2972_v9 = vmax.f32 %v2851_v1, %v1453_v14  ;;  %v2975_v61 = vmax.f32 %v2853_v21, %v1525_v22 }
 0x16e   :  { %v2978_v47 = vmax.f32 %v2813_v24, %v1451_v42  ;;  %v2981_v10 = vmax.f32 %v2815_v5, %v1523_v63  ;;  %v1979_v16 = vpop.f32.mrb[52].mxu0  ;;  %v2051_v57 = vpop.f32.mrb[52].mxu1 }
 0x16f   :  { %v1044_v36 = vadd.f32 %v1979_v16, %v2543_v35  ;;  %v1332_v46 = vadd.f32 %v2051_v57, %v2543_v35  ;;  %v1035_v29 = vpop.f32.mrb[53].mxu0  ;;  %v1323_v12 = vpop.f32.mrb[53].mxu1 }
 0x170   :  { %v1036_v1 = vadd.f32 %v2543_v35, %v1035_v29  ;;  %v1324_v48 = vadd.f32 %v2543_v35, %v1323_v12  ;;  %v1980_v21 = vpop.f32.mrb[54].mxu0  ;;  %v2052_v11 = vpop.f32.mrb[54].mxu1 }
 0x171   :  { %v1456_v45 = vmax.f32 %v1044_v36, 0.0  ;;  %v1528_v24 = vmax.f32 %v1332_v46, 0.0  ;;  %v1047_v37 = vadd.f32 %v1980_v21, %v2543_v35  ;;  %v1335_v5 = vadd.f32 %v2052_v11, %v2543_v35  ;;  %v1038_v33 = vpop.f32.mrb[55].mxu0  ;;  %v1326_v26 = vpop.f32.mrb[55].mxu1 }
 0x172   :  { %v1454_v44 = vmax.f32 %v1036_v1, 0.0  ;;  %v1526_v7 = vmax.f32 %v1324_v48, 0.0  ;;  %v1039_v8 = vadd.f32 %v2543_v35, %v1038_v33  ;;  %v1327_v34 = vadd.f32 %v2543_v35, %v1326_v26 }
 0x173   :  { %v1548_v55 = vmax.f32 %v2870_v30, %v1456_v45  ;;  %v1602_v43 = vmax.f32 %v2873_v15, %v1528_v24  ;;  %v1457_v58 = vmax.f32 %v1047_v37, 0.0  ;;  %v1529_v14 = vmax.f32 %v1335_v5, 0.0 }
 0x174   :  { %v2994_v22 = vmax.f32 %v2839_v25, %v1454_v44  ;;  %v2997_v42 = vmax.f32 %v2841_v49, %v1526_v7  ;;  %v1455_v63 = vmax.f32 %v1039_v8, 0.0  ;;  %v1527_v16 = vmax.f32 %v1327_v34, 0.0 }
 0x175   :  { %1654 = vst [vmem:[%s3174_s3] sm:$0xff] %v1548_v55  ;;  %1672 = vst [vmem:[%s3174_s3 + $0x90] sm:$0xff] %v1602_v43  ;;  %v1551_v30 = vmax.f32 %v2882_v13, %v1457_v58  ;;  %v1605_v15 = vmax.f32 %v2885_v62, %v1529_v14 }
 0x176   :  { %v3008_v25 = vmax.f32 %v2847_v4, %v1455_v63  ;;  %v3011_v49 = vmax.f32 %v2849_v53, %v1527_v16  ;;  %v1983_v57 = vpop.f32.mrb[56].mxu0  ;;  %v2055_v36 = vpop.f32.mrb[56].mxu1 }
 0x177   :  { %1655 = vst [vmem:[%s3174_s3 + $0x8] sm:$0xff] %v1551_v30  ;;  %1673 = vst [vmem:[%s3174_s3 + $0x98] sm:$0xff] %v1605_v15  ;;  %v1060_v13 = vadd.f32 %v1983_v57, %v2543_v35  ;;  %v1348_v62 = vadd.f32 %v2055_v36, %v2543_v35  ;;  %v1051_v46 = vpop.f32.mrb[57].mxu0  ;;  %v1339_v4 = vpop.f32.mrb[57].mxu1 }
 0x178   :  { %v1052_v29 = vadd.f32 %v2543_v35, %v1051_v46  ;;  %v1340_v53 = vadd.f32 %v2543_v35, %v1339_v4  ;;  %v1984_v12 = vpop.f32.mrb[58].mxu0  ;;  %v2056_v1 = vpop.f32.mrb[58].mxu1 }
 0x179   :  { %v1460_v48 = vmax.f32 %v1060_v13, 0.0  ;;  %v1532_v21 = vmax.f32 %v1348_v62, 0.0  ;;  %v1063_v11 = vadd.f32 %v1984_v12, %v2543_v35  ;;  %v1351_v45 = vadd.f32 %v2056_v1, %v2543_v35  ;;  %v1054_v24 = vpop.f32.mrb[59].mxu0  ;;  %v1342_v37 = vpop.f32.mrb[59].mxu1 }
 0x17a   :  { %v1458_v5 = vmax.f32 %v1052_v29, 0.0  ;;  %v1530_v33 = vmax.f32 %v1340_v53, 0.0  ;;  %v1055_v26 = vadd.f32 %v2543_v35, %v1054_v24  ;;  %v1343_v44 = vadd.f32 %v2543_v35, %v1342_v37 }
 0x17b   :  { %v1560_v7 = vmax.f32 %v2902_v40, %v1460_v48  ;;  %v1614_v8 = vmax.f32 %v2905_v18, %v1532_v21  ;;  %v1461_v34 = vmax.f32 %v1063_v11, 0.0  ;;  %v1533_v55 = vmax.f32 %v1351_v45, 0.0 }
 0x17c   :  { %v1554_v43 = vmax.f32 %v2864_v60, %v1458_v5  ;;  %v1608_v58 = vmax.f32 %v2867_v3, %v1530_v33  ;;  %v1459_v14 = vmax.f32 %v1055_v26, 0.0  ;;  %v1531_v63 = vmax.f32 %v1343_v44, 0.0 }
 0x17d   :  { %1658 = vst [vmem:[%s3174_s3 + $0x20] sm:$0xff] %v1560_v7  ;;  %1676 = vst [vmem:[%s3174_s3 + $0xb0] sm:$0xff] %v1614_v8  ;;  %v1563_v40 = vmax.f32 %v2914_v56, %v1461_v34  ;;  %v1617_v18 = vmax.f32 %v2917_v39, %v1533_v55 }
 0x17e   :  { %1656 = vst [vmem:[%s3174_s3 + $0x10] sm:$0xff] %v1554_v43  ;;  %1674 = vst [vmem:[%s3174_s3 + $0xa0] sm:$0xff] %v1608_v58  ;;  %v1557_v60 = vmax.f32 %v2876_v38, %v1459_v14  ;;  %v1611_v3 = vmax.f32 %v2879_v52, %v1531_v63  ;;  %v1987_v16 = vpop.f32.mrb[60].mxu0  ;;  %v2059_v30 = vpop.f32.mrb[60].mxu1 }
 0x17f   :  { %1659 = vst [vmem:[%s3174_s3 + $0x28] sm:$0xff] %v1563_v40  ;;  %1677 = vst [vmem:[%s3174_s3 + $0xb8] sm:$0xff] %v1617_v18  ;;  %v1076_v56 = vadd.f32 %v1987_v16, %v2543_v35  ;;  %v1364_v39 = vadd.f32 %v2059_v30, %v2543_v35  ;;  %v1067_v15 = vpop.f32.mrb[61].mxu0  ;;  %v1355_v57 = vpop.f32.mrb[61].mxu1 }
 0x180   :  { %1657 = vst [vmem:[%s3174_s3 + $0x18] sm:$0xff] %v1557_v60  ;;  %1675 = vst [vmem:[%s3174_s3 + $0xa8] sm:$0xff] %v1611_v3  ;;  %v1068_v38 = vadd.f32 %v2543_v35, %v1067_v15  ;;  %v1356_v52 = vadd.f32 %v2543_v35, %v1355_v57  ;;  %v1988_v36 = vpop.f32.mrb[62].mxu0  ;;  %v2060_v13 = vpop.f32.mrb[62].mxu1 }
 0x181   :  { %v1464_v62 = vmax.f32 %v1076_v56, 0.0  ;;  %v1536_v46 = vmax.f32 %v1364_v39, 0.0  ;;  %v1079_v4 = vadd.f32 %v1988_v36, %v2543_v35  ;;  %v1367_v29 = vadd.f32 %v2060_v13, %v2543_v35  ;;  %v1070_v53 = vpop.f32.mrb[63].mxu0  ;;  %v1358_v12 = vpop.f32.mrb[63].mxu1 }
 0x182   :  { %v1462_v1 = vmax.f32 %v1068_v38, 0.0  ;;  %v1534_v48 = vmax.f32 %v1356_v52, 0.0  ;;  %v1071_v21 = vadd.f32 %v2543_v35, %v1070_v53  ;;  %v1359_v11 = vadd.f32 %v2543_v35, %v1358_v12 }
 0x183   :  { %v1572_v45 = vmax.f32 %v2934_v59, %v1464_v62  ;;  %v1626_v24 = vmax.f32 %v2937_v6, %v1536_v46  ;;  %v1465_v37 = vmax.f32 %v1079_v4, 0.0  ;;  %v1537_v5 = vmax.f32 %v1367_v29, 0.0 }
 0x184   :  { %v1566_v33 = vmax.f32 %v2896_v19, %v1462_v1  ;;  %v1620_v26 = vmax.f32 %v2899_v20, %v1534_v48  ;;  %v1463_v44 = vmax.f32 %v1071_v21, 0.0  ;;  %v1535_v7 = vmax.f32 %v1359_v11, 0.0 }
 0x185   :  { %1662 = vst [vmem:[%s3174_s3 + $0x40] sm:$0xff] %v1572_v45  ;;  %1680 = vst [vmem:[%s3174_s3 + $0xd0] sm:$0xff] %v1626_v24  ;;  %v1575_v59 = vmax.f32 %v2946_v0, %v1465_v37  ;;  %v1629_v6 = vmax.f32 %v2949_v41, %v1537_v5 }
 0x186   :  { %1660 = vst [vmem:[%s3174_s3 + $0x30] sm:$0xff] %v1566_v33  ;;  %1678 = vst [vmem:[%s3174_s3 + $0xc0] sm:$0xff] %v1620_v26  ;;  %v1569_v19 = vmax.f32 %v2908_v28, %v1463_v44  ;;  %v1623_v20 = vmax.f32 %v2911_v2, %v1535_v7  ;;  %v1991_v8 = vpop.f32.mrb[64].mxu0  ;;  %v2063_v34 = vpop.f32.mrb[64].mxu1 }
 0x187   :  { %1663 = vst [vmem:[%s3174_s3 + $0x48] sm:$0xff] %v1575_v59  ;;  %1681 = vst [vmem:[%s3174_s3 + $0xd8] sm:$0xff] %v1629_v6  ;;  %v1092_v0 = vadd.f32 %v1991_v8, %v2543_v35  ;;  %v1380_v41 = vadd.f32 %v2063_v34, %v2543_v35  ;;  %v1083_v55 = vpop.f32.mrb[65].mxu0  ;;  %v1371_v43 = vpop.f32.mrb[65].mxu1 }
 0x188   :  { %1661 = vst [vmem:[%s3174_s3 + $0x38] sm:$0xff] %v1569_v19  ;;  %1679 = vst [vmem:[%s3174_s3 + $0xc8] sm:$0xff] %v1623_v20  ;;  %v1084_v28 = vadd.f32 %v2543_v35, %v1083_v55  ;;  %v1372_v2 = vadd.f32 %v2543_v35, %v1371_v43  ;;  %v1992_v58 = vpop.f32.mrb[66].mxu0  ;;  %v2064_v14 = vpop.f32.mrb[66].mxu1 }
 0x189   :  { %v1468_v63 = vmax.f32 %v1092_v0, 0.0  ;;  %v1540_v40 = vmax.f32 %v1380_v41, 0.0  ;;  %v1095_v18 = vadd.f32 %v1992_v58, %v2543_v35  ;;  %v1383_v60 = vadd.f32 %v2064_v14, %v2543_v35  ;;  %v1086_v3 = vpop.f32.mrb[67].mxu0  ;;  %v1374_v16 = vpop.f32.mrb[67].mxu1 }
 0x18a   :  { %v1466_v30 = vmax.f32 %v1084_v28, 0.0  ;;  %v1538_v56 = vmax.f32 %v1372_v2, 0.0  ;;  %v1087_v39 = vadd.f32 %v2543_v35, %v1086_v3  ;;  %v1375_v15 = vadd.f32 %v2543_v35, %v1374_v16 }
 0x18b   :  { %v1584_v57 = vmax.f32 %v2966_v23, %v1468_v63  ;;  %v1638_v38 = vmax.f32 %v2969_v27, %v1540_v40  ;;  %v1469_v52 = vmax.f32 %v1095_v18, 0.0  ;;  %v1541_v36 = vmax.f32 %v1383_v60, 0.0 }
 0x18c   :  { %v1578_v13 = vmax.f32 %v2928_v32, %v1466_v30  ;;  %v1632_v62 = vmax.f32 %v2931_v31, %v1538_v56  ;;  %v1467_v46 = vmax.f32 %v1087_v39, 0.0  ;;  %v1539_v4 = vmax.f32 %v1375_v15, 0.0 }
 0x18d   :  { %1666 = vst [vmem:[%s3174_s3 + $0x60] sm:$0xff] %v1584_v57  ;;  %1684 = vst [vmem:[%s3174_s3 + $0xf0] sm:$0xff] %v1638_v38  ;;  %v1587_v35 = vmax.f32 %v2978_v47, %v1469_v52  ;;  %v1641_v23 = vmax.f32 %v2981_v10, %v1541_v36  ;;  %v2154_v47 = vld [vmem:[#allocation4] ss:$0 sm:$0xff] }
 0x18e   :  { %1664 = vst [vmem:[%s3174_s3 + $0x50] sm:$0xff] %v1578_v13  ;;  %1682 = vst [vmem:[%s3174_s3 + $0xe0] sm:$0xff] %v1632_v62  ;;  %v1581_v32 = vmax.f32 %v2940_v17, %v1467_v46  ;;  %v1635_v31 = vmax.f32 %v2943_v50, %v1539_v4  ;;  %v1995_v27 = vpop.f32.mrb[68].mxu0  ;;  %v2067_v29 = vpop.f32.mrb[68].mxu1 }
 0x18f   :  { %1667 = vst [vmem:[%s3174_s3 + $0x68] sm:$0xff] %v1587_v35  ;;  %1685 = vst [vmem:[%s3174_s3 + $0xf8] sm:$0xff] %v1641_v23  ;;  %v1108_v10 = vadd.f32 %v2154_v47, %v1995_v27  ;;  %v1396_v53 = vadd.f32 %v2154_v47, %v2067_v29  ;;  %v1099_v12 = vpop.f32.mrb[69].mxu0  ;;  %v1387_v1 = vpop.f32.mrb[69].mxu1 }
 0x190   :  { %1665 = vst [vmem:[%s3174_s3 + $0x58] sm:$0xff] %v1581_v32  ;;  %1683 = vst [vmem:[%s3174_s3 + $0xe8] sm:$0xff] %v1635_v31  ;;  %v1100_v17 = vadd.f32 %v2154_v47, %v1099_v12  ;;  %v1388_v50 = vadd.f32 %v2154_v47, %v1387_v1  ;;  %v1996_v48 = vpop.f32.mrb[70].mxu0  ;;  %v2068_v21 = vpop.f32.mrb[70].mxu1 }
 0x191   :  { %v1472_v11 = vmax.f32 %v1108_v10, 0.0  ;;  %v1544_v45 = vmax.f32 %v1396_v53, 0.0  ;;  %v1111_v24 = vadd.f32 %v2154_v47, %v1996_v48  ;;  %v1399_v37 = vadd.f32 %v2154_v47, %v2068_v21  ;;  %v1102_v5 = vpop.f32.mrb[71].mxu0  ;;  %v1390_v33 = vpop.f32.mrb[71].mxu1 }
 0x192   :  { %v1470_v26 = vmax.f32 %v1100_v17, 0.0  ;;  %v1542_v44 = vmax.f32 %v1388_v50, 0.0  ;;  %v1103_v7 = vadd.f32 %v2154_v47, %v1102_v5  ;;  %v1391_v59 = vadd.f32 %v2154_v47, %v1390_v33 }
 0x193   :  { %v1596_v6 = vmax.f32 %v2994_v22, %v1472_v11  ;;  %v1650_v19 = vmax.f32 %v2997_v42, %v1544_v45  ;;  %v1473_v20 = vmax.f32 %v1111_v24, 0.0  ;;  %v1545_v8 = vmax.f32 %v1399_v37, 0.0 }
 0x194   :  { %v1590_v34 = vmax.f32 %v2960_v51, %v1470_v26  ;;  %v1644_v0 = vmax.f32 %v2963_v54, %v1542_v44  ;;  %v1471_v41 = vmax.f32 %v1103_v7, 0.0  ;;  %v1543_v55 = vmax.f32 %v1391_v59, 0.0 }
 0x195   :  { %1670 = vst [vmem:[%s3174_s3 + $0x80] sm:$0xff] %v1596_v6  ;;  %1688 = vst [vmem:[%s3174_s3 + $0x110] sm:$0xff] %v1650_v19  ;;  %v1599_v22 = vmax.f32 %v3008_v25, %v1473_v20  ;;  %v1653_v42 = vmax.f32 %v3011_v49, %v1545_v8 }
 0x196   :  { %1668 = vst [vmem:[%s3174_s3 + $0x70] sm:$0xff] %v1590_v34  ;;  %1686 = vst [vmem:[%s3174_s3 + $0x100] sm:$0xff] %v1644_v0  ;;  %v1593_v51 = vmax.f32 %v2972_v9, %v1471_v41  ;;  %v1647_v54 = vmax.f32 %v2975_v61, %v1543_v55 }
 0x197   :  { %1671 = vst [vmem:[%s3174_s3 + $0x88] sm:$0xff] %v1599_v22  ;;  %1689 = vst [vmem:[%s3174_s3 + $0x118] sm:$0xff] %v1653_v42 }
 0x198   :  { %1669 = vst [vmem:[%s3174_s3 + $0x78] sm:$0xff] %v1593_v51  ;;  %1687 = vst [vmem:[%s3174_s3 + $0x108] sm:$0xff] %v1647_v54 }
 0x199   :  { %1694 = vsyncpa [#allocation3], 1 }
 0x19a   :  { %1695 = vsyncpa [#allocation5], 1 }

// kernel: encoder_cc_forward.5
= control target key start
LH: loop header
LB: loop body
LE: loop exit
PB: predicated region body
PF: predicated region fallthrough
CT: control target
= control target key end

     0   :  { %s4474_s1 = inlined_call_operand.vmem [shape: bf16[1152,128], index: 1, kind: input, shape index: {}]   ;;  %s4475_s0 = inlined_call_operand.vmem [shape: bf16[2,4,32,1152], index: 0, kind: input, shape index: {}]   ;;  %s4476_s2 = inlined_call_operand.vmem [shape: f32[1,128], index: 2, kind: input, shape index: {}]   ;;  %s4477_s3 = inlined_call_operand.vmem [shape: f32[2,32,128], index: 3, kind: output, shape index: {}]  }
   0x1   :  { %v3120_v0 = vld [vmem:[%s4474_s1 + $0x40] sm:$0xff]   ;;  %v3122_v2 = vld [vmem:[%s4474_s1 + $0x48] sm:$0xff]   ;;  %v3124_v4 = vld [vmem:[%s4474_s1 + $0x50] sm:$0xff]  }
   0x2   :  { %v3121_v1 = vld [vmem:[%s4474_s1] sm:$0xff]   ;;  %2584 = vmatprep.subr.bf16.mxu0 %v3120_v0  ;;  %3104 = vmatprep.subr.bf16.mxu1 %v3120_v0  ;;  %v3123_v3 = vld [vmem:[%s4474_s1 + $0x8] sm:$0xff]   ;;  %v3125_v5 = vld [vmem:[%s4474_s1 + $0x10] sm:$0xff]  }
   0x3   :  { %2585 = vmatpush3.bf16.msra.mxu0 %v3121_v1  ;;  %3112 = vmatpush3.bf16.msra.mxu1 %v3121_v1  ;;  %v3126_v6 = vld [vmem:[%s4474_s1 + $0x58] sm:$0xff]   ;;  %v3128_v8 = vld [vmem:[%s4474_s1 + $0x60] sm:$0xff]   ;;  %v3130_v10 = vld [vmem:[%s4474_s1 + $0x68] sm:$0xff]  }
   0x4   :  { %2586 = vmatprep.subr.bf16.mxu0 %v3122_v2  ;;  %3105 = vmatprep.subr.bf16.mxu1 %v3122_v2  ;;  %v3127_v7 = vld [vmem:[%s4474_s1 + $0x18] sm:$0xff]   ;;  %v3129_v9 = vld [vmem:[%s4474_s1 + $0x20] sm:$0xff]   ;;  %v3131_v13 = vld [vmem:[%s4474_s1 + $0x28] sm:$0xff]  }
   0x5   :  { %v3138_v11 = vld [vmem:[%s4475_s0 + $0x4] ss:$36 sps:$4 sm:$0xff]   ;;  %v3132_v14 = vld [vmem:[%s4474_s1 + $0x70] sm:$0xff]   ;;  %v3134_v16 = vld [vmem:[%s4474_s1 + $0x78] sm:$0xff]  }
   0x6   :  { %v3141_v12 = vld [vmem:[%s4475_s0 + $0x364] ss:$36 sps:$4 sm:$0xff]   ;;  %1526 = vmatprep.mubr.bf16.mxu0 %v3138_v11  ;;  %v3133_v15 = vld [vmem:[%s4474_s1 + $0x30] sm:$0xff]   ;;  %v3135_v17 = vld [vmem:[%s4474_s1 + $0x38] sm:$0xff]  }
   0x7   :  { %2587 = vmatpush3.bf16.msra.mxu0 %v3123_v3  ;;  %3113 = vmatpush3.bf16.msra.mxu1 %v3123_v3  ;;  %v3142_v18 = vld [vmem:[%s4474_s1 + $0xc0] sm:$0xff]   ;;  %v3144_v23 = vld [vmem:[%s4474_s1 + $0xc8] sm:$0xff]   ;;  %v3154_v31 = vld [vmem:[%s4474_s1 + $0xd0] sm:$0xff]  }
   0x8   :  { %2588 = vmatprep.subr.bf16.mxu0 %v3124_v4  ;;  %3106 = vmatprep.subr.bf16.mxu1 %v3124_v4  ;;  %v3136_v19 = vld [vmem:[%s4475_s0] ss:$36 sps:$4 sm:$0xff]   ;;  %v3148_v25 = vld [vmem:[%s4475_s0 + $0x4c] ss:$36 sps:$4 sm:$0xff]   ;;  %v3156_v34 = vld [vmem:[%s4474_s1 + $0xd8] sm:$0xff]  }
   0x9   :  { %1622 = vmatprep.mubr.bf16.mxu1 %v3141_v12  ;;  %v3139_v20 = vld [vmem:[%s4475_s0 + $0x360] ss:$36 sps:$4 sm:$0xff]   ;;  %v3150_v26 = vld [vmem:[%s4475_s0 + $0x3ac] ss:$36 sps:$4 sm:$0xff]   ;;  %v3158_v35 = vld [vmem:[%s4475_s0 + $0x94] ss:$36 sps:$4 sm:$0xff]  }
   0xa   :  { %v3145_v21 = vld [vmem:[%s4474_s1 + $0x140] sm:$0xff]   ;;  %v3146_v27 = vld [vmem:[%s4474_s1 + $0x88] sm:$0xff]   ;;  %v3155_v32 = vld [vmem:[%s4474_s1 + $0x90] sm:$0xff]  }
   0xb   :  { %2589 = vmatpush3.bf16.msra.mxu0 %v3125_v5  ;;  %3114 = vmatpush3.bf16.msra.mxu1 %v3125_v5  ;;  %v3143_v22 = vld [vmem:[%s4474_s1 + $0x80] sm:$0xff]   ;;  %v3165_v28 = vld [vmem:[%s4474_s1 + $0x148] sm:$0xff]   ;;  %v3160_v36 = vld [vmem:[%s4475_s0 + $0x3f4] ss:$36 sps:$4 sm:$0xff]  }
   0xc   :  { %2590 = vmatprep.subr.bf16.mxu0 %v3126_v6  ;;  %3107 = vmatprep.subr.bf16.mxu1 %v3126_v6  ;;  %v3147_v24 = vld [vmem:[%s4474_s1 + $0x100] sm:$0xff]   ;;  %v3152_v29 = vld [vmem:[%s4475_s0 + $0x48] ss:$36 sps:$4 sm:$0xff]   ;;  %v3157_v37 = vld [vmem:[%s4474_s1 + $0x98] sm:$0xff]  }
   0xd   :  { %v3153_v30 = vld [vmem:[%s4475_s0 + $0x3a8] ss:$36 sps:$4 sm:$0xff]   ;;  %v3162_v38 = vld [vmem:[%s4475_s0 + $0x90] ss:$36 sps:$4 sm:$0xff]   ;;  %v3164_v40 = vld [vmem:[%s4474_s1 + $0xe0] sm:$0xff]  }
   0xe   :  { %v3167_v33 = vld [vmem:[%s4474_s1 + $0x108] sm:$0xff]   ;;  %v3163_v39 = vld [vmem:[%s4475_s0 + $0x3f0] ss:$36 sps:$4 sm:$0xff]   ;;  %v3166_v41 = vld [vmem:[%s4474_s1 + $0xa0] sm:$0xff]  }
   0xf   :  { %2591 = vmatpush3.bf16.msra.mxu0 %v3127_v7  ;;  %3115 = vmatpush3.bf16.msra.mxu1 %v3127_v7  ;;  %v3168_v42 = vld [vmem:[%s4474_s1 + $0xe8] sm:$0xff]   ;;  %v3179_v43 = vld [vmem:[%s4474_s1 + $0x150] sm:$0xff]   ;;  %v3170_v44 = vld [vmem:[%s4475_s0 + $0xdc] ss:$36 sps:$4 sm:$0xff]  }
  0x10   :  { %2592 = vmatprep.subr.bf16.mxu0 %v3128_v8  ;;  %3108 = vmatprep.subr.bf16.mxu1 %v3128_v8  ;;  %v3172_v45 = vld [vmem:[%s4475_s0 + $0x43c] ss:$36 sps:$4 sm:$0xff]   ;;  %v3181_v46 = vld [vmem:[%s4474_s1 + $0x110] sm:$0xff]   ;;  %v3169_v47 = vld [vmem:[%s4474_s1 + $0xa8] sm:$0xff]  }
  0x11   :  { %v3176_v48 = vld [vmem:[%s4474_s1 + $0xf0] sm:$0xff]   ;;  %v3174_v49 = vld [vmem:[%s4475_s0 + $0xd8] ss:$36 sps:$4 sm:$0xff]   ;;  %v3182_v53 = vld [vmem:[%s4475_s0 + $0x124] ss:$36 sps:$4 sm:$0xff]  }
  0x12   :  { %v3175_v50 = vld [vmem:[%s4475_s0 + $0x438] ss:$36 sps:$4 sm:$0xff]   ;;  %v3177_v51 = vld [vmem:[%s4474_s1 + $0xb0] sm:$0xff]   ;;  %v3184_v58 = vld [vmem:[%s4475_s0 + $0x8] ss:$36 sps:$4 sm:$0xff]  }
  0x13   :  { %2593 = vmatpush3.bf16.msra.mxu0 %v3129_v9  ;;  %3116 = vmatpush3.bf16.msra.mxu1 %v3129_v9  ;;  %v3178_v52 = vld [vmem:[%s4474_s1 + $0xf8] sm:$0xff]   ;;  %v3186_v54 = vld [vmem:[%s4475_s0 + $0xc] ss:$36 sps:$4 sm:$0xff]   ;;  %v3187_v59 = vld [vmem:[%s4475_s0 + $0x120] ss:$36 sps:$4 sm:$0xff]  }
  0x14   :  { %2594 = vmatprep.subr.bf16.mxu0 %v3130_v10  ;;  %3109 = vmatprep.subr.bf16.mxu1 %v3130_v10  ;;  %v3196_v55 = vld [vmem:[%s4474_s1 + $0x158] sm:$0xff]   ;;  %v3188_v60 = vld [vmem:[%s4474_s1 + $0x1c0] sm:$0xff]   ;;  %v3190_v62 = vld [vmem:[%s4475_s0 + $0x16c] ss:$36 sps:$4 sm:$0xff]  }
  0x15   :  { %v3197_v56 = vld [vmem:[%s4474_s1 + $0x118] sm:$0xff]   ;;  %v3189_v61 = vld [vmem:[%s4474_s1 + $0x180] sm:$0xff]   ;;  %v3204_v1 = vld [vmem:[%s4474_s1 + $0x1c8] sm:$0xff]  }
  0x16   :  { %v3180_v57 = vld [vmem:[%s4474_s1 + $0xb8] sm:$0xff]   ;;  %v3206_v0 = vld [vmem:[%s4474_s1 + $0x160] sm:$0xff]   ;;  %v3205_v3 = vld [vmem:[%s4474_s1 + $0x188] sm:$0xff]  }
  0x17   :  { %2595 = vmatpush3.bf16.msra.mxu0 %v3131_v13  ;;  %3117 = vmatpush3.bf16.msra.mxu1 %v3131_v13  ;;  %v3192_v63 = vld [vmem:[%s4475_s0 + $0x54] ss:$36 sps:$4 sm:$0xff]   ;;  %v3207_v2 = vld [vmem:[%s4474_s1 + $0x120] sm:$0xff]   ;;  %v3194_v4 = vld [vmem:[%s4475_s0 + $0x168] ss:$36 sps:$4 sm:$0xff]  }
  0x18   :  { %2596 = vmatprep.subr.bf16.mxu0 %v3132_v14  ;;  %3110 = vmatprep.subr.bf16.mxu1 %v3132_v14  ;;  %v3195_v5 = vld [vmem:[%s4475_s0 + $0x50] ss:$36 sps:$4 sm:$0xff]   ;;  %v3200_v7 = vld [vmem:[%s4475_s0 + $0x9c] ss:$36 sps:$4 sm:$0xff]   ;;  %v3220_v8 = vld [vmem:[%s4474_s1 + $0x168] sm:$0xff]  }
  0x19   :  { %v3198_v6 = vld [vmem:[%s4475_s0 + $0x1b4] ss:$36 sps:$4 sm:$0xff]   ;;  %v3222_v10 = vld [vmem:[%s4474_s1 + $0x128] sm:$0xff]   ;;  %v3208_v14 = vld [vmem:[%s4475_s0 + $0x1fc] ss:$36 sps:$4 sm:$0xff]  }
  0x1a   :  { %v3221_v9 = vld [vmem:[%s4474_s1 + $0x1d0] sm:$0xff]   ;;  %v3203_v13 = vld [vmem:[%s4475_s0 + $0x98] ss:$36 sps:$4 sm:$0xff]  }
  0x1b   :  { %2597 = vmatpush3.bf16.msra.mxu0 %v3133_v15  ;;  %3118 = vmatpush3.bf16.msra.mxu1 %v3133_v15  ;;  %v3223_v11 = vld [vmem:[%s4474_s1 + $0x190] sm:$0xff]  }
  0x1c   :  { %2598 = vmatprep.subr.bf16.mxu0 %v3134_v16  ;;  %3111 = vmatprep.subr.bf16.mxu1 %v3134_v16  ;;  %v3202_v12 = vld [vmem:[%s4475_s0 + $0x1b0] ss:$36 sps:$4 sm:$0xff]  }
  0x1d   :  { %v3230_v15 = vld [vmem:[%s4474_s1 + $0x170] sm:$0xff]  }
  0x1e   :  { %v3231_v16 = vld [vmem:[%s4474_s1 + $0x130] sm:$0xff]  }
  0x1f   :  { %2599 = vmatpush3.bf16.msra.mxu0 %v3135_v17  ;;  %3119 = vmatpush3.bf16.msra.mxu1 %v3135_v17  ;;  %v3210_v17 = vld [vmem:[%s4475_s0 + $0xe4] ss:$36 sps:$4 sm:$0xff]  }
  0x20   :  { %2696 = vmatprep.subr.bf16.mxu1 %v3142_v18  ;;  %2808 = vmatprep.subr.bf16.mxu0 %v3145_v21  ;;  %v3238_v18 = vld [vmem:[%s4474_s1 + $0x1d8] sm:$0xff]   ;;  %v3213_v21 = vld [vmem:[%s4475_s0 + $0xe0] ss:$36 sps:$4 sm:$0xff]  }
  0x22   :  { %1527 = vmatmul.mubr.bf16.vlgmr.msra.gmra.mrb[0].mxu0 %v3136_v19  ;;  %1623 = vmatmul.mubr.bf16.vlgmr.msra.gmra.mrb[0].mxu1 %v3139_v20  ;;  %v3239_v19 = vld [vmem:[%s4474_s1 + $0x198] sm:$0xff]  }
  0x23   :  { %2697 = vmatpush3.bf16.msra.mxu1 %v3143_v22  ;;  %2809 = vmatpush3.bf16.msra.mxu0 %v3147_v24  ;;  %v3212_v20 = vld [vmem:[%s4475_s0 + $0x1f8] ss:$36 sps:$4 sm:$0xff]   ;;  %v3214_v22 = vld [vmem:[%s4475_s0 + $0x244] ss:$36 sps:$4 sm:$0xff]  }
  0x24   :  { %2698 = vmatprep.subr.bf16.mxu1 %v3144_v23  ;;  %1534 = vmatprep.mubr.bf16.mxu0 %v3148_v25  ;;  %v3216_v23 = vld [vmem:[%s4475_s0 + $0x12c] ss:$36 sps:$4 sm:$0xff]   ;;  %v3246_v24 = vld [vmem:[%s4474_s1 + $0x178] sm:$0xff]  }
  0x25   :  { %1630 = vmatprep.mubr.bf16.mxu1 %v3150_v26  ;;  %2810 = vmatprep.subr.bf16.mxu0 %v3165_v28  ;;  %v3247_v25 = vld [vmem:[%s4474_s1 + $0x138] sm:$0xff]   ;;  %v3254_v26 = vld [vmem:[%s4474_s1 + $0x1e0] sm:$0xff]  }
  0x26   :  { %v3255_v28 = vld [vmem:[%s4474_s1 + $0x1a0] sm:$0xff]  }
  0x27   :  { %2699 = vmatpush3.bf16.msra.mxu1 %v3146_v27  ;;  %2811 = vmatpush3.bf16.msra.mxu0 %v3167_v33  ;;  %v3218_v27 = vld [vmem:[%s4475_s0 + $0x240] ss:$36 sps:$4 sm:$0xff]   ;;  %v3269_v33 = vld [vmem:[%s4474_s1 + $0x1e8] sm:$0xff]  }
  0x28   :  { %2700 = vmatprep.subr.bf16.mxu1 %v3154_v31  ;;  %2812 = vmatprep.subr.bf16.mxu0 %v3179_v43  ;;  %v3224_v31 = vld [vmem:[%s4475_s0 + $0x28c] ss:$36 sps:$4 sm:$0xff]   ;;  %v3240_v43 = vld [vmem:[%s4475_s0 + $0x31c] ss:$36 sps:$4 sm:$0xff]  }
  0x2a   :  { %1535 = vmatmul.mubr.bf16.gmra.mrb[4].mxu0 %v3152_v29  ;;  %1631 = vmatmul.mubr.bf16.gmra.mrb[4].mxu1 %v3153_v30  ;;  %v3256_v29 = vld [vmem:[%s4474_s1 + $0x200] sm:$0xff]   ;;  %v3219_v30 = vld [vmem:[%s4475_s0 + $0x128] ss:$36 sps:$4 sm:$0xff]  }
  0x2b   :  { %2701 = vmatpush3.bf16.msra.mxu1 %v3155_v32  ;;  %1542 = vmatprep.mubr.bf16.mxu0 %v3158_v35  ;;  %v3226_v32 = vld [vmem:[%s4475_s0 + $0x174] ss:$36 sps:$4 sm:$0xff]   ;;  %v3270_v35 = vld [vmem:[%s4474_s1 + $0x1a8] sm:$0xff]  }
  0x2c   :  { %2702 = vmatprep.subr.bf16.mxu1 %v3156_v34  ;;  %1638 = vmatprep.mubr.bf16.mxu1 %v3160_v36  ;;  %v3228_v34 = vld [vmem:[%s4475_s0 + $0x288] ss:$36 sps:$4 sm:$0xff]   ;;  %v3229_v36 = vld [vmem:[%s4475_s0 + $0x170] ss:$36 sps:$4 sm:$0xff]  }
  0x2d   :  { %2813 = vmatpush3.bf16.msra.mxu0 %v3181_v46  ;;  %v3245_v46 = vld [vmem:[%s4475_s0 + $0x200] ss:$36 sps:$4 sm:$0xff]  }
  0x2e   :  { %2814 = vmatprep.subr.bf16.mxu0 %v3196_v55  ;;  %v3271_v55 = vld [vmem:[%s4474_s1 + $0x208] sm:$0xff]  }
  0x2f   :  { %2703 = vmatpush3.bf16.msra.mxu1 %v3157_v37  ;;  %v3232_v37 = vld [vmem:[%s4475_s0 + $0x2d4] ss:$36 sps:$4 sm:$0xff]  }
  0x30   :  { %2704 = vmatprep.subr.bf16.mxu1 %v3164_v40  ;;  %v3237_v40 = vld [vmem:[%s4475_s0 + $0x1b8] ss:$36 sps:$4 sm:$0xff]  }
  0x31   :  { %2815 = vmatpush3.bf16.msra.mxu0 %v3197_v56  ;;  %v3286_v56 = vld [vmem:[%s4474_s1 + $0x210] sm:$0xff]  }
  0x32   :  { %1543 = vmatmul.mubr.bf16.gmra.mrb[8].mxu0 %v3162_v38  ;;  %1639 = vmatmul.mubr.bf16.gmra.mrb[8].mxu1 %v3163_v39  ;;  %v3234_v38 = vld [vmem:[%s4475_s0 + $0x1bc] ss:$36 sps:$4 sm:$0xff]   ;;  %v3236_v39 = vld [vmem:[%s4475_s0 + $0x2d0] ss:$36 sps:$4 sm:$0xff]  }
  0x33   :  { %2705 = vmatpush3.bf16.msra.mxu1 %v3166_v41  ;;  %1550 = vmatprep.mubr.bf16.mxu0 %v3170_v44  ;;  %v3284_v41 = vld [vmem:[%s4474_s1 + $0x1f0] sm:$0xff]   ;;  %v3242_v44 = vld [vmem:[%s4475_s0 + $0x204] ss:$36 sps:$4 sm:$0xff]  }
  0x34   :  { %2706 = vmatprep.subr.bf16.mxu1 %v3168_v42  ;;  %1646 = vmatprep.mubr.bf16.mxu1 %v3172_v45  ;;  %v3285_v42 = vld [vmem:[%s4474_s1 + $0x1b0] sm:$0xff]   ;;  %v3244_v45 = vld [vmem:[%s4475_s0 + $0x318] ss:$36 sps:$4 sm:$0xff]  }
  0x35   :  { %2816 = vmatprep.subr.bf16.mxu0 %v3206_v0  ;;  %v3268_v0 = vld [vmem:[%s4475_s0 + $0xa0] ss:$36 sps:$4 sm:$0xff]  }
  0x36   :  { %2817 = vmatpush3.bf16.msra.mxu0 %v3207_v2  ;;  %v3274_v2 = vld [vmem:[%s4475_s0 + $0xec] ss:$36 sps:$4 sm:$0xff]  }
  0x37   :  { %2707 = vmatpush3.bf16.msra.mxu1 %v3169_v47  ;;  %2818 = vmatprep.subr.bf16.mxu0 %v3220_v8  ;;  %v3299_v47 = vld [vmem:[%s4474_s1 + $0x1f8] sm:$0xff]  }
  0x38   :  { %2708 = vmatprep.subr.bf16.mxu1 %v3176_v48  ;;  %v3300_v48 = vld [vmem:[%s4474_s1 + $0x1b8] sm:$0xff]  }
  0x39   :  { %v3280_v8 = vld [vmem:[%s4475_s0 + $0x134] ss:$36 sps:$4 sm:$0xff]  }
  0x3a   :  { %1551 = vmatmul.mubr.bf16.gmra.mrb[12].mxu0 %v3174_v49  ;;  %1647 = vmatmul.mubr.bf16.gmra.mrb[12].mxu1 %v3175_v50  ;;  %v3248_v49 = vld [vmem:[%s4475_s0 + $0x24c] ss:$36 sps:$4 sm:$0xff]   ;;  %v3252_v50 = vld [vmem:[%s4475_s0 + $0x14] ss:$36 sps:$4 sm:$0xff]  }
  0x3b   :  { %2709 = vmatpush3.bf16.msra.mxu1 %v3177_v51  ;;  %1558 = vmatprep.mubr.bf16.mxu0 %v3182_v53  ;;  %v3250_v51 = vld [vmem:[%s4475_s0 + $0x10] ss:$36 sps:$4 sm:$0xff]  }
  0x3c   :  { %2710 = vmatprep.subr.bf16.mxu1 %v3178_v52  ;;  %1687 = vmatprep.mubr.bf16.mxu1 %v3186_v54  ;;  %v3253_v52 = vld [vmem:[%s4475_s0 + $0x248] ss:$36 sps:$4 sm:$0xff]   ;;  %v3257_v53 = vld [vmem:[%s4475_s0 + $0x294] ss:$36 sps:$4 sm:$0xff]   ;;  %v3259_v54 = vld [vmem:[%s4475_s0 + $0x5c] ss:$36 sps:$4 sm:$0xff]  }
  0x3d   :  { %2819 = vmatpush3.bf16.msra.mxu0 %v3222_v10  ;;  %v3282_v10 = vld [vmem:[%s4475_s0 + $0x368] ss:$36 sps:$4 sm:$0xff]  }
  0x3e   :  { %2820 = vmatprep.subr.bf16.mxu0 %v3230_v15  ;;  %v3292_v15 = vld [vmem:[%s4475_s0 + $0x178] ss:$36 sps:$4 sm:$0xff]  }
  0x3f   :  { %2711 = vmatpush3.bf16.msra.mxu1 %v3180_v57  ;;  %v3261_v57 = vld [vmem:[%s4475_s0 + $0x290] ss:$36 sps:$4 sm:$0xff]  }
  0x40   :  { %2920 = vmatprep.subr.bf16.mxu1 %v3188_v60  ;;  %v3265_v60 = vld [vmem:[%s4475_s0 + $0xa4] ss:$36 sps:$4 sm:$0xff]  }
  0x41   :  { %2821 = vmatpush3.bf16.msra.mxu0 %v3231_v16  ;;  %v3293_v16 = vld [vmem:[%s4475_s0 + $0x3fc] ss:$36 sps:$4 sm:$0xff]  }
  0x42   :  { %1559 = vmatmul.mubr.bf16.gmra.mrb[16].mxu0 %v3187_v59  ;;  %1688 = vmatmul.mubr.bf16.vlgmr.msra.gmra.mrb[16].mxu1 %v3184_v58  ;;  %v3262_v58 = vld [vmem:[%s4475_s0 + $0x58] ss:$36 sps:$4 sm:$0xff]  }
  0x43   :  { %2921 = vmatpush3.bf16.msra.mxu1 %v3189_v61  ;;  %1566 = vmatprep.mubr.bf16.mxu0 %v3190_v62  ;;  %v3263_v59 = vld [vmem:[%s4475_s0 + $0x2dc] ss:$36 sps:$4 sm:$0xff]  }
  0x44   :  { %1695 = vmatprep.mubr.bf16.mxu1 %v3192_v63  ;;  %2922 = vmatprep.subr.bf16.mxu1 %v3204_v1  ;;  %v3301_v61 = vld [vmem:[%s4474_s1 + $0x218] sm:$0xff]   ;;  %v3314_v62 = vld [vmem:[%s4474_s1 + $0x220] sm:$0xff]  }
  0x45   :  { %2822 = vmatprep.subr.bf16.mxu0 %v3246_v24  ;;  %v3267_v63 = vld [vmem:[%s4475_s0 + $0x2d8] ss:$36 sps:$4 sm:$0xff]   ;;  %v3272_v1 = vld [vmem:[%s4475_s0 + $0x324] ss:$36 sps:$4 sm:$0xff]  }
  0x46   :  { %2823 = vmatpush3.bf16.msra.mxu0 %v3247_v25  ;;  %v3308_v24 = vld [vmem:[%s4475_s0 + $0x254] ss:$36 sps:$4 sm:$0xff]   ;;  %v3312_v25 = vld [vmem:[%s4475_s0 + $0x1c] ss:$36 sps:$4 sm:$0xff]  }
  0x47   :  { %2923 = vmatpush3.bf16.msra.mxu1 %v3205_v3  ;;  %3056 = vmatprep.subr.bf16.mxu0 %v3256_v29  ;;  %v3327_v3 = vld [vmem:[%s4474_s1 + $0x228] sm:$0xff]  }
  0x48   :  { %2924 = vmatprep.subr.bf16.mxu1 %v3221_v9  ;;  %v3353_v9 = vld [vmem:[%s4474_s1 + $0x238] sm:$0xff]  }
  0x4a   :  { %1567 = vmatmul.mubr.bf16.gmra.mrb[20].mxu0 %v3194_v4  ;;  %1696 = vmatmul.mubr.bf16.gmra.mrb[20].mxu1 %v3195_v5  ;;  %v3276_v4 = vld [vmem:[%s4475_s0 + $0x320] ss:$36 sps:$4 sm:$0xff]   ;;  %v3277_v5 = vld [vmem:[%s4475_s0 + $0xe8] ss:$36 sps:$4 sm:$0xff]  }
  0x4b   :  { %1574 = vmatprep.mubr.bf16.mxu0 %v3198_v6  ;;  %1703 = vmatprep.mubr.bf16.mxu1 %v3200_v7  ;;  %v3340_v6 = vld [vmem:[%s4474_s1 + $0x230] sm:$0xff]  }
  0x4c   :  { %2925 = vmatpush3.bf16.msra.mxu1 %v3223_v11  ;;  %v3278_v7 = vld [vmem:[%s4475_s0 + $0x36c] ss:$36 sps:$4 sm:$0xff]  }
  0x4d   :  { %2926 = vmatprep.subr.bf16.mxu1 %v3238_v18  ;;  %v3283_v11 = vld [vmem:[%s4475_s0 + $0x130] ss:$36 sps:$4 sm:$0xff]   ;;  %v3297_v18 = vld [vmem:[%s4475_s0 + $0x3f8] ss:$36 sps:$4 sm:$0xff]  }
  0x50   :  { %2927 = vmatpush3.bf16.msra.mxu1 %v3239_v19  ;;  %v3298_v19 = vld [vmem:[%s4475_s0 + $0x1c0] ss:$36 sps:$4 sm:$0xff]  }
  0x51   :  { %2928 = vmatprep.subr.bf16.mxu1 %v3254_v26  ;;  %v3310_v26 = vld [vmem:[%s4475_s0 + $0x18] ss:$36 sps:$4 sm:$0xff]  }
  0x52   :  { %1575 = vmatmul.mubr.bf16.gmra.mrb[24].mxu0 %v3202_v12  ;;  %1704 = vmatmul.mubr.bf16.gmra.mrb[24].mxu1 %v3203_v13  ;;  %v3287_v12 = vld [vmem:[%s4475_s0 + $0x3b4] ss:$36 sps:$4 sm:$0xff]   ;;  %v3289_v13 = vld [vmem:[%s4475_s0 + $0x17c] ss:$36 sps:$4 sm:$0xff]  }
  0x53   :  { %1582 = vmatprep.mubr.bf16.mxu0 %v3208_v14  ;;  %1711 = vmatprep.mubr.bf16.mxu1 %v3210_v17  ;;  %v3291_v14 = vld [vmem:[%s4475_s0 + $0x3b0] ss:$36 sps:$4 sm:$0xff]   ;;  %v3295_v17 = vld [vmem:[%s4475_s0 + $0x1c4] ss:$36 sps:$4 sm:$0xff]  }
  0x54   :  { %2929 = vmatpush3.bf16.msra.mxu1 %v3255_v28  ;;  %v3315_v28 = vld [vmem:[%s4475_s0 + $0x29c] ss:$36 sps:$4 sm:$0xff]  }
  0x55   :  { %2930 = vmatprep.subr.bf16.mxu1 %v3269_v33  ;;  %v3323_v33 = vld [vmem:[%s4475_s0 + $0xac] ss:$36 sps:$4 sm:$0xff]  }
  0x58   :  { %2931 = vmatpush3.bf16.msra.mxu1 %v3270_v35  ;;  %v3326_v35 = vld [vmem:[%s4475_s0 + $0xa8] ss:$36 sps:$4 sm:$0xff]  }
  0x59   :  { %2932 = vmatprep.subr.bf16.mxu1 %v3284_v41  ;;  %v3336_v41 = vld [vmem:[%s4475_s0 + $0x13c] ss:$36 sps:$4 sm:$0xff]  }
  0x5a   :  { %1583 = vmatmul.mubr.bf16.gmra.mrb[28].mxu0 %v3212_v20  ;;  %1712 = vmatmul.mubr.bf16.gmra.mrb[28].mxu1 %v3213_v21  ;;  %v3302_v20 = vld [vmem:[%s4475_s0 + $0x444] ss:$36 sps:$4 sm:$0xff]   ;;  %v3304_v21 = vld [vmem:[%s4475_s0 + $0x20c] ss:$36 sps:$4 sm:$0xff]  }
  0x5b   :  { %1590 = vmatprep.mubr.bf16.mxu0 %v3214_v22  ;;  %1719 = vmatprep.mubr.bf16.mxu1 %v3216_v23  ;;  %v3306_v22 = vld [vmem:[%s4475_s0 + $0x440] ss:$36 sps:$4 sm:$0xff]   ;;  %v3307_v23 = vld [vmem:[%s4475_s0 + $0x208] ss:$36 sps:$4 sm:$0xff]  }
  0x5c   :  { %2933 = vmatpush3.bf16.msra.mxu1 %v3285_v42  ;;  %v3338_v42 = vld [vmem:[%s4475_s0 + $0x370] ss:$36 sps:$4 sm:$0xff]  }
  0x5d   :  { %2934 = vmatprep.subr.bf16.mxu1 %v3299_v47  ;;  %v3346_v47 = vld [vmem:[%s4475_s0 + $0x180] ss:$36 sps:$4 sm:$0xff]  }
  0x60   :  { %2935 = vmatpush3.bf16.msra.mxu1 %v3300_v48  ;;  %v3347_v48 = vld [vmem:[%s4475_s0 + $0x404] ss:$36 sps:$4 sm:$0xff]  }
  0x62   :  { %1591 = vmatmul.mubr.bf16.gmra.mrb[32].mxu0 %v3218_v27  ;;  %1720 = vmatmul.mubr.bf16.gmra.mrb[32].mxu1 %v3219_v30  ;;  %v3313_v27 = vld [vmem:[%s4475_s0 + $0x250] ss:$36 sps:$4 sm:$0xff]   ;;  %v3319_v30 = vld [vmem:[%s4475_s0 + $0x298] ss:$36 sps:$4 sm:$0xff]  }
  0x63   :  { %1598 = vmatprep.mubr.bf16.mxu0 %v3224_v31  ;;  %1727 = vmatprep.mubr.bf16.mxu1 %v3226_v32  ;;  %v3320_v31 = vld [vmem:[%s4475_s0 + $0x60] ss:$36 sps:$4 sm:$0xff]  }
  0x64   :  { %v3321_v32 = vld [vmem:[%s4475_s0 + $0x2e4] ss:$36 sps:$4 sm:$0xff]  }
  0x6a   :  { %1599 = vmatmul.mubr.bf16.gmra.mrb[36].mxu0 %v3228_v34  ;;  %1728 = vmatmul.mubr.bf16.gmra.mrb[36].mxu1 %v3229_v36  ;;  %v3325_v34 = vld [vmem:[%s4475_s0 + $0x2e0] ss:$36 sps:$4 sm:$0xff]   ;;  %v3328_v36 = vld [vmem:[%s4475_s0 + $0x32c] ss:$36 sps:$4 sm:$0xff]  }
  0x6b   :  { %1606 = vmatprep.mubr.bf16.mxu0 %v3232_v37  ;;  %1735 = vmatprep.mubr.bf16.mxu1 %v3234_v38  ;;  %v3330_v37 = vld [vmem:[%s4475_s0 + $0xf4] ss:$36 sps:$4 sm:$0xff]   ;;  %v3332_v38 = vld [vmem:[%s4475_s0 + $0x328] ss:$36 sps:$4 sm:$0xff]  }
  0x72   :  { %1607 = vmatmul.mubr.bf16.gmra.mrb[40].mxu0 %v3236_v39  ;;  %1736 = vmatmul.mubr.bf16.gmra.mrb[40].mxu1 %v3237_v40  ;;  %v3333_v39 = vld [vmem:[%s4475_s0 + $0xf0] ss:$36 sps:$4 sm:$0xff]  }
  0x73   :  { %1614 = vmatprep.mubr.bf16.mxu0 %v3240_v43  ;;  %1743 = vmatprep.mubr.bf16.mxu1 %v3242_v44  ;;  %v3334_v40 = vld [vmem:[%s4475_s0 + $0x374] ss:$36 sps:$4 sm:$0xff]   ;;  %v3341_v44 = vld [vmem:[%s4475_s0 + $0x3bc] ss:$36 sps:$4 sm:$0xff]  }
  0x74   :  { %v3339_v43 = vld [vmem:[%s4475_s0 + $0x138] ss:$36 sps:$4 sm:$0xff]  }
  0x7a   :  { %1615 = vmatmul.mubr.bf16.gmra.mrb[44].mxu0 %v3244_v45  ;;  %1744 = vmatmul.mubr.bf16.gmra.mrb[44].mxu1 %v3245_v46  ;;  %v3343_v45 = vld [vmem:[%s4475_s0 + $0x184] ss:$36 sps:$4 sm:$0xff]   ;;  %v3345_v46 = vld [vmem:[%s4475_s0 + $0x3b8] ss:$36 sps:$4 sm:$0xff]  }
  0x7b   :  { %1751 = vmatprep.mubr.bf16.mxu1 %v3248_v49  ;;  %1848 = vmatprep.mubr.bf16.mxu0 %v3252_v50  ;;  %v3349_v49 = vld [vmem:[%s4475_s0 + $0x1cc] ss:$36 sps:$4 sm:$0xff]   ;;  %v3351_v50 = vld [vmem:[%s4475_s0 + $0x400] ss:$36 sps:$4 sm:$0xff]  }
  0x82   :  { %1752 = vmatmul.mubr.bf16.gmra.mrb[48].mxu1 %v3253_v52  ;;  %1849 = vmatmul.mubr.bf16.vlgmr.msra.gmra.mrb[48].mxu0 %v3250_v51  ;;  %v3352_v51 = vld [vmem:[%s4475_s0 + $0x1c8] ss:$36 sps:$4 sm:$0xff]  }
  0x83   :  { %3057 = vmatpush3.bf16.msra.mxu0 %v3256_v29  ;;  %1759 = vmatprep.mubr.bf16.mxu1 %v3257_v53  ;;  %v3317_v29 = vld [vmem:[%s4475_s0 + $0x64] ss:$36 sps:$4 sm:$0xff]   ;;  %v3354_v52 = vld [vmem:[%s4475_s0 + $0x44c] ss:$36 sps:$4 sm:$0xff]   ;;  %v3356_v53 = vld [vmem:[%s4475_s0 + $0x214] ss:$36 sps:$4 sm:$0xff]  }
  0x84   :  { %1856 = vmatprep.mubr.bf16.mxu0 %v3259_v54  ;;  %3058 = vmatprep.subr.bf16.mxu0 %v3271_v55 }
  0x87   :  { %3059 = vmatpush3.bf16.msra.mxu0 %v3271_v55 }
  0x88   :  { %3060 = vmatprep.subr.bf16.mxu0 %v3286_v56 }
  0x8a   :  { %1760 = vmatmul.mubr.bf16.gmra.mrb[52].mxu1 %v3261_v57  ;;  %1857 = vmatmul.mubr.bf16.gmra.mrb[52].mxu0 %v3262_v58  ;;  %v3358_v58 = vld [vmem:[%s4475_s0 + $0x448] ss:$36 sps:$4 sm:$0xff]  }
  0x8b   :  { %1767 = vmatprep.mubr.bf16.mxu1 %v3263_v59  ;;  %1864 = vmatprep.mubr.bf16.mxu0 %v3265_v60  ;;  %v3359_v59 = vld [vmem:[%s4475_s0 + $0x210] ss:$36 sps:$4 sm:$0xff]  }
  0x8c   :  { %3061 = vmatpush3.bf16.msra.mxu0 %v3286_v56 }
  0x8d   :  { %3062 = vmatprep.subr.bf16.mxu0 %v3301_v61 }
  0x90   :  { %3063 = vmatpush3.bf16.msra.mxu0 %v3301_v61 }
  0x91   :  { %3064 = vmatprep.subr.bf16.mxu0 %v3314_v62 }
  0x92   :  { %1768 = vmatmul.mubr.bf16.gmra.mrb[56].mxu1 %v3267_v63  ;;  %1865 = vmatmul.mubr.bf16.gmra.mrb[56].mxu0 %v3268_v0  ;;  %v3360_v0 = vld [vmem:[%s4475_s0 + $0x25c] ss:$36 sps:$4 sm:$0xff]  }
  0x93   :  { %1775 = vmatprep.mubr.bf16.mxu1 %v3272_v1  ;;  %1872 = vmatprep.mubr.bf16.mxu0 %v3274_v2  ;;  %v3362_v1 = vld [vmem:[%s4475_s0 + $0x20] ss:$36 sps:$4 sm:$0xff]  }
  0x94   :  { %3065 = vmatpush3.bf16.msra.mxu0 %v3314_v62 }
  0x95   :  { %3066 = vmatprep.subr.bf16.mxu0 %v3327_v3 }
  0x98   :  { %3067 = vmatpush3.bf16.msra.mxu0 %v3327_v3 }
  0x99   :  { %3068 = vmatprep.subr.bf16.mxu0 %v3340_v6 }
  0x9a   :  { %1776 = vmatmul.mubr.bf16.gmra.mrb[60].mxu1 %v3276_v4  ;;  %1873 = vmatmul.mubr.bf16.gmra.mrb[60].mxu0 %v3277_v5 }
  0x9b   :  { %1783 = vmatprep.mubr.bf16.mxu1 %v3278_v7  ;;  %1880 = vmatprep.mubr.bf16.mxu0 %v3280_v8 }
  0x9c   :  { %3069 = vmatpush3.bf16.msra.mxu0 %v3340_v6 }
  0x9d   :  { %3070 = vmatprep.subr.bf16.mxu0 %v3353_v9 }
  0xa0   :  { %3071 = vmatpush3.bf16.msra.mxu0 %v3353_v9 }
  0xa2   :  { %1784 = vmatmul.mubr.bf16.gmra.mrb[64].mxu1 %v3282_v10  ;;  %1881 = vmatmul.mubr.bf16.gmra.mrb[64].mxu0 %v3283_v11  ;;  %v3363_v10 = vld [vmem:[%s4475_s0 + $0x258] ss:$36 sps:$4 sm:$0xff]   ;;  %v3364_v11 = vld [vmem:[%s4475_s0 + $0x68] ss:$36 sps:$4 sm:$0xff]  }
  0xa3   :  { %1791 = vmatprep.mubr.bf16.mxu1 %v3287_v12  ;;  %1888 = vmatprep.mubr.bf16.mxu0 %v3289_v13 }
  0xaa   :  { %1792 = vmatmul.mubr.bf16.gmra.mrb[68].mxu1 %v3291_v14  ;;  %1889 = vmatmul.mubr.bf16.gmra.mrb[68].mxu0 %v3292_v15 }
  0xab   :  { %1799 = vmatprep.mubr.bf16.mxu1 %v3293_v16  ;;  %1896 = vmatprep.mubr.bf16.mxu0 %v3295_v17  ;;  %v3365_v16 = vld [vmem:[%s4475_s0 + $0x2a4] ss:$36 sps:$4 sm:$0xff]   ;;  %v3367_v17 = vld [vmem:[%s4475_s0 + $0xb0] ss:$36 sps:$4 sm:$0xff]  }
  0xb2   :  { %1800 = vmatmul.mubr.bf16.gmra.mrb[72].mxu1 %v3297_v18  ;;  %1897 = vmatmul.mubr.bf16.gmra.mrb[72].mxu0 %v3298_v19 }
  0xb3   :  { %1807 = vmatprep.mubr.bf16.mxu1 %v3302_v20  ;;  %1904 = vmatprep.mubr.bf16.mxu0 %v3304_v21 }
  0xba   :  { %1808 = vmatmul.mubr.bf16.gmra.mrb[76].mxu1 %v3306_v22  ;;  %1905 = vmatmul.mubr.bf16.gmra.mrb[76].mxu0 %v3307_v23 }
  0xbb   :  { %1912 = vmatprep.mubr.bf16.mxu0 %v3308_v24  ;;  %2009 = vmatprep.mubr.bf16.mxu1 %v3312_v25 }
  0xc2   :  { %1913 = vmatmul.mubr.bf16.gmra.mrb[80].mxu0 %v3313_v27  ;;  %2010 = vmatmul.mubr.bf16.vlgmr.msra.gmra.mrb[80].mxu1 %v3310_v26  ;;  %v3368_v26 = vld [vmem:[%s4475_s0 + $0x2a0] ss:$36 sps:$4 sm:$0xff]   ;;  %v3369_v27 = vld [vmem:[%s4475_s0 + $0xf8] ss:$36 sps:$4 sm:$0xff]  }
  0xc3   :  { %1920 = vmatprep.mubr.bf16.mxu0 %v3315_v28  ;;  %2017 = vmatprep.mubr.bf16.mxu1 %v3317_v29 }
  0xca   :  { %1921 = vmatmul.mubr.bf16.gmra.mrb[84].mxu0 %v3319_v30  ;;  %2018 = vmatmul.mubr.bf16.gmra.mrb[84].mxu1 %v3320_v31 }
  0xcb   :  { %1928 = vmatprep.mubr.bf16.mxu0 %v3321_v32  ;;  %2025 = vmatprep.mubr.bf16.mxu1 %v3323_v33  ;;  %v3370_v32 = vld [vmem:[%s4475_s0 + $0x2ec] ss:$36 sps:$4 sm:$0xff]   ;;  %v3372_v33 = vld [vmem:[%s4475_s0 + $0x140] ss:$36 sps:$4 sm:$0xff]  }
  0xd2   :  { %1929 = vmatmul.mubr.bf16.gmra.mrb[88].mxu0 %v3325_v34  ;;  %2026 = vmatmul.mubr.bf16.gmra.mrb[88].mxu1 %v3326_v35 }
  0xd3   :  { %1936 = vmatprep.mubr.bf16.mxu0 %v3328_v36  ;;  %2033 = vmatprep.mubr.bf16.mxu1 %v3330_v37 }
  0xda   :  { %1937 = vmatmul.mubr.bf16.gmra.mrb[92].mxu0 %v3332_v38  ;;  %2034 = vmatmul.mubr.bf16.gmra.mrb[92].mxu1 %v3333_v39 }
  0xdb   :  { %1944 = vmatprep.mubr.bf16.mxu0 %v3334_v40  ;;  %2041 = vmatprep.mubr.bf16.mxu1 %v3336_v41 }
  0xe2   :  { %1945 = vmatmul.mubr.bf16.gmra.mrb[96].mxu0 %v3338_v42  ;;  %2042 = vmatmul.mubr.bf16.gmra.mrb[96].mxu1 %v3339_v43  ;;  %v3373_v42 = vld [vmem:[%s4475_s0 + $0x2e8] ss:$36 sps:$4 sm:$0xff]  }
  0xe3   :  { %1952 = vmatprep.mubr.bf16.mxu0 %v3341_v44  ;;  %2049 = vmatprep.mubr.bf16.mxu1 %v3343_v45  ;;  %v3374_v43 = vld [vmem:[%s4475_s0 + $0x188] ss:$36 sps:$4 sm:$0xff]  }
  0xea   :  { %1953 = vmatmul.mubr.bf16.gmra.mrb[100].mxu0 %v3345_v46  ;;  %2050 = vmatmul.mubr.bf16.gmra.mrb[100].mxu1 %v3346_v47 }
  0xeb   :  { %1960 = vmatprep.mubr.bf16.mxu0 %v3347_v48  ;;  %2057 = vmatprep.mubr.bf16.mxu1 %v3349_v49  ;;  %v3375_v48 = vld [vmem:[%s4475_s0 + $0x334] ss:$36 sps:$4 sm:$0xff]  }
  0xec   :  { %v3377_v49 = vld [vmem:[%s4475_s0 + $0x1d0] ss:$36 sps:$4 sm:$0xff]  }
  0xf2   :  { %1961 = vmatmul.mubr.bf16.gmra.mrb[104].mxu0 %v3351_v50  ;;  %2058 = vmatmul.mubr.bf16.gmra.mrb[104].mxu1 %v3352_v51 }
  0xf3   :  { %1968 = vmatprep.mubr.bf16.mxu0 %v3354_v52  ;;  %2065 = vmatprep.mubr.bf16.mxu1 %v3356_v53 }
  0xf5   :  { %v2672_v54 = vpop.f32.mrb[0].mxu1  ;;  %v2600_v55 = vpop.f32.mrb[0].mxu0 }
  0xf6   :  { %v2673_v56 = vpop.f32.mrb[1].mxu1  ;;  %v2601_v57 = vpop.f32.mrb[1].mxu0 }
  0xf7   :  { %v3972_v60 = vadd.f32 %v2673_v56, %v2672_v54  ;;  %v2675_v61 = vpop.f32.mrb[2].mxu1  ;;  %v3974_v62 = vadd.f32 %v2601_v57, %v2600_v55  ;;  %v2603_v63 = vpop.f32.mrb[2].mxu0  ;;  %v4049_v54 = vld [vmem:[%s4476_s2] ss:$0 sm:$0xff] }
  0xf8   :  { %v2676_v2 = vpop.f32.mrb[3].mxu1  ;;  %v2604_v3 = vpop.f32.mrb[3].mxu0 }
  0xf9   :  { %v3982_v4 = vadd.f32 %v2676_v2, %v2675_v61  ;;  %v3984_v5 = vadd.f32 %v2604_v3, %v2603_v63  ;;  %v3379_v61 = vld [vmem:[%s4475_s0 + $0x218] ss:$36 sps:$4 sm:$0xff]   ;;  %v1529_v63 = vadd.f32 %v3974_v62, %v4049_v54 }
  0xfa   :  { %1969 = vmatmul.mubr.bf16.gmra.mrb[108].mxu0 %v3358_v58  ;;  %2066 = vmatmul.mubr.bf16.gmra.mrb[108].mxu1 %v3359_v59  ;;  %v3378_v59 = vld [vmem:[%s4475_s0 + $0x330] ss:$36 sps:$4 sm:$0xff]  }
  0xfb   :  { %2073 = vmatprep.mubr.bf16.mxu1 %v3360_v0  ;;  %3072 = vmatprep.mubr.bf16.mxu0 %v3362_v1 }
  0xfd   :  { %v2678_v6 = vpop.f32.mrb[4].mxu1  ;;  %v2606_v7 = vpop.f32.mrb[4].mxu0 }
  0xfe   :  { %v2679_v8 = vpop.f32.mrb[5].mxu1  ;;  %v2607_v9 = vpop.f32.mrb[5].mxu0 }
  0xff   :  { %v3992_v12 = vadd.f32 %v2679_v8, %v2678_v6  ;;  %v2681_v13 = vpop.f32.mrb[6].mxu1  ;;  %v3994_v14 = vadd.f32 %v2607_v9, %v2606_v7  ;;  %v2609_v15 = vpop.f32.mrb[6].mxu0  ;;  %v3380_v6 = vld [vmem:[%s4475_s0 + $0x37c] ss:$36 sps:$4 sm:$0xff]  }
 0x100   :  { %v2682_v18 = vpop.f32.mrb[7].mxu1  ;;  %v2610_v19 = vpop.f32.mrb[7].mxu0  ;;  %v3382_v7 = vld [vmem:[%s4475_s0 + $0x260] ss:$36 sps:$4 sm:$0xff]  }
 0x101   :  { %v4002_v20 = vadd.f32 %v2682_v18, %v2681_v13  ;;  %v4004_v21 = vadd.f32 %v2610_v19, %v2609_v15 }
 0x102   :  { %2074 = vmatmul.mubr.bf16.gmra.mrb[112].mxu1 %v3363_v10  ;;  %3073 = vmatmul.mubr.bf16.vlgmr.msra.gmra.mrb[112].mxu0 %v3364_v11  ;;  %v1532_v10 = vadd.f32 %v3984_v5, %v4049_v54  ;;  %v3384_v5 = vld [vmem:[%s4475_s0 + $0x2a8] ss:$36 sps:$4 sm:$0xff]  }
 0x103   :  { %2081 = vmatprep.mubr.bf16.mxu1 %v3365_v16  ;;  %3076 = vmatprep.mubr.bf16.mxu0 %v3367_v17 }
 0x105   :  { %v2684_v22 = vpop.f32.mrb[8].mxu1  ;;  %v2612_v23 = vpop.f32.mrb[8].mxu0 }
 0x106   :  { %v2685_v24 = vpop.f32.mrb[9].mxu1  ;;  %v2613_v25 = vpop.f32.mrb[9].mxu0 }
 0x107   :  { %v4012_v28 = vadd.f32 %v2685_v24, %v2684_v22  ;;  %v2687_v29 = vpop.f32.mrb[10].mxu1  ;;  %v4014_v30 = vadd.f32 %v2613_v25, %v2612_v23  ;;  %v2615_v31 = vpop.f32.mrb[10].mxu0  ;;  %v3383_v22 = vld [vmem:[%s4475_s0 + $0x378] ss:$36 sps:$4 sm:$0xff]   ;;  %v1537_v23 = vadd.f32 %v3994_v14, %v4049_v54 }
 0x108   :  { %v2688_v34 = vpop.f32.mrb[11].mxu1  ;;  %v2616_v35 = vpop.f32.mrb[11].mxu0 }
 0x109   :  { %v4022_v36 = vadd.f32 %v2688_v34, %v2687_v29  ;;  %v4024_v37 = vadd.f32 %v2616_v35, %v2615_v31  ;;  %v3385_v29 = vld [vmem:[%s4475_s0 + $0x3c4] ss:$36 sps:$4 sm:$0xff]   ;;  %v3387_v31 = vld [vmem:[%s4475_s0 + $0x2f0] ss:$36 sps:$4 sm:$0xff]   ;;  %v1540_v34 = vadd.f32 %v4004_v21, %v4049_v54  ;;  %v3389_v21 = vld [vmem:[%s4475_s0 + $0x338] ss:$36 sps:$4 sm:$0xff]  }
 0x10a   :  { %2082 = vmatmul.mubr.bf16.gmra.mrb[116].mxu1 %v3368_v26  ;;  %3077 = vmatmul.mubr.bf16.gmra.mrb[116].mxu0 %v3369_v27 }
 0x10b   :  { %2089 = vmatprep.mubr.bf16.mxu1 %v3370_v32  ;;  %3080 = vmatprep.mubr.bf16.mxu0 %v3372_v33 }
 0x10d   :  { %v2690_v38 = vpop.f32.mrb[12].mxu1  ;;  %v2618_v39 = vpop.f32.mrb[12].mxu0 }
 0x10e   :  { %v2691_v40 = vpop.f32.mrb[13].mxu1  ;;  %v2619_v41 = vpop.f32.mrb[13].mxu0 }
 0x10f   :  { %v4032_v44 = vadd.f32 %v2691_v40, %v2690_v38  ;;  %v2693_v45 = vpop.f32.mrb[14].mxu1  ;;  %v4034_v46 = vadd.f32 %v2619_v41, %v2618_v39  ;;  %v2621_v47 = vpop.f32.mrb[14].mxu0 }
 0x110   :  { %v2694_v50 = vpop.f32.mrb[15].mxu1  ;;  %v2622_v51 = vpop.f32.mrb[15].mxu0 }
 0x111   :  { %v4042_v52 = vadd.f32 %v2694_v50, %v2693_v45  ;;  %v4044_v53 = vadd.f32 %v2622_v51, %v2621_v47  ;;  %v3388_v45 = vld [vmem:[%s4475_s0 + $0x3c0] ss:$36 sps:$4 sm:$0xff]   ;;  %v1545_v47 = vadd.f32 %v4014_v30, %v4049_v54 }
 0x112   :  { %2090 = vmatmul.mubr.bf16.gmra.mrb[120].mxu1 %v3373_v42  ;;  %3081 = vmatmul.mubr.bf16.gmra.mrb[120].mxu0 %v3374_v43 }
 0x113   :  { %2097 = vmatprep.mubr.bf16.mxu1 %v3375_v48  ;;  %3084 = vmatprep.mubr.bf16.mxu0 %v3377_v49 }
 0x115   :  { %v2712_v55 = vpop.f32.mrb[16].mxu1  ;;  %v2624_v56 = vpop.f32.mrb[16].mxu0 }
 0x116   :  { %v2713_v57 = vpop.f32.mrb[17].mxu1  ;;  %v2625_v58 = vpop.f32.mrb[17].mxu0 }
 0x117   :  { %v2714_v0 = vadd.f32 %v2713_v57, %v2712_v55  ;;  %v2715_v1 = vpop.f32.mrb[18].mxu1  ;;  %v4059_v2 = vadd.f32 %v2625_v58, %v2624_v56  ;;  %v2627_v3 = vpop.f32.mrb[18].mxu0  ;;  %v3390_v55 = vld [vmem:[%s4475_s0 + $0x40c] ss:$36 sps:$4 sm:$0xff]   ;;  %v3392_v56 = vld [vmem:[%s4475_s0 + $0x380] ss:$36 sps:$4 sm:$0xff]  }
 0x118   :  { %v2716_v8 = vpop.f32.mrb[19].mxu1  ;;  %v2628_v9 = vpop.f32.mrb[19].mxu0 }
 0x119   :  { %v4069_v11 = vadd.f32 %v2714_v0, %v1529_v63  ;;  %v2717_v62 = vadd.f32 %v2716_v8, %v2715_v1  ;;  %v4071_v13 = vadd.f32 %v2628_v9, %v2627_v3  ;;  %v3393_v8 = vld [vmem:[%s4475_s0 + $0x408] ss:$36 sps:$4 sm:$0xff]   ;;  %v1553_v9 = vadd.f32 %v4034_v46, %v4049_v54 }
 0x11a   :  { %2098 = vmatmul.mubr.bf16.gmra.mrb[124].mxu1 %v3378_v59  ;;  %3085 = vmatmul.mubr.bf16.gmra.mrb[124].mxu0 %v3379_v61  ;;  %v1548_v59 = vadd.f32 %v4024_v37, %v4049_v54  ;;  %v3394_v37 = vld [vmem:[%s4475_s0 + $0x3c8] ss:$36 sps:$4 sm:$0xff]  }
 0x11b   :  { %v4073_v15 = vadd.f32 %v2717_v62, %v1532_v10  ;;  %2105 = vmatprep.mubr.bf16.mxu1 %v3380_v6  ;;  %3088 = vmatprep.mubr.bf16.mxu0 %v3382_v7 }
 0x11d   :  { %v2718_v16 = vpop.f32.mrb[20].mxu1  ;;  %v2630_v17 = vpop.f32.mrb[20].mxu0 }
 0x11e   :  { %v2719_v18 = vpop.f32.mrb[21].mxu1  ;;  %v2631_v19 = vpop.f32.mrb[21].mxu0 }
 0x11f   :  { %v2720_v24 = vadd.f32 %v2719_v18, %v2718_v16  ;;  %v2721_v25 = vpop.f32.mrb[22].mxu1  ;;  %v4083_v26 = vadd.f32 %v2631_v19, %v2630_v17  ;;  %v2633_v27 = vpop.f32.mrb[22].mxu0  ;;  %v3395_v18 = vld [vmem:[%s4475_s0 + $0x454] ss:$36 sps:$4 sm:$0xff]  }
 0x120   :  { %v2722_v32 = vpop.f32.mrb[23].mxu1  ;;  %v2634_v33 = vpop.f32.mrb[23].mxu0  ;;  %v3397_v19 = vld [vmem:[%s4475_s0 + $0x410] ss:$36 sps:$4 sm:$0xff]  }
 0x121   :  { %v4093_v35 = vadd.f32 %v2720_v24, %v1537_v23  ;;  %v2723_v14 = vadd.f32 %v2722_v32, %v2721_v25  ;;  %v4095_v38 = vadd.f32 %v2634_v33, %v2633_v27  ;;  %v1556_v23 = vadd.f32 %v4044_v53, %v4049_v54  ;;  %v3399_v53 = vld [vmem:[%s4475_s0 + $0x458] ss:$36 sps:$4 sm:$0xff]  }
 0x122   :  { %2106 = vmatmul.mubr.bf16.gmra.mrb[128].mxu1 %v3383_v22  ;;  %3089 = vmatmul.mubr.bf16.gmra.mrb[128].mxu0 %v3384_v5 }
 0x123   :  { %v4097_v39 = vadd.f32 %v2723_v14, %v1540_v34  ;;  %2113 = vmatprep.mubr.bf16.mxu1 %v3385_v29  ;;  %3092 = vmatprep.mubr.bf16.mxu0 %v3387_v31  ;;  %v3398_v34 = vld [vmem:[%s4475_s0 + $0x450] ss:$36 sps:$4 sm:$0xff]   ;;  %v1561_v14 = vadd.f32 %v4059_v2, %v4049_v54 }
 0x125   :  { %v2724_v40 = vpop.f32.mrb[24].mxu1  ;;  %v2636_v41 = vpop.f32.mrb[24].mxu0 }
 0x126   :  { %v2725_v42 = vpop.f32.mrb[25].mxu1  ;;  %v2637_v43 = vpop.f32.mrb[25].mxu0 }
 0x127   :  { %v2726_v48 = vadd.f32 %v2725_v42, %v2724_v40  ;;  %v2727_v49 = vpop.f32.mrb[26].mxu1  ;;  %v4107_v50 = vadd.f32 %v2637_v43, %v2636_v41  ;;  %v2639_v51 = vpop.f32.mrb[26].mxu0 }
 0x128   :  { %v2728_v57 = vpop.f32.mrb[27].mxu1  ;;  %v2640_v58 = vpop.f32.mrb[27].mxu0 }
 0x129   :  { %v4117_v61 = vadd.f32 %v2726_v48, %v1545_v47  ;;  %v2729_v30 = vadd.f32 %v2728_v57, %v2727_v49  ;;  %v4119_v63 = vadd.f32 %v2640_v58, %v2639_v51  ;;  %v1564_v47 = vadd.f32 %v4071_v13, %v4049_v54 }
 0x12a   :  { %2114 = vmatmul.mubr.bf16.gmra.mrb[132].mxu1 %v3388_v45  ;;  %3093 = vmatmul.mubr.bf16.gmra.mrb[132].mxu0 %v3389_v21 }
 0x12b   :  { %v4121_v0 = vadd.f32 %v2729_v30, %v1548_v59  ;;  %2121 = vmatprep.mubr.bf16.mxu1 %v3390_v55  ;;  %3096 = vmatprep.mubr.bf16.mxu0 %v3392_v56  ;;  %v1569_v59 = vadd.f32 %v4083_v26, %v4049_v54 }
 0x12d   :  { %v2730_v1 = vpop.f32.mrb[28].mxu1  ;;  %v2642_v3 = vpop.f32.mrb[28].mxu0 }
 0x12e   :  { %v2731_v6 = vpop.f32.mrb[29].mxu1  ;;  %v2643_v7 = vpop.f32.mrb[29].mxu0 }
 0x12f   :  { %v2732_v10 = vadd.f32 %v2731_v6, %v2730_v1  ;;  %v2733_v62 = vpop.f32.mrb[30].mxu1  ;;  %v4131_v16 = vadd.f32 %v2643_v7, %v2642_v3  ;;  %v2645_v17 = vpop.f32.mrb[30].mxu0 }
 0x130   :  { %v2734_v22 = vpop.f32.mrb[31].mxu1  ;;  %v2646_v5 = vpop.f32.mrb[31].mxu0 }
 0x131   :  { %v4141_v24 = vadd.f32 %v2732_v10, %v1553_v9  ;;  %v2735_v46 = vadd.f32 %v2734_v22, %v2733_v62  ;;  %v4143_v25 = vadd.f32 %v2646_v5, %v2645_v17  ;;  %v1577_v22 = vadd.f32 %v4107_v50, %v4049_v54 }
 0x132   :  { %2122 = vmatmul.mubr.bf16.gmra.mrb[136].mxu1 %v3393_v8  ;;  %3097 = vmatmul.mubr.bf16.gmra.mrb[136].mxu0 %v3394_v37  ;;  %v1572_v8 = vadd.f32 %v4095_v38, %v4049_v54 }
 0x133   :  { %v4145_v27 = vadd.f32 %v2735_v46, %v1556_v23  ;;  %2129 = vmatprep.mubr.bf16.mxu1 %v3395_v18  ;;  %3100 = vmatprep.mubr.bf16.mxu0 %v3397_v19 }
 0x135   :  { %v2736_v29 = vpop.f32.mrb[32].mxu1  ;;  %v2648_v31 = vpop.f32.mrb[32].mxu0 }
 0x136   :  { %v2737_v32 = vpop.f32.mrb[33].mxu1  ;;  %v2649_v33 = vpop.f32.mrb[33].mxu0 }
 0x137   :  { %v2738_v40 = vadd.f32 %v2737_v32, %v2736_v29  ;;  %v2739_v41 = vpop.f32.mrb[34].mxu1  ;;  %v4155_v42 = vadd.f32 %v2649_v33, %v2648_v31  ;;  %v2651_v43 = vpop.f32.mrb[34].mxu0  ;;  %v1580_v32 = vadd.f32 %v4119_v63, %v4049_v54 }
 0x138   :  { %v2740_v45 = vpop.f32.mrb[35].mxu1  ;;  %v2652_v21 = vpop.f32.mrb[35].mxu0 }
 0x139   :  { %v4159_v48 = vadd.f32 %v2738_v40, %v1561_v14  ;;  %v2741_v49 = vadd.f32 %v2740_v45, %v2739_v41  ;;  %v2653_v51 = vadd.f32 %v2652_v21, %v2651_v43  ;;  %v1585_v45 = vadd.f32 %v4131_v16, %v4049_v54 }
 0x13a   :  { %2130 = vmatmul.mubr.bf16.gmra.mrb[140].mxu1 %v3398_v34  ;;  %3101 = vmatmul.mubr.bf16.gmra.mrb[140].mxu0 %v3399_v53 }
 0x13b   :  { %v4161_v55 = vadd.f32 %v2741_v49, %v1564_v47 }
 0x13d   :  { %v2742_v56 = vpop.f32.mrb[36].mxu1  ;;  %v2654_v2 = vpop.f32.mrb[36].mxu0 }
 0x13e   :  { %v2743_v57 = vpop.f32.mrb[37].mxu1  ;;  %v2655_v58 = vpop.f32.mrb[37].mxu0 }
 0x13f   :  { %v2744_v30 = vadd.f32 %v2743_v57, %v2742_v56  ;;  %v2745_v1 = vpop.f32.mrb[38].mxu1  ;;  %v4165_v3 = vadd.f32 %v2655_v58, %v2654_v2  ;;  %v2657_v13 = vpop.f32.mrb[38].mxu0  ;;  %v1588_v57 = vadd.f32 %v4143_v25, %v4049_v54  ;;  %v1596_v25 = vadd.f32 %v2653_v51, %v4049_v54 }
 0x140   :  { %v2746_v6 = vpop.f32.mrb[39].mxu1  ;;  %v2658_v7 = vpop.f32.mrb[39].mxu0 }
 0x141   :  { %v4169_v37 = vadd.f32 %v2744_v30, %v1569_v59  ;;  %v2747_v9 = vadd.f32 %v2746_v6, %v2745_v1  ;;  %v2659_v10 = vadd.f32 %v2658_v7, %v2657_v13  ;;  %v1601_v51 = vadd.f32 %v4165_v3, %v4049_v54 }
 0x143   :  { %v4171_v62 = vadd.f32 %v2747_v9, %v1572_v8  ;;  %v1593_v8 = vadd.f32 %v4155_v42, %v4049_v54 }
 0x145   :  { %v2748_v17 = vpop.f32.mrb[40].mxu1  ;;  %v2660_v18 = vpop.f32.mrb[40].mxu0 }
 0x146   :  { %v2749_v19 = vpop.f32.mrb[41].mxu1  ;;  %v2661_v26 = vpop.f32.mrb[41].mxu0 }
 0x147   :  { %v2750_v5 = vadd.f32 %v2749_v19, %v2748_v17  ;;  %v2751_v23 = vpop.f32.mrb[42].mxu1  ;;  %v4175_v46 = vadd.f32 %v2661_v26, %v2660_v18  ;;  %v2663_v29 = vpop.f32.mrb[42].mxu0 }
 0x148   :  { %v2752_v31 = vpop.f32.mrb[43].mxu1  ;;  %v2664_v38 = vpop.f32.mrb[43].mxu0 }
 0x149   :  { %v4179_v33 = vadd.f32 %v2750_v5, %v1577_v22  ;;  %v2753_v34 = vadd.f32 %v2752_v31, %v2751_v23  ;;  %v4181_v53 = vadd.f32 %v2664_v38, %v2663_v29 }
 0x14b   :  { %v4183_v14 = vadd.f32 %v2753_v34, %v1580_v32 }
 0x14d   :  { %v2754_v40 = vpop.f32.mrb[44].mxu1  ;;  %v2666_v41 = vpop.f32.mrb[44].mxu0 }
 0x14e   :  { %v2755_v50 = vpop.f32.mrb[45].mxu1  ;;  %v2667_v43 = vpop.f32.mrb[45].mxu0 }
 0x14f   :  { %v2756_v21 = vadd.f32 %v2755_v50, %v2754_v40  ;;  %v2757_v47 = vpop.f32.mrb[46].mxu1  ;;  %v4187_v49 = vadd.f32 %v2667_v43, %v2666_v41  ;;  %v2669_v56 = vpop.f32.mrb[46].mxu0 }
 0x150   :  { %v2758_v63 = vpop.f32.mrb[47].mxu1  ;;  %v2670_v2 = vpop.f32.mrb[47].mxu0 }
 0x151   :  { %v4191_v58 = vadd.f32 %v2756_v21, %v1585_v45  ;;  %v2759_v59 = vadd.f32 %v2758_v63, %v2757_v47  ;;  %v4193_v30 = vadd.f32 %v2670_v2, %v2669_v56 }
 0x153   :  { %v4195_v1 = vadd.f32 %v2759_v59, %v1588_v57 }
 0x155   :  { %v2760_v13 = vpop.f32.mrb[48].mxu1  ;;  %v2824_v6 = vpop.f32.mrb[48].mxu0 }
 0x156   :  { %v2761_v16 = vpop.f32.mrb[49].mxu1  ;;  %v2825_v7 = vpop.f32.mrb[49].mxu0 }
 0x157   :  { %v2762_v9 = vadd.f32 %v2761_v16, %v2760_v13  ;;  %v2826_v17 = vadd.f32 %v2825_v7, %v2824_v6  ;;  %v2763_v18 = vpop.f32.mrb[50].mxu1  ;;  %v2827_v19 = vpop.f32.mrb[50].mxu0 }
 0x158   :  { %v2764_v26 = vpop.f32.mrb[51].mxu1  ;;  %v2828_v22 = vpop.f32.mrb[51].mxu0 }
 0x159   :  { %v4200_v5 = vadd.f32 %v2762_v9, %v1593_v8  ;;  %v4203_v23 = vadd.f32 %v2826_v17, %v4069_v11  ;;  %v2765_v29 = vadd.f32 %v2764_v26, %v2763_v18  ;;  %v2829_v31 = vadd.f32 %v2828_v22, %v2827_v19 }
 0x15a   :  { %v1604_v11 = vadd.f32 %v2659_v10, %v4049_v54  ;;  %v1609_v10 = vadd.f32 %v4175_v46, %v4049_v54 }
 0x15b   :  { %v4205_v38 = vadd.f32 %v2765_v29, %v1596_v25  ;;  %v4208_v32 = vadd.f32 %v2829_v31, %v4073_v15 }
 0x15d   :  { %v2766_v42 = vpop.f32.mrb[52].mxu1  ;;  %v2830_v34 = vpop.f32.mrb[52].mxu0 }
 0x15e   :  { %v2767_v40 = vpop.f32.mrb[53].mxu1  ;;  %v2831_v41 = vpop.f32.mrb[53].mxu0 }
 0x15f   :  { %v2768_v50 = vadd.f32 %v2767_v40, %v2766_v42  ;;  %v2832_v43 = vadd.f32 %v2831_v41, %v2830_v34  ;;  %v2769_v45 = vpop.f32.mrb[54].mxu1  ;;  %v2833_v21 = vpop.f32.mrb[54].mxu0 }
 0x160   :  { %v2770_v47 = vpop.f32.mrb[55].mxu1  ;;  %v2834_v56 = vpop.f32.mrb[55].mxu0 }
 0x161   :  { %v4213_v63 = vadd.f32 %v2768_v50, %v1601_v51  ;;  %v4216_v15 = vadd.f32 %v2832_v43, %v4093_v35  ;;  %v2771_v2 = vadd.f32 %v2770_v47, %v2769_v45  ;;  %v2835_v57 = vadd.f32 %v2834_v56, %v2833_v21 }
 0x162   :  { %v1612_v35 = vadd.f32 %v4181_v53, %v4049_v54  ;;  %v1617_v53 = vadd.f32 %v4187_v49, %v4049_v54 }
 0x163   :  { %v4218_v59 = vadd.f32 %v2771_v2, %v1604_v11  ;;  %v4221_v13 = vadd.f32 %v2835_v57, %v4097_v39 }
 0x165   :  { %v2772_v3 = vpop.f32.mrb[56].mxu1  ;;  %v2836_v6 = vpop.f32.mrb[56].mxu0 }
 0x166   :  { %v2773_v16 = vpop.f32.mrb[57].mxu1  ;;  %v2837_v7 = vpop.f32.mrb[57].mxu0 }
 0x167   :  { %v2774_v8 = vadd.f32 %v2773_v16, %v2772_v3  ;;  %v2838_v9 = vadd.f32 %v2837_v7, %v2836_v6  ;;  %v2775_v17 = vpop.f32.mrb[58].mxu1  ;;  %v2839_v18 = vpop.f32.mrb[58].mxu0 }
 0x168   :  { %v2776_v19 = vpop.f32.mrb[59].mxu1  ;;  %v2840_v25 = vpop.f32.mrb[59].mxu0 }
 0x169   :  { %v4227_v26 = vadd.f32 %v2774_v8, %v1609_v10  ;;  %v4230_v39 = vadd.f32 %v2838_v9, %v4117_v61  ;;  %v2777_v22 = vadd.f32 %v2776_v19, %v2775_v17  ;;  %v2841_v29 = vadd.f32 %v2840_v25, %v2839_v18 }
 0x16a   :  { %v1620_v61 = vadd.f32 %v4193_v30, %v4049_v54  ;;  %v1625_v30 = vadd.f32 %v3972_v60, %v4049_v54 }
 0x16b   :  { %v4232_v31 = vadd.f32 %v2777_v22, %v1612_v35  ;;  %v4235_v46 = vadd.f32 %v2841_v29, %v4121_v0 }
 0x16d   :  { %v2778_v42 = vpop.f32.mrb[60].mxu1  ;;  %v2842_v34 = vpop.f32.mrb[60].mxu0 }
 0x16e   :  { %v2779_v40 = vpop.f32.mrb[61].mxu1  ;;  %v2843_v41 = vpop.f32.mrb[61].mxu0 }
 0x16f   :  { %v2780_v51 = vadd.f32 %v2779_v40, %v2778_v42  ;;  %v2844_v50 = vadd.f32 %v2843_v41, %v2842_v34  ;;  %v2781_v43 = vpop.f32.mrb[62].mxu1  ;;  %v2845_v45 = vpop.f32.mrb[62].mxu0 }
 0x170   :  { %v2782_v21 = vpop.f32.mrb[63].mxu1  ;;  %v2846_v11 = vpop.f32.mrb[63].mxu0 }
 0x171   :  { %v4241_v47 = vadd.f32 %v2780_v51, %v1617_v53  ;;  %v4244_v0 = vadd.f32 %v2844_v50, %v4141_v24  ;;  %v2783_v56 = vadd.f32 %v2782_v21, %v2781_v43  ;;  %v2847_v2 = vadd.f32 %v2846_v11, %v2845_v45 }
 0x172   :  { %v1628_v24 = vadd.f32 %v3982_v4, %v4049_v54  ;;  %v1633_v4 = vadd.f32 %v3992_v12, %v4049_v54 }
 0x173   :  { %v4246_v57 = vadd.f32 %v2783_v56, %v1620_v61  ;;  %v4249_v49 = vadd.f32 %v2847_v2, %v4145_v27 }
 0x175   :  { %v2784_v3 = vpop.f32.mrb[64].mxu1  ;;  %v2848_v6 = vpop.f32.mrb[64].mxu0 }
 0x176   :  { %v2785_v16 = vpop.f32.mrb[65].mxu1  ;;  %v2849_v7 = vpop.f32.mrb[65].mxu0 }
 0x177   :  { %v2786_v10 = vadd.f32 %v2785_v16, %v2784_v3  ;;  %v2850_v8 = vadd.f32 %v2849_v7, %v2848_v6  ;;  %v2787_v9 = vpop.f32.mrb[66].mxu1  ;;  %v2851_v17 = vpop.f32.mrb[66].mxu0 }
 0x178   :  { %v2788_v18 = vpop.f32.mrb[67].mxu1  ;;  %v2852_v35 = vpop.f32.mrb[67].mxu0 }
 0x179   :  { %v4255_v19 = vadd.f32 %v2786_v10, %v1625_v30  ;;  %v4258_v27 = vadd.f32 %v2850_v8, %v4159_v48  ;;  %v2789_v25 = vadd.f32 %v2788_v18, %v2787_v9  ;;  %v2853_v22 = vadd.f32 %v2852_v35, %v2851_v17 }
 0x17a   :  { %v1636_v48 = vadd.f32 %v4002_v20, %v4049_v54  ;;  %v1641_v20 = vadd.f32 %v4012_v28, %v4049_v54 }
 0x17b   :  { %v4260_v29 = vadd.f32 %v2789_v25, %v1628_v24  ;;  %v4263_v60 = vadd.f32 %v2853_v22, %v4161_v55 }
 0x17d   :  { %v2790_v42 = vpop.f32.mrb[68].mxu1  ;;  %v2854_v34 = vpop.f32.mrb[68].mxu0 }
 0x17e   :  { %v2791_v40 = vpop.f32.mrb[69].mxu1  ;;  %v2855_v41 = vpop.f32.mrb[69].mxu0 }
 0x17f   :  { %v2792_v53 = vadd.f32 %v2791_v40, %v2790_v42  ;;  %v2856_v51 = vadd.f32 %v2855_v41, %v2854_v34  ;;  %v2793_v50 = vpop.f32.mrb[70].mxu1  ;;  %v2857_v43 = vpop.f32.mrb[70].mxu0 }
 0x180   :  { %v2794_v45 = vpop.f32.mrb[71].mxu1  ;;  %v2858_v61 = vpop.f32.mrb[71].mxu0 }
 0x181   :  { %v4269_v21 = vadd.f32 %v2792_v53, %v1633_v4  ;;  %v4272_v55 = vadd.f32 %v2856_v51, %v4169_v37  ;;  %v2795_v11 = vadd.f32 %v2794_v45, %v2793_v50  ;;  %v2859_v56 = vadd.f32 %v2858_v61, %v2857_v43 }
 0x182   :  { %v1644_v37 = vadd.f32 %v4022_v36, %v4049_v54  ;;  %v1649_v36 = vadd.f32 %v4032_v44, %v4049_v54 }
 0x183   :  { %v4274_v2 = vadd.f32 %v2795_v11, %v1636_v48  ;;  %v4277_v12 = vadd.f32 %v2859_v56, %v4171_v62 }
 0x185   :  { %v2796_v3 = vpop.f32.mrb[72].mxu1  ;;  %v2860_v6 = vpop.f32.mrb[72].mxu0 }
 0x186   :  { %v2797_v16 = vpop.f32.mrb[73].mxu1  ;;  %v2861_v7 = vpop.f32.mrb[73].mxu0 }
 0x187   :  { %v2798_v30 = vadd.f32 %v2797_v16, %v2796_v3  ;;  %v2862_v10 = vadd.f32 %v2861_v7, %v2860_v6  ;;  %v2799_v8 = vpop.f32.mrb[74].mxu1  ;;  %v2863_v9 = vpop.f32.mrb[74].mxu0 }
 0x188   :  { %v2800_v17 = vpop.f32.mrb[75].mxu1  ;;  %v2864_v24 = vpop.f32.mrb[75].mxu0 }
 0x189   :  { %v4283_v18 = vadd.f32 %v2798_v30, %v1641_v20  ;;  %v4286_v62 = vadd.f32 %v2862_v10, %v4179_v33  ;;  %v2801_v35 = vadd.f32 %v2800_v17, %v2799_v8  ;;  %v2865_v25 = vadd.f32 %v2864_v24, %v2863_v9 }
 0x18a   :  { %v1652_v33 = vadd.f32 %v4042_v52, %v4049_v54 }
 0x18b   :  { %v4288_v22 = vadd.f32 %v2801_v35, %v1644_v37  ;;  %v4291_v28 = vadd.f32 %v2865_v25, %v4183_v14 }
 0x18d   :  { %v2802_v42 = vpop.f32.mrb[76].mxu1  ;;  %v2866_v34 = vpop.f32.mrb[76].mxu0 }
 0x18e   :  { %v2803_v40 = vpop.f32.mrb[77].mxu1  ;;  %v2867_v41 = vpop.f32.mrb[77].mxu0 }
 0x18f   :  { %v2804_v4 = vadd.f32 %v2803_v40, %v2802_v42  ;;  %v2868_v53 = vadd.f32 %v2867_v41, %v2866_v34  ;;  %v2805_v51 = vpop.f32.mrb[78].mxu1  ;;  %v2869_v50 = vpop.f32.mrb[78].mxu0 }
 0x190   :  { %v2806_v43 = vpop.f32.mrb[79].mxu1  ;;  %v2870_v48 = vpop.f32.mrb[79].mxu0 }
 0x191   :  { %v4297_v45 = vadd.f32 %v2804_v4, %v1649_v36  ;;  %v4300_v14 = vadd.f32 %v2868_v53, %v4191_v58  ;;  %v2807_v61 = vadd.f32 %v2806_v43, %v2805_v51  ;;  %v2871_v11 = vadd.f32 %v2870_v48, %v2869_v50 }
 0x193   :  { %v4302_v56 = vadd.f32 %v2807_v61, %v1652_v33  ;;  %v4305_v44 = vadd.f32 %v2871_v11, %v4195_v1 }
 0x195   :  { %v2872_v3 = vpop.f32.mrb[80].mxu0  ;;  %v2936_v6 = vpop.f32.mrb[80].mxu1 }
 0x196   :  { %v2873_v16 = vpop.f32.mrb[81].mxu0  ;;  %v2937_v7 = vpop.f32.mrb[81].mxu1 }
 0x197   :  { %v2874_v20 = vadd.f32 %v2873_v16, %v2872_v3  ;;  %v2938_v52 = vadd.f32 %v2937_v7, %v2936_v6  ;;  %v2875_v54 = vpop.f32.mrb[82].mxu0  ;;  %v2939_v30 = vpop.f32.mrb[82].mxu1 }
 0x198   :  { %v2876_v10 = vpop.f32.mrb[83].mxu0  ;;  %v2940_v8 = vpop.f32.mrb[83].mxu1 }
 0x199   :  { %v4308_v58 = vadd.f32 %v2874_v20, %v4200_v5  ;;  %v2877_v9 = vadd.f32 %v2876_v10, %v2875_v54  ;;  %v2941_v37 = vadd.f32 %v2940_v8, %v2939_v30  ;;  %v4311_v17 = vadd.f32 %v2938_v52, %v4203_v23 }
 0x19b   :  { %v4314_v1 = vadd.f32 %v2877_v9, %v4205_v38  ;;  %v4317_v24 = vadd.f32 %v2941_v37, %v4208_v32 }
 0x19d   :  { %v2878_v35 = vpop.f32.mrb[84].mxu0  ;;  %v2942_v25 = vpop.f32.mrb[84].mxu1 }
 0x19e   :  { %v2879_v42 = vpop.f32.mrb[85].mxu0  ;;  %v2943_v34 = vpop.f32.mrb[85].mxu1 }
 0x19f   :  { %v2880_v40 = vadd.f32 %v2879_v42, %v2878_v35  ;;  %v2944_v41 = vadd.f32 %v2943_v34, %v2942_v25  ;;  %v2881_v36 = vpop.f32.mrb[86].mxu0  ;;  %v2945_v5 = vpop.f32.mrb[86].mxu1 }
 0x1a0   :  { %v2882_v4 = vpop.f32.mrb[87].mxu0  ;;  %v2946_v53 = vpop.f32.mrb[87].mxu1 }
 0x1a1   :  { %v4320_v51 = vadd.f32 %v2880_v40, %v4213_v63  ;;  %v2883_v23 = vadd.f32 %v2882_v4, %v2881_v36  ;;  %v2947_v50 = vadd.f32 %v2946_v53, %v2945_v5  ;;  %v4323_v38 = vadd.f32 %v2944_v41, %v4216_v15 }
 0x1a3   :  { %v4326_v32 = vadd.f32 %v2883_v23, %v4218_v59  ;;  %v4329_v33 = vadd.f32 %v2947_v50, %v4221_v13 }
 0x1a5   :  { %v2884_v43 = vpop.f32.mrb[88].mxu0  ;;  %v2948_v48 = vpop.f32.mrb[88].mxu1 }
 0x1a6   :  { %v2885_v61 = vpop.f32.mrb[89].mxu0  ;;  %v2949_v11 = vpop.f32.mrb[89].mxu1 }
 0x1a7   :  { %v2886_v3 = vadd.f32 %v2885_v61, %v2884_v43  ;;  %v2950_v6 = vadd.f32 %v2949_v11, %v2948_v48  ;;  %v2887_v16 = vpop.f32.mrb[90].mxu0  ;;  %v2951_v63 = vpop.f32.mrb[90].mxu1 }
 0x1a8   :  { %v2888_v7 = vpop.f32.mrb[91].mxu0  ;;  %v2952_v20 = vpop.f32.mrb[91].mxu1 }
 0x1a9   :  { %v4332_v52 = vadd.f32 %v2886_v3, %v4227_v26  ;;  %v2889_v15 = vadd.f32 %v2888_v7, %v2887_v16  ;;  %v2953_v54 = vadd.f32 %v2952_v20, %v2951_v63  ;;  %v4335_v59 = vadd.f32 %v2950_v6, %v4230_v39 }
 0x1ab   :  { %v4338_v13 = vadd.f32 %v2889_v15, %v4232_v31  ;;  %v4341_v30 = vadd.f32 %v2953_v54, %v4235_v46 }
 0x1ad   :  { %v2890_v10 = vpop.f32.mrb[92].mxu0  ;;  %v2954_v8 = vpop.f32.mrb[92].mxu1 }
 0x1ae   :  { %v2891_v9 = vpop.f32.mrb[93].mxu0  ;;  %v2955_v37 = vpop.f32.mrb[93].mxu1 }
 0x1af   :  { %v2892_v35 = vadd.f32 %v2891_v9, %v2890_v10  ;;  %v2956_v25 = vadd.f32 %v2955_v37, %v2954_v8  ;;  %v2893_v42 = vpop.f32.mrb[94].mxu0  ;;  %v2957_v26 = vpop.f32.mrb[94].mxu1 }
 0x1b0   :  { %v2894_v34 = vpop.f32.mrb[95].mxu0  ;;  %v2958_v40 = vpop.f32.mrb[95].mxu1 }
 0x1b1   :  { %v4344_v41 = vadd.f32 %v2892_v35, %v4241_v47  ;;  %v2895_v39 = vadd.f32 %v2894_v34, %v2893_v42  ;;  %v2959_v36 = vadd.f32 %v2958_v40, %v2957_v26  ;;  %v4347_v31 = vadd.f32 %v2956_v25, %v4244_v0 }
 0x1b3   :  { %v4350_v46 = vadd.f32 %v2895_v39, %v4246_v57  ;;  %v4353_v5 = vadd.f32 %v2959_v36, %v4249_v49 }
 0x1b5   :  { %v2896_v4 = vpop.f32.mrb[96].mxu0  ;;  %v2960_v53 = vpop.f32.mrb[96].mxu1 }
 0x1b6   :  { %v2897_v23 = vpop.f32.mrb[97].mxu0  ;;  %v2961_v50 = vpop.f32.mrb[97].mxu1 }
 0x1b7   :  { %v2898_v43 = vadd.f32 %v2897_v23, %v2896_v4  ;;  %v2962_v48 = vadd.f32 %v2961_v50, %v2960_v53  ;;  %v2899_v61 = vpop.f32.mrb[98].mxu0  ;;  %v2963_v47 = vpop.f32.mrb[98].mxu1 }
 0x1b8   :  { %v2900_v11 = vpop.f32.mrb[99].mxu0  ;;  %v2964_v3 = vpop.f32.mrb[99].mxu1 }
 0x1b9   :  { %v4356_v6 = vadd.f32 %v2898_v43, %v4255_v19  ;;  %v2901_v0 = vadd.f32 %v2900_v11, %v2899_v61  ;;  %v2965_v16 = vadd.f32 %v2964_v3, %v2963_v47  ;;  %v4359_v57 = vadd.f32 %v2962_v48, %v4258_v27 }
 0x1bb   :  { %v4362_v49 = vadd.f32 %v2901_v0, %v4260_v29  ;;  %v4365_v63 = vadd.f32 %v2965_v16, %v4263_v60 }
 0x1bd   :  { %v2902_v7 = vpop.f32.mrb[100].mxu0  ;;  %v2966_v20 = vpop.f32.mrb[100].mxu1 }
 0x1be   :  { %v2903_v15 = vpop.f32.mrb[101].mxu0  ;;  %v2967_v54 = vpop.f32.mrb[101].mxu1 }
 0x1bf   :  { %v2904_v10 = vadd.f32 %v2903_v15, %v2902_v7  ;;  %v2968_v8 = vadd.f32 %v2967_v54, %v2966_v20  ;;  %v2905_v9 = vpop.f32.mrb[102].mxu0  ;;  %v2969_v19 = vpop.f32.mrb[102].mxu1 }
 0x1c0   :  { %v2906_v37 = vpop.f32.mrb[103].mxu0  ;;  %v2970_v35 = vpop.f32.mrb[103].mxu1 }
 0x1c1   :  { %v4368_v25 = vadd.f32 %v2904_v10, %v4269_v21  ;;  %v2907_v27 = vadd.f32 %v2906_v37, %v2905_v9  ;;  %v2971_v42 = vadd.f32 %v2970_v35, %v2969_v19  ;;  %v4371_v29 = vadd.f32 %v2968_v8, %v4272_v55 }
 0x1c3   :  { %v4374_v60 = vadd.f32 %v2907_v27, %v4274_v2  ;;  %v4377_v26 = vadd.f32 %v2971_v42, %v4277_v12 }
 0x1c5   :  { %v2908_v34 = vpop.f32.mrb[104].mxu0  ;;  %v2972_v40 = vpop.f32.mrb[104].mxu1 }
 0x1c6   :  { %v2909_v39 = vpop.f32.mrb[105].mxu0  ;;  %v2973_v36 = vpop.f32.mrb[105].mxu1 }
 0x1c7   :  { %v2910_v4 = vadd.f32 %v2909_v39, %v2908_v34  ;;  %v2974_v53 = vadd.f32 %v2973_v36, %v2972_v40  ;;  %v2911_v23 = vpop.f32.mrb[106].mxu0  ;;  %v2975_v21 = vpop.f32.mrb[106].mxu1 }
 0x1c8   :  { %v2912_v50 = vpop.f32.mrb[107].mxu0  ;;  %v2976_v43 = vpop.f32.mrb[107].mxu1 }
 0x1c9   :  { %v4380_v48 = vadd.f32 %v2910_v4, %v4283_v18  ;;  %v2913_v55 = vadd.f32 %v2912_v50, %v2911_v23  ;;  %v2977_v61 = vadd.f32 %v2976_v43, %v2975_v21  ;;  %v4383_v2 = vadd.f32 %v2974_v53, %v4286_v62 }
 0x1cb   :  { %v4386_v12 = vadd.f32 %v2913_v55, %v4288_v22  ;;  %v4389_v47 = vadd.f32 %v2977_v61, %v4291_v28 }
 0x1cd   :  { %v2914_v11 = vpop.f32.mrb[108].mxu0  ;;  %v2978_v3 = vpop.f32.mrb[108].mxu1 }
 0x1ce   :  { %v2915_v0 = vpop.f32.mrb[109].mxu0  ;;  %v2979_v16 = vpop.f32.mrb[109].mxu1 }
 0x1cf   :  { %v2916_v7 = vadd.f32 %v2915_v0, %v2914_v11  ;;  %v2980_v20 = vadd.f32 %v2979_v16, %v2978_v3  ;;  %v2917_v15 = vpop.f32.mrb[110].mxu0  ;;  %v2981_v18 = vpop.f32.mrb[110].mxu1 }
 0x1d0   :  { %v2918_v54 = vpop.f32.mrb[111].mxu0  ;;  %v2982_v10 = vpop.f32.mrb[111].mxu1 }
 0x1d1   :  { %v4392_v8 = vadd.f32 %v2916_v7, %v4297_v45  ;;  %v2919_v62 = vadd.f32 %v2918_v54, %v2917_v15  ;;  %v2983_v9 = vadd.f32 %v2982_v10, %v2981_v18  ;;  %v4395_v22 = vadd.f32 %v2980_v20, %v4300_v14 }
 0x1d3   :  { %v4398_v28 = vadd.f32 %v2919_v62, %v4302_v56  ;;  %v4401_v19 = vadd.f32 %v2983_v9, %v4305_v44 }
 0x1d5   :  { %v2984_v37 = vpop.f32.mrb[112].mxu1  ;;  %v3074_v35 = vpop.f32.mrb[112].mxu0 }
 0x1d6   :  { %v2181_v27 = vadd.f32 %v3074_v35, %v4323_v38  ;;  %v2985_v42 = vpop.f32.mrb[113].mxu1  ;;  %v2172_v34 = vpop.f32.mrb[113].mxu0 }
 0x1d7   :  { %v2986_v40 = vadd.f32 %v2985_v42, %v2984_v37  ;;  %v2173_v45 = vadd.f32 %v2172_v34, %v4311_v17  ;;  %v2987_v39 = vpop.f32.mrb[114].mxu1  ;;  %v3075_v36 = vpop.f32.mrb[114].mxu0 }
 0x1d8   :  { %v2184_v14 = vadd.f32 %v3075_v36, %v4329_v33  ;;  %v2988_v4 = vpop.f32.mrb[115].mxu1  ;;  %v2175_v53 = vpop.f32.mrb[115].mxu0  ;;  %v2301_v0 = vmax.f32 %v2181_v27, 0.0 }
 0x1d9   :  { %v2989_v56 = vadd.f32 %v2988_v4, %v2987_v39  ;;  %v2176_v23 = vadd.f32 %v2175_v53, %v4317_v24  ;;  %v4408_v44 = vadd.f32 %v2986_v40, %v4308_v58  ;;  %v2299_v16 = vmax.f32 %v2173_v45, 0.0 }
 0x1da   :  { %v2302_v54 = vmax.f32 %v2184_v14, 0.0 }
 0x1db   :  { %v4411_v21 = vadd.f32 %v2989_v56, %v4314_v1 }
 0x1dd   :  { %v2990_v38 = vpop.f32.mrb[116].mxu1  ;;  %v3078_v50 = vpop.f32.mrb[116].mxu0 }
 0x1de   :  { %v2197_v43 = vadd.f32 %v3078_v50, %v4347_v31  ;;  %v2991_v17 = vpop.f32.mrb[117].mxu1  ;;  %v2188_v55 = vpop.f32.mrb[117].mxu0 }
 0x1df   :  { %v2992_v61 = vadd.f32 %v2991_v17, %v2990_v38  ;;  %v2189_v33 = vadd.f32 %v2188_v55, %v4335_v59  ;;  %v2993_v11 = vpop.f32.mrb[118].mxu1  ;;  %v3079_v3 = vpop.f32.mrb[118].mxu0  ;;  %v2300_v59 = vmax.f32 %v2176_v23, 0.0 }
 0x1e0   :  { %v2305_v24 = vmax.f32 %v2197_v43, 0.0  ;;  %v2200_v58 = vadd.f32 %v3079_v3, %v4353_v5  ;;  %v2994_v7 = vpop.f32.mrb[119].mxu1  ;;  %v2191_v20 = vpop.f32.mrb[119].mxu0 }
 0x1e1   :  { %v2303_v1 = vmax.f32 %v2189_v33, 0.0  ;;  %v2995_v15 = vadd.f32 %v2994_v7, %v2993_v11  ;;  %v2192_v18 = vadd.f32 %v2191_v20, %v4341_v30  ;;  %v4418_v31 = vadd.f32 %v2992_v61, %v4320_v51 }
 0x1e2   :  { %v2337_v10 = vmax.f32 %v2301_v0, %v2305_v24  ;;  %v2306_v62 = vmax.f32 %v2200_v58, 0.0 }
 0x1e3   :  { %v2331_v9 = vmax.f32 %v2299_v16, %v2303_v1  ;;  %v2304_v37 = vmax.f32 %v2192_v18, 0.0  ;;  %v4421_v35 = vadd.f32 %v2995_v15, %v4326_v32 }
 0x1e4   :  { %v2340_v27 = vmax.f32 %v2302_v54, %v2306_v62 }
 0x1e5   :  { %v2334_v5 = vmax.f32 %v2300_v59, %v2304_v37  ;;  %v2996_v42 = vpop.f32.mrb[120].mxu1  ;;  %v3082_v34 = vpop.f32.mrb[120].mxu0 }
 0x1e6   :  { %v2213_v40 = vadd.f32 %v3082_v34, %v4371_v29  ;;  %v2997_v45 = vpop.f32.mrb[121].mxu1  ;;  %v2204_v30 = vpop.f32.mrb[121].mxu0 }
 0x1e7   :  { %v2998_v39 = vadd.f32 %v2997_v45, %v2996_v42  ;;  %v2205_v51 = vadd.f32 %v2204_v30, %v4359_v57  ;;  %v2999_v36 = vpop.f32.mrb[122].mxu1  ;;  %v3083_v14 = vpop.f32.mrb[122].mxu0 }
 0x1e8   :  { %v2309_v4 = vmax.f32 %v2213_v40, 0.0  ;;  %v2216_v53 = vadd.f32 %v3083_v14, %v4377_v26  ;;  %v3000_v56 = vpop.f32.mrb[123].mxu1  ;;  %v2207_v23 = vpop.f32.mrb[123].mxu0 }
 0x1e9   :  { %v2307_v32 = vmax.f32 %v2205_v51, 0.0  ;;  %v3001_v38 = vadd.f32 %v3000_v56, %v2999_v36  ;;  %v2208_v50 = vadd.f32 %v2207_v23, %v4365_v63  ;;  %v2092_v43 = vadd.f32 %v2998_v39, %v4332_v52 }
 0x1ea   :  { %v2338_v17 = vmax.f32 %v2337_v10, %v2309_v4  ;;  %v2310_v29 = vmax.f32 %v2216_v53, 0.0 }
 0x1eb   :  { %v2332_v55 = vmax.f32 %v2331_v9, %v2307_v32  ;;  %v2308_v61 = vmax.f32 %v2208_v50, 0.0  ;;  %v4429_v33 = vadd.f32 %v3001_v38, %v4338_v13 }
 0x1ec   :  { %v2341_v57 = vmax.f32 %v2340_v27, %v2310_v29 }
 0x1ed   :  { %v2335_v11 = vmax.f32 %v2334_v5, %v2308_v61  ;;  %v3002_v3 = vpop.f32.mrb[124].mxu1  ;;  %v3086_v0 = vpop.f32.mrb[124].mxu0 }
 0x1ee   :  { %v2229_v26 = vadd.f32 %v3086_v0, %v4395_v22  ;;  %v3003_v16 = vpop.f32.mrb[125].mxu1  ;;  %v2220_v24 = vpop.f32.mrb[125].mxu0 }
 0x1ef   :  { %v3004_v58 = vadd.f32 %v3003_v16, %v3002_v3  ;;  %v2221_v63 = vadd.f32 %v2220_v24, %v4383_v2  ;;  %v3005_v7 = vpop.f32.mrb[126].mxu1  ;;  %v3087_v52 = vpop.f32.mrb[126].mxu0 }
 0x1f0   :  { %v2313_v20 = vmax.f32 %v2229_v26, 0.0  ;;  %v2232_v1 = vadd.f32 %v3087_v52, %v4401_v19  ;;  %v3006_v15 = vpop.f32.mrb[127].mxu1  ;;  %v2223_v18 = vpop.f32.mrb[127].mxu0 }
 0x1f1   :  { %v2311_v13 = vmax.f32 %v2221_v63, 0.0  ;;  %v3007_v54 = vadd.f32 %v3006_v15, %v3005_v7  ;;  %v2224_v10 = vadd.f32 %v2223_v18, %v4389_v47  ;;  %v2100_v62 = vadd.f32 %v3004_v58, %v4344_v41 }
 0x1f2   :  { %v2339_v59 = vmax.f32 %v2338_v17, %v2313_v20  ;;  %v2314_v22 = vmax.f32 %v2232_v1, 0.0 }
 0x1f3   :  { %v2333_v9 = vmax.f32 %v2332_v55, %v2311_v13  ;;  %v2312_v37 = vmax.f32 %v2224_v10, 0.0  ;;  %v2103_v27 = vadd.f32 %v3007_v54, %v4350_v46 }
 0x1f4   :  { %2357 = vst [vmem:[%s4477_s3 + $0x10] sm:$0xff] %v2339_v59  ;;  %v2342_v2 = vmax.f32 %v2341_v57, %v2314_v22 }
 0x1f5   :  { %2355 = vst [vmem:[%s4477_s3] sm:$0xff] %v2333_v9  ;;  %v2336_v19 = vmax.f32 %v2335_v11, %v2312_v37  ;;  %v3008_v5 = vpop.f32.mrb[128].mxu1  ;;  %v3090_v47 = vpop.f32.mrb[128].mxu0 }
 0x1f6   :  { %2358 = vst [vmem:[%s4477_s3 + $0x18] sm:$0xff] %v2342_v2  ;;  %v2245_v41 = vadd.f32 %v3090_v47, %v4418_v31  ;;  %v3009_v42 = vpop.f32.mrb[129].mxu1  ;;  %v2236_v46 = vpop.f32.mrb[129].mxu0 }
 0x1f7   :  { %2356 = vst [vmem:[%s4477_s3 + $0x8] sm:$0xff] %v2336_v19  ;;  %v3010_v34 = vadd.f32 %v3009_v42, %v3008_v5  ;;  %v2237_v40 = vadd.f32 %v2236_v46, %v4408_v44  ;;  %v3011_v45 = vpop.f32.mrb[130].mxu1  ;;  %v3091_v30 = vpop.f32.mrb[130].mxu0 }
 0x1f8   :  { %v2248_v39 = vadd.f32 %v3091_v30, %v4421_v35  ;;  %v3012_v51 = vpop.f32.mrb[131].mxu1  ;;  %v2239_v36 = vpop.f32.mrb[131].mxu0  ;;  %v2317_v61 = vmax.f32 %v2245_v41, 0.0 }
 0x1f9   :  { %v3013_v14 = vadd.f32 %v3012_v51, %v3011_v45  ;;  %v2240_v4 = vadd.f32 %v2239_v36, %v4411_v21  ;;  %v2108_v31 = vadd.f32 %v3010_v34, %v4356_v6  ;;  %v2315_v35 = vmax.f32 %v2237_v40, 0.0 }
 0x1fa   :  { %v2318_v16 = vmax.f32 %v2248_v39, 0.0 }
 0x1fb   :  { %v2111_v53 = vadd.f32 %v3013_v14, %v4362_v49  ;;  %v2316_v63 = vmax.f32 %v2240_v4, 0.0 }
 0x1fd   :  { %v3014_v56 = vpop.f32.mrb[132].mxu1  ;;  %v3094_v23 = vpop.f32.mrb[132].mxu0 }
 0x1fe   :  { %v2261_v32 = vadd.f32 %v3094_v23, %v2100_v62  ;;  %v3015_v38 = vpop.f32.mrb[133].mxu1  ;;  %v2252_v50 = vpop.f32.mrb[133].mxu0 }
 0x1ff   :  { %v3016_v17 = vadd.f32 %v3015_v38, %v3014_v56  ;;  %v2253_v44 = vadd.f32 %v2252_v50, %v2092_v43  ;;  %v3017_v29 = vpop.f32.mrb[134].mxu1  ;;  %v3095_v55 = vpop.f32.mrb[134].mxu0 }
 0x200   :  { %v2321_v57 = vmax.f32 %v2261_v32, 0.0  ;;  %v2264_v11 = vadd.f32 %v3095_v55, %v2103_v27  ;;  %v3018_v3 = vpop.f32.mrb[135].mxu1  ;;  %v2255_v0 = vpop.f32.mrb[135].mxu0 }
 0x201   :  { %v2319_v21 = vmax.f32 %v2253_v44, 0.0  ;;  %v3019_v26 = vadd.f32 %v3018_v3, %v3017_v29  ;;  %v2256_v6 = vadd.f32 %v2255_v0, %v4429_v33  ;;  %v2116_v49 = vadd.f32 %v3016_v17, %v4368_v25 }
 0x202   :  { %v2349_v24 = vmax.f32 %v2317_v61, %v2321_v57  ;;  %v2322_v58 = vmax.f32 %v2264_v11, 0.0 }
 0x203   :  { %v2343_v7 = vmax.f32 %v2315_v35, %v2319_v21  ;;  %v2320_v43 = vmax.f32 %v2256_v6, 0.0  ;;  %v2119_v52 = vadd.f32 %v3019_v26, %v4374_v60 }
 0x204   :  { %v2352_v20 = vmax.f32 %v2318_v16, %v2322_v58 }
 0x205   :  { %v2346_v1 = vmax.f32 %v2316_v63, %v2320_v43  ;;  %v3020_v15 = vpop.f32.mrb[136].mxu1  ;;  %v3098_v18 = vpop.f32.mrb[136].mxu0 }
 0x206   :  { %v2277_v13 = vadd.f32 %v3098_v18, %v2116_v49  ;;  %v3021_v54 = vpop.f32.mrb[137].mxu1  ;;  %v2268_v10 = vpop.f32.mrb[137].mxu0 }
 0x207   :  { %v3022_v62 = vadd.f32 %v3021_v54, %v3020_v15  ;;  %v2269_v59 = vadd.f32 %v2268_v10, %v2108_v31  ;;  %v3023_v33 = vpop.f32.mrb[138].mxu1  ;;  %v3099_v22 = vpop.f32.mrb[138].mxu0 }
 0x208   :  { %v2325_v25 = vmax.f32 %v2277_v13, 0.0  ;;  %v2280_v9 = vadd.f32 %v3099_v22, %v2119_v52  ;;  %v3024_v37 = vpop.f32.mrb[139].mxu1  ;;  %v2271_v27 = vpop.f32.mrb[139].mxu0 }
 0x209   :  { %v2323_v2 = vmax.f32 %v2269_v59, 0.0  ;;  %v3025_v19 = vadd.f32 %v3024_v37, %v3023_v33  ;;  %v2272_v5 = vadd.f32 %v2271_v27, %v2111_v53  ;;  %v2124_v60 = vadd.f32 %v3022_v62, %v4380_v48 }
 0x20a   :  { %v2350_v47 = vmax.f32 %v2349_v24, %v2325_v25  ;;  %v2326_v41 = vmax.f32 %v2280_v9, 0.0 }
 0x20b   :  { %v2344_v42 = vmax.f32 %v2343_v7, %v2323_v2  ;;  %v2324_v46 = vmax.f32 %v2272_v5, 0.0  ;;  %v2127_v34 = vadd.f32 %v3025_v19, %v4386_v12 }
 0x20c   :  { %v2353_v40 = vmax.f32 %v2352_v20, %v2326_v41 }
 0x20d   :  { %v2347_v45 = vmax.f32 %v2346_v1, %v2324_v46  ;;  %v3026_v30 = vpop.f32.mrb[140].mxu1  ;;  %v3102_v39 = vpop.f32.mrb[140].mxu0 }
 0x20e   :  { %v3027_v51 = vpop.f32.mrb[141].mxu1  ;;  %v2284_v36 = vpop.f32.mrb[141].mxu0 }
 0x20f   :  { %v3028_v14 = vadd.f32 %v3027_v51, %v3026_v30  ;;  %v2285_v4 = vadd.f32 %v2284_v36, %v2124_v60  ;;  %v3029_v31 = vpop.f32.mrb[142].mxu1  ;;  %v3103_v56 = vpop.f32.mrb[142].mxu0 }
 0x210   :  { %v3030_v23 = vpop.f32.mrb[143].mxu1  ;;  %v2287_v53 = vpop.f32.mrb[143].mxu0 }
 0x211   :  { %v2132_v48 = vadd.f32 %v3028_v14, %v4392_v8  ;;  %v2327_v32 = vmax.f32 %v2285_v4, 0.0  ;;  %v3031_v38 = vadd.f32 %v3030_v23, %v3029_v31  ;;  %v2288_v50 = vadd.f32 %v2287_v53, %v2127_v34 }
 0x213   :  { %v2293_v17 = vadd.f32 %v3102_v39, %v2132_v48  ;;  %v2345_v44 = vmax.f32 %v2344_v42, %v2327_v32  ;;  %v2135_v12 = vadd.f32 %v3031_v38, %v4398_v28  ;;  %v2328_v29 = vmax.f32 %v2288_v50, 0.0 }
 0x215   :  { %v2329_v55 = vmax.f32 %v2293_v17, 0.0  ;;  %2359 = vst [vmem:[%s4477_s3 + $0x20] sm:$0xff] %v2345_v44  ;;  %v2296_v61 = vadd.f32 %v3103_v56, %v2135_v12  ;;  %v2348_v35 = vmax.f32 %v2347_v45, %v2328_v29 }
 0x217   :  { %v2351_v57 = vmax.f32 %v2350_v47, %v2329_v55  ;;  %v2330_v11 = vmax.f32 %v2296_v61, 0.0  ;;  %2360 = vst [vmem:[%s4477_s3 + $0x28] sm:$0xff] %v2348_v35 }
 0x219   :  { %2361 = vst [vmem:[%s4477_s3 + $0x30] sm:$0xff] %v2351_v57  ;;  %v2354_v8 = vmax.f32 %v2353_v40, %v2330_v11 }
 0x21b   :  { %2362 = vst [vmem:[%s4477_s3 + $0x38] sm:$0xff] %v2354_v8 }

// kernel: encoder_cc_forward.7
= control target key start
LH: loop header
LB: loop body
LE: loop exit
PB: predicated region body
PF: predicated region fallthrough
CT: control target
= control target key end

     0   :  { %v146_v38 = vlaneseq  ;;  %v1400_v39 = vmov 1966171168   ;;  %s1839_s0 = inlined_call_operand.vmem [shape: bf16[2,512], index: 0, kind: input, shape index: {}]   ;;  %s1840_s1 = inlined_call_operand.vmem [shape: bf16[512,512], index: 1, kind: input, shape index: {}]   ;;  %s1841_s2 = inlined_call_operand.vmem [shape: f32[1,512], index: 2, kind: input, shape index: {}]   ;;  %s1842_s3 = inlined_call_operand.hbm [shape: f32[2,512], index: 3, kind: output, shape index: {}]  }
   0x1   :  { %v1184_v0 = vld [vmem:[%s1840_s1 + $0x4] ss:$16 sps:$4 sm:$0xff]   ;;  %v1186_v1 = vld [vmem:[%s1840_s1 + $0xc] ss:$16 sps:$4 sm:$0xff]   ;;  %v1188_v2 = vld [vmem:[%s1840_s1] ss:$16 sps:$4 sm:$0xff]   ;;  %v176_v40 = vunpack.c.l.s4 %v1400_v39 }
   0x2   :  { %835 = vmatprep.subr.bf16.mxu0 %v1184_v0  ;;  %v1189_v3 = vld [vmem:[%s1840_s1 + $0x8] ss:$16 sps:$4 sm:$0xff]   ;;  %917 = vmatprep.subr.bf16.mxu1 %v1186_v1  ;;  %v1190_v4 = vld [vmem:[%s1840_s1 + $0x24] ss:$16 sps:$4 sm:$0xff]   ;;  %v1192_v5 = vld [vmem:[%s1840_s1 + $0x2c] ss:$16 sps:$4 sm:$0xff]  }
   0x3   :  { %836 = vmatpush1.bf16.msra.mxu0 %v1188_v2  ;;  %918 = vmatpush1.bf16.msra.mxu1 %v1189_v3  ;;  %v1194_v6 = vld [vmem:[%s1840_s1 + $0x20] ss:$16 sps:$4 sm:$0xff]   ;;  %v1195_v7 = vld [vmem:[%s1840_s1 + $0x28] ss:$16 sps:$4 sm:$0xff]   ;;  %v1196_v8 = vld [vmem:[%s1840_s1 + $0x44] ss:$16 sps:$4 sm:$0xff]   ;;  %v177_v46 = vunpack.c.0.s8 %v176_v40 }
   0x4   :  { %837 = vmatprep.subr.bf16.mxu0 %v1190_v4  ;;  %919 = vmatprep.subr.bf16.mxu1 %v1192_v5  ;;  %v1198_v9 = vld [vmem:[%s1840_s1 + $0x4c] ss:$16 sps:$4 sm:$0xff]   ;;  %v1200_v10 = vld [vmem:[%s1840_s1 + $0x40] ss:$16 sps:$4 sm:$0xff]   ;;  %v1201_v11 = vld [vmem:[%s1840_s1 + $0x48] ss:$16 sps:$4 sm:$0xff]  }
   0x5   :  { %v1202_v12 = vld [vmem:[%s1840_s1 + $0x64] ss:$16 sps:$4 sm:$0xff]   ;;  %v1204_v13 = vld [vmem:[%s1840_s1 + $0x6c] ss:$16 sps:$4 sm:$0xff]   ;;  %v1206_v14 = vld [vmem:[%s1840_s1 + $0x60] ss:$16 sps:$4 sm:$0xff]  }
   0x6   :  { %v1207_v15 = vld [vmem:[%s1840_s1 + $0x68] ss:$16 sps:$4 sm:$0xff]   ;;  %v1208_v16 = vld [vmem:[%s1840_s1 + $0x84] ss:$16 sps:$4 sm:$0xff]   ;;  %v1210_v17 = vld [vmem:[%s1840_s1 + $0x8c] ss:$16 sps:$4 sm:$0xff]  }
   0x7   :  { %838 = vmatpush1.bf16.msra.mxu0 %v1194_v6  ;;  %920 = vmatpush1.bf16.msra.mxu1 %v1195_v7  ;;  %v1212_v18 = vld [vmem:[%s1840_s1 + $0x80] ss:$16 sps:$4 sm:$0xff]   ;;  %v1213_v19 = vld [vmem:[%s1840_s1 + $0x88] ss:$16 sps:$4 sm:$0xff]   ;;  %v1214_v20 = vld [vmem:[%s1840_s1 + $0xa4] ss:$16 sps:$4 sm:$0xff]  }
   0x8   :  { %839 = vmatprep.subr.bf16.mxu0 %v1196_v8  ;;  %921 = vmatprep.subr.bf16.mxu1 %v1198_v9  ;;  %v1216_v21 = vld [vmem:[%s1840_s1 + $0xac] ss:$16 sps:$4 sm:$0xff]   ;;  %v1218_v22 = vld [vmem:[%s1840_s1 + $0xa0] ss:$16 sps:$4 sm:$0xff]   ;;  %v1219_v23 = vld [vmem:[%s1840_s1 + $0xa8] ss:$16 sps:$4 sm:$0xff]  }
   0x9   :  { %v1220_v24 = vld [vmem:[%s1840_s1 + $0xc4] ss:$16 sps:$4 sm:$0xff]   ;;  %v1222_v25 = vld [vmem:[%s1840_s1 + $0xcc] ss:$16 sps:$4 sm:$0xff]   ;;  %v1224_v26 = vld [vmem:[%s1840_s1 + $0xc0] ss:$16 sps:$4 sm:$0xff]  }
   0xa   :  { %v1225_v27 = vld [vmem:[%s1840_s1 + $0xc8] ss:$16 sps:$4 sm:$0xff]   ;;  %v1226_v28 = vld [vmem:[%s1840_s1 + $0xe4] ss:$16 sps:$4 sm:$0xff]   ;;  %v1228_v29 = vld [vmem:[%s1840_s1 + $0xec] ss:$16 sps:$4 sm:$0xff]  }
   0xb   :  { %840 = vmatpush1.bf16.msra.mxu0 %v1200_v10  ;;  %922 = vmatpush1.bf16.msra.mxu1 %v1201_v11  ;;  %v1230_v30 = vld [vmem:[%s1840_s1 + $0xe0] ss:$16 sps:$4 sm:$0xff]   ;;  %v1231_v31 = vld [vmem:[%s1840_s1 + $0xe8] ss:$16 sps:$4 sm:$0xff]   ;;  %v1232_v32 = vld [vmem:[%s1840_s1 + $0x104] ss:$16 sps:$4 sm:$0xff]  }
   0xc   :  { %841 = vmatprep.subr.bf16.mxu0 %v1202_v12  ;;  %923 = vmatprep.subr.bf16.mxu1 %v1204_v13  ;;  %v1234_v33 = vld [vmem:[%s1840_s1 + $0x10c] ss:$16 sps:$4 sm:$0xff]   ;;  %v1236_v34 = vld [vmem:[%s1840_s1 + $0x100] ss:$16 sps:$4 sm:$0xff]   ;;  %v1237_v35 = vld [vmem:[%s1840_s1 + $0x108] ss:$16 sps:$4 sm:$0xff]  }
   0xd   :  { %v1238_v36 = vld [vmem:[%s1840_s1 + $0x124] ss:$16 sps:$4 sm:$0xff]   ;;  %v1240_v37 = vld [vmem:[%s1840_s1 + $0x12c] ss:$16 sps:$4 sm:$0xff]   ;;  %v1242_v41 = vld [vmem:[%s1840_s1 + $0x120] ss:$16 sps:$4 sm:$0xff]  }
   0xe   :  { %v1243_v42 = vld [vmem:[%s1840_s1 + $0x128] ss:$16 sps:$4 sm:$0xff]   ;;  %v1244_v43 = vld [vmem:[%s1840_s1 + $0x144] ss:$16 sps:$4 sm:$0xff]   ;;  %v1246_v44 = vld [vmem:[%s1840_s1 + $0x14c] ss:$16 sps:$4 sm:$0xff]  }
   0xf   :  { %842 = vmatpush1.bf16.msra.mxu0 %v1206_v14  ;;  %924 = vmatpush1.bf16.msra.mxu1 %v1207_v15  ;;  %v1549_v45 = vshrl.u32 %v146_v38, 7  ;;  %v1248_v47 = vld [vmem:[%s1840_s1 + $0x140] ss:$16 sps:$4 sm:$0xff]   ;;  %v1249_v48 = vld [vmem:[%s1840_s1 + $0x148] ss:$16 sps:$4 sm:$0xff]  }
  0x10   :  { %843 = vmatprep.subr.bf16.mxu0 %v1208_v16  ;;  %925 = vmatprep.subr.bf16.mxu1 %v1210_v17  ;;  %v1250_v49 = vld [vmem:[%s1840_s1 + $0x164] ss:$16 sps:$4 sm:$0xff]   ;;  %v1252_v50 = vld [vmem:[%s1840_s1 + $0x16c] ss:$16 sps:$4 sm:$0xff]   ;;  %v1254_v53 = vld [vmem:[%s1840_s1 + $0x160] ss:$16 sps:$4 sm:$0xff]  }
  0x11   :  { %v180_v51 = vsub.s32 %v177_v46, %v1549_v45  ;;  %v1040_v52 = vld.sshfl [vmem:[%s1839_s0] sm:$0x33 pattern:$0x75316420]  ;;  %v1255_v54 = vld [vmem:[%s1840_s1 + $0x168] ss:$16 sps:$4 sm:$0xff]  }
  0x12   :  { %v174_v55 = vcombine.high %v1040_v52, %v1040_v52  ;;  %v1256_v56 = vld [vmem:[%s1840_s1 + $0x184] ss:$16 sps:$4 sm:$0xff]   ;;  %v1258_v57 = vld [vmem:[%s1840_s1 + $0x18c] ss:$16 sps:$4 sm:$0xff]   ;;  %v1260_v59 = vld [vmem:[%s1840_s1 + $0x180] ss:$16 sps:$4 sm:$0xff]  }
  0x13   :  { %844 = vmatpush1.bf16.msra.mxu0 %v1212_v18  ;;  %926 = vmatpush1.bf16.msra.mxu1 %v1213_v19  ;;  %v1261_v60 = vld [vmem:[%s1840_s1 + $0x188] ss:$16 sps:$4 sm:$0xff]   ;;  %v1262_v61 = vld [vmem:[%s1840_s1 + $0x1a4] ss:$16 sps:$4 sm:$0xff]   ;;  %v1264_v62 = vld [vmem:[%s1840_s1 + $0x1ac] ss:$16 sps:$4 sm:$0xff]   ;;  %v1630_v12 = vrot.slane %v1040_v52, %v180_v51 }
  0x14   :  { %845 = vmatprep.subr.bf16.mxu0 %v1214_v20  ;;  %927 = vmatprep.subr.bf16.mxu1 %v1216_v21  ;;  %v188_v58 = vrot.slane %v174_v55, %v180_v51  ;;  %v1266_v63 = vld [vmem:[%s1840_s1 + $0x1a0] ss:$16 sps:$4 sm:$0xff]   ;;  %v1267_v0 = vld [vmem:[%s1840_s1 + $0x1a8] ss:$16 sps:$4 sm:$0xff]   ;;  %v1268_v1 = vld [vmem:[%s1840_s1 + $0x1c4] ss:$16 sps:$4 sm:$0xff]  }
  0x15   :  { %v1270_v2 = vld [vmem:[%s1840_s1 + $0x1cc] ss:$16 sps:$4 sm:$0xff]   ;;  %v1272_v3 = vld [vmem:[%s1840_s1 + $0x1c0] ss:$16 sps:$4 sm:$0xff]   ;;  %v1273_v4 = vld [vmem:[%s1840_s1 + $0x1c8] ss:$16 sps:$4 sm:$0xff]  }
  0x16   :  { %867 = vmatprep.mubr.bf16.mxu0 %v188_v58  ;;  %949 = vmatprep.mubr.bf16.mxu1 %v188_v58  ;;  %v1274_v5 = vld [vmem:[%s1840_s1 + $0x1e4] ss:$16 sps:$4 sm:$0xff]   ;;  %v1276_v6 = vld [vmem:[%s1840_s1 + $0x1ec] ss:$16 sps:$4 sm:$0xff]   ;;  %v1278_v7 = vld [vmem:[%s1840_s1 + $0x1e0] ss:$16 sps:$4 sm:$0xff]   ;;  %v190_v16 = vcombine.high %v188_v58, %v188_v58 }
  0x17   :  { %846 = vmatpush1.bf16.msra.mxu0 %v1218_v22  ;;  %928 = vmatpush1.bf16.msra.mxu1 %v1219_v23  ;;  %v1279_v8 = vld [vmem:[%s1840_s1 + $0x1e8] ss:$16 sps:$4 sm:$0xff]   ;;  %v1282_v9 = vld [vmem:[%s1840_s1 + $0x204] ss:$16 sps:$4 sm:$0xff]   ;;  %v1285_v10 = vld [vmem:[%s1840_s1 + $0x20c] ss:$16 sps:$4 sm:$0xff]  }
  0x18   :  { %847 = vmatprep.subr.bf16.mxu0 %v1220_v24  ;;  %929 = vmatprep.subr.bf16.mxu1 %v1222_v25  ;;  %v1280_v11 = vld [vmem:[%s1840_s1 + $0x200] ss:$16 sps:$4 sm:$0xff]   ;;  %v1283_v13 = vld [vmem:[%s1840_s1 + $0x208] ss:$16 sps:$4 sm:$0xff]   ;;  %v1288_v14 = vld [vmem:[%s1840_s1 + $0x224] ss:$16 sps:$4 sm:$0xff]  }
  0x19   :  { %v1291_v15 = vld [vmem:[%s1840_s1 + $0x22c] ss:$16 sps:$4 sm:$0xff]   ;;  %v1286_v17 = vld [vmem:[%s1840_s1 + $0x220] ss:$16 sps:$4 sm:$0xff]   ;;  %v1289_v18 = vld [vmem:[%s1840_s1 + $0x228] ss:$16 sps:$4 sm:$0xff]  }
  0x1a   :  { %v1294_v19 = vld [vmem:[%s1840_s1 + $0x244] ss:$16 sps:$4 sm:$0xff]   ;;  %v1297_v20 = vld [vmem:[%s1840_s1 + $0x24c] ss:$16 sps:$4 sm:$0xff]   ;;  %v1292_v21 = vld [vmem:[%s1840_s1 + $0x240] ss:$16 sps:$4 sm:$0xff]  }
  0x1b   :  { %848 = vmatpush1.bf16.msra.mxu0 %v1224_v26  ;;  %930 = vmatpush1.bf16.msra.mxu1 %v1225_v27  ;;  %v1295_v22 = vld [vmem:[%s1840_s1 + $0x248] ss:$16 sps:$4 sm:$0xff]   ;;  %v1300_v23 = vld [vmem:[%s1840_s1 + $0x264] ss:$16 sps:$4 sm:$0xff]   ;;  %v1303_v24 = vld [vmem:[%s1840_s1 + $0x26c] ss:$16 sps:$4 sm:$0xff]  }
  0x1c   :  { %849 = vmatprep.subr.bf16.mxu0 %v1226_v28  ;;  %931 = vmatprep.subr.bf16.mxu1 %v1228_v29  ;;  %v1298_v25 = vld [vmem:[%s1840_s1 + $0x260] ss:$16 sps:$4 sm:$0xff]   ;;  %v1301_v26 = vld [vmem:[%s1840_s1 + $0x268] ss:$16 sps:$4 sm:$0xff]   ;;  %v1306_v27 = vld [vmem:[%s1840_s1 + $0x284] ss:$16 sps:$4 sm:$0xff]  }
  0x1d   :  { %v1309_v28 = vld [vmem:[%s1840_s1 + $0x28c] ss:$16 sps:$4 sm:$0xff]   ;;  %v1304_v29 = vld [vmem:[%s1840_s1 + $0x280] ss:$16 sps:$4 sm:$0xff]  }
  0x1f   :  { %850 = vmatpush1.bf16.msra.mxu0 %v1230_v30  ;;  %932 = vmatpush1.bf16.msra.mxu1 %v1231_v31  ;;  %v1307_v30 = vld [vmem:[%s1840_s1 + $0x288] ss:$16 sps:$4 sm:$0xff]   ;;  %v1312_v31 = vld [vmem:[%s1840_s1 + $0x2a4] ss:$16 sps:$4 sm:$0xff]  }
  0x20   :  { %851 = vmatprep.subr.bf16.mxu0 %v1232_v32  ;;  %933 = vmatprep.subr.bf16.mxu1 %v1234_v33  ;;  %v1315_v32 = vld [vmem:[%s1840_s1 + $0x2ac] ss:$16 sps:$4 sm:$0xff]   ;;  %v1310_v33 = vld [vmem:[%s1840_s1 + $0x2a0] ss:$16 sps:$4 sm:$0xff]  }
  0x23   :  { %852 = vmatpush1.bf16.msra.mxu0 %v1236_v34  ;;  %934 = vmatpush1.bf16.msra.mxu1 %v1237_v35  ;;  %v1313_v34 = vld [vmem:[%s1840_s1 + $0x2a8] ss:$16 sps:$4 sm:$0xff]   ;;  %v1318_v35 = vld [vmem:[%s1840_s1 + $0x2c4] ss:$16 sps:$4 sm:$0xff]  }
  0x24   :  { %853 = vmatprep.subr.bf16.mxu0 %v1238_v36  ;;  %935 = vmatprep.subr.bf16.mxu1 %v1240_v37  ;;  %v1321_v36 = vld [vmem:[%s1840_s1 + $0x2cc] ss:$16 sps:$4 sm:$0xff]  }
  0x27   :  { %854 = vmatpush1.bf16.msra.mxu0 %v1242_v41  ;;  %936 = vmatpush1.bf16.msra.mxu1 %v1243_v42 }
  0x28   :  { %855 = vmatprep.subr.bf16.mxu0 %v1244_v43  ;;  %937 = vmatprep.subr.bf16.mxu1 %v1246_v44 }
  0x2b   :  { %856 = vmatpush1.bf16.msra.mxu0 %v1248_v47  ;;  %938 = vmatpush1.bf16.msra.mxu1 %v1249_v48 }
  0x2c   :  { %857 = vmatprep.subr.bf16.mxu0 %v1250_v49  ;;  %939 = vmatprep.subr.bf16.mxu1 %v1252_v50 }
  0x2f   :  { %858 = vmatpush1.bf16.msra.mxu0 %v1254_v53  ;;  %940 = vmatpush1.bf16.msra.mxu1 %v1255_v54 }
  0x30   :  { %859 = vmatprep.subr.bf16.mxu0 %v1256_v56  ;;  %941 = vmatprep.subr.bf16.mxu1 %v1258_v57 }
  0x33   :  { %860 = vmatpush1.bf16.msra.mxu0 %v1260_v59  ;;  %942 = vmatpush1.bf16.msra.mxu1 %v1261_v60 }
  0x34   :  { %861 = vmatprep.subr.bf16.mxu0 %v1262_v61  ;;  %943 = vmatprep.subr.bf16.mxu1 %v1264_v62 }
  0x37   :  { %862 = vmatpush1.bf16.msra.mxu0 %v1266_v63  ;;  %944 = vmatpush1.bf16.msra.mxu1 %v1267_v0 }
  0x38   :  { %863 = vmatprep.subr.bf16.mxu0 %v1268_v1  ;;  %945 = vmatprep.subr.bf16.mxu1 %v1270_v2 }
  0x3b   :  { %864 = vmatpush1.bf16.msra.mxu0 %v1272_v3  ;;  %946 = vmatpush1.bf16.msra.mxu1 %v1273_v4 }
  0x3c   :  { %865 = vmatprep.subr.bf16.mxu0 %v1274_v5  ;;  %947 = vmatprep.subr.bf16.mxu1 %v1276_v6 }
  0x3f   :  { %866 = vmatpush1.bf16.msra.mxu0 %v1278_v7  ;;  %948 = vmatpush1.bf16.msra.mxu1 %v1279_v8 }
  0x40   :  { %876 = vmatprep.subr.bf16.mxu0 %v1282_v9  ;;  %958 = vmatprep.subr.bf16.mxu1 %v1285_v10 }
  0x42   :  { %868 = vmatmul.mubr.bf16.vlgmr.msra.gmra.mrb[0].mxu0 %v1630_v12  ;;  %950 = vmatmul.mubr.bf16.vlgmr.msra.gmra.mrb[0].mxu1 %v1630_v12 }
  0x43   :  { %877 = vmatpush1.bf16.msra.mxu0 %v1280_v11  ;;  %959 = vmatpush1.bf16.msra.mxu1 %v1283_v13 }
  0x44   :  { %878 = vmatprep.subr.bf16.mxu0 %v1288_v14  ;;  %960 = vmatprep.subr.bf16.mxu1 %v1291_v15 }
  0x45   :  { %908 = vmatprep.mubr.bf16.mxu0 %v190_v16  ;;  %990 = vmatprep.mubr.bf16.mxu1 %v190_v16 }
  0x47   :  { %879 = vmatpush1.bf16.msra.mxu0 %v1286_v17  ;;  %961 = vmatpush1.bf16.msra.mxu1 %v1289_v18 }
  0x48   :  { %880 = vmatprep.subr.bf16.mxu0 %v1294_v19  ;;  %962 = vmatprep.subr.bf16.mxu1 %v1297_v20 }
  0x4b   :  { %881 = vmatpush1.bf16.msra.mxu0 %v1292_v21  ;;  %963 = vmatpush1.bf16.msra.mxu1 %v1295_v22 }
  0x4c   :  { %882 = vmatprep.subr.bf16.mxu0 %v1300_v23  ;;  %964 = vmatprep.subr.bf16.mxu1 %v1303_v24 }
  0x4f   :  { %883 = vmatpush1.bf16.msra.mxu0 %v1298_v25  ;;  %965 = vmatpush1.bf16.msra.mxu1 %v1301_v26 }
  0x50   :  { %884 = vmatprep.subr.bf16.mxu0 %v1306_v27  ;;  %966 = vmatprep.subr.bf16.mxu1 %v1309_v28 }
  0x53   :  { %885 = vmatpush1.bf16.msra.mxu0 %v1304_v29  ;;  %967 = vmatpush1.bf16.msra.mxu1 %v1307_v30 }
  0x54   :  { %886 = vmatprep.subr.bf16.mxu0 %v1312_v31  ;;  %968 = vmatprep.subr.bf16.mxu1 %v1315_v32 }
  0x55   :  { %8 = vsyncpa [#allocation3], 0  ;;  %v1316_v37 = vld [vmem:[%s1840_s1 + $0x2c0] ss:$16 sps:$4 sm:$0xff]   ;;  %v1319_v38 = vld [vmem:[%s1840_s1 + $0x2c8] ss:$16 sps:$4 sm:$0xff]   ;;  %v189_v13 = vcombine.high %v1630_v12, %v1630_v12 }
  0x56   :  { %v1324_v39 = vld [vmem:[%s1840_s1 + $0x2e4] ss:$16 sps:$4 sm:$0xff]   ;;  %v1327_v40 = vld [vmem:[%s1840_s1 + $0x2ec] ss:$16 sps:$4 sm:$0xff]   ;;  %v1322_v41 = vld [vmem:[%s1840_s1 + $0x2e0] ss:$16 sps:$4 sm:$0xff]  }
  0x57   :  { %887 = vmatpush1.bf16.msra.mxu0 %v1310_v33  ;;  %969 = vmatpush1.bf16.msra.mxu1 %v1313_v34  ;;  %v1325_v42 = vld [vmem:[%s1840_s1 + $0x2e8] ss:$16 sps:$4 sm:$0xff]   ;;  %v1330_v43 = vld [vmem:[%s1840_s1 + $0x304] ss:$16 sps:$4 sm:$0xff]   ;;  %v1333_v44 = vld [vmem:[%s1840_s1 + $0x30c] ss:$16 sps:$4 sm:$0xff]  }
  0x58   :  { %888 = vmatprep.subr.bf16.mxu0 %v1318_v35  ;;  %970 = vmatprep.subr.bf16.mxu1 %v1321_v36  ;;  %v1328_v46 = vld [vmem:[%s1840_s1 + $0x300] ss:$16 sps:$4 sm:$0xff]   ;;  %v1331_v47 = vld [vmem:[%s1840_s1 + $0x308] ss:$16 sps:$4 sm:$0xff]   ;;  %v1336_v48 = vld [vmem:[%s1840_s1 + $0x324] ss:$16 sps:$4 sm:$0xff]  }
  0x59   :  { %v1339_v49 = vld [vmem:[%s1840_s1 + $0x32c] ss:$16 sps:$4 sm:$0xff]   ;;  %v1334_v50 = vld [vmem:[%s1840_s1 + $0x320] ss:$16 sps:$4 sm:$0xff]   ;;  %v1337_v51 = vld [vmem:[%s1840_s1 + $0x328] ss:$16 sps:$4 sm:$0xff]  }
  0x5a   :  { %v1342_v52 = vld [vmem:[%s1840_s1 + $0x344] ss:$16 sps:$4 sm:$0xff]   ;;  %v1345_v53 = vld [vmem:[%s1840_s1 + $0x34c] ss:$16 sps:$4 sm:$0xff]   ;;  %v1340_v54 = vld [vmem:[%s1840_s1 + $0x340] ss:$16 sps:$4 sm:$0xff]  }
  0x5b   :  { %889 = vmatpush1.bf16.msra.mxu0 %v1316_v37  ;;  %971 = vmatpush1.bf16.msra.mxu1 %v1319_v38  ;;  %v1343_v55 = vld [vmem:[%s1840_s1 + $0x348] ss:$16 sps:$4 sm:$0xff]   ;;  %v1348_v56 = vld [vmem:[%s1840_s1 + $0x364] ss:$16 sps:$4 sm:$0xff]   ;;  %v1351_v57 = vld [vmem:[%s1840_s1 + $0x36c] ss:$16 sps:$4 sm:$0xff]  }
  0x5c   :  { %890 = vmatprep.subr.bf16.mxu0 %v1324_v39  ;;  %972 = vmatprep.subr.bf16.mxu1 %v1327_v40  ;;  %v1346_v58 = vld [vmem:[%s1840_s1 + $0x360] ss:$16 sps:$4 sm:$0xff]   ;;  %v1349_v59 = vld [vmem:[%s1840_s1 + $0x368] ss:$16 sps:$4 sm:$0xff]   ;;  %v1354_v60 = vld [vmem:[%s1840_s1 + $0x384] ss:$16 sps:$4 sm:$0xff]  }
  0x5d   :  { %v1357_v61 = vld [vmem:[%s1840_s1 + $0x38c] ss:$16 sps:$4 sm:$0xff]   ;;  %v1352_v62 = vld [vmem:[%s1840_s1 + $0x380] ss:$16 sps:$4 sm:$0xff]   ;;  %v1355_v63 = vld [vmem:[%s1840_s1 + $0x388] ss:$16 sps:$4 sm:$0xff]  }
  0x5e   :  { %v1360_v0 = vld [vmem:[%s1840_s1 + $0x3a4] ss:$16 sps:$4 sm:$0xff]   ;;  %v1363_v1 = vld [vmem:[%s1840_s1 + $0x3ac] ss:$16 sps:$4 sm:$0xff]   ;;  %v1358_v2 = vld [vmem:[%s1840_s1 + $0x3a0] ss:$16 sps:$4 sm:$0xff]  }
  0x5f   :  { %891 = vmatpush1.bf16.msra.mxu0 %v1322_v41  ;;  %973 = vmatpush1.bf16.msra.mxu1 %v1325_v42  ;;  %v1361_v3 = vld [vmem:[%s1840_s1 + $0x3a8] ss:$16 sps:$4 sm:$0xff]   ;;  %v1366_v4 = vld [vmem:[%s1840_s1 + $0x3c4] ss:$16 sps:$4 sm:$0xff]   ;;  %v1369_v5 = vld [vmem:[%s1840_s1 + $0x3cc] ss:$16 sps:$4 sm:$0xff]  }
  0x60   :  { %892 = vmatprep.subr.bf16.mxu0 %v1330_v43  ;;  %974 = vmatprep.subr.bf16.mxu1 %v1333_v44  ;;  %v1364_v6 = vld [vmem:[%s1840_s1 + $0x3c0] ss:$16 sps:$4 sm:$0xff]   ;;  %v1367_v7 = vld [vmem:[%s1840_s1 + $0x3c8] ss:$16 sps:$4 sm:$0xff]   ;;  %v1372_v8 = vld [vmem:[%s1840_s1 + $0x3e4] ss:$16 sps:$4 sm:$0xff]  }
  0x61   :  { %v1375_v9 = vld [vmem:[%s1840_s1 + $0x3ec] ss:$16 sps:$4 sm:$0xff]   ;;  %v1370_v10 = vld [vmem:[%s1840_s1 + $0x3e0] ss:$16 sps:$4 sm:$0xff]   ;;  %v1373_v11 = vld [vmem:[%s1840_s1 + $0x3e8] ss:$16 sps:$4 sm:$0xff]  }
  0x62   :  { %v148_v14 = vsub.s32 0, %v1549_v45  ;;  %v156_v15 = vsub.s32 2, %v1549_v45  ;;  %v144_v16 = vld [vmem:[%s1841_s2] sm:$0xf]  ;;  %v152_v17 = vsub.s32 1, %v1549_v45  ;;  %v160_v18 = vsub.s32 3, %v1549_v45 }
  0x63   :  { %893 = vmatpush1.bf16.msra.mxu0 %v1328_v46  ;;  %975 = vmatpush1.bf16.msra.mxu1 %v1331_v47  ;;  %v1401_v19 = vmov 1983009808   ;;  %s1402_s1 = smov [#allocation2]  }
  0x64   :  { %894 = vmatprep.subr.bf16.mxu0 %v1336_v48  ;;  %976 = vmatprep.subr.bf16.mxu1 %v1339_v49  ;;  %v1010_v20 = vunpack.c.l.s4 %v1401_v19  ;;  %v149_v21 = vrot.slane %v144_v16, %v148_v14  ;;  %v157_v12 = vrot.slane %v144_v16, %v156_v15  ;;  %v153_v22 = vrot.slane %v144_v16, %v152_v17  ;;  %s1032_s2 = sshll.u32 %s1402_s1, 4  ;;  %s1033_s2 = int_to_ptr.vmem [resolvable:$true] %s1032_s2 }
  0x65   :  { %v161_v23 = vrot.slane %v144_v16, %v160_v18  ;;  %s1376_s23 = scalar_lea.vmem %s1033_s2, 128  ;;  %p1381_p1 = scmp.lt.s32.totalorder %s1033_s2, %s1033_s2 }
  0x66   :  { %v1011_v26 = vunpack.c.0.s8 %v1010_v20  ;;  %p1377_p0 = scmp.ne.s32.totalorder %s1033_s2, %s1376_s23  ;;  %p1382_p2 = scmp.lt.s32.totalorder %s1376_s23, %s1376_s23 }
  0x67   :  { %895 = vmatpush1.bf16.msra.mxu0 %v1334_v50  ;;  %977 = vmatpush1.bf16.msra.mxu1 %v1337_v51 }
  0x68   :  { %896 = vmatprep.subr.bf16.mxu0 %v1342_v52  ;;  %978 = vmatprep.subr.bf16.mxu1 %v1345_v53  ;;  %v1014_v41 = vsub.s32 %v1011_v26, %v1549_v45  ;;  %p1383_p3 = por %p1382_p2, %p1381_p1 }
  0x6a   :  { %p1384_p4 = pnand %p1383_p3, %p1377_p0 }
  0x6b   :  { %897 = vmatpush1.bf16.msra.mxu0 %v1340_v54  ;;  %979 = vmatpush1.bf16.msra.mxu1 %v1343_v55 }
  0x6c   :  { %898 = vmatprep.subr.bf16.mxu0 %v1348_v56  ;;  %980 = vmatprep.subr.bf16.mxu1 %v1351_v57 }
  0x6f   :  { %899 = vmatpush1.bf16.msra.mxu0 %v1346_v58  ;;  %981 = vmatpush1.bf16.msra.mxu1 %v1349_v59 }
  0x70   :  { %900 = vmatprep.subr.bf16.mxu0 %v1354_v60  ;;  %982 = vmatprep.subr.bf16.mxu1 %v1357_v61 }
  0x73   :  { %901 = vmatpush1.bf16.msra.mxu0 %v1352_v62  ;;  %983 = vmatpush1.bf16.msra.mxu1 %v1355_v63 }
  0x74   :  { %902 = vmatprep.subr.bf16.mxu0 %v1360_v0  ;;  %984 = vmatprep.subr.bf16.mxu1 %v1363_v1 }
  0x77   :  { %903 = vmatpush1.bf16.msra.mxu0 %v1358_v2  ;;  %985 = vmatpush1.bf16.msra.mxu1 %v1361_v3 }
  0x78   :  { %904 = vmatprep.subr.bf16.mxu0 %v1366_v4  ;;  %986 = vmatprep.subr.bf16.mxu1 %v1369_v5 }
  0x7b   :  { %905 = vmatpush1.bf16.msra.mxu0 %v1364_v6  ;;  %987 = vmatpush1.bf16.msra.mxu1 %v1367_v7 }
  0x7c   :  { %906 = vmatprep.subr.bf16.mxu0 %v1372_v8  ;;  %988 = vmatprep.subr.bf16.mxu1 %v1375_v9 }
  0x7f   :  { %907 = vmatpush1.bf16.msra.mxu0 %v1370_v10  ;;  %989 = vmatpush1.bf16.msra.mxu1 %v1373_v11 }
  0x82   :  { %909 = vmatmul.mubr.bf16.vlgmr.msra.gmra.mrb[0].mxu0 %v189_v13  ;;  %991 = vmatmul.mubr.bf16.vlgmr.msra.gmra.mrb[0].mxu1 %v189_v13 }
 0x155   :  { %v910_v24 = vpop.f32.mrb[0].mxu0  ;;  %v992_v25 = vpop.f32.mrb[0].mxu1 }
 0x156   :  { %v1169_v27 = vadd.f32 %v910_v24, %v149_v21  ;;  %v1171_v28 = vadd.f32 %v992_v25, %v157_v12  ;;  %v912_v29 = vpop.f32.mrb[1].mxu0  ;;  %v994_v30 = vpop.f32.mrb[1].mxu1 }
 0x157   :  { %v1170_v31 = vadd.f32 %v912_v29, %v153_v22  ;;  %v1172_v32 = vadd.f32 %v994_v30, %v161_v23  ;;  %v914_v33 = vpop.f32.mrb[2].mxu0  ;;  %v996_v34 = vpop.f32.mrb[2].mxu1 }
 0x158   :  { %v999_v35 = vmax.f32 %v1169_v27, 0.0  ;;  %v1001_v36 = vmax.f32 %v1171_v28, 0.0  ;;  %v915_v37 = vpop.f32.mrb[3].mxu0  ;;  %v997_v38 = vpop.f32.mrb[3].mxu1 }
 0x159   :  { %v1000_v39 = vmax.f32 %v1170_v31, 0.0  ;;  %v1002_v40 = vmax.f32 %v1172_v32, 0.0 }
 0x15b   :  { %v1007_v42 = vcombine.low %v999_v35, %v1000_v39  ;;  %v1008_v43 = vcombine.low %v1001_v36, %v1002_v40 }
 0x15d   :  { %v1015_v44 = vrot.slane %v1007_v42, %v1014_v41  ;;  %v1022_v46 = vrot.slane %v1008_v43, %v1014_v41 }
 0x15f   :  { %v1023_v47 = vcombine.low %v1015_v44, %v1022_v46 }
 0x161   :  { %1025 = vst [vmem:[#allocation2] sm:$0xff] %v1023_v47 }
 0x162   :  { %1387 = shalt.err (!%p1384_p4)
}
 0x163   :  { %s1388_s26 = scalar_lea.hbm %s1842_s3, 128 }
 0x164   :  { %p1389_p5 = scmp.ne.s32.totalorder %s1842_s3, %s1388_s26  ;;  %p1392_p6 = scmp.lt.u32.totalorder %s1388_s26, %s1842_s3 }
 0x166   :  { %p1394_p7 = pnand %p1392_p6, %p1389_p5 }
 0x168   :  { %1397 = shalt.err (!%p1394_p7)
}
 0x169   :  { %1035 = dma.vmem_to_hbm [thread:$0]  %s1033_s2, 128, %s1842_s3, [#allocation3]  }
 0x16a   :  { %1398 = dma.done.wait [#allocation3], 128  }
 0x16b   :  { %1399 = vsyncadd [#allocation3], 4294967168 }
 0x16c   :  { %1039 = vsyncpa [#allocation3], 1 }

// kernel: encoder_cc_forward.6
= control target key start
LH: loop header
LB: loop body
LE: loop exit
PB: predicated region body
PF: predicated region fallthrough
CT: control target
= control target key end

     0   :  { %v1044_v36 = vlaneseq  ;;  %v10451_v37 = vmov 1966171168   ;;  %s13739_s1 = inlined_call_operand.vmem [shape: bf16[4096,512], index: 1, kind: input, shape index: {}]   ;;  %s13740_s0 = inlined_call_operand.vmem [shape: bf16[2,4096], index: 0, kind: input, shape index: {}]   ;;  %s13741_s2 = inlined_call_operand.vmem [shape: f32[1,512], index: 2, kind: input, shape index: {}]   ;;  %s13742_s3 = inlined_call_operand.vmem [shape: f32[2,512], index: 3, kind: output, shape index: {}]  }
   0x1   :  { %v8909_v0 = vld [vmem:[%s13739_s1 + $0x4] ss:$16 sps:$4 sm:$0xff]   ;;  %v8911_v1 = vld [vmem:[%s13739_s1 + $0xc] ss:$16 sps:$4 sm:$0xff]   ;;  %v8913_v2 = vld [vmem:[%s13739_s1] ss:$16 sps:$4 sm:$0xff]   ;;  %v1070_v38 = vunpack.c.l.s4 %v10451_v37 }
   0x2   :  { %6416 = vmatprep.subr.bf16.mxu0 %v8909_v0  ;;  %v8914_v3 = vld [vmem:[%s13739_s1 + $0x8] ss:$16 sps:$4 sm:$0xff]   ;;  %7072 = vmatprep.subr.bf16.mxu1 %v8911_v1  ;;  %v8915_v4 = vld [vmem:[%s13739_s1 + $0x24] ss:$16 sps:$4 sm:$0xff]   ;;  %v8917_v5 = vld [vmem:[%s13739_s1 + $0x2c] ss:$16 sps:$4 sm:$0xff]  }
   0x3   :  { %6417 = vmatpush1.bf16.msra.mxu0 %v8913_v2  ;;  %7073 = vmatpush1.bf16.msra.mxu1 %v8914_v3  ;;  %v8919_v6 = vld [vmem:[%s13739_s1 + $0x20] ss:$16 sps:$4 sm:$0xff]   ;;  %v8920_v7 = vld [vmem:[%s13739_s1 + $0x28] ss:$16 sps:$4 sm:$0xff]   ;;  %v8921_v8 = vld [vmem:[%s13739_s1 + $0x44] ss:$16 sps:$4 sm:$0xff]   ;;  %v1071_v43 = vunpack.c.0.s8 %v1070_v38 }
   0x4   :  { %6418 = vmatprep.subr.bf16.mxu0 %v8915_v4  ;;  %7074 = vmatprep.subr.bf16.mxu1 %v8917_v5  ;;  %v8923_v9 = vld [vmem:[%s13739_s1 + $0x4c] ss:$16 sps:$4 sm:$0xff]   ;;  %v8925_v10 = vld [vmem:[%s13739_s1 + $0x40] ss:$16 sps:$4 sm:$0xff]   ;;  %v8926_v11 = vld [vmem:[%s13739_s1 + $0x48] ss:$16 sps:$4 sm:$0xff]  }
   0x5   :  { %v8927_v12 = vld [vmem:[%s13739_s1 + $0x64] ss:$16 sps:$4 sm:$0xff]   ;;  %v8929_v13 = vld [vmem:[%s13739_s1 + $0x6c] ss:$16 sps:$4 sm:$0xff]   ;;  %v8931_v14 = vld [vmem:[%s13739_s1 + $0x60] ss:$16 sps:$4 sm:$0xff]  }
   0x6   :  { %v8932_v15 = vld [vmem:[%s13739_s1 + $0x68] ss:$16 sps:$4 sm:$0xff]   ;;  %v8933_v16 = vld [vmem:[%s13739_s1 + $0x84] ss:$16 sps:$4 sm:$0xff]   ;;  %v8935_v17 = vld [vmem:[%s13739_s1 + $0x8c] ss:$16 sps:$4 sm:$0xff]  }
   0x7   :  { %6419 = vmatpush1.bf16.msra.mxu0 %v8919_v6  ;;  %7075 = vmatpush1.bf16.msra.mxu1 %v8920_v7  ;;  %v8937_v18 = vld [vmem:[%s13739_s1 + $0x80] ss:$16 sps:$4 sm:$0xff]   ;;  %v8938_v19 = vld [vmem:[%s13739_s1 + $0x88] ss:$16 sps:$4 sm:$0xff]   ;;  %v8939_v20 = vld [vmem:[%s13739_s1 + $0xa4] ss:$16 sps:$4 sm:$0xff]  }
   0x8   :  { %6420 = vmatprep.subr.bf16.mxu0 %v8921_v8  ;;  %7076 = vmatprep.subr.bf16.mxu1 %v8923_v9  ;;  %v8941_v21 = vld [vmem:[%s13739_s1 + $0xac] ss:$16 sps:$4 sm:$0xff]   ;;  %v8943_v22 = vld [vmem:[%s13739_s1 + $0xa0] ss:$16 sps:$4 sm:$0xff]   ;;  %v8944_v23 = vld [vmem:[%s13739_s1 + $0xa8] ss:$16 sps:$4 sm:$0xff]  }
   0x9   :  { %v8945_v24 = vld [vmem:[%s13739_s1 + $0xc4] ss:$16 sps:$4 sm:$0xff]   ;;  %v8947_v25 = vld [vmem:[%s13739_s1 + $0xcc] ss:$16 sps:$4 sm:$0xff]   ;;  %v8949_v26 = vld [vmem:[%s13739_s1 + $0xc0] ss:$16 sps:$4 sm:$0xff]  }
   0xa   :  { %v8950_v27 = vld [vmem:[%s13739_s1 + $0xc8] ss:$16 sps:$4 sm:$0xff]   ;;  %v8951_v28 = vld [vmem:[%s13739_s1 + $0xe4] ss:$16 sps:$4 sm:$0xff]   ;;  %v8953_v29 = vld [vmem:[%s13739_s1 + $0xec] ss:$16 sps:$4 sm:$0xff]  }
   0xb   :  { %6421 = vmatpush1.bf16.msra.mxu0 %v8925_v10  ;;  %7077 = vmatpush1.bf16.msra.mxu1 %v8926_v11  ;;  %v8955_v30 = vld [vmem:[%s13739_s1 + $0xe0] ss:$16 sps:$4 sm:$0xff]   ;;  %v8956_v31 = vld [vmem:[%s13739_s1 + $0xe8] ss:$16 sps:$4 sm:$0xff]   ;;  %v8957_v32 = vld [vmem:[%s13739_s1 + $0x104] ss:$16 sps:$4 sm:$0xff]  }
   0xc   :  { %6422 = vmatprep.subr.bf16.mxu0 %v8927_v12  ;;  %7078 = vmatprep.subr.bf16.mxu1 %v8929_v13  ;;  %v8959_v33 = vld [vmem:[%s13739_s1 + $0x10c] ss:$16 sps:$4 sm:$0xff]   ;;  %v8961_v34 = vld [vmem:[%s13739_s1 + $0x100] ss:$16 sps:$4 sm:$0xff]   ;;  %v8962_v35 = vld [vmem:[%s13739_s1 + $0x108] ss:$16 sps:$4 sm:$0xff]  }
   0xd   :  { %v8963_v39 = vld [vmem:[%s13739_s1 + $0x124] ss:$16 sps:$4 sm:$0xff]   ;;  %v8965_v40 = vld [vmem:[%s13739_s1 + $0x12c] ss:$16 sps:$4 sm:$0xff]   ;;  %v8967_v41 = vld [vmem:[%s13739_s1 + $0x120] ss:$16 sps:$4 sm:$0xff]  }
   0xe   :  { %v10590_v42 = vshrl.u32 %v1044_v36, 7  ;;  %v8968_v44 = vld [vmem:[%s13739_s1 + $0x128] ss:$16 sps:$4 sm:$0xff]   ;;  %v8969_v45 = vld [vmem:[%s13739_s1 + $0x144] ss:$16 sps:$4 sm:$0xff]  }
   0xf   :  { %6423 = vmatpush1.bf16.msra.mxu0 %v8931_v14  ;;  %7079 = vmatpush1.bf16.msra.mxu1 %v8932_v15  ;;  %v8971_v46 = vld [vmem:[%s13739_s1 + $0x14c] ss:$16 sps:$4 sm:$0xff]   ;;  %v8973_v47 = vld [vmem:[%s13739_s1 + $0x140] ss:$16 sps:$4 sm:$0xff]   ;;  %v8974_v48 = vld [vmem:[%s13739_s1 + $0x148] ss:$16 sps:$4 sm:$0xff]  }
  0x10   :  { %6424 = vmatprep.subr.bf16.mxu0 %v8933_v16  ;;  %7080 = vmatprep.subr.bf16.mxu1 %v8935_v17  ;;  %v10608_v49 = vsub.s32 %v1071_v43, %v10590_v42  ;;  %v8975_v50 = vld [vmem:[%s13739_s1 + $0x164] ss:$16 sps:$4 sm:$0xff]   ;;  %v8977_v51 = vld [vmem:[%s13739_s1 + $0x16c] ss:$16 sps:$4 sm:$0xff]   ;;  %v8979_v53 = vld [vmem:[%s13739_s1 + $0x160] ss:$16 sps:$4 sm:$0xff]  }
  0x11   :  { %v10619_v52 = vld [vmem:[%s13740_s0] sm:$0xff]  ;;  %v8980_v55 = vld [vmem:[%s13739_s1 + $0x168] ss:$16 sps:$4 sm:$0xff]   ;;  %v8983_v57 = vld [vmem:[%s13739_s1 + $0x18c] ss:$16 sps:$4 sm:$0xff]  }
  0x12   :  { %v1075_v54 = vrot.slane %v10619_v52, %v10608_v49  ;;  %v8981_v56 = vld [vmem:[%s13739_s1 + $0x184] ss:$16 sps:$4 sm:$0xff]   ;;  %v8985_v59 = vld [vmem:[%s13739_s1 + $0x180] ss:$16 sps:$4 sm:$0xff]   ;;  %v8986_v61 = vld [vmem:[%s13739_s1 + $0x188] ss:$16 sps:$4 sm:$0xff]  }
  0x13   :  { %6425 = vmatpush1.bf16.msra.mxu0 %v8937_v18  ;;  %7081 = vmatpush1.bf16.msra.mxu1 %v8938_v19  ;;  %v8987_v62 = vld [vmem:[%s13739_s1 + $0x1a4] ss:$16 sps:$4 sm:$0xff]   ;;  %v8989_v63 = vld [vmem:[%s13739_s1 + $0x1ac] ss:$16 sps:$4 sm:$0xff]   ;;  %v8991_v0 = vld [vmem:[%s13739_s1 + $0x1a0] ss:$16 sps:$4 sm:$0xff]  }
  0x14   :  { %6426 = vmatprep.subr.bf16.mxu0 %v8939_v20  ;;  %7082 = vmatprep.subr.bf16.mxu1 %v8941_v21  ;;  %v1083_v58 = vcombine.high %v1075_v54, %v1075_v54  ;;  %v8992_v1 = vld [vmem:[%s13739_s1 + $0x1a8] ss:$16 sps:$4 sm:$0xff]   ;;  %v8993_v2 = vld [vmem:[%s13739_s1 + $0x1c4] ss:$16 sps:$4 sm:$0xff]   ;;  %v8995_v3 = vld [vmem:[%s13739_s1 + $0x1cc] ss:$16 sps:$4 sm:$0xff]   ;;  %v10688_v13 = vrot.slane %v1075_v54, %v10608_v49 }
  0x15   :  { %v8997_v4 = vld [vmem:[%s13739_s1 + $0x1c0] ss:$16 sps:$4 sm:$0xff]   ;;  %v8998_v5 = vld [vmem:[%s13739_s1 + $0x1c8] ss:$16 sps:$4 sm:$0xff]   ;;  %v8999_v6 = vld [vmem:[%s13739_s1 + $0x1e4] ss:$16 sps:$4 sm:$0xff]  }
  0x16   :  { %v1105_v60 = vrot.slane %v1083_v58, %v10608_v49  ;;  %v9001_v7 = vld [vmem:[%s13739_s1 + $0x1ec] ss:$16 sps:$4 sm:$0xff]   ;;  %v9003_v8 = vld [vmem:[%s13739_s1 + $0x1e0] ss:$16 sps:$4 sm:$0xff]   ;;  %v9004_v9 = vld [vmem:[%s13739_s1 + $0x1e8] ss:$16 sps:$4 sm:$0xff]  }
  0x17   :  { %6427 = vmatpush1.bf16.msra.mxu0 %v8943_v22  ;;  %7083 = vmatpush1.bf16.msra.mxu1 %v8944_v23  ;;  %v9007_v10 = vld [vmem:[%s13739_s1 + $0x204] ss:$16 sps:$4 sm:$0xff]   ;;  %v9010_v11 = vld [vmem:[%s13739_s1 + $0x20c] ss:$16 sps:$4 sm:$0xff]   ;;  %v9005_v12 = vld [vmem:[%s13739_s1 + $0x200] ss:$16 sps:$4 sm:$0xff]  }
  0x18   :  { %6428 = vmatprep.subr.bf16.mxu0 %v8945_v24  ;;  %7084 = vmatprep.subr.bf16.mxu1 %v8947_v25  ;;  %v9008_v14 = vld [vmem:[%s13739_s1 + $0x208] ss:$16 sps:$4 sm:$0xff]   ;;  %v9013_v15 = vld [vmem:[%s13739_s1 + $0x224] ss:$16 sps:$4 sm:$0xff]   ;;  %v9016_v16 = vld [vmem:[%s13739_s1 + $0x22c] ss:$16 sps:$4 sm:$0xff]   ;;  %v1115_v17 = vcombine.high %v1105_v60, %v1105_v60 }
  0x19   :  { %6448 = vmatprep.mubr.bf16.mxu0 %v1105_v60  ;;  %7104 = vmatprep.mubr.bf16.mxu1 %v1105_v60  ;;  %v9011_v18 = vld [vmem:[%s13739_s1 + $0x220] ss:$16 sps:$4 sm:$0xff]   ;;  %v9014_v19 = vld [vmem:[%s13739_s1 + $0x228] ss:$16 sps:$4 sm:$0xff]   ;;  %v9019_v20 = vld [vmem:[%s13739_s1 + $0x244] ss:$16 sps:$4 sm:$0xff]  }
  0x1a   :  { %v9022_v21 = vld [vmem:[%s13739_s1 + $0x24c] ss:$16 sps:$4 sm:$0xff]   ;;  %v9017_v22 = vld [vmem:[%s13739_s1 + $0x240] ss:$16 sps:$4 sm:$0xff]   ;;  %v9020_v23 = vld [vmem:[%s13739_s1 + $0x248] ss:$16 sps:$4 sm:$0xff]  }
  0x1b   :  { %6429 = vmatpush1.bf16.msra.mxu0 %v8949_v26  ;;  %7085 = vmatpush1.bf16.msra.mxu1 %v8950_v27  ;;  %v9025_v24 = vld [vmem:[%s13739_s1 + $0x264] ss:$16 sps:$4 sm:$0xff]   ;;  %v9028_v25 = vld [vmem:[%s13739_s1 + $0x26c] ss:$16 sps:$4 sm:$0xff]   ;;  %v9023_v26 = vld [vmem:[%s13739_s1 + $0x260] ss:$16 sps:$4 sm:$0xff]  }
  0x1c   :  { %6430 = vmatprep.subr.bf16.mxu0 %v8951_v28  ;;  %7086 = vmatprep.subr.bf16.mxu1 %v8953_v29  ;;  %v9026_v27 = vld [vmem:[%s13739_s1 + $0x268] ss:$16 sps:$4 sm:$0xff]   ;;  %v9031_v28 = vld [vmem:[%s13739_s1 + $0x284] ss:$16 sps:$4 sm:$0xff]   ;;  %v9034_v29 = vld [vmem:[%s13739_s1 + $0x28c] ss:$16 sps:$4 sm:$0xff]  }
  0x1d   :  { %v9043_v36 = vld [vmem:[%s13739_s1 + $0x2c4] ss:$16 sps:$4 sm:$0xff]   ;;  %v9046_v37 = vld [vmem:[%s13739_s1 + $0x2cc] ss:$16 sps:$4 sm:$0xff]   ;;  %v9041_v38 = vld [vmem:[%s13739_s1 + $0x2c0] ss:$16 sps:$4 sm:$0xff]  }
  0x1e   :  { %v9047_v43 = vld [vmem:[%s13739_s1 + $0x2e0] ss:$16 sps:$4 sm:$0xff]   ;;  %v9062_v54 = vld [vmem:[%s13739_s1 + $0x328] ss:$16 sps:$4 sm:$0xff]   ;;  %v9076_v60 = vld [vmem:[%s13739_s1 + $0x36c] ss:$16 sps:$4 sm:$0xff]  }
  0x1f   :  { %6431 = vmatpush1.bf16.msra.mxu0 %v8955_v30  ;;  %7087 = vmatpush1.bf16.msra.mxu1 %v8956_v31  ;;  %v9029_v30 = vld [vmem:[%s13739_s1 + $0x280] ss:$16 sps:$4 sm:$0xff]   ;;  %v9032_v31 = vld [vmem:[%s13739_s1 + $0x288] ss:$16 sps:$4 sm:$0xff]  }
  0x20   :  { %6432 = vmatprep.subr.bf16.mxu0 %v8957_v32  ;;  %7088 = vmatprep.subr.bf16.mxu1 %v8959_v33  ;;  %v9037_v32 = vld [vmem:[%s13739_s1 + $0x2a4] ss:$16 sps:$4 sm:$0xff]   ;;  %v9040_v33 = vld [vmem:[%s13739_s1 + $0x2ac] ss:$16 sps:$4 sm:$0xff]   ;;  %v9068_v58 = vld [vmem:[%s13739_s1 + $0x348] ss:$16 sps:$4 sm:$0xff]  }
  0x23   :  { %6433 = vmatpush1.bf16.msra.mxu0 %v8961_v34  ;;  %7089 = vmatpush1.bf16.msra.mxu1 %v8962_v35  ;;  %v9035_v34 = vld [vmem:[%s13739_s1 + $0x2a0] ss:$16 sps:$4 sm:$0xff]   ;;  %v9038_v35 = vld [vmem:[%s13739_s1 + $0x2a8] ss:$16 sps:$4 sm:$0xff]  }
  0x24   :  { %6434 = vmatprep.subr.bf16.mxu0 %v8963_v39  ;;  %7090 = vmatprep.subr.bf16.mxu1 %v8965_v40  ;;  %v9044_v39 = vld [vmem:[%s13739_s1 + $0x2c8] ss:$16 sps:$4 sm:$0xff]   ;;  %v9049_v40 = vld [vmem:[%s13739_s1 + $0x2e4] ss:$16 sps:$4 sm:$0xff]  }
  0x27   :  { %6435 = vmatpush1.bf16.msra.mxu0 %v8967_v41  ;;  %7091 = vmatpush1.bf16.msra.mxu1 %v8968_v44  ;;  %v9052_v41 = vld [vmem:[%s13739_s1 + $0x2ec] ss:$16 sps:$4 sm:$0xff]   ;;  %v9050_v44 = vld [vmem:[%s13739_s1 + $0x2e8] ss:$16 sps:$4 sm:$0xff]  }
  0x28   :  { %6436 = vmatprep.subr.bf16.mxu0 %v8969_v45  ;;  %7092 = vmatprep.subr.bf16.mxu1 %v8971_v46  ;;  %v9055_v45 = vld [vmem:[%s13739_s1 + $0x304] ss:$16 sps:$4 sm:$0xff]   ;;  %v9058_v46 = vld [vmem:[%s13739_s1 + $0x30c] ss:$16 sps:$4 sm:$0xff]  }
  0x2b   :  { %6437 = vmatpush1.bf16.msra.mxu0 %v8973_v47  ;;  %7093 = vmatpush1.bf16.msra.mxu1 %v8974_v48  ;;  %v9053_v47 = vld [vmem:[%s13739_s1 + $0x300] ss:$16 sps:$4 sm:$0xff]   ;;  %v9056_v48 = vld [vmem:[%s13739_s1 + $0x308] ss:$16 sps:$4 sm:$0xff]  }
  0x2c   :  { %6438 = vmatprep.subr.bf16.mxu0 %v8975_v50  ;;  %7094 = vmatprep.subr.bf16.mxu1 %v8977_v51  ;;  %v9061_v50 = vld [vmem:[%s13739_s1 + $0x324] ss:$16 sps:$4 sm:$0xff]   ;;  %v9064_v51 = vld [vmem:[%s13739_s1 + $0x32c] ss:$16 sps:$4 sm:$0xff]  }
  0x2f   :  { %6439 = vmatpush1.bf16.msra.mxu0 %v8979_v53  ;;  %7095 = vmatpush1.bf16.msra.mxu1 %v8980_v55  ;;  %v9059_v53 = vld [vmem:[%s13739_s1 + $0x320] ss:$16 sps:$4 sm:$0xff]   ;;  %v9067_v55 = vld [vmem:[%s13739_s1 + $0x344] ss:$16 sps:$4 sm:$0xff]  }
  0x30   :  { %6440 = vmatprep.subr.bf16.mxu0 %v8981_v56  ;;  %7096 = vmatprep.subr.bf16.mxu1 %v8983_v57  ;;  %v9070_v56 = vld [vmem:[%s13739_s1 + $0x34c] ss:$16 sps:$4 sm:$0xff]   ;;  %v9065_v57 = vld [vmem:[%s13739_s1 + $0x340] ss:$16 sps:$4 sm:$0xff]  }
  0x33   :  { %6441 = vmatpush1.bf16.msra.mxu0 %v8985_v59  ;;  %7097 = vmatpush1.bf16.msra.mxu1 %v8986_v61  ;;  %v9073_v59 = vld [vmem:[%s13739_s1 + $0x364] ss:$16 sps:$4 sm:$0xff]   ;;  %v9071_v61 = vld [vmem:[%s13739_s1 + $0x360] ss:$16 sps:$4 sm:$0xff]  }
  0x34   :  { %6442 = vmatprep.subr.bf16.mxu0 %v8987_v62  ;;  %7098 = vmatprep.subr.bf16.mxu1 %v8989_v63  ;;  %v9074_v62 = vld [vmem:[%s13739_s1 + $0x368] ss:$16 sps:$4 sm:$0xff]   ;;  %v9079_v63 = vld [vmem:[%s13739_s1 + $0x384] ss:$16 sps:$4 sm:$0xff]  }
  0x37   :  { %6443 = vmatpush1.bf16.msra.mxu0 %v8991_v0  ;;  %7099 = vmatpush1.bf16.msra.mxu1 %v8992_v1  ;;  %v9082_v0 = vld [vmem:[%s13739_s1 + $0x38c] ss:$16 sps:$4 sm:$0xff]   ;;  %v9077_v1 = vld [vmem:[%s13739_s1 + $0x380] ss:$16 sps:$4 sm:$0xff]  }
  0x38   :  { %6444 = vmatprep.subr.bf16.mxu0 %v8993_v2  ;;  %7100 = vmatprep.subr.bf16.mxu1 %v8995_v3  ;;  %v9080_v2 = vld [vmem:[%s13739_s1 + $0x388] ss:$16 sps:$4 sm:$0xff]   ;;  %v9085_v3 = vld [vmem:[%s13739_s1 + $0x3a4] ss:$16 sps:$4 sm:$0xff]  }
  0x3b   :  { %6445 = vmatpush1.bf16.msra.mxu0 %v8997_v4  ;;  %7101 = vmatpush1.bf16.msra.mxu1 %v8998_v5  ;;  %v9088_v4 = vld [vmem:[%s13739_s1 + $0x3ac] ss:$16 sps:$4 sm:$0xff]   ;;  %v9083_v5 = vld [vmem:[%s13739_s1 + $0x3a0] ss:$16 sps:$4 sm:$0xff]  }
  0x3c   :  { %6446 = vmatprep.subr.bf16.mxu0 %v8999_v6  ;;  %7102 = vmatprep.subr.bf16.mxu1 %v9001_v7  ;;  %v9086_v6 = vld [vmem:[%s13739_s1 + $0x3a8] ss:$16 sps:$4 sm:$0xff]   ;;  %v9091_v7 = vld [vmem:[%s13739_s1 + $0x3c4] ss:$16 sps:$4 sm:$0xff]  }
  0x3f   :  { %6447 = vmatpush1.bf16.msra.mxu0 %v9003_v8  ;;  %7103 = vmatpush1.bf16.msra.mxu1 %v9004_v9  ;;  %v9094_v8 = vld [vmem:[%s13739_s1 + $0x3cc] ss:$16 sps:$4 sm:$0xff]   ;;  %v1068_v9 = vcombine.high %v10619_v52, %v10619_v52 }
  0x40   :  { %6457 = vmatprep.subr.bf16.mxu0 %v9007_v10  ;;  %7113 = vmatprep.subr.bf16.mxu1 %v9010_v11  ;;  %v9089_v10 = vld [vmem:[%s13739_s1 + $0x3c0] ss:$16 sps:$4 sm:$0xff]   ;;  %v9092_v11 = vld [vmem:[%s13739_s1 + $0x3c8] ss:$16 sps:$4 sm:$0xff]   ;;  %v9100_v52 = vld [vmem:[%s13739_s1 + $0x3ec] ss:$16 sps:$4 sm:$0xff]  }
  0x42   :  { %6449 = vmatmul.mubr.bf16.vlgmr.msra.gmra.mrb[0].mxu0 %v10688_v13  ;;  %7105 = vmatmul.mubr.bf16.vlgmr.msra.gmra.mrb[0].mxu1 %v10688_v13 }
  0x43   :  { %6458 = vmatpush1.bf16.msra.mxu0 %v9005_v12  ;;  %7114 = vmatpush1.bf16.msra.mxu1 %v9008_v14  ;;  %v9097_v12 = vld [vmem:[%s13739_s1 + $0x3e4] ss:$16 sps:$4 sm:$0xff]   ;;  %v10872_v14 = vrot.slane %v1068_v9, %v10608_v49  ;;  %v9176_v9 = vld [vmem:[%s13739_s1 + $0x588] ss:$16 sps:$4 sm:$0xff]  }
  0x44   :  { %6459 = vmatprep.subr.bf16.mxu0 %v9013_v15  ;;  %7115 = vmatprep.subr.bf16.mxu1 %v9016_v16  ;;  %v9095_v15 = vld [vmem:[%s13739_s1 + $0x3e0] ss:$16 sps:$4 sm:$0xff]   ;;  %v9098_v16 = vld [vmem:[%s13739_s1 + $0x3e8] ss:$16 sps:$4 sm:$0xff]  }
  0x45   :  { %6489 = vmatprep.mubr.bf16.mxu0 %v1115_v17  ;;  %7145 = vmatprep.mubr.bf16.mxu1 %v1115_v17  ;;  %v9103_v17 = vld [vmem:[%s13739_s1 + $0x404] ss:$16 sps:$4 sm:$0xff]  }
  0x47   :  { %6460 = vmatpush1.bf16.msra.mxu0 %v9011_v18  ;;  %7116 = vmatpush1.bf16.msra.mxu1 %v9014_v19  ;;  %v9106_v18 = vld [vmem:[%s13739_s1 + $0x40c] ss:$16 sps:$4 sm:$0xff]   ;;  %v1084_v19 = vcombine.high %v10872_v14, %v10872_v14 }
  0x48   :  { %6461 = vmatprep.subr.bf16.mxu0 %v9019_v20  ;;  %7117 = vmatprep.subr.bf16.mxu1 %v9022_v21  ;;  %v9101_v20 = vld [vmem:[%s13739_s1 + $0x400] ss:$16 sps:$4 sm:$0xff]   ;;  %v1113_v21 = vcombine.high %v10688_v13, %v10688_v13 }
  0x49   :  { %v9107_v13 = vld [vmem:[%s13739_s1 + $0x420] ss:$16 sps:$4 sm:$0xff]  }
  0x4b   :  { %6462 = vmatpush1.bf16.msra.mxu0 %v9017_v22  ;;  %7118 = vmatpush1.bf16.msra.mxu1 %v9020_v23  ;;  %v9104_v22 = vld [vmem:[%s13739_s1 + $0x408] ss:$16 sps:$4 sm:$0xff]   ;;  %v9109_v23 = vld [vmem:[%s13739_s1 + $0x424] ss:$16 sps:$4 sm:$0xff]  }
  0x4c   :  { %6463 = vmatprep.subr.bf16.mxu0 %v9025_v24  ;;  %7119 = vmatprep.subr.bf16.mxu1 %v9028_v25  ;;  %v9112_v24 = vld [vmem:[%s13739_s1 + $0x42c] ss:$16 sps:$4 sm:$0xff]   ;;  %v10903_v25 = vrot.slane %v1084_v19, %v10608_v49  ;;  %v9193_v19 = vld [vmem:[%s13739_s1 + $0x5e4] ss:$16 sps:$4 sm:$0xff]  }
  0x4f   :  { %6464 = vmatpush1.bf16.msra.mxu0 %v9023_v26  ;;  %7120 = vmatpush1.bf16.msra.mxu1 %v9026_v27  ;;  %v9110_v26 = vld [vmem:[%s13739_s1 + $0x428] ss:$16 sps:$4 sm:$0xff]   ;;  %v9115_v27 = vld [vmem:[%s13739_s1 + $0x444] ss:$16 sps:$4 sm:$0xff]  }
  0x50   :  { %6465 = vmatprep.subr.bf16.mxu0 %v9031_v28  ;;  %7121 = vmatprep.subr.bf16.mxu1 %v9034_v29  ;;  %v9118_v28 = vld [vmem:[%s13739_s1 + $0x44c] ss:$16 sps:$4 sm:$0xff]   ;;  %v9113_v29 = vld [vmem:[%s13739_s1 + $0x440] ss:$16 sps:$4 sm:$0xff]  }
  0x53   :  { %6466 = vmatpush1.bf16.msra.mxu0 %v9029_v30  ;;  %7122 = vmatpush1.bf16.msra.mxu1 %v9032_v31  ;;  %v9116_v30 = vld [vmem:[%s13739_s1 + $0x448] ss:$16 sps:$4 sm:$0xff]   ;;  %v9121_v31 = vld [vmem:[%s13739_s1 + $0x464] ss:$16 sps:$4 sm:$0xff]  }
  0x54   :  { %6467 = vmatprep.subr.bf16.mxu0 %v9037_v32  ;;  %7123 = vmatprep.subr.bf16.mxu1 %v9040_v33  ;;  %v9124_v32 = vld [vmem:[%s13739_s1 + $0x46c] ss:$16 sps:$4 sm:$0xff]   ;;  %v9119_v33 = vld [vmem:[%s13739_s1 + $0x460] ss:$16 sps:$4 sm:$0xff]  }
  0x57   :  { %6468 = vmatpush1.bf16.msra.mxu0 %v9035_v34  ;;  %7124 = vmatpush1.bf16.msra.mxu1 %v9038_v35  ;;  %v9122_v34 = vld [vmem:[%s13739_s1 + $0x468] ss:$16 sps:$4 sm:$0xff]   ;;  %v9127_v35 = vld [vmem:[%s13739_s1 + $0x484] ss:$16 sps:$4 sm:$0xff]  }
  0x58   :  { %6469 = vmatprep.subr.bf16.mxu0 %v9043_v36  ;;  %7125 = vmatprep.subr.bf16.mxu1 %v9046_v37  ;;  %v9130_v36 = vld [vmem:[%s13739_s1 + $0x48c] ss:$16 sps:$4 sm:$0xff]   ;;  %v9125_v37 = vld [vmem:[%s13739_s1 + $0x480] ss:$16 sps:$4 sm:$0xff]  }
  0x5b   :  { %6470 = vmatpush1.bf16.msra.mxu0 %v9041_v38  ;;  %7126 = vmatpush1.bf16.msra.mxu1 %v9044_v39  ;;  %v9128_v38 = vld [vmem:[%s13739_s1 + $0x488] ss:$16 sps:$4 sm:$0xff]   ;;  %v9133_v39 = vld [vmem:[%s13739_s1 + $0x4a4] ss:$16 sps:$4 sm:$0xff]  }
  0x5c   :  { %6471 = vmatprep.subr.bf16.mxu0 %v9049_v40  ;;  %7127 = vmatprep.subr.bf16.mxu1 %v9052_v41  ;;  %v9136_v40 = vld [vmem:[%s13739_s1 + $0x4ac] ss:$16 sps:$4 sm:$0xff]   ;;  %v9131_v41 = vld [vmem:[%s13739_s1 + $0x4a0] ss:$16 sps:$4 sm:$0xff]  }
  0x5f   :  { %6472 = vmatpush1.bf16.msra.mxu0 %v9047_v43  ;;  %7128 = vmatpush1.bf16.msra.mxu1 %v9050_v44  ;;  %v9134_v43 = vld [vmem:[%s13739_s1 + $0x4a8] ss:$16 sps:$4 sm:$0xff]   ;;  %v9139_v44 = vld [vmem:[%s13739_s1 + $0x4c4] ss:$16 sps:$4 sm:$0xff]  }
  0x60   :  { %6473 = vmatprep.subr.bf16.mxu0 %v9055_v45  ;;  %7129 = vmatprep.subr.bf16.mxu1 %v9058_v46  ;;  %v9142_v45 = vld [vmem:[%s13739_s1 + $0x4cc] ss:$16 sps:$4 sm:$0xff]   ;;  %v9137_v46 = vld [vmem:[%s13739_s1 + $0x4c0] ss:$16 sps:$4 sm:$0xff]  }
  0x63   :  { %6474 = vmatpush1.bf16.msra.mxu0 %v9053_v47  ;;  %7130 = vmatpush1.bf16.msra.mxu1 %v9056_v48  ;;  %v9140_v47 = vld [vmem:[%s13739_s1 + $0x4c8] ss:$16 sps:$4 sm:$0xff]   ;;  %v9145_v48 = vld [vmem:[%s13739_s1 + $0x4e4] ss:$16 sps:$4 sm:$0xff]  }
  0x64   :  { %6475 = vmatprep.subr.bf16.mxu0 %v9061_v50  ;;  %7131 = vmatprep.subr.bf16.mxu1 %v9064_v51  ;;  %v9148_v50 = vld [vmem:[%s13739_s1 + $0x4ec] ss:$16 sps:$4 sm:$0xff]   ;;  %v9143_v51 = vld [vmem:[%s13739_s1 + $0x4e0] ss:$16 sps:$4 sm:$0xff]  }
  0x67   :  { %6476 = vmatpush1.bf16.msra.mxu0 %v9059_v53  ;;  %7132 = vmatpush1.bf16.msra.mxu1 %v9062_v54  ;;  %v9146_v53 = vld [vmem:[%s13739_s1 + $0x4e8] ss:$16 sps:$4 sm:$0xff]   ;;  %v9151_v54 = vld [vmem:[%s13739_s1 + $0x504] ss:$16 sps:$4 sm:$0xff]  }
  0x68   :  { %6477 = vmatprep.subr.bf16.mxu0 %v9067_v55  ;;  %7133 = vmatprep.subr.bf16.mxu1 %v9070_v56  ;;  %v9154_v55 = vld [vmem:[%s13739_s1 + $0x50c] ss:$16 sps:$4 sm:$0xff]   ;;  %v9149_v56 = vld [vmem:[%s13739_s1 + $0x500] ss:$16 sps:$4 sm:$0xff]  }
  0x6b   :  { %6478 = vmatpush1.bf16.msra.mxu0 %v9065_v57  ;;  %7134 = vmatpush1.bf16.msra.mxu1 %v9068_v58  ;;  %v9152_v57 = vld [vmem:[%s13739_s1 + $0x508] ss:$16 sps:$4 sm:$0xff]   ;;  %v9157_v58 = vld [vmem:[%s13739_s1 + $0x524] ss:$16 sps:$4 sm:$0xff]  }
  0x6c   :  { %6479 = vmatprep.subr.bf16.mxu0 %v9073_v59  ;;  %7135 = vmatprep.subr.bf16.mxu1 %v9076_v60  ;;  %v9160_v59 = vld [vmem:[%s13739_s1 + $0x52c] ss:$16 sps:$4 sm:$0xff]   ;;  %v9155_v60 = vld [vmem:[%s13739_s1 + $0x520] ss:$16 sps:$4 sm:$0xff]  }
  0x6f   :  { %6480 = vmatpush1.bf16.msra.mxu0 %v9071_v61  ;;  %7136 = vmatpush1.bf16.msra.mxu1 %v9074_v62  ;;  %v9158_v61 = vld [vmem:[%s13739_s1 + $0x528] ss:$16 sps:$4 sm:$0xff]   ;;  %v9163_v62 = vld [vmem:[%s13739_s1 + $0x544] ss:$16 sps:$4 sm:$0xff]  }
  0x70   :  { %6481 = vmatprep.subr.bf16.mxu0 %v9079_v63  ;;  %7137 = vmatprep.subr.bf16.mxu1 %v9082_v0  ;;  %v9166_v63 = vld [vmem:[%s13739_s1 + $0x54c] ss:$16 sps:$4 sm:$0xff]   ;;  %v9161_v0 = vld [vmem:[%s13739_s1 + $0x540] ss:$16 sps:$4 sm:$0xff]  }
  0x73   :  { %6482 = vmatpush1.bf16.msra.mxu0 %v9077_v1  ;;  %7138 = vmatpush1.bf16.msra.mxu1 %v9080_v2  ;;  %v9164_v1 = vld [vmem:[%s13739_s1 + $0x548] ss:$16 sps:$4 sm:$0xff]   ;;  %v9169_v2 = vld [vmem:[%s13739_s1 + $0x564] ss:$16 sps:$4 sm:$0xff]  }
  0x74   :  { %6483 = vmatprep.subr.bf16.mxu0 %v9085_v3  ;;  %7139 = vmatprep.subr.bf16.mxu1 %v9088_v4  ;;  %v9172_v3 = vld [vmem:[%s13739_s1 + $0x56c] ss:$16 sps:$4 sm:$0xff]   ;;  %v9167_v4 = vld [vmem:[%s13739_s1 + $0x560] ss:$16 sps:$4 sm:$0xff]  }
  0x77   :  { %6484 = vmatpush1.bf16.msra.mxu0 %v9083_v5  ;;  %7140 = vmatpush1.bf16.msra.mxu1 %v9086_v6  ;;  %v9170_v5 = vld [vmem:[%s13739_s1 + $0x568] ss:$16 sps:$4 sm:$0xff]   ;;  %v9175_v6 = vld [vmem:[%s13739_s1 + $0x584] ss:$16 sps:$4 sm:$0xff]  }
  0x78   :  { %6485 = vmatprep.subr.bf16.mxu0 %v9091_v7  ;;  %7141 = vmatprep.subr.bf16.mxu1 %v9094_v8  ;;  %v9178_v7 = vld [vmem:[%s13739_s1 + $0x58c] ss:$16 sps:$4 sm:$0xff]   ;;  %v9173_v8 = vld [vmem:[%s13739_s1 + $0x580] ss:$16 sps:$4 sm:$0xff]  }
  0x7b   :  { %6486 = vmatpush1.bf16.msra.mxu0 %v9089_v10  ;;  %7142 = vmatpush1.bf16.msra.mxu1 %v9092_v11  ;;  %v9181_v10 = vld [vmem:[%s13739_s1 + $0x5a4] ss:$16 sps:$4 sm:$0xff]   ;;  %v9184_v11 = vld [vmem:[%s13739_s1 + $0x5ac] ss:$16 sps:$4 sm:$0xff]  }
  0x7c   :  { %6487 = vmatprep.subr.bf16.mxu0 %v9097_v12  ;;  %7143 = vmatprep.subr.bf16.mxu1 %v9100_v52  ;;  %v9179_v12 = vld [vmem:[%s13739_s1 + $0x5a0] ss:$16 sps:$4 sm:$0xff]   ;;  %v9182_v52 = vld [vmem:[%s13739_s1 + $0x5a8] ss:$16 sps:$4 sm:$0xff]  }
  0x7f   :  { %6488 = vmatpush1.bf16.msra.mxu0 %v9095_v15  ;;  %7144 = vmatpush1.bf16.msra.mxu1 %v9098_v16  ;;  %v9187_v15 = vld [vmem:[%s13739_s1 + $0x5c4] ss:$16 sps:$4 sm:$0xff]   ;;  %v9190_v16 = vld [vmem:[%s13739_s1 + $0x5cc] ss:$16 sps:$4 sm:$0xff]  }
  0x80   :  { %6498 = vmatprep.subr.bf16.mxu0 %v9103_v17  ;;  %7154 = vmatprep.subr.bf16.mxu1 %v9106_v18  ;;  %v9185_v17 = vld [vmem:[%s13739_s1 + $0x5c0] ss:$16 sps:$4 sm:$0xff]   ;;  %v9188_v18 = vld [vmem:[%s13739_s1 + $0x5c8] ss:$16 sps:$4 sm:$0xff]  }
  0x82   :  { %6490 = vmatmul.mubr.bf16.vlgmr.msra.gmra.mrb[0].mxu0 %v1113_v21  ;;  %7146 = vmatmul.mubr.bf16.vlgmr.msra.gmra.mrb[0].mxu1 %v1113_v21  ;;  %v9191_v21 = vld [vmem:[%s13739_s1 + $0x5e0] ss:$16 sps:$4 sm:$0xff]  }
  0x83   :  { %6499 = vmatpush1.bf16.msra.mxu0 %v9101_v20  ;;  %7155 = vmatpush1.bf16.msra.mxu1 %v9104_v22  ;;  %v9196_v20 = vld [vmem:[%s13739_s1 + $0x5ec] ss:$16 sps:$4 sm:$0xff]   ;;  %v9194_v22 = vld [vmem:[%s13739_s1 + $0x5e8] ss:$16 sps:$4 sm:$0xff]  }
  0x84   :  { %6500 = vmatprep.subr.bf16.mxu0 %v9109_v23  ;;  %7156 = vmatprep.subr.bf16.mxu1 %v9112_v24  ;;  %v9200_v23 = vld [vmem:[%s13739_s1 + $0x604] ss:$16 sps:$4 sm:$0xff]   ;;  %v9203_v24 = vld [vmem:[%s13739_s1 + $0x60c] ss:$16 sps:$4 sm:$0xff]  }
  0x85   :  { %6530 = vmatprep.mubr.bf16.mxu0 %v10903_v25  ;;  %7186 = vmatprep.mubr.bf16.mxu1 %v10903_v25 }
  0x87   :  { %6501 = vmatpush1.bf16.msra.mxu0 %v9107_v13  ;;  %7157 = vmatpush1.bf16.msra.mxu1 %v9110_v26  ;;  %v9198_v13 = vld [vmem:[%s13739_s1 + $0x600] ss:$16 sps:$4 sm:$0xff]   ;;  %v11092_v26 = vrot.slane %v10872_v14, %v10608_v49  ;;  %v1116_v14 = vcombine.high %v10903_v25, %v10903_v25  ;;  %v9212_v25 = vld [vmem:[%s13739_s1 + $0x644] ss:$16 sps:$4 sm:$0xff]  }
  0x88   :  { %6502 = vmatprep.subr.bf16.mxu0 %v9115_v27  ;;  %7158 = vmatprep.subr.bf16.mxu1 %v9118_v28  ;;  %v9201_v27 = vld [vmem:[%s13739_s1 + $0x608] ss:$16 sps:$4 sm:$0xff]   ;;  %v9206_v28 = vld [vmem:[%s13739_s1 + $0x624] ss:$16 sps:$4 sm:$0xff]  }
  0x8b   :  { %6503 = vmatpush1.bf16.msra.mxu0 %v9113_v29  ;;  %7159 = vmatpush1.bf16.msra.mxu1 %v9116_v30  ;;  %v9209_v29 = vld [vmem:[%s13739_s1 + $0x62c] ss:$16 sps:$4 sm:$0xff]   ;;  %v9204_v30 = vld [vmem:[%s13739_s1 + $0x620] ss:$16 sps:$4 sm:$0xff]  }
  0x8c   :  { %6504 = vmatprep.subr.bf16.mxu0 %v9121_v31  ;;  %7160 = vmatprep.subr.bf16.mxu1 %v9124_v32  ;;  %v9207_v31 = vld [vmem:[%s13739_s1 + $0x628] ss:$16 sps:$4 sm:$0xff]   ;;  %v9215_v32 = vld [vmem:[%s13739_s1 + $0x64c] ss:$16 sps:$4 sm:$0xff]  }
  0x8f   :  { %6505 = vmatpush1.bf16.msra.mxu0 %v9119_v33  ;;  %7161 = vmatpush1.bf16.msra.mxu1 %v9122_v34  ;;  %v9210_v33 = vld [vmem:[%s13739_s1 + $0x640] ss:$16 sps:$4 sm:$0xff]   ;;  %v9213_v34 = vld [vmem:[%s13739_s1 + $0x648] ss:$16 sps:$4 sm:$0xff]  }
  0x90   :  { %6506 = vmatprep.subr.bf16.mxu0 %v9127_v35  ;;  %7162 = vmatprep.subr.bf16.mxu1 %v9130_v36  ;;  %v9218_v35 = vld [vmem:[%s13739_s1 + $0x664] ss:$16 sps:$4 sm:$0xff]   ;;  %v9221_v36 = vld [vmem:[%s13739_s1 + $0x66c] ss:$16 sps:$4 sm:$0xff]  }
  0x93   :  { %6507 = vmatpush1.bf16.msra.mxu0 %v9125_v37  ;;  %7163 = vmatpush1.bf16.msra.mxu1 %v9128_v38  ;;  %v9216_v37 = vld [vmem:[%s13739_s1 + $0x660] ss:$16 sps:$4 sm:$0xff]   ;;  %v9219_v38 = vld [vmem:[%s13739_s1 + $0x668] ss:$16 sps:$4 sm:$0xff]  }
  0x94   :  { %6508 = vmatprep.subr.bf16.mxu0 %v9133_v39  ;;  %7164 = vmatprep.subr.bf16.mxu1 %v9136_v40  ;;  %v9224_v39 = vld [vmem:[%s13739_s1 + $0x684] ss:$16 sps:$4 sm:$0xff]   ;;  %v9227_v40 = vld [vmem:[%s13739_s1 + $0x68c] ss:$16 sps:$4 sm:$0xff]  }
  0x97   :  { %6509 = vmatpush1.bf16.msra.mxu0 %v9131_v41  ;;  %7165 = vmatpush1.bf16.msra.mxu1 %v9134_v43  ;;  %v9222_v41 = vld [vmem:[%s13739_s1 + $0x680] ss:$16 sps:$4 sm:$0xff]   ;;  %v9225_v43 = vld [vmem:[%s13739_s1 + $0x688] ss:$16 sps:$4 sm:$0xff]  }
  0x98   :  { %6510 = vmatprep.subr.bf16.mxu0 %v9139_v44  ;;  %7166 = vmatprep.subr.bf16.mxu1 %v9142_v45  ;;  %v9230_v44 = vld [vmem:[%s13739_s1 + $0x6a4] ss:$16 sps:$4 sm:$0xff]   ;;  %v9233_v45 = vld [vmem:[%s13739_s1 + $0x6ac] ss:$16 sps:$4 sm:$0xff]  }
  0x9b   :  { %6511 = vmatpush1.bf16.msra.mxu0 %v9137_v46  ;;  %7167 = vmatpush1.bf16.msra.mxu1 %v9140_v47  ;;  %v9228_v46 = vld [vmem:[%s13739_s1 + $0x6a0] ss:$16 sps:$4 sm:$0xff]   ;;  %v9231_v47 = vld [vmem:[%s13739_s1 + $0x6a8] ss:$16 sps:$4 sm:$0xff]  }
  0x9c   :  { %6512 = vmatprep.subr.bf16.mxu0 %v9145_v48  ;;  %7168 = vmatprep.subr.bf16.mxu1 %v9148_v50  ;;  %v9236_v48 = vld [vmem:[%s13739_s1 + $0x6c4] ss:$16 sps:$4 sm:$0xff]   ;;  %v9239_v50 = vld [vmem:[%s13739_s1 + $0x6cc] ss:$16 sps:$4 sm:$0xff]  }
  0x9f   :  { %6513 = vmatpush1.bf16.msra.mxu0 %v9143_v51  ;;  %7169 = vmatpush1.bf16.msra.mxu1 %v9146_v53  ;;  %v9234_v51 = vld [vmem:[%s13739_s1 + $0x6c0] ss:$16 sps:$4 sm:$0xff]   ;;  %v9237_v53 = vld [vmem:[%s13739_s1 + $0x6c8] ss:$16 sps:$4 sm:$0xff]  }
  0xa0   :  { %6514 = vmatprep.subr.bf16.mxu0 %v9151_v54  ;;  %7170 = vmatprep.subr.bf16.mxu1 %v9154_v55  ;;  %v9242_v54 = vld [vmem:[%s13739_s1 + $0x6e4] ss:$16 sps:$4 sm:$0xff]   ;;  %v9245_v55 = vld [vmem:[%s13739_s1 + $0x6ec] ss:$16 sps:$4 sm:$0xff]  }
  0xa3   :  { %6515 = vmatpush1.bf16.msra.mxu0 %v9149_v56  ;;  %7171 = vmatpush1.bf16.msra.mxu1 %v9152_v57  ;;  %v9240_v56 = vld [vmem:[%s13739_s1 + $0x6e0] ss:$16 sps:$4 sm:$0xff]   ;;  %v9243_v57 = vld [vmem:[%s13739_s1 + $0x6e8] ss:$16 sps:$4 sm:$0xff]  }
  0xa4   :  { %6516 = vmatprep.subr.bf16.mxu0 %v9157_v58  ;;  %7172 = vmatprep.subr.bf16.mxu1 %v9160_v59  ;;  %v9248_v58 = vld [vmem:[%s13739_s1 + $0x704] ss:$16 sps:$4 sm:$0xff]   ;;  %v9251_v59 = vld [vmem:[%s13739_s1 + $0x70c] ss:$16 sps:$4 sm:$0xff]  }
  0xa7   :  { %6517 = vmatpush1.bf16.msra.mxu0 %v9155_v60  ;;  %7173 = vmatpush1.bf16.msra.mxu1 %v9158_v61  ;;  %v9246_v60 = vld [vmem:[%s13739_s1 + $0x700] ss:$16 sps:$4 sm:$0xff]   ;;  %v9249_v61 = vld [vmem:[%s13739_s1 + $0x708] ss:$16 sps:$4 sm:$0xff]  }
  0xa8   :  { %6518 = vmatprep.subr.bf16.mxu0 %v9163_v62  ;;  %7174 = vmatprep.subr.bf16.mxu1 %v9166_v63  ;;  %v9254_v62 = vld [vmem:[%s13739_s1 + $0x724] ss:$16 sps:$4 sm:$0xff]   ;;  %v9257_v63 = vld [vmem:[%s13739_s1 + $0x72c] ss:$16 sps:$4 sm:$0xff]  }
  0xab   :  { %6519 = vmatpush1.bf16.msra.mxu0 %v9161_v0  ;;  %7175 = vmatpush1.bf16.msra.mxu1 %v9164_v1  ;;  %v9252_v0 = vld [vmem:[%s13739_s1 + $0x720] ss:$16 sps:$4 sm:$0xff]   ;;  %v9255_v1 = vld [vmem:[%s13739_s1 + $0x728] ss:$16 sps:$4 sm:$0xff]  }
  0xac   :  { %6520 = vmatprep.subr.bf16.mxu0 %v9169_v2  ;;  %7176 = vmatprep.subr.bf16.mxu1 %v9172_v3  ;;  %v9260_v2 = vld [vmem:[%s13739_s1 + $0x744] ss:$16 sps:$4 sm:$0xff]   ;;  %v9263_v3 = vld [vmem:[%s13739_s1 + $0x74c] ss:$16 sps:$4 sm:$0xff]  }
  0xaf   :  { %6521 = vmatpush1.bf16.msra.mxu0 %v9167_v4  ;;  %7177 = vmatpush1.bf16.msra.mxu1 %v9170_v5  ;;  %v9258_v4 = vld [vmem:[%s13739_s1 + $0x740] ss:$16 sps:$4 sm:$0xff]   ;;  %v9261_v5 = vld [vmem:[%s13739_s1 + $0x748] ss:$16 sps:$4 sm:$0xff]  }
  0xb0   :  { %6522 = vmatprep.subr.bf16.mxu0 %v9175_v6  ;;  %7178 = vmatprep.subr.bf16.mxu1 %v9178_v7  ;;  %v9266_v6 = vld [vmem:[%s13739_s1 + $0x764] ss:$16 sps:$4 sm:$0xff]   ;;  %v9269_v7 = vld [vmem:[%s13739_s1 + $0x76c] ss:$16 sps:$4 sm:$0xff]  }
  0xb3   :  { %6523 = vmatpush1.bf16.msra.mxu0 %v9173_v8  ;;  %7179 = vmatpush1.bf16.msra.mxu1 %v9176_v9  ;;  %v9264_v8 = vld [vmem:[%s13739_s1 + $0x760] ss:$16 sps:$4 sm:$0xff]   ;;  %v9267_v9 = vld [vmem:[%s13739_s1 + $0x768] ss:$16 sps:$4 sm:$0xff]  }
  0xb4   :  { %6524 = vmatprep.subr.bf16.mxu0 %v9181_v10  ;;  %7180 = vmatprep.subr.bf16.mxu1 %v9184_v11  ;;  %v9272_v10 = vld [vmem:[%s13739_s1 + $0x784] ss:$16 sps:$4 sm:$0xff]   ;;  %v9275_v11 = vld [vmem:[%s13739_s1 + $0x78c] ss:$16 sps:$4 sm:$0xff]  }
  0xb7   :  { %6525 = vmatpush1.bf16.msra.mxu0 %v9179_v12  ;;  %7181 = vmatpush1.bf16.msra.mxu1 %v9182_v52  ;;  %v9270_v12 = vld [vmem:[%s13739_s1 + $0x780] ss:$16 sps:$4 sm:$0xff]   ;;  %v9273_v52 = vld [vmem:[%s13739_s1 + $0x788] ss:$16 sps:$4 sm:$0xff]  }
  0xb8   :  { %6526 = vmatprep.subr.bf16.mxu0 %v9187_v15  ;;  %7182 = vmatprep.subr.bf16.mxu1 %v9190_v16  ;;  %v9278_v15 = vld [vmem:[%s13739_s1 + $0x7a4] ss:$16 sps:$4 sm:$0xff]   ;;  %v9281_v16 = vld [vmem:[%s13739_s1 + $0x7ac] ss:$16 sps:$4 sm:$0xff]  }
  0xbb   :  { %6527 = vmatpush1.bf16.msra.mxu0 %v9185_v17  ;;  %7183 = vmatpush1.bf16.msra.mxu1 %v9188_v18  ;;  %v9276_v17 = vld [vmem:[%s13739_s1 + $0x7a0] ss:$16 sps:$4 sm:$0xff]   ;;  %v9279_v18 = vld [vmem:[%s13739_s1 + $0x7a8] ss:$16 sps:$4 sm:$0xff]  }
  0xbc   :  { %6528 = vmatprep.subr.bf16.mxu0 %v9193_v19  ;;  %7184 = vmatprep.subr.bf16.mxu1 %v9196_v20  ;;  %v9284_v19 = vld [vmem:[%s13739_s1 + $0x7c4] ss:$16 sps:$4 sm:$0xff]   ;;  %v9287_v20 = vld [vmem:[%s13739_s1 + $0x7cc] ss:$16 sps:$4 sm:$0xff]  }
  0xbf   :  { %6529 = vmatpush1.bf16.msra.mxu0 %v9191_v21  ;;  %7185 = vmatpush1.bf16.msra.mxu1 %v9194_v22  ;;  %v11266_v21 = vld.sshfl [vmem:[%s13740_s0 + $0x8] sm:$0xff pattern:$0x75316420]  ;;  %v9282_v22 = vld [vmem:[%s13739_s1 + $0x7c0] ss:$16 sps:$4 sm:$0xff]  }
  0xc0   :  { %6539 = vmatprep.subr.bf16.mxu0 %v9200_v23  ;;  %7195 = vmatprep.subr.bf16.mxu1 %v9203_v24  ;;  %v9285_v23 = vld [vmem:[%s13739_s1 + $0x7c8] ss:$16 sps:$4 sm:$0xff]   ;;  %v9290_v24 = vld [vmem:[%s13739_s1 + $0x7e4] ss:$16 sps:$4 sm:$0xff]  }
  0xc2   :  { %6531 = vmatmul.mubr.bf16.vlgmr.msra.gmra.mrb[0].mxu0 %v11092_v26  ;;  %7187 = vmatmul.mubr.bf16.vlgmr.msra.gmra.mrb[0].mxu1 %v11092_v26 }
  0xc3   :  { %6540 = vmatpush1.bf16.msra.mxu0 %v9198_v13  ;;  %7196 = vmatpush1.bf16.msra.mxu1 %v9201_v27  ;;  %v9293_v13 = vld [vmem:[%s13739_s1 + $0x7ec] ss:$16 sps:$4 sm:$0xff]   ;;  %v9288_v27 = vld [vmem:[%s13739_s1 + $0x7e0] ss:$16 sps:$4 sm:$0xff]  }
  0xc4   :  { %6541 = vmatprep.subr.bf16.mxu0 %v9206_v28  ;;  %7197 = vmatprep.subr.bf16.mxu1 %v9209_v29  ;;  %v9291_v28 = vld [vmem:[%s13739_s1 + $0x7e8] ss:$16 sps:$4 sm:$0xff]   ;;  %v9296_v29 = vld [vmem:[%s13739_s1 + $0x804] ss:$16 sps:$4 sm:$0xff]  }
  0xc5   :  { %6571 = vmatprep.mubr.bf16.mxu0 %v1116_v14  ;;  %7227 = vmatprep.mubr.bf16.mxu1 %v1116_v14  ;;  %v9299_v14 = vld [vmem:[%s13739_s1 + $0x80c] ss:$16 sps:$4 sm:$0xff]  }
  0xc7   :  { %6542 = vmatpush1.bf16.msra.mxu0 %v9204_v30  ;;  %7198 = vmatpush1.bf16.msra.mxu1 %v9207_v31  ;;  %v1132_v30 = vcombine.high %v11266_v21, %v11266_v21  ;;  %v1114_v31 = vcombine.high %v11092_v26, %v11092_v26  ;;  %v9305_v26 = vld [vmem:[%s13739_s1 + $0x82c] ss:$16 sps:$4 sm:$0xff]  }
  0xc8   :  { %6543 = vmatprep.subr.bf16.mxu0 %v9212_v25  ;;  %7199 = vmatprep.subr.bf16.mxu1 %v9215_v32  ;;  %v9294_v25 = vld [vmem:[%s13739_s1 + $0x800] ss:$16 sps:$4 sm:$0xff]   ;;  %v9297_v32 = vld [vmem:[%s13739_s1 + $0x808] ss:$16 sps:$4 sm:$0xff]  }
  0xcb   :  { %6544 = vmatpush1.bf16.msra.mxu0 %v9210_v33  ;;  %7200 = vmatpush1.bf16.msra.mxu1 %v9213_v34  ;;  %v9302_v33 = vld [vmem:[%s13739_s1 + $0x824] ss:$16 sps:$4 sm:$0xff]   ;;  %v11309_v34 = vrot.slane %v1132_v30, %v10608_v49 }
  0xcc   :  { %6545 = vmatprep.subr.bf16.mxu0 %v9218_v35  ;;  %7201 = vmatprep.subr.bf16.mxu1 %v9221_v36  ;;  %v9300_v35 = vld [vmem:[%s13739_s1 + $0x820] ss:$16 sps:$4 sm:$0xff]   ;;  %v9303_v36 = vld [vmem:[%s13739_s1 + $0x828] ss:$16 sps:$4 sm:$0xff]   ;;  %v9386_v30 = vld [vmem:[%s13739_s1 + $0x9e4] ss:$16 sps:$4 sm:$0xff]  }
  0xcf   :  { %6546 = vmatpush1.bf16.msra.mxu0 %v9216_v37  ;;  %7202 = vmatpush1.bf16.msra.mxu1 %v9219_v38  ;;  %v9308_v37 = vld [vmem:[%s13739_s1 + $0x844] ss:$16 sps:$4 sm:$0xff]   ;;  %v9311_v38 = vld [vmem:[%s13739_s1 + $0x84c] ss:$16 sps:$4 sm:$0xff]  }
  0xd0   :  { %6547 = vmatprep.subr.bf16.mxu0 %v9224_v39  ;;  %7203 = vmatprep.subr.bf16.mxu1 %v9227_v40  ;;  %v9306_v39 = vld [vmem:[%s13739_s1 + $0x840] ss:$16 sps:$4 sm:$0xff]   ;;  %v9309_v40 = vld [vmem:[%s13739_s1 + $0x848] ss:$16 sps:$4 sm:$0xff]  }
  0xd3   :  { %6548 = vmatpush1.bf16.msra.mxu0 %v9222_v41  ;;  %7204 = vmatpush1.bf16.msra.mxu1 %v9225_v43  ;;  %v9314_v41 = vld [vmem:[%s13739_s1 + $0x864] ss:$16 sps:$4 sm:$0xff]   ;;  %v9317_v43 = vld [vmem:[%s13739_s1 + $0x86c] ss:$16 sps:$4 sm:$0xff]  }
  0xd4   :  { %6549 = vmatprep.subr.bf16.mxu0 %v9230_v44  ;;  %7205 = vmatprep.subr.bf16.mxu1 %v9233_v45  ;;  %v9312_v44 = vld [vmem:[%s13739_s1 + $0x860] ss:$16 sps:$4 sm:$0xff]   ;;  %v9315_v45 = vld [vmem:[%s13739_s1 + $0x868] ss:$16 sps:$4 sm:$0xff]  }
  0xd7   :  { %6550 = vmatpush1.bf16.msra.mxu0 %v9228_v46  ;;  %7206 = vmatpush1.bf16.msra.mxu1 %v9231_v47  ;;  %v9320_v46 = vld [vmem:[%s13739_s1 + $0x884] ss:$16 sps:$4 sm:$0xff]   ;;  %v9323_v47 = vld [vmem:[%s13739_s1 + $0x88c] ss:$16 sps:$4 sm:$0xff]  }
  0xd8   :  { %6551 = vmatprep.subr.bf16.mxu0 %v9236_v48  ;;  %7207 = vmatprep.subr.bf16.mxu1 %v9239_v50  ;;  %v9318_v48 = vld [vmem:[%s13739_s1 + $0x880] ss:$16 sps:$4 sm:$0xff]   ;;  %v9321_v50 = vld [vmem:[%s13739_s1 + $0x888] ss:$16 sps:$4 sm:$0xff]  }
  0xdb   :  { %6552 = vmatpush1.bf16.msra.mxu0 %v9234_v51  ;;  %7208 = vmatpush1.bf16.msra.mxu1 %v9237_v53  ;;  %v9326_v51 = vld [vmem:[%s13739_s1 + $0x8a4] ss:$16 sps:$4 sm:$0xff]   ;;  %v9329_v53 = vld [vmem:[%s13739_s1 + $0x8ac] ss:$16 sps:$4 sm:$0xff]  }
  0xdc   :  { %6553 = vmatprep.subr.bf16.mxu0 %v9242_v54  ;;  %7209 = vmatprep.subr.bf16.mxu1 %v9245_v55  ;;  %v9324_v54 = vld [vmem:[%s13739_s1 + $0x8a0] ss:$16 sps:$4 sm:$0xff]   ;;  %v9327_v55 = vld [vmem:[%s13739_s1 + $0x8a8] ss:$16 sps:$4 sm:$0xff]  }
  0xdf   :  { %6554 = vmatpush1.bf16.msra.mxu0 %v9240_v56  ;;  %7210 = vmatpush1.bf16.msra.mxu1 %v9243_v57  ;;  %v9332_v56 = vld [vmem:[%s13739_s1 + $0x8c4] ss:$16 sps:$4 sm:$0xff]   ;;  %v9335_v57 = vld [vmem:[%s13739_s1 + $0x8cc] ss:$16 sps:$4 sm:$0xff]  }
  0xe0   :  { %6555 = vmatprep.subr.bf16.mxu0 %v9248_v58  ;;  %7211 = vmatprep.subr.bf16.mxu1 %v9251_v59  ;;  %v9330_v58 = vld [vmem:[%s13739_s1 + $0x8c0] ss:$16 sps:$4 sm:$0xff]   ;;  %v9333_v59 = vld [vmem:[%s13739_s1 + $0x8c8] ss:$16 sps:$4 sm:$0xff]  }
  0xe3   :  { %6556 = vmatpush1.bf16.msra.mxu0 %v9246_v60  ;;  %7212 = vmatpush1.bf16.msra.mxu1 %v9249_v61  ;;  %v9338_v60 = vld [vmem:[%s13739_s1 + $0x8e4] ss:$16 sps:$4 sm:$0xff]   ;;  %v9341_v61 = vld [vmem:[%s13739_s1 + $0x8ec] ss:$16 sps:$4 sm:$0xff]  }
  0xe4   :  { %6557 = vmatprep.subr.bf16.mxu0 %v9254_v62  ;;  %7213 = vmatprep.subr.bf16.mxu1 %v9257_v63  ;;  %v9336_v62 = vld [vmem:[%s13739_s1 + $0x8e0] ss:$16 sps:$4 sm:$0xff]   ;;  %v9339_v63 = vld [vmem:[%s13739_s1 + $0x8e8] ss:$16 sps:$4 sm:$0xff]  }
  0xe7   :  { %6558 = vmatpush1.bf16.msra.mxu0 %v9252_v0  ;;  %7214 = vmatpush1.bf16.msra.mxu1 %v9255_v1  ;;  %v9344_v0 = vld [vmem:[%s13739_s1 + $0x904] ss:$16 sps:$4 sm:$0xff]   ;;  %v9347_v1 = vld [vmem:[%s13739_s1 + $0x90c] ss:$16 sps:$4 sm:$0xff]  }
  0xe8   :  { %6559 = vmatprep.subr.bf16.mxu0 %v9260_v2  ;;  %7215 = vmatprep.subr.bf16.mxu1 %v9263_v3  ;;  %v9342_v2 = vld [vmem:[%s13739_s1 + $0x900] ss:$16 sps:$4 sm:$0xff]   ;;  %v9345_v3 = vld [vmem:[%s13739_s1 + $0x908] ss:$16 sps:$4 sm:$0xff]  }
  0xeb   :  { %6560 = vmatpush1.bf16.msra.mxu0 %v9258_v4  ;;  %7216 = vmatpush1.bf16.msra.mxu1 %v9261_v5  ;;  %v9350_v4 = vld [vmem:[%s13739_s1 + $0x924] ss:$16 sps:$4 sm:$0xff]   ;;  %v9353_v5 = vld [vmem:[%s13739_s1 + $0x92c] ss:$16 sps:$4 sm:$0xff]  }
  0xec   :  { %6561 = vmatprep.subr.bf16.mxu0 %v9266_v6  ;;  %7217 = vmatprep.subr.bf16.mxu1 %v9269_v7  ;;  %v9348_v6 = vld [vmem:[%s13739_s1 + $0x920] ss:$16 sps:$4 sm:$0xff]   ;;  %v9351_v7 = vld [vmem:[%s13739_s1 + $0x928] ss:$16 sps:$4 sm:$0xff]  }
  0xef   :  { %6562 = vmatpush1.bf16.msra.mxu0 %v9264_v8  ;;  %7218 = vmatpush1.bf16.msra.mxu1 %v9267_v9  ;;  %v9356_v8 = vld [vmem:[%s13739_s1 + $0x944] ss:$16 sps:$4 sm:$0xff]   ;;  %v9359_v9 = vld [vmem:[%s13739_s1 + $0x94c] ss:$16 sps:$4 sm:$0xff]  }
  0xf0   :  { %6563 = vmatprep.subr.bf16.mxu0 %v9272_v10  ;;  %7219 = vmatprep.subr.bf16.mxu1 %v9275_v11  ;;  %v9354_v10 = vld [vmem:[%s13739_s1 + $0x940] ss:$16 sps:$4 sm:$0xff]   ;;  %v9357_v11 = vld [vmem:[%s13739_s1 + $0x948] ss:$16 sps:$4 sm:$0xff]  }
  0xf3   :  { %6564 = vmatpush1.bf16.msra.mxu0 %v9270_v12  ;;  %7220 = vmatpush1.bf16.msra.mxu1 %v9273_v52  ;;  %v9362_v12 = vld [vmem:[%s13739_s1 + $0x964] ss:$16 sps:$4 sm:$0xff]   ;;  %v9365_v52 = vld [vmem:[%s13739_s1 + $0x96c] ss:$16 sps:$4 sm:$0xff]  }
  0xf4   :  { %6565 = vmatprep.subr.bf16.mxu0 %v9278_v15  ;;  %7221 = vmatprep.subr.bf16.mxu1 %v9281_v16  ;;  %v9360_v15 = vld [vmem:[%s13739_s1 + $0x960] ss:$16 sps:$4 sm:$0xff]   ;;  %v9363_v16 = vld [vmem:[%s13739_s1 + $0x968] ss:$16 sps:$4 sm:$0xff]  }
  0xf7   :  { %6566 = vmatpush1.bf16.msra.mxu0 %v9276_v17  ;;  %7222 = vmatpush1.bf16.msra.mxu1 %v9279_v18  ;;  %v9368_v17 = vld [vmem:[%s13739_s1 + $0x984] ss:$16 sps:$4 sm:$0xff]   ;;  %v9371_v18 = vld [vmem:[%s13739_s1 + $0x98c] ss:$16 sps:$4 sm:$0xff]  }
  0xf8   :  { %6567 = vmatprep.subr.bf16.mxu0 %v9284_v19  ;;  %7223 = vmatprep.subr.bf16.mxu1 %v9287_v20  ;;  %v9366_v19 = vld [vmem:[%s13739_s1 + $0x980] ss:$16 sps:$4 sm:$0xff]   ;;  %v9369_v20 = vld [vmem:[%s13739_s1 + $0x988] ss:$16 sps:$4 sm:$0xff]  }
  0xfb   :  { %6568 = vmatpush1.bf16.msra.mxu0 %v9282_v22  ;;  %7224 = vmatpush1.bf16.msra.mxu1 %v9285_v23  ;;  %v9374_v22 = vld [vmem:[%s13739_s1 + $0x9a4] ss:$16 sps:$4 sm:$0xff]   ;;  %v9377_v23 = vld [vmem:[%s13739_s1 + $0x9ac] ss:$16 sps:$4 sm:$0xff]  }
  0xfc   :  { %6569 = vmatprep.subr.bf16.mxu0 %v9290_v24  ;;  %7225 = vmatprep.subr.bf16.mxu1 %v9293_v13  ;;  %v9372_v24 = vld [vmem:[%s13739_s1 + $0x9a0] ss:$16 sps:$4 sm:$0xff]   ;;  %v9375_v13 = vld [vmem:[%s13739_s1 + $0x9a8] ss:$16 sps:$4 sm:$0xff]  }
  0xff   :  { %6570 = vmatpush1.bf16.msra.mxu0 %v9288_v27  ;;  %7226 = vmatpush1.bf16.msra.mxu1 %v9291_v28  ;;  %v9380_v27 = vld [vmem:[%s13739_s1 + $0x9c4] ss:$16 sps:$4 sm:$0xff]   ;;  %v9383_v28 = vld [vmem:[%s13739_s1 + $0x9cc] ss:$16 sps:$4 sm:$0xff]  }
 0x100   :  { %6580 = vmatprep.subr.bf16.mxu0 %v9296_v29  ;;  %7236 = vmatprep.subr.bf16.mxu1 %v9299_v14  ;;  %v9378_v29 = vld [vmem:[%s13739_s1 + $0x9c0] ss:$16 sps:$4 sm:$0xff]   ;;  %v9381_v14 = vld [vmem:[%s13739_s1 + $0x9c8] ss:$16 sps:$4 sm:$0xff]  }
 0x102   :  { %6572 = vmatmul.mubr.bf16.vlgmr.msra.gmra.mrb[0].mxu0 %v1114_v31  ;;  %7228 = vmatmul.mubr.bf16.vlgmr.msra.gmra.mrb[0].mxu1 %v1114_v31  ;;  %v9389_v31 = vld [vmem:[%s13739_s1 + $0x9ec] ss:$16 sps:$4 sm:$0xff]  }
 0x103   :  { %6581 = vmatpush1.bf16.msra.mxu0 %v9294_v25  ;;  %7237 = vmatpush1.bf16.msra.mxu1 %v9297_v32  ;;  %v9384_v25 = vld [vmem:[%s13739_s1 + $0x9e0] ss:$16 sps:$4 sm:$0xff]   ;;  %v9387_v32 = vld [vmem:[%s13739_s1 + $0x9e8] ss:$16 sps:$4 sm:$0xff]  }
 0x104   :  { %6582 = vmatprep.subr.bf16.mxu0 %v9302_v33  ;;  %7238 = vmatprep.subr.bf16.mxu1 %v9305_v26  ;;  %v9392_v33 = vld [vmem:[%s13739_s1 + $0xa04] ss:$16 sps:$4 sm:$0xff]   ;;  %v9395_v26 = vld [vmem:[%s13739_s1 + $0xa0c] ss:$16 sps:$4 sm:$0xff]  }
 0x105   :  { %6612 = vmatprep.mubr.bf16.mxu0 %v11309_v34  ;;  %7268 = vmatprep.mubr.bf16.mxu1 %v11309_v34 }
 0x107   :  { %6583 = vmatpush1.bf16.msra.mxu0 %v9300_v35  ;;  %7239 = vmatpush1.bf16.msra.mxu1 %v9303_v36  ;;  %v11495_v35 = vrot.slane %v11266_v21, %v10608_v49  ;;  %v9390_v36 = vld [vmem:[%s13739_s1 + $0xa00] ss:$16 sps:$4 sm:$0xff]   ;;  %v9401_v21 = vld [vmem:[%s13739_s1 + $0xa2c] ss:$16 sps:$4 sm:$0xff]  }
 0x108   :  { %6584 = vmatprep.subr.bf16.mxu0 %v9308_v37  ;;  %7240 = vmatprep.subr.bf16.mxu1 %v9311_v38  ;;  %v9393_v37 = vld [vmem:[%s13739_s1 + $0xa08] ss:$16 sps:$4 sm:$0xff]   ;;  %v9398_v38 = vld [vmem:[%s13739_s1 + $0xa24] ss:$16 sps:$4 sm:$0xff]  }
 0x10b   :  { %6585 = vmatpush1.bf16.msra.mxu0 %v9306_v39  ;;  %7241 = vmatpush1.bf16.msra.mxu1 %v9309_v40  ;;  %v1164_v39 = vcombine.high %v11309_v34, %v11309_v34  ;;  %v9396_v40 = vld [vmem:[%s13739_s1 + $0xa20] ss:$16 sps:$4 sm:$0xff]   ;;  %v9404_v34 = vld [vmem:[%s13739_s1 + $0xa44] ss:$16 sps:$4 sm:$0xff]  }
 0x10c   :  { %6586 = vmatprep.subr.bf16.mxu0 %v9314_v41  ;;  %7242 = vmatprep.subr.bf16.mxu1 %v9317_v43  ;;  %v9399_v41 = vld [vmem:[%s13739_s1 + $0xa28] ss:$16 sps:$4 sm:$0xff]   ;;  %v9407_v43 = vld [vmem:[%s13739_s1 + $0xa4c] ss:$16 sps:$4 sm:$0xff]  }
 0x10f   :  { %6587 = vmatpush1.bf16.msra.mxu0 %v9312_v44  ;;  %7243 = vmatpush1.bf16.msra.mxu1 %v9315_v45  ;;  %v9402_v44 = vld [vmem:[%s13739_s1 + $0xa40] ss:$16 sps:$4 sm:$0xff]   ;;  %v9405_v45 = vld [vmem:[%s13739_s1 + $0xa48] ss:$16 sps:$4 sm:$0xff]  }
 0x110   :  { %6588 = vmatprep.subr.bf16.mxu0 %v9320_v46  ;;  %7244 = vmatprep.subr.bf16.mxu1 %v9323_v47  ;;  %v9410_v46 = vld [vmem:[%s13739_s1 + $0xa64] ss:$16 sps:$4 sm:$0xff]   ;;  %v9413_v47 = vld [vmem:[%s13739_s1 + $0xa6c] ss:$16 sps:$4 sm:$0xff]  }
 0x113   :  { %6589 = vmatpush1.bf16.msra.mxu0 %v9318_v48  ;;  %7245 = vmatpush1.bf16.msra.mxu1 %v9321_v50  ;;  %v9408_v48 = vld [vmem:[%s13739_s1 + $0xa60] ss:$16 sps:$4 sm:$0xff]   ;;  %v9411_v50 = vld [vmem:[%s13739_s1 + $0xa68] ss:$16 sps:$4 sm:$0xff]  }
 0x114   :  { %6590 = vmatprep.subr.bf16.mxu0 %v9326_v51  ;;  %7246 = vmatprep.subr.bf16.mxu1 %v9329_v53  ;;  %v9416_v51 = vld [vmem:[%s13739_s1 + $0xa84] ss:$16 sps:$4 sm:$0xff]   ;;  %v9419_v53 = vld [vmem:[%s13739_s1 + $0xa8c] ss:$16 sps:$4 sm:$0xff]  }
 0x117   :  { %6591 = vmatpush1.bf16.msra.mxu0 %v9324_v54  ;;  %7247 = vmatpush1.bf16.msra.mxu1 %v9327_v55  ;;  %v9414_v54 = vld [vmem:[%s13739_s1 + $0xa80] ss:$16 sps:$4 sm:$0xff]   ;;  %v9417_v55 = vld [vmem:[%s13739_s1 + $0xa88] ss:$16 sps:$4 sm:$0xff]  }
 0x118   :  { %6592 = vmatprep.subr.bf16.mxu0 %v9332_v56  ;;  %7248 = vmatprep.subr.bf16.mxu1 %v9335_v57  ;;  %v9422_v56 = vld [vmem:[%s13739_s1 + $0xaa4] ss:$16 sps:$4 sm:$0xff]   ;;  %v9425_v57 = vld [vmem:[%s13739_s1 + $0xaac] ss:$16 sps:$4 sm:$0xff]  }
 0x11b   :  { %6593 = vmatpush1.bf16.msra.mxu0 %v9330_v58  ;;  %7249 = vmatpush1.bf16.msra.mxu1 %v9333_v59  ;;  %v9420_v58 = vld [vmem:[%s13739_s1 + $0xaa0] ss:$16 sps:$4 sm:$0xff]   ;;  %v9423_v59 = vld [vmem:[%s13739_s1 + $0xaa8] ss:$16 sps:$4 sm:$0xff]  }
 0x11c   :  { %6594 = vmatprep.subr.bf16.mxu0 %v9338_v60  ;;  %7250 = vmatprep.subr.bf16.mxu1 %v9341_v61  ;;  %v9428_v60 = vld [vmem:[%s13739_s1 + $0xac4] ss:$16 sps:$4 sm:$0xff]   ;;  %v9431_v61 = vld [vmem:[%s13739_s1 + $0xacc] ss:$16 sps:$4 sm:$0xff]  }
 0x11f   :  { %6595 = vmatpush1.bf16.msra.mxu0 %v9336_v62  ;;  %7251 = vmatpush1.bf16.msra.mxu1 %v9339_v63  ;;  %v9426_v62 = vld [vmem:[%s13739_s1 + $0xac0] ss:$16 sps:$4 sm:$0xff]   ;;  %v9429_v63 = vld [vmem:[%s13739_s1 + $0xac8] ss:$16 sps:$4 sm:$0xff]  }
 0x120   :  { %6596 = vmatprep.subr.bf16.mxu0 %v9344_v0  ;;  %7252 = vmatprep.subr.bf16.mxu1 %v9347_v1  ;;  %v9434_v0 = vld [vmem:[%s13739_s1 + $0xae4] ss:$16 sps:$4 sm:$0xff]   ;;  %v9437_v1 = vld [vmem:[%s13739_s1 + $0xaec] ss:$16 sps:$4 sm:$0xff]  }
 0x123   :  { %6597 = vmatpush1.bf16.msra.mxu0 %v9342_v2  ;;  %7253 = vmatpush1.bf16.msra.mxu1 %v9345_v3  ;;  %v9432_v2 = vld [vmem:[%s13739_s1 + $0xae0] ss:$16 sps:$4 sm:$0xff]   ;;  %v9435_v3 = vld [vmem:[%s13739_s1 + $0xae8] ss:$16 sps:$4 sm:$0xff]  }
 0x124   :  { %6598 = vmatprep.subr.bf16.mxu0 %v9350_v4  ;;  %7254 = vmatprep.subr.bf16.mxu1 %v9353_v5  ;;  %v9440_v4 = vld [vmem:[%s13739_s1 + $0xb04] ss:$16 sps:$4 sm:$0xff]   ;;  %v9443_v5 = vld [vmem:[%s13739_s1 + $0xb0c] ss:$16 sps:$4 sm:$0xff]  }
 0x127   :  { %6599 = vmatpush1.bf16.msra.mxu0 %v9348_v6  ;;  %7255 = vmatpush1.bf16.msra.mxu1 %v9351_v7  ;;  %v9438_v6 = vld [vmem:[%s13739_s1 + $0xb00] ss:$16 sps:$4 sm:$0xff]   ;;  %v9441_v7 = vld [vmem:[%s13739_s1 + $0xb08] ss:$16 sps:$4 sm:$0xff]  }
 0x128   :  { %6600 = vmatprep.subr.bf16.mxu0 %v9356_v8  ;;  %7256 = vmatprep.subr.bf16.mxu1 %v9359_v9  ;;  %v9446_v8 = vld [vmem:[%s13739_s1 + $0xb24] ss:$16 sps:$4 sm:$0xff]   ;;  %v9449_v9 = vld [vmem:[%s13739_s1 + $0xb2c] ss:$16 sps:$4 sm:$0xff]  }
 0x12b   :  { %6601 = vmatpush1.bf16.msra.mxu0 %v9354_v10  ;;  %7257 = vmatpush1.bf16.msra.mxu1 %v9357_v11  ;;  %v9444_v10 = vld [vmem:[%s13739_s1 + $0xb20] ss:$16 sps:$4 sm:$0xff]   ;;  %v9447_v11 = vld [vmem:[%s13739_s1 + $0xb28] ss:$16 sps:$4 sm:$0xff]  }
 0x12c   :  { %6602 = vmatprep.subr.bf16.mxu0 %v9362_v12  ;;  %7258 = vmatprep.subr.bf16.mxu1 %v9365_v52  ;;  %v9452_v12 = vld [vmem:[%s13739_s1 + $0xb44] ss:$16 sps:$4 sm:$0xff]   ;;  %v9455_v52 = vld [vmem:[%s13739_s1 + $0xb4c] ss:$16 sps:$4 sm:$0xff]  }
 0x12f   :  { %6603 = vmatpush1.bf16.msra.mxu0 %v9360_v15  ;;  %7259 = vmatpush1.bf16.msra.mxu1 %v9363_v16  ;;  %v9450_v15 = vld [vmem:[%s13739_s1 + $0xb40] ss:$16 sps:$4 sm:$0xff]   ;;  %v9453_v16 = vld [vmem:[%s13739_s1 + $0xb48] ss:$16 sps:$4 sm:$0xff]  }
 0x130   :  { %6604 = vmatprep.subr.bf16.mxu0 %v9368_v17  ;;  %7260 = vmatprep.subr.bf16.mxu1 %v9371_v18  ;;  %v9458_v17 = vld [vmem:[%s13739_s1 + $0xb64] ss:$16 sps:$4 sm:$0xff]   ;;  %v9461_v18 = vld [vmem:[%s13739_s1 + $0xb6c] ss:$16 sps:$4 sm:$0xff]  }
 0x133   :  { %6605 = vmatpush1.bf16.msra.mxu0 %v9366_v19  ;;  %7261 = vmatpush1.bf16.msra.mxu1 %v9369_v20  ;;  %v9456_v19 = vld [vmem:[%s13739_s1 + $0xb60] ss:$16 sps:$4 sm:$0xff]   ;;  %v9459_v20 = vld [vmem:[%s13739_s1 + $0xb68] ss:$16 sps:$4 sm:$0xff]  }
 0x134   :  { %6606 = vmatprep.subr.bf16.mxu0 %v9374_v22  ;;  %7262 = vmatprep.subr.bf16.mxu1 %v9377_v23  ;;  %v9464_v22 = vld [vmem:[%s13739_s1 + $0xb84] ss:$16 sps:$4 sm:$0xff]   ;;  %v9467_v23 = vld [vmem:[%s13739_s1 + $0xb8c] ss:$16 sps:$4 sm:$0xff]  }
 0x137   :  { %6607 = vmatpush1.bf16.msra.mxu0 %v9372_v24  ;;  %7263 = vmatpush1.bf16.msra.mxu1 %v9375_v13  ;;  %v9462_v24 = vld [vmem:[%s13739_s1 + $0xb80] ss:$16 sps:$4 sm:$0xff]   ;;  %v9465_v13 = vld [vmem:[%s13739_s1 + $0xb88] ss:$16 sps:$4 sm:$0xff]  }
 0x138   :  { %6608 = vmatprep.subr.bf16.mxu0 %v9380_v27  ;;  %7264 = vmatprep.subr.bf16.mxu1 %v9383_v28  ;;  %v9470_v27 = vld [vmem:[%s13739_s1 + $0xba4] ss:$16 sps:$4 sm:$0xff]   ;;  %v9473_v28 = vld [vmem:[%s13739_s1 + $0xbac] ss:$16 sps:$4 sm:$0xff]  }
 0x13b   :  { %6609 = vmatpush1.bf16.msra.mxu0 %v9378_v29  ;;  %7265 = vmatpush1.bf16.msra.mxu1 %v9381_v14  ;;  %v9468_v29 = vld [vmem:[%s13739_s1 + $0xba0] ss:$16 sps:$4 sm:$0xff]   ;;  %v9471_v14 = vld [vmem:[%s13739_s1 + $0xba8] ss:$16 sps:$4 sm:$0xff]  }
 0x13c   :  { %6610 = vmatprep.subr.bf16.mxu0 %v9386_v30  ;;  %7266 = vmatprep.subr.bf16.mxu1 %v9389_v31  ;;  %v9476_v30 = vld [vmem:[%s13739_s1 + $0xbc4] ss:$16 sps:$4 sm:$0xff]   ;;  %v9479_v31 = vld [vmem:[%s13739_s1 + $0xbcc] ss:$16 sps:$4 sm:$0xff]  }
 0x13f   :  { %6611 = vmatpush1.bf16.msra.mxu0 %v9384_v25  ;;  %7267 = vmatpush1.bf16.msra.mxu1 %v9387_v32  ;;  %v10449_v25 = vld [vmem:[%s13740_s0 + $0x8] sm:$0xff] }
 0x140   :  { %6621 = vmatprep.subr.bf16.mxu0 %v9392_v33  ;;  %7277 = vmatprep.subr.bf16.mxu1 %v9395_v26  ;;  %v1117_v32 = vcombine.high %v10449_v25, %v10449_v25  ;;  %v9474_v33 = vld [vmem:[%s13739_s1 + $0xbc0] ss:$16 sps:$4 sm:$0xff]   ;;  %v9477_v26 = vld [vmem:[%s13739_s1 + $0xbc8] ss:$16 sps:$4 sm:$0xff]  }
 0x141   :  { %v9558_v25 = vld [vmem:[%s13739_s1 + $0xd80] ss:$16 sps:$4 sm:$0xff]  }
 0x142   :  { %6613 = vmatmul.mubr.bf16.vlgmr.msra.gmra.mrb[0].mxu0 %v11495_v35  ;;  %7269 = vmatmul.mubr.bf16.vlgmr.msra.gmra.mrb[0].mxu1 %v11495_v35 }
 0x143   :  { %6622 = vmatpush1.bf16.msra.mxu0 %v9390_v36  ;;  %7278 = vmatpush1.bf16.msra.mxu1 %v9393_v37  ;;  %v9482_v36 = vld [vmem:[%s13739_s1 + $0xbe4] ss:$16 sps:$4 sm:$0xff]   ;;  %v9485_v37 = vld [vmem:[%s13739_s1 + $0xbec] ss:$16 sps:$4 sm:$0xff]  }
 0x144   :  { %6623 = vmatprep.subr.bf16.mxu0 %v9398_v38  ;;  %7279 = vmatprep.subr.bf16.mxu1 %v9401_v21  ;;  %v11685_v38 = vrot.slane %v1117_v32, %v10608_v49  ;;  %v9480_v21 = vld [vmem:[%s13739_s1 + $0xbe0] ss:$16 sps:$4 sm:$0xff]   ;;  %v9561_v32 = vld [vmem:[%s13739_s1 + $0xd88] ss:$16 sps:$4 sm:$0xff]  }
 0x145   :  { %6653 = vmatprep.mubr.bf16.mxu0 %v1164_v39  ;;  %7309 = vmatprep.mubr.bf16.mxu1 %v1164_v39  ;;  %v9483_v39 = vld [vmem:[%s13739_s1 + $0xbe8] ss:$16 sps:$4 sm:$0xff]  }
 0x147   :  { %6624 = vmatpush1.bf16.msra.mxu0 %v9396_v40  ;;  %7280 = vmatpush1.bf16.msra.mxu1 %v9399_v41  ;;  %v9488_v40 = vld [vmem:[%s13739_s1 + $0xc04] ss:$16 sps:$4 sm:$0xff]   ;;  %v9491_v41 = vld [vmem:[%s13739_s1 + $0xc0c] ss:$16 sps:$4 sm:$0xff]  }
 0x148   :  { %6625 = vmatprep.subr.bf16.mxu0 %v9404_v34  ;;  %7281 = vmatprep.subr.bf16.mxu1 %v9407_v43  ;;  %v1133_v34 = vcombine.high %v11685_v38, %v11685_v38  ;;  %v1162_v43 = vcombine.high %v11495_v35, %v11495_v35  ;;  %v9497_v35 = vld [vmem:[%s13739_s1 + $0xc2c] ss:$16 sps:$4 sm:$0xff]  }
 0x14b   :  { %6626 = vmatpush1.bf16.msra.mxu0 %v9402_v44  ;;  %7282 = vmatpush1.bf16.msra.mxu1 %v9405_v45  ;;  %v9486_v44 = vld [vmem:[%s13739_s1 + $0xc00] ss:$16 sps:$4 sm:$0xff]   ;;  %v9489_v45 = vld [vmem:[%s13739_s1 + $0xc08] ss:$16 sps:$4 sm:$0xff]  }
 0x14c   :  { %6627 = vmatprep.subr.bf16.mxu0 %v9410_v46  ;;  %7283 = vmatprep.subr.bf16.mxu1 %v9413_v47  ;;  %v9494_v46 = vld [vmem:[%s13739_s1 + $0xc24] ss:$16 sps:$4 sm:$0xff]   ;;  %v11716_v47 = vrot.slane %v1133_v34, %v10608_v49 }
 0x14d   :  { %v9578_v34 = vld [vmem:[%s13739_s1 + $0xde4] ss:$16 sps:$4 sm:$0xff]  }
 0x14f   :  { %6628 = vmatpush1.bf16.msra.mxu0 %v9408_v48  ;;  %7284 = vmatpush1.bf16.msra.mxu1 %v9411_v50  ;;  %v9492_v48 = vld [vmem:[%s13739_s1 + $0xc20] ss:$16 sps:$4 sm:$0xff]   ;;  %v9495_v50 = vld [vmem:[%s13739_s1 + $0xc28] ss:$16 sps:$4 sm:$0xff]  }
 0x150   :  { %6629 = vmatprep.subr.bf16.mxu0 %v9416_v51  ;;  %7285 = vmatprep.subr.bf16.mxu1 %v9419_v53  ;;  %v9500_v51 = vld [vmem:[%s13739_s1 + $0xc44] ss:$16 sps:$4 sm:$0xff]   ;;  %v9503_v53 = vld [vmem:[%s13739_s1 + $0xc4c] ss:$16 sps:$4 sm:$0xff]  }
 0x153   :  { %6630 = vmatpush1.bf16.msra.mxu0 %v9414_v54  ;;  %7286 = vmatpush1.bf16.msra.mxu1 %v9417_v55  ;;  %v9498_v54 = vld [vmem:[%s13739_s1 + $0xc40] ss:$16 sps:$4 sm:$0xff]   ;;  %v9501_v55 = vld [vmem:[%s13739_s1 + $0xc48] ss:$16 sps:$4 sm:$0xff]  }
 0x154   :  { %6631 = vmatprep.subr.bf16.mxu0 %v9422_v56  ;;  %7287 = vmatprep.subr.bf16.mxu1 %v9425_v57  ;;  %v9506_v56 = vld [vmem:[%s13739_s1 + $0xc64] ss:$16 sps:$4 sm:$0xff]   ;;  %v9509_v57 = vld [vmem:[%s13739_s1 + $0xc6c] ss:$16 sps:$4 sm:$0xff]  }
 0x157   :  { %6632 = vmatpush1.bf16.msra.mxu0 %v9420_v58  ;;  %7288 = vmatpush1.bf16.msra.mxu1 %v9423_v59  ;;  %v9504_v58 = vld [vmem:[%s13739_s1 + $0xc60] ss:$16 sps:$4 sm:$0xff]   ;;  %v9507_v59 = vld [vmem:[%s13739_s1 + $0xc68] ss:$16 sps:$4 sm:$0xff]  }
 0x158   :  { %6633 = vmatprep.subr.bf16.mxu0 %v9428_v60  ;;  %7289 = vmatprep.subr.bf16.mxu1 %v9431_v61  ;;  %v9512_v60 = vld [vmem:[%s13739_s1 + $0xc84] ss:$16 sps:$4 sm:$0xff]   ;;  %v9515_v61 = vld [vmem:[%s13739_s1 + $0xc8c] ss:$16 sps:$4 sm:$0xff]  }
 0x15b   :  { %6634 = vmatpush1.bf16.msra.mxu0 %v9426_v62  ;;  %7290 = vmatpush1.bf16.msra.mxu1 %v9429_v63  ;;  %v9510_v62 = vld [vmem:[%s13739_s1 + $0xc80] ss:$16 sps:$4 sm:$0xff]   ;;  %v9513_v63 = vld [vmem:[%s13739_s1 + $0xc88] ss:$16 sps:$4 sm:$0xff]  }
 0x15c   :  { %6635 = vmatprep.subr.bf16.mxu0 %v9434_v0  ;;  %7291 = vmatprep.subr.bf16.mxu1 %v9437_v1  ;;  %v9518_v0 = vld [vmem:[%s13739_s1 + $0xca4] ss:$16 sps:$4 sm:$0xff]   ;;  %v9521_v1 = vld [vmem:[%s13739_s1 + $0xcac] ss:$16 sps:$4 sm:$0xff]  }
 0x15f   :  { %6636 = vmatpush1.bf16.msra.mxu0 %v9432_v2  ;;  %7292 = vmatpush1.bf16.msra.mxu1 %v9435_v3  ;;  %v9516_v2 = vld [vmem:[%s13739_s1 + $0xca0] ss:$16 sps:$4 sm:$0xff]   ;;  %v9519_v3 = vld [vmem:[%s13739_s1 + $0xca8] ss:$16 sps:$4 sm:$0xff]  }
 0x160   :  { %6637 = vmatprep.subr.bf16.mxu0 %v9440_v4  ;;  %7293 = vmatprep.subr.bf16.mxu1 %v9443_v5  ;;  %v9524_v4 = vld [vmem:[%s13739_s1 + $0xcc4] ss:$16 sps:$4 sm:$0xff]   ;;  %v9527_v5 = vld [vmem:[%s13739_s1 + $0xccc] ss:$16 sps:$4 sm:$0xff]  }
 0x163   :  { %6638 = vmatpush1.bf16.msra.mxu0 %v9438_v6  ;;  %7294 = vmatpush1.bf16.msra.mxu1 %v9441_v7  ;;  %v9522_v6 = vld [vmem:[%s13739_s1 + $0xcc0] ss:$16 sps:$4 sm:$0xff]   ;;  %v9525_v7 = vld [vmem:[%s13739_s1 + $0xcc8] ss:$16 sps:$4 sm:$0xff]  }
 0x164   :  { %6639 = vmatprep.subr.bf16.mxu0 %v9446_v8  ;;  %7295 = vmatprep.subr.bf16.mxu1 %v9449_v9  ;;  %v9530_v8 = vld [vmem:[%s13739_s1 + $0xce4] ss:$16 sps:$4 sm:$0xff]   ;;  %v9533_v9 = vld [vmem:[%s13739_s1 + $0xcec] ss:$16 sps:$4 sm:$0xff]  }
 0x167   :  { %6640 = vmatpush1.bf16.msra.mxu0 %v9444_v10  ;;  %7296 = vmatpush1.bf16.msra.mxu1 %v9447_v11  ;;  %v9528_v10 = vld [vmem:[%s13739_s1 + $0xce0] ss:$16 sps:$4 sm:$0xff]   ;;  %v9531_v11 = vld [vmem:[%s13739_s1 + $0xce8] ss:$16 sps:$4 sm:$0xff]  }
 0x168   :  { %6641 = vmatprep.subr.bf16.mxu0 %v9452_v12  ;;  %7297 = vmatprep.subr.bf16.mxu1 %v9455_v52  ;;  %v9536_v12 = vld [vmem:[%s13739_s1 + $0xd04] ss:$16 sps:$4 sm:$0xff]   ;;  %v9539_v52 = vld [vmem:[%s13739_s1 + $0xd0c] ss:$16 sps:$4 sm:$0xff]  }
 0x16b   :  { %6642 = vmatpush1.bf16.msra.mxu0 %v9450_v15  ;;  %7298 = vmatpush1.bf16.msra.mxu1 %v9453_v16  ;;  %v9534_v15 = vld [vmem:[%s13739_s1 + $0xd00] ss:$16 sps:$4 sm:$0xff]   ;;  %v9537_v16 = vld [vmem:[%s13739_s1 + $0xd08] ss:$16 sps:$4 sm:$0xff]  }
 0x16c   :  { %6643 = vmatprep.subr.bf16.mxu0 %v9458_v17  ;;  %7299 = vmatprep.subr.bf16.mxu1 %v9461_v18  ;;  %v9542_v17 = vld [vmem:[%s13739_s1 + $0xd24] ss:$16 sps:$4 sm:$0xff]   ;;  %v9545_v18 = vld [vmem:[%s13739_s1 + $0xd2c] ss:$16 sps:$4 sm:$0xff]  }
 0x16f   :  { %6644 = vmatpush1.bf16.msra.mxu0 %v9456_v19  ;;  %7300 = vmatpush1.bf16.msra.mxu1 %v9459_v20  ;;  %v9540_v19 = vld [vmem:[%s13739_s1 + $0xd20] ss:$16 sps:$4 sm:$0xff]   ;;  %v9543_v20 = vld [vmem:[%s13739_s1 + $0xd28] ss:$16 sps:$4 sm:$0xff]  }
 0x170   :  { %6645 = vmatprep.subr.bf16.mxu0 %v9464_v22  ;;  %7301 = vmatprep.subr.bf16.mxu1 %v9467_v23  ;;  %v9548_v22 = vld [vmem:[%s13739_s1 + $0xd44] ss:$16 sps:$4 sm:$0xff]   ;;  %v9551_v23 = vld [vmem:[%s13739_s1 + $0xd4c] ss:$16 sps:$4 sm:$0xff]  }
 0x173   :  { %6646 = vmatpush1.bf16.msra.mxu0 %v9462_v24  ;;  %7302 = vmatpush1.bf16.msra.mxu1 %v9465_v13  ;;  %v9546_v24 = vld [vmem:[%s13739_s1 + $0xd40] ss:$16 sps:$4 sm:$0xff]   ;;  %v9549_v13 = vld [vmem:[%s13739_s1 + $0xd48] ss:$16 sps:$4 sm:$0xff]  }
 0x174   :  { %6647 = vmatprep.subr.bf16.mxu0 %v9470_v27  ;;  %7303 = vmatprep.subr.bf16.mxu1 %v9473_v28  ;;  %v9554_v27 = vld [vmem:[%s13739_s1 + $0xd64] ss:$16 sps:$4 sm:$0xff]   ;;  %v9557_v28 = vld [vmem:[%s13739_s1 + $0xd6c] ss:$16 sps:$4 sm:$0xff]  }
 0x177   :  { %6648 = vmatpush1.bf16.msra.mxu0 %v9468_v29  ;;  %7304 = vmatpush1.bf16.msra.mxu1 %v9471_v14  ;;  %v9552_v29 = vld [vmem:[%s13739_s1 + $0xd60] ss:$16 sps:$4 sm:$0xff]   ;;  %v9555_v14 = vld [vmem:[%s13739_s1 + $0xd68] ss:$16 sps:$4 sm:$0xff]  }
 0x178   :  { %6649 = vmatprep.subr.bf16.mxu0 %v9476_v30  ;;  %7305 = vmatprep.subr.bf16.mxu1 %v9479_v31  ;;  %v9560_v30 = vld [vmem:[%s13739_s1 + $0xd84] ss:$16 sps:$4 sm:$0xff]   ;;  %v9563_v31 = vld [vmem:[%s13739_s1 + $0xd8c] ss:$16 sps:$4 sm:$0xff]  }
 0x17b   :  { %6650 = vmatpush1.bf16.msra.mxu0 %v9474_v33  ;;  %7306 = vmatpush1.bf16.msra.mxu1 %v9477_v26  ;;  %v9566_v33 = vld [vmem:[%s13739_s1 + $0xda4] ss:$16 sps:$4 sm:$0xff]   ;;  %v9569_v26 = vld [vmem:[%s13739_s1 + $0xdac] ss:$16 sps:$4 sm:$0xff]  }
 0x17c   :  { %6651 = vmatprep.subr.bf16.mxu0 %v9482_v36  ;;  %7307 = vmatprep.subr.bf16.mxu1 %v9485_v37  ;;  %v9564_v36 = vld [vmem:[%s13739_s1 + $0xda0] ss:$16 sps:$4 sm:$0xff]   ;;  %v9567_v37 = vld [vmem:[%s13739_s1 + $0xda8] ss:$16 sps:$4 sm:$0xff]  }
 0x17f   :  { %6652 = vmatpush1.bf16.msra.mxu0 %v9480_v21  ;;  %7308 = vmatpush1.bf16.msra.mxu1 %v9483_v39  ;;  %v9572_v21 = vld [vmem:[%s13739_s1 + $0xdc4] ss:$16 sps:$4 sm:$0xff]   ;;  %v9575_v39 = vld [vmem:[%s13739_s1 + $0xdcc] ss:$16 sps:$4 sm:$0xff]  }
 0x180   :  { %6662 = vmatprep.subr.bf16.mxu0 %v9488_v40  ;;  %7318 = vmatprep.subr.bf16.mxu1 %v9491_v41  ;;  %v9570_v40 = vld [vmem:[%s13739_s1 + $0xdc0] ss:$16 sps:$4 sm:$0xff]   ;;  %v9573_v41 = vld [vmem:[%s13739_s1 + $0xdc8] ss:$16 sps:$4 sm:$0xff]  }
 0x182   :  { %6654 = vmatmul.mubr.bf16.vlgmr.msra.gmra.mrb[0].mxu0 %v1162_v43  ;;  %7310 = vmatmul.mubr.bf16.vlgmr.msra.gmra.mrb[0].mxu1 %v1162_v43  ;;  %v9581_v43 = vld [vmem:[%s13739_s1 + $0xdec] ss:$16 sps:$4 sm:$0xff]  }
 0x183   :  { %6663 = vmatpush1.bf16.msra.mxu0 %v9486_v44  ;;  %7319 = vmatpush1.bf16.msra.mxu1 %v9489_v45  ;;  %v9576_v44 = vld [vmem:[%s13739_s1 + $0xde0] ss:$16 sps:$4 sm:$0xff]   ;;  %v9579_v45 = vld [vmem:[%s13739_s1 + $0xde8] ss:$16 sps:$4 sm:$0xff]  }
 0x184   :  { %6664 = vmatprep.subr.bf16.mxu0 %v9494_v46  ;;  %7320 = vmatprep.subr.bf16.mxu1 %v9497_v35  ;;  %v9585_v46 = vld [vmem:[%s13739_s1 + $0xe04] ss:$16 sps:$4 sm:$0xff]   ;;  %v9588_v35 = vld [vmem:[%s13739_s1 + $0xe0c] ss:$16 sps:$4 sm:$0xff]  }
 0x185   :  { %6694 = vmatprep.mubr.bf16.mxu0 %v11716_v47  ;;  %7350 = vmatprep.mubr.bf16.mxu1 %v11716_v47 }
 0x187   :  { %6665 = vmatpush1.bf16.msra.mxu0 %v9492_v48  ;;  %7321 = vmatpush1.bf16.msra.mxu1 %v9495_v50  ;;  %v11902_v48 = vrot.slane %v11685_v38, %v10608_v49  ;;  %v9583_v50 = vld [vmem:[%s13739_s1 + $0xe00] ss:$16 sps:$4 sm:$0xff]   ;;  %v9594_v38 = vld [vmem:[%s13739_s1 + $0xe2c] ss:$16 sps:$4 sm:$0xff]  }
 0x188   :  { %6666 = vmatprep.subr.bf16.mxu0 %v9500_v51  ;;  %7322 = vmatprep.subr.bf16.mxu1 %v9503_v53  ;;  %v9586_v51 = vld [vmem:[%s13739_s1 + $0xe08] ss:$16 sps:$4 sm:$0xff]   ;;  %v9591_v53 = vld [vmem:[%s13739_s1 + $0xe24] ss:$16 sps:$4 sm:$0xff]  }
 0x18b   :  { %6667 = vmatpush1.bf16.msra.mxu0 %v9498_v54  ;;  %7323 = vmatpush1.bf16.msra.mxu1 %v9501_v55  ;;  %v1165_v54 = vcombine.high %v11716_v47, %v11716_v47  ;;  %v9589_v55 = vld [vmem:[%s13739_s1 + $0xe20] ss:$16 sps:$4 sm:$0xff]   ;;  %v9597_v47 = vld [vmem:[%s13739_s1 + $0xe44] ss:$16 sps:$4 sm:$0xff]  }
 0x18c   :  { %6668 = vmatprep.subr.bf16.mxu0 %v9506_v56  ;;  %7324 = vmatprep.subr.bf16.mxu1 %v9509_v57  ;;  %v9592_v56 = vld [vmem:[%s13739_s1 + $0xe28] ss:$16 sps:$4 sm:$0xff]   ;;  %v9600_v57 = vld [vmem:[%s13739_s1 + $0xe4c] ss:$16 sps:$4 sm:$0xff]  }
 0x18f   :  { %6669 = vmatpush1.bf16.msra.mxu0 %v9504_v58  ;;  %7325 = vmatpush1.bf16.msra.mxu1 %v9507_v59  ;;  %v9595_v58 = vld [vmem:[%s13739_s1 + $0xe40] ss:$16 sps:$4 sm:$0xff]   ;;  %v9598_v59 = vld [vmem:[%s13739_s1 + $0xe48] ss:$16 sps:$4 sm:$0xff]  }
 0x190   :  { %6670 = vmatprep.subr.bf16.mxu0 %v9512_v60  ;;  %7326 = vmatprep.subr.bf16.mxu1 %v9515_v61  ;;  %v9603_v60 = vld [vmem:[%s13739_s1 + $0xe64] ss:$16 sps:$4 sm:$0xff]   ;;  %v9606_v61 = vld [vmem:[%s13739_s1 + $0xe6c] ss:$16 sps:$4 sm:$0xff]  }
 0x193   :  { %6671 = vmatpush1.bf16.msra.mxu0 %v9510_v62  ;;  %7327 = vmatpush1.bf16.msra.mxu1 %v9513_v63  ;;  %v9601_v62 = vld [vmem:[%s13739_s1 + $0xe60] ss:$16 sps:$4 sm:$0xff]   ;;  %v9604_v63 = vld [vmem:[%s13739_s1 + $0xe68] ss:$16 sps:$4 sm:$0xff]  }
 0x194   :  { %6672 = vmatprep.subr.bf16.mxu0 %v9518_v0  ;;  %7328 = vmatprep.subr.bf16.mxu1 %v9521_v1  ;;  %v9609_v0 = vld [vmem:[%s13739_s1 + $0xe84] ss:$16 sps:$4 sm:$0xff]   ;;  %v9612_v1 = vld [vmem:[%s13739_s1 + $0xe8c] ss:$16 sps:$4 sm:$0xff]  }
 0x197   :  { %6673 = vmatpush1.bf16.msra.mxu0 %v9516_v2  ;;  %7329 = vmatpush1.bf16.msra.mxu1 %v9519_v3  ;;  %v9607_v2 = vld [vmem:[%s13739_s1 + $0xe80] ss:$16 sps:$4 sm:$0xff]   ;;  %v9610_v3 = vld [vmem:[%s13739_s1 + $0xe88] ss:$16 sps:$4 sm:$0xff]  }
 0x198   :  { %6674 = vmatprep.subr.bf16.mxu0 %v9524_v4  ;;  %7330 = vmatprep.subr.bf16.mxu1 %v9527_v5  ;;  %v9615_v4 = vld [vmem:[%s13739_s1 + $0xea4] ss:$16 sps:$4 sm:$0xff]   ;;  %v9618_v5 = vld [vmem:[%s13739_s1 + $0xeac] ss:$16 sps:$4 sm:$0xff]  }
 0x19b   :  { %6675 = vmatpush1.bf16.msra.mxu0 %v9522_v6  ;;  %7331 = vmatpush1.bf16.msra.mxu1 %v9525_v7  ;;  %v9613_v6 = vld [vmem:[%s13739_s1 + $0xea0] ss:$16 sps:$4 sm:$0xff]   ;;  %v9616_v7 = vld [vmem:[%s13739_s1 + $0xea8] ss:$16 sps:$4 sm:$0xff]  }
 0x19c   :  { %6676 = vmatprep.subr.bf16.mxu0 %v9530_v8  ;;  %7332 = vmatprep.subr.bf16.mxu1 %v9533_v9  ;;  %v9621_v8 = vld [vmem:[%s13739_s1 + $0xec4] ss:$16 sps:$4 sm:$0xff]   ;;  %v9624_v9 = vld [vmem:[%s13739_s1 + $0xecc] ss:$16 sps:$4 sm:$0xff]  }
 0x19f   :  { %6677 = vmatpush1.bf16.msra.mxu0 %v9528_v10  ;;  %7333 = vmatpush1.bf16.msra.mxu1 %v9531_v11  ;;  %v9619_v10 = vld [vmem:[%s13739_s1 + $0xec0] ss:$16 sps:$4 sm:$0xff]   ;;  %v9622_v11 = vld [vmem:[%s13739_s1 + $0xec8] ss:$16 sps:$4 sm:$0xff]  }
 0x1a0   :  { %6678 = vmatprep.subr.bf16.mxu0 %v9536_v12  ;;  %7334 = vmatprep.subr.bf16.mxu1 %v9539_v52  ;;  %v9627_v12 = vld [vmem:[%s13739_s1 + $0xee4] ss:$16 sps:$4 sm:$0xff]   ;;  %v9630_v52 = vld [vmem:[%s13739_s1 + $0xeec] ss:$16 sps:$4 sm:$0xff]  }
 0x1a3   :  { %6679 = vmatpush1.bf16.msra.mxu0 %v9534_v15  ;;  %7335 = vmatpush1.bf16.msra.mxu1 %v9537_v16  ;;  %v9625_v15 = vld [vmem:[%s13739_s1 + $0xee0] ss:$16 sps:$4 sm:$0xff]   ;;  %v9628_v16 = vld [vmem:[%s13739_s1 + $0xee8] ss:$16 sps:$4 sm:$0xff]  }
 0x1a4   :  { %6680 = vmatprep.subr.bf16.mxu0 %v9542_v17  ;;  %7336 = vmatprep.subr.bf16.mxu1 %v9545_v18  ;;  %v9633_v17 = vld [vmem:[%s13739_s1 + $0xf04] ss:$16 sps:$4 sm:$0xff]   ;;  %v9636_v18 = vld [vmem:[%s13739_s1 + $0xf0c] ss:$16 sps:$4 sm:$0xff]  }
 0x1a7   :  { %6681 = vmatpush1.bf16.msra.mxu0 %v9540_v19  ;;  %7337 = vmatpush1.bf16.msra.mxu1 %v9543_v20  ;;  %v9631_v19 = vld [vmem:[%s13739_s1 + $0xf00] ss:$16 sps:$4 sm:$0xff]   ;;  %v9634_v20 = vld [vmem:[%s13739_s1 + $0xf08] ss:$16 sps:$4 sm:$0xff]  }
 0x1a8   :  { %6682 = vmatprep.subr.bf16.mxu0 %v9548_v22  ;;  %7338 = vmatprep.subr.bf16.mxu1 %v9551_v23  ;;  %v9639_v22 = vld [vmem:[%s13739_s1 + $0xf24] ss:$16 sps:$4 sm:$0xff]   ;;  %v9642_v23 = vld [vmem:[%s13739_s1 + $0xf2c] ss:$16 sps:$4 sm:$0xff]  }
 0x1ab   :  { %6683 = vmatpush1.bf16.msra.mxu0 %v9546_v24  ;;  %7339 = vmatpush1.bf16.msra.mxu1 %v9549_v13  ;;  %v9637_v24 = vld [vmem:[%s13739_s1 + $0xf20] ss:$16 sps:$4 sm:$0xff]   ;;  %v9640_v13 = vld [vmem:[%s13739_s1 + $0xf28] ss:$16 sps:$4 sm:$0xff]  }
 0x1ac   :  { %6684 = vmatprep.subr.bf16.mxu0 %v9554_v27  ;;  %7340 = vmatprep.subr.bf16.mxu1 %v9557_v28  ;;  %v9645_v27 = vld [vmem:[%s13739_s1 + $0xf44] ss:$16 sps:$4 sm:$0xff]   ;;  %v9648_v28 = vld [vmem:[%s13739_s1 + $0xf4c] ss:$16 sps:$4 sm:$0xff]  }
 0x1af   :  { %6685 = vmatpush1.bf16.msra.mxu0 %v9552_v29  ;;  %7341 = vmatpush1.bf16.msra.mxu1 %v9555_v14  ;;  %v9643_v29 = vld [vmem:[%s13739_s1 + $0xf40] ss:$16 sps:$4 sm:$0xff]   ;;  %v9646_v14 = vld [vmem:[%s13739_s1 + $0xf48] ss:$16 sps:$4 sm:$0xff]  }
 0x1b0   :  { %6686 = vmatprep.subr.bf16.mxu0 %v9560_v30  ;;  %7342 = vmatprep.subr.bf16.mxu1 %v9563_v31  ;;  %v9651_v30 = vld [vmem:[%s13739_s1 + $0xf64] ss:$16 sps:$4 sm:$0xff]   ;;  %v9654_v31 = vld [vmem:[%s13739_s1 + $0xf6c] ss:$16 sps:$4 sm:$0xff]  }
 0x1b3   :  { %6687 = vmatpush1.bf16.msra.mxu0 %v9558_v25  ;;  %7343 = vmatpush1.bf16.msra.mxu1 %v9561_v32  ;;  %v9649_v25 = vld [vmem:[%s13739_s1 + $0xf60] ss:$16 sps:$4 sm:$0xff]   ;;  %v9652_v32 = vld [vmem:[%s13739_s1 + $0xf68] ss:$16 sps:$4 sm:$0xff]  }
 0x1b4   :  { %6688 = vmatprep.subr.bf16.mxu0 %v9566_v33  ;;  %7344 = vmatprep.subr.bf16.mxu1 %v9569_v26  ;;  %v9657_v33 = vld [vmem:[%s13739_s1 + $0xf84] ss:$16 sps:$4 sm:$0xff]   ;;  %v9660_v26 = vld [vmem:[%s13739_s1 + $0xf8c] ss:$16 sps:$4 sm:$0xff]  }
 0x1b7   :  { %6689 = vmatpush1.bf16.msra.mxu0 %v9564_v36  ;;  %7345 = vmatpush1.bf16.msra.mxu1 %v9567_v37  ;;  %v9655_v36 = vld [vmem:[%s13739_s1 + $0xf80] ss:$16 sps:$4 sm:$0xff]   ;;  %v9658_v37 = vld [vmem:[%s13739_s1 + $0xf88] ss:$16 sps:$4 sm:$0xff]  }
 0x1b8   :  { %6690 = vmatprep.subr.bf16.mxu0 %v9572_v21  ;;  %7346 = vmatprep.subr.bf16.mxu1 %v9575_v39  ;;  %v9663_v21 = vld [vmem:[%s13739_s1 + $0xfa4] ss:$16 sps:$4 sm:$0xff]   ;;  %v9666_v39 = vld [vmem:[%s13739_s1 + $0xfac] ss:$16 sps:$4 sm:$0xff]  }
 0x1bb   :  { %6691 = vmatpush1.bf16.msra.mxu0 %v9570_v40  ;;  %7347 = vmatpush1.bf16.msra.mxu1 %v9573_v41  ;;  %v9661_v40 = vld [vmem:[%s13739_s1 + $0xfa0] ss:$16 sps:$4 sm:$0xff]   ;;  %v9664_v41 = vld [vmem:[%s13739_s1 + $0xfa8] ss:$16 sps:$4 sm:$0xff]  }
 0x1bc   :  { %6692 = vmatprep.subr.bf16.mxu0 %v9578_v34  ;;  %7348 = vmatprep.subr.bf16.mxu1 %v9581_v43  ;;  %v9669_v34 = vld [vmem:[%s13739_s1 + $0xfc4] ss:$16 sps:$4 sm:$0xff]   ;;  %v9672_v43 = vld [vmem:[%s13739_s1 + $0xfcc] ss:$16 sps:$4 sm:$0xff]  }
 0x1bf   :  { %6693 = vmatpush1.bf16.msra.mxu0 %v9576_v44  ;;  %7349 = vmatpush1.bf16.msra.mxu1 %v9579_v45  ;;  %v12079_v44 = vld [vmem:[%s13740_s0 + $0x10] sm:$0xff] }
 0x1c0   :  { %6703 = vmatprep.subr.bf16.mxu0 %v9585_v46  ;;  %7359 = vmatprep.subr.bf16.mxu1 %v9588_v35  ;;  %v9667_v45 = vld [vmem:[%s13739_s1 + $0xfc0] ss:$16 sps:$4 sm:$0xff]   ;;  %v9670_v46 = vld [vmem:[%s13739_s1 + $0xfc8] ss:$16 sps:$4 sm:$0xff]   ;;  %v9675_v35 = vld [vmem:[%s13739_s1 + $0xfe4] ss:$16 sps:$4 sm:$0xff]  }
 0x1c2   :  { %6695 = vmatmul.mubr.bf16.vlgmr.msra.gmra.mrb[0].mxu0 %v11902_v48  ;;  %7351 = vmatmul.mubr.bf16.vlgmr.msra.gmra.mrb[0].mxu1 %v11902_v48 }
 0x1c3   :  { %6704 = vmatpush1.bf16.msra.mxu0 %v9583_v50  ;;  %7360 = vmatpush1.bf16.msra.mxu1 %v9586_v51  ;;  %v9678_v50 = vld [vmem:[%s13739_s1 + $0xfec] ss:$16 sps:$4 sm:$0xff]   ;;  %v12095_v51 = vrot.slane %v12079_v44, %v10608_v49 }
 0x1c4   :  { %6705 = vmatprep.subr.bf16.mxu0 %v9591_v53  ;;  %7361 = vmatprep.subr.bf16.mxu1 %v9594_v38  ;;  %v9673_v53 = vld [vmem:[%s13739_s1 + $0xfe0] ss:$16 sps:$4 sm:$0xff]   ;;  %v9676_v38 = vld [vmem:[%s13739_s1 + $0xfe8] ss:$16 sps:$4 sm:$0xff]  }
 0x1c5   :  { %6735 = vmatprep.mubr.bf16.mxu0 %v1165_v54  ;;  %7391 = vmatprep.mubr.bf16.mxu1 %v1165_v54  ;;  %v9681_v54 = vld [vmem:[%s13739_s1 + $0x1004] ss:$16 sps:$4 sm:$0xff]  }
 0x1c7   :  { %6706 = vmatpush1.bf16.msra.mxu0 %v9589_v55  ;;  %7362 = vmatpush1.bf16.msra.mxu1 %v9592_v56  ;;  %v9684_v55 = vld [vmem:[%s13739_s1 + $0x100c] ss:$16 sps:$4 sm:$0xff]   ;;  %v1181_v56 = vcombine.high %v12095_v51, %v12095_v51 }
 0x1c8   :  { %6707 = vmatprep.subr.bf16.mxu0 %v9597_v47  ;;  %7363 = vmatprep.subr.bf16.mxu1 %v9600_v57  ;;  %v1163_v47 = vcombine.high %v11902_v48, %v11902_v48  ;;  %v9679_v57 = vld [vmem:[%s13739_s1 + $0x1000] ss:$16 sps:$4 sm:$0xff]   ;;  %v9690_v48 = vld [vmem:[%s13739_s1 + $0x102c] ss:$16 sps:$4 sm:$0xff]  }
 0x1cb   :  { %6708 = vmatpush1.bf16.msra.mxu0 %v9595_v58  ;;  %7364 = vmatpush1.bf16.msra.mxu1 %v9598_v59  ;;  %v9682_v58 = vld [vmem:[%s13739_s1 + $0x1008] ss:$16 sps:$4 sm:$0xff]   ;;  %v9687_v59 = vld [vmem:[%s13739_s1 + $0x1024] ss:$16 sps:$4 sm:$0xff]  }
 0x1cc   :  { %6709 = vmatprep.subr.bf16.mxu0 %v9603_v60  ;;  %7365 = vmatprep.subr.bf16.mxu1 %v9606_v61  ;;  %v12126_v60 = vrot.slane %v1181_v56, %v10608_v49  ;;  %v9685_v61 = vld [vmem:[%s13739_s1 + $0x1020] ss:$16 sps:$4 sm:$0xff]   ;;  %v9766_v56 = vld [vmem:[%s13739_s1 + $0x11c8] ss:$16 sps:$4 sm:$0xff]  }
 0x1cf   :  { %6710 = vmatpush1.bf16.msra.mxu0 %v9601_v62  ;;  %7366 = vmatpush1.bf16.msra.mxu1 %v9604_v63  ;;  %v9688_v62 = vld [vmem:[%s13739_s1 + $0x1028] ss:$16 sps:$4 sm:$0xff]   ;;  %v9693_v63 = vld [vmem:[%s13739_s1 + $0x1044] ss:$16 sps:$4 sm:$0xff]  }
 0x1d0   :  { %6711 = vmatprep.subr.bf16.mxu0 %v9609_v0  ;;  %7367 = vmatprep.subr.bf16.mxu1 %v9612_v1  ;;  %v9696_v0 = vld [vmem:[%s13739_s1 + $0x104c] ss:$16 sps:$4 sm:$0xff]   ;;  %v9691_v1 = vld [vmem:[%s13739_s1 + $0x1040] ss:$16 sps:$4 sm:$0xff]  }
 0x1d3   :  { %6712 = vmatpush1.bf16.msra.mxu0 %v9607_v2  ;;  %7368 = vmatpush1.bf16.msra.mxu1 %v9610_v3  ;;  %v9694_v2 = vld [vmem:[%s13739_s1 + $0x1048] ss:$16 sps:$4 sm:$0xff]   ;;  %v9699_v3 = vld [vmem:[%s13739_s1 + $0x1064] ss:$16 sps:$4 sm:$0xff]  }
 0x1d4   :  { %6713 = vmatprep.subr.bf16.mxu0 %v9615_v4  ;;  %7369 = vmatprep.subr.bf16.mxu1 %v9618_v5  ;;  %v9702_v4 = vld [vmem:[%s13739_s1 + $0x106c] ss:$16 sps:$4 sm:$0xff]   ;;  %v9697_v5 = vld [vmem:[%s13739_s1 + $0x1060] ss:$16 sps:$4 sm:$0xff]  }
 0x1d7   :  { %6714 = vmatpush1.bf16.msra.mxu0 %v9613_v6  ;;  %7370 = vmatpush1.bf16.msra.mxu1 %v9616_v7  ;;  %v9700_v6 = vld [vmem:[%s13739_s1 + $0x1068] ss:$16 sps:$4 sm:$0xff]   ;;  %v9705_v7 = vld [vmem:[%s13739_s1 + $0x1084] ss:$16 sps:$4 sm:$0xff]  }
 0x1d8   :  { %6715 = vmatprep.subr.bf16.mxu0 %v9621_v8  ;;  %7371 = vmatprep.subr.bf16.mxu1 %v9624_v9  ;;  %v9708_v8 = vld [vmem:[%s13739_s1 + $0x108c] ss:$16 sps:$4 sm:$0xff]   ;;  %v9703_v9 = vld [vmem:[%s13739_s1 + $0x1080] ss:$16 sps:$4 sm:$0xff]  }
 0x1db   :  { %6716 = vmatpush1.bf16.msra.mxu0 %v9619_v10  ;;  %7372 = vmatpush1.bf16.msra.mxu1 %v9622_v11  ;;  %v9706_v10 = vld [vmem:[%s13739_s1 + $0x1088] ss:$16 sps:$4 sm:$0xff]   ;;  %v9711_v11 = vld [vmem:[%s13739_s1 + $0x10a4] ss:$16 sps:$4 sm:$0xff]  }
 0x1dc   :  { %6717 = vmatprep.subr.bf16.mxu0 %v9627_v12  ;;  %7373 = vmatprep.subr.bf16.mxu1 %v9630_v52  ;;  %v9714_v12 = vld [vmem:[%s13739_s1 + $0x10ac] ss:$16 sps:$4 sm:$0xff]   ;;  %v9709_v52 = vld [vmem:[%s13739_s1 + $0x10a0] ss:$16 sps:$4 sm:$0xff]  }
 0x1df   :  { %6718 = vmatpush1.bf16.msra.mxu0 %v9625_v15  ;;  %7374 = vmatpush1.bf16.msra.mxu1 %v9628_v16  ;;  %v9712_v15 = vld [vmem:[%s13739_s1 + $0x10a8] ss:$16 sps:$4 sm:$0xff]   ;;  %v9717_v16 = vld [vmem:[%s13739_s1 + $0x10c4] ss:$16 sps:$4 sm:$0xff]  }
 0x1e0   :  { %6719 = vmatprep.subr.bf16.mxu0 %v9633_v17  ;;  %7375 = vmatprep.subr.bf16.mxu1 %v9636_v18  ;;  %v9720_v17 = vld [vmem:[%s13739_s1 + $0x10cc] ss:$16 sps:$4 sm:$0xff]   ;;  %v9715_v18 = vld [vmem:[%s13739_s1 + $0x10c0] ss:$16 sps:$4 sm:$0xff]  }
 0x1e3   :  { %6720 = vmatpush1.bf16.msra.mxu0 %v9631_v19  ;;  %7376 = vmatpush1.bf16.msra.mxu1 %v9634_v20  ;;  %v9718_v19 = vld [vmem:[%s13739_s1 + $0x10c8] ss:$16 sps:$4 sm:$0xff]   ;;  %v9723_v20 = vld [vmem:[%s13739_s1 + $0x10e4] ss:$16 sps:$4 sm:$0xff]  }
 0x1e4   :  { %6721 = vmatprep.subr.bf16.mxu0 %v9639_v22  ;;  %7377 = vmatprep.subr.bf16.mxu1 %v9642_v23  ;;  %v9726_v22 = vld [vmem:[%s13739_s1 + $0x10ec] ss:$16 sps:$4 sm:$0xff]   ;;  %v9721_v23 = vld [vmem:[%s13739_s1 + $0x10e0] ss:$16 sps:$4 sm:$0xff]  }
 0x1e7   :  { %6722 = vmatpush1.bf16.msra.mxu0 %v9637_v24  ;;  %7378 = vmatpush1.bf16.msra.mxu1 %v9640_v13  ;;  %v9724_v24 = vld [vmem:[%s13739_s1 + $0x10e8] ss:$16 sps:$4 sm:$0xff]   ;;  %v9729_v13 = vld [vmem:[%s13739_s1 + $0x1104] ss:$16 sps:$4 sm:$0xff]  }
 0x1e8   :  { %6723 = vmatprep.subr.bf16.mxu0 %v9645_v27  ;;  %7379 = vmatprep.subr.bf16.mxu1 %v9648_v28  ;;  %v9732_v27 = vld [vmem:[%s13739_s1 + $0x110c] ss:$16 sps:$4 sm:$0xff]   ;;  %v9727_v28 = vld [vmem:[%s13739_s1 + $0x1100] ss:$16 sps:$4 sm:$0xff]  }
 0x1eb   :  { %6724 = vmatpush1.bf16.msra.mxu0 %v9643_v29  ;;  %7380 = vmatpush1.bf16.msra.mxu1 %v9646_v14  ;;  %v9730_v29 = vld [vmem:[%s13739_s1 + $0x1108] ss:$16 sps:$4 sm:$0xff]   ;;  %v9735_v14 = vld [vmem:[%s13739_s1 + $0x1124] ss:$16 sps:$4 sm:$0xff]  }
 0x1ec   :  { %6725 = vmatprep.subr.bf16.mxu0 %v9651_v30  ;;  %7381 = vmatprep.subr.bf16.mxu1 %v9654_v31  ;;  %v9738_v30 = vld [vmem:[%s13739_s1 + $0x112c] ss:$16 sps:$4 sm:$0xff]   ;;  %v9733_v31 = vld [vmem:[%s13739_s1 + $0x1120] ss:$16 sps:$4 sm:$0xff]  }
 0x1ef   :  { %6726 = vmatpush1.bf16.msra.mxu0 %v9649_v25  ;;  %7382 = vmatpush1.bf16.msra.mxu1 %v9652_v32  ;;  %v9736_v25 = vld [vmem:[%s13739_s1 + $0x1128] ss:$16 sps:$4 sm:$0xff]   ;;  %v9741_v32 = vld [vmem:[%s13739_s1 + $0x1144] ss:$16 sps:$4 sm:$0xff]  }
 0x1f0   :  { %6727 = vmatprep.subr.bf16.mxu0 %v9657_v33  ;;  %7383 = vmatprep.subr.bf16.mxu1 %v9660_v26  ;;  %v9744_v33 = vld [vmem:[%s13739_s1 + $0x114c] ss:$16 sps:$4 sm:$0xff]   ;;  %v9739_v26 = vld [vmem:[%s13739_s1 + $0x1140] ss:$16 sps:$4 sm:$0xff]  }
 0x1f3   :  { %6728 = vmatpush1.bf16.msra.mxu0 %v9655_v36  ;;  %7384 = vmatpush1.bf16.msra.mxu1 %v9658_v37  ;;  %v9742_v36 = vld [vmem:[%s13739_s1 + $0x1148] ss:$16 sps:$4 sm:$0xff]   ;;  %v9747_v37 = vld [vmem:[%s13739_s1 + $0x1164] ss:$16 sps:$4 sm:$0xff]  }
 0x1f4   :  { %6729 = vmatprep.subr.bf16.mxu0 %v9663_v21  ;;  %7385 = vmatprep.subr.bf16.mxu1 %v9666_v39  ;;  %v9750_v21 = vld [vmem:[%s13739_s1 + $0x116c] ss:$16 sps:$4 sm:$0xff]   ;;  %v9745_v39 = vld [vmem:[%s13739_s1 + $0x1160] ss:$16 sps:$4 sm:$0xff]  }
 0x1f7   :  { %6730 = vmatpush1.bf16.msra.mxu0 %v9661_v40  ;;  %7386 = vmatpush1.bf16.msra.mxu1 %v9664_v41  ;;  %v9748_v40 = vld [vmem:[%s13739_s1 + $0x1168] ss:$16 sps:$4 sm:$0xff]   ;;  %v9753_v41 = vld [vmem:[%s13739_s1 + $0x1184] ss:$16 sps:$4 sm:$0xff]  }
 0x1f8   :  { %6731 = vmatprep.subr.bf16.mxu0 %v9669_v34  ;;  %7387 = vmatprep.subr.bf16.mxu1 %v9672_v43  ;;  %v9756_v34 = vld [vmem:[%s13739_s1 + $0x118c] ss:$16 sps:$4 sm:$0xff]   ;;  %v9751_v43 = vld [vmem:[%s13739_s1 + $0x1180] ss:$16 sps:$4 sm:$0xff]  }
 0x1fb   :  { %6732 = vmatpush1.bf16.msra.mxu0 %v9667_v45  ;;  %7388 = vmatpush1.bf16.msra.mxu1 %v9670_v46  ;;  %v9754_v45 = vld [vmem:[%s13739_s1 + $0x1188] ss:$16 sps:$4 sm:$0xff]   ;;  %v9759_v46 = vld [vmem:[%s13739_s1 + $0x11a4] ss:$16 sps:$4 sm:$0xff]  }
 0x1fc   :  { %6733 = vmatprep.subr.bf16.mxu0 %v9675_v35  ;;  %7389 = vmatprep.subr.bf16.mxu1 %v9678_v50  ;;  %v9762_v35 = vld [vmem:[%s13739_s1 + $0x11ac] ss:$16 sps:$4 sm:$0xff]   ;;  %v9757_v50 = vld [vmem:[%s13739_s1 + $0x11a0] ss:$16 sps:$4 sm:$0xff]  }
 0x1ff   :  { %6734 = vmatpush1.bf16.msra.mxu0 %v9673_v53  ;;  %7390 = vmatpush1.bf16.msra.mxu1 %v9676_v38  ;;  %v9760_v53 = vld [vmem:[%s13739_s1 + $0x11a8] ss:$16 sps:$4 sm:$0xff]   ;;  %v9765_v38 = vld [vmem:[%s13739_s1 + $0x11c4] ss:$16 sps:$4 sm:$0xff]  }
 0x200   :  { %6744 = vmatprep.subr.bf16.mxu0 %v9681_v54  ;;  %7400 = vmatprep.subr.bf16.mxu1 %v9684_v55  ;;  %v9768_v54 = vld [vmem:[%s13739_s1 + $0x11cc] ss:$16 sps:$4 sm:$0xff]   ;;  %v9763_v55 = vld [vmem:[%s13739_s1 + $0x11c0] ss:$16 sps:$4 sm:$0xff]  }
 0x202   :  { %6736 = vmatmul.mubr.bf16.vlgmr.msra.gmra.mrb[0].mxu0 %v1163_v47  ;;  %7392 = vmatmul.mubr.bf16.vlgmr.msra.gmra.mrb[0].mxu1 %v1163_v47  ;;  %v9771_v47 = vld [vmem:[%s13739_s1 + $0x11e4] ss:$16 sps:$4 sm:$0xff]  }
 0x203   :  { %6745 = vmatpush1.bf16.msra.mxu0 %v9679_v57  ;;  %7401 = vmatpush1.bf16.msra.mxu1 %v9682_v58  ;;  %v9774_v57 = vld [vmem:[%s13739_s1 + $0x11ec] ss:$16 sps:$4 sm:$0xff]   ;;  %v9769_v58 = vld [vmem:[%s13739_s1 + $0x11e0] ss:$16 sps:$4 sm:$0xff]  }
 0x204   :  { %6746 = vmatprep.subr.bf16.mxu0 %v9687_v59  ;;  %7402 = vmatprep.subr.bf16.mxu1 %v9690_v48  ;;  %v9772_v59 = vld [vmem:[%s13739_s1 + $0x11e8] ss:$16 sps:$4 sm:$0xff]   ;;  %v9777_v48 = vld [vmem:[%s13739_s1 + $0x1204] ss:$16 sps:$4 sm:$0xff]  }
 0x205   :  { %6776 = vmatprep.mubr.bf16.mxu0 %v12126_v60  ;;  %7432 = vmatprep.mubr.bf16.mxu1 %v12126_v60 }
 0x207   :  { %6747 = vmatpush1.bf16.msra.mxu0 %v9685_v61  ;;  %7403 = vmatpush1.bf16.msra.mxu1 %v9688_v62  ;;  %v9780_v61 = vld [vmem:[%s13739_s1 + $0x120c] ss:$16 sps:$4 sm:$0xff]   ;;  %v12312_v62 = vrot.slane %v12095_v51, %v10608_v49 }
 0x208   :  { %6748 = vmatprep.subr.bf16.mxu0 %v9693_v63  ;;  %7404 = vmatprep.subr.bf16.mxu1 %v9696_v0  ;;  %v9775_v63 = vld [vmem:[%s13739_s1 + $0x1200] ss:$16 sps:$4 sm:$0xff]   ;;  %v9778_v0 = vld [vmem:[%s13739_s1 + $0x1208] ss:$16 sps:$4 sm:$0xff]   ;;  %v9786_v51 = vld [vmem:[%s13739_s1 + $0x122c] ss:$16 sps:$4 sm:$0xff]  }
 0x20b   :  { %6749 = vmatpush1.bf16.msra.mxu0 %v9691_v1  ;;  %7405 = vmatpush1.bf16.msra.mxu1 %v9694_v2  ;;  %v9783_v1 = vld [vmem:[%s13739_s1 + $0x1224] ss:$16 sps:$4 sm:$0xff]   ;;  %v1213_v2 = vcombine.high %v12126_v60, %v12126_v60 }
 0x20c   :  { %6750 = vmatprep.subr.bf16.mxu0 %v9699_v3  ;;  %7406 = vmatprep.subr.bf16.mxu1 %v9702_v4  ;;  %v9781_v3 = vld [vmem:[%s13739_s1 + $0x1220] ss:$16 sps:$4 sm:$0xff]   ;;  %v9784_v4 = vld [vmem:[%s13739_s1 + $0x1228] ss:$16 sps:$4 sm:$0xff]   ;;  %v9789_v60 = vld [vmem:[%s13739_s1 + $0x1244] ss:$16 sps:$4 sm:$0xff]  }
 0x20f   :  { %6751 = vmatpush1.bf16.msra.mxu0 %v9697_v5  ;;  %7407 = vmatpush1.bf16.msra.mxu1 %v9700_v6  ;;  %v9792_v5 = vld [vmem:[%s13739_s1 + $0x124c] ss:$16 sps:$4 sm:$0xff]   ;;  %v9787_v6 = vld [vmem:[%s13739_s1 + $0x1240] ss:$16 sps:$4 sm:$0xff]  }
 0x210   :  { %6752 = vmatprep.subr.bf16.mxu0 %v9705_v7  ;;  %7408 = vmatprep.subr.bf16.mxu1 %v9708_v8  ;;  %v9790_v7 = vld [vmem:[%s13739_s1 + $0x1248] ss:$16 sps:$4 sm:$0xff]   ;;  %v9795_v8 = vld [vmem:[%s13739_s1 + $0x1264] ss:$16 sps:$4 sm:$0xff]  }
 0x213   :  { %6753 = vmatpush1.bf16.msra.mxu0 %v9703_v9  ;;  %7409 = vmatpush1.bf16.msra.mxu1 %v9706_v10  ;;  %v9798_v9 = vld [vmem:[%s13739_s1 + $0x126c] ss:$16 sps:$4 sm:$0xff]   ;;  %v9793_v10 = vld [vmem:[%s13739_s1 + $0x1260] ss:$16 sps:$4 sm:$0xff]  }
 0x214   :  { %6754 = vmatprep.subr.bf16.mxu0 %v9711_v11  ;;  %7410 = vmatprep.subr.bf16.mxu1 %v9714_v12  ;;  %v9796_v11 = vld [vmem:[%s13739_s1 + $0x1268] ss:$16 sps:$4 sm:$0xff]   ;;  %v9801_v12 = vld [vmem:[%s13739_s1 + $0x1284] ss:$16 sps:$4 sm:$0xff]  }
 0x217   :  { %6755 = vmatpush1.bf16.msra.mxu0 %v9709_v52  ;;  %7411 = vmatpush1.bf16.msra.mxu1 %v9712_v15  ;;  %v9804_v52 = vld [vmem:[%s13739_s1 + $0x128c] ss:$16 sps:$4 sm:$0xff]   ;;  %v9799_v15 = vld [vmem:[%s13739_s1 + $0x1280] ss:$16 sps:$4 sm:$0xff]  }
 0x218   :  { %6756 = vmatprep.subr.bf16.mxu0 %v9717_v16  ;;  %7412 = vmatprep.subr.bf16.mxu1 %v9720_v17  ;;  %v9802_v16 = vld [vmem:[%s13739_s1 + $0x1288] ss:$16 sps:$4 sm:$0xff]   ;;  %v9807_v17 = vld [vmem:[%s13739_s1 + $0x12a4] ss:$16 sps:$4 sm:$0xff]  }
 0x21b   :  { %6757 = vmatpush1.bf16.msra.mxu0 %v9715_v18  ;;  %7413 = vmatpush1.bf16.msra.mxu1 %v9718_v19  ;;  %v9810_v18 = vld [vmem:[%s13739_s1 + $0x12ac] ss:$16 sps:$4 sm:$0xff]   ;;  %v9805_v19 = vld [vmem:[%s13739_s1 + $0x12a0] ss:$16 sps:$4 sm:$0xff]  }
 0x21c   :  { %6758 = vmatprep.subr.bf16.mxu0 %v9723_v20  ;;  %7414 = vmatprep.subr.bf16.mxu1 %v9726_v22  ;;  %v9808_v20 = vld [vmem:[%s13739_s1 + $0x12a8] ss:$16 sps:$4 sm:$0xff]   ;;  %v9813_v22 = vld [vmem:[%s13739_s1 + $0x12c4] ss:$16 sps:$4 sm:$0xff]  }
 0x21f   :  { %6759 = vmatpush1.bf16.msra.mxu0 %v9721_v23  ;;  %7415 = vmatpush1.bf16.msra.mxu1 %v9724_v24  ;;  %v9816_v23 = vld [vmem:[%s13739_s1 + $0x12cc] ss:$16 sps:$4 sm:$0xff]   ;;  %v9811_v24 = vld [vmem:[%s13739_s1 + $0x12c0] ss:$16 sps:$4 sm:$0xff]  }
 0x220   :  { %6760 = vmatprep.subr.bf16.mxu0 %v9729_v13  ;;  %7416 = vmatprep.subr.bf16.mxu1 %v9732_v27  ;;  %v9814_v13 = vld [vmem:[%s13739_s1 + $0x12c8] ss:$16 sps:$4 sm:$0xff]   ;;  %v9819_v27 = vld [vmem:[%s13739_s1 + $0x12e4] ss:$16 sps:$4 sm:$0xff]  }
 0x223   :  { %6761 = vmatpush1.bf16.msra.mxu0 %v9727_v28  ;;  %7417 = vmatpush1.bf16.msra.mxu1 %v9730_v29  ;;  %v9822_v28 = vld [vmem:[%s13739_s1 + $0x12ec] ss:$16 sps:$4 sm:$0xff]   ;;  %v9817_v29 = vld [vmem:[%s13739_s1 + $0x12e0] ss:$16 sps:$4 sm:$0xff]  }
 0x224   :  { %6762 = vmatprep.subr.bf16.mxu0 %v9735_v14  ;;  %7418 = vmatprep.subr.bf16.mxu1 %v9738_v30  ;;  %v9820_v14 = vld [vmem:[%s13739_s1 + $0x12e8] ss:$16 sps:$4 sm:$0xff]   ;;  %v9825_v30 = vld [vmem:[%s13739_s1 + $0x1304] ss:$16 sps:$4 sm:$0xff]  }
 0x227   :  { %6763 = vmatpush1.bf16.msra.mxu0 %v9733_v31  ;;  %7419 = vmatpush1.bf16.msra.mxu1 %v9736_v25  ;;  %v9828_v31 = vld [vmem:[%s13739_s1 + $0x130c] ss:$16 sps:$4 sm:$0xff]   ;;  %v9823_v25 = vld [vmem:[%s13739_s1 + $0x1300] ss:$16 sps:$4 sm:$0xff]  }
 0x228   :  { %6764 = vmatprep.subr.bf16.mxu0 %v9741_v32  ;;  %7420 = vmatprep.subr.bf16.mxu1 %v9744_v33  ;;  %v9826_v32 = vld [vmem:[%s13739_s1 + $0x1308] ss:$16 sps:$4 sm:$0xff]   ;;  %v9831_v33 = vld [vmem:[%s13739_s1 + $0x1324] ss:$16 sps:$4 sm:$0xff]  }
 0x22b   :  { %6765 = vmatpush1.bf16.msra.mxu0 %v9739_v26  ;;  %7421 = vmatpush1.bf16.msra.mxu1 %v9742_v36  ;;  %v9834_v26 = vld [vmem:[%s13739_s1 + $0x132c] ss:$16 sps:$4 sm:$0xff]   ;;  %v9829_v36 = vld [vmem:[%s13739_s1 + $0x1320] ss:$16 sps:$4 sm:$0xff]  }
 0x22c   :  { %6766 = vmatprep.subr.bf16.mxu0 %v9747_v37  ;;  %7422 = vmatprep.subr.bf16.mxu1 %v9750_v21  ;;  %v9832_v37 = vld [vmem:[%s13739_s1 + $0x1328] ss:$16 sps:$4 sm:$0xff]   ;;  %v9837_v21 = vld [vmem:[%s13739_s1 + $0x1344] ss:$16 sps:$4 sm:$0xff]  }
 0x22f   :  { %6767 = vmatpush1.bf16.msra.mxu0 %v9745_v39  ;;  %7423 = vmatpush1.bf16.msra.mxu1 %v9748_v40  ;;  %v9840_v39 = vld [vmem:[%s13739_s1 + $0x134c] ss:$16 sps:$4 sm:$0xff]   ;;  %v9835_v40 = vld [vmem:[%s13739_s1 + $0x1340] ss:$16 sps:$4 sm:$0xff]  }
 0x230   :  { %6768 = vmatprep.subr.bf16.mxu0 %v9753_v41  ;;  %7424 = vmatprep.subr.bf16.mxu1 %v9756_v34  ;;  %v9838_v41 = vld [vmem:[%s13739_s1 + $0x1348] ss:$16 sps:$4 sm:$0xff]   ;;  %v9843_v34 = vld [vmem:[%s13739_s1 + $0x1364] ss:$16 sps:$4 sm:$0xff]  }
 0x233   :  { %6769 = vmatpush1.bf16.msra.mxu0 %v9751_v43  ;;  %7425 = vmatpush1.bf16.msra.mxu1 %v9754_v45  ;;  %v9846_v43 = vld [vmem:[%s13739_s1 + $0x136c] ss:$16 sps:$4 sm:$0xff]   ;;  %v9841_v45 = vld [vmem:[%s13739_s1 + $0x1360] ss:$16 sps:$4 sm:$0xff]  }
 0x234   :  { %6770 = vmatprep.subr.bf16.mxu0 %v9759_v46  ;;  %7426 = vmatprep.subr.bf16.mxu1 %v9762_v35  ;;  %v9844_v46 = vld [vmem:[%s13739_s1 + $0x1368] ss:$16 sps:$4 sm:$0xff]   ;;  %v9849_v35 = vld [vmem:[%s13739_s1 + $0x1384] ss:$16 sps:$4 sm:$0xff]  }
 0x237   :  { %6771 = vmatpush1.bf16.msra.mxu0 %v9757_v50  ;;  %7427 = vmatpush1.bf16.msra.mxu1 %v9760_v53  ;;  %v9852_v50 = vld [vmem:[%s13739_s1 + $0x138c] ss:$16 sps:$4 sm:$0xff]   ;;  %v9847_v53 = vld [vmem:[%s13739_s1 + $0x1380] ss:$16 sps:$4 sm:$0xff]  }
 0x238   :  { %6772 = vmatprep.subr.bf16.mxu0 %v9765_v38  ;;  %7428 = vmatprep.subr.bf16.mxu1 %v9768_v54  ;;  %v9850_v38 = vld [vmem:[%s13739_s1 + $0x1388] ss:$16 sps:$4 sm:$0xff]   ;;  %v9855_v54 = vld [vmem:[%s13739_s1 + $0x13a4] ss:$16 sps:$4 sm:$0xff]  }
 0x23b   :  { %6773 = vmatpush1.bf16.msra.mxu0 %v9763_v55  ;;  %7429 = vmatpush1.bf16.msra.mxu1 %v9766_v56  ;;  %v9858_v55 = vld [vmem:[%s13739_s1 + $0x13ac] ss:$16 sps:$4 sm:$0xff]   ;;  %v9853_v56 = vld [vmem:[%s13739_s1 + $0x13a0] ss:$16 sps:$4 sm:$0xff]  }
 0x23c   :  { %6774 = vmatprep.subr.bf16.mxu0 %v9771_v47  ;;  %7430 = vmatprep.subr.bf16.mxu1 %v9774_v57  ;;  %v9856_v47 = vld [vmem:[%s13739_s1 + $0x13a8] ss:$16 sps:$4 sm:$0xff]   ;;  %v9861_v57 = vld [vmem:[%s13739_s1 + $0x13c4] ss:$16 sps:$4 sm:$0xff]  }
 0x23f   :  { %6775 = vmatpush1.bf16.msra.mxu0 %v9769_v58  ;;  %7431 = vmatpush1.bf16.msra.mxu1 %v9772_v59  ;;  %v9864_v58 = vld [vmem:[%s13739_s1 + $0x13cc] ss:$16 sps:$4 sm:$0xff]   ;;  %v1166_v59 = vcombine.high %v12079_v44, %v12079_v44 }
 0x240   :  { %6785 = vmatprep.subr.bf16.mxu0 %v9777_v48  ;;  %7441 = vmatprep.subr.bf16.mxu1 %v9780_v61  ;;  %v9859_v48 = vld [vmem:[%s13739_s1 + $0x13c0] ss:$16 sps:$4 sm:$0xff]   ;;  %v9862_v61 = vld [vmem:[%s13739_s1 + $0x13c8] ss:$16 sps:$4 sm:$0xff]   ;;  %v9870_v44 = vld [vmem:[%s13739_s1 + $0x13ec] ss:$16 sps:$4 sm:$0xff]  }
 0x242   :  { %6777 = vmatmul.mubr.bf16.vlgmr.msra.gmra.mrb[0].mxu0 %v12312_v62  ;;  %7433 = vmatmul.mubr.bf16.vlgmr.msra.gmra.mrb[0].mxu1 %v12312_v62 }
 0x243   :  { %6786 = vmatpush1.bf16.msra.mxu0 %v9775_v63  ;;  %7442 = vmatpush1.bf16.msra.mxu1 %v9778_v0  ;;  %v9867_v63 = vld [vmem:[%s13739_s1 + $0x13e4] ss:$16 sps:$4 sm:$0xff]   ;;  %v12501_v0 = vrot.slane %v1166_v59, %v10608_v49  ;;  %v9946_v59 = vld [vmem:[%s13739_s1 + $0x1588] ss:$16 sps:$4 sm:$0xff]  }
 0x244   :  { %6787 = vmatprep.subr.bf16.mxu0 %v9783_v1  ;;  %7443 = vmatprep.subr.bf16.mxu1 %v9786_v51  ;;  %v9865_v1 = vld [vmem:[%s13739_s1 + $0x13e0] ss:$16 sps:$4 sm:$0xff]   ;;  %v9868_v51 = vld [vmem:[%s13739_s1 + $0x13e8] ss:$16 sps:$4 sm:$0xff]  }
 0x245   :  { %6817 = vmatprep.mubr.bf16.mxu0 %v1213_v2  ;;  %7473 = vmatprep.mubr.bf16.mxu1 %v1213_v2  ;;  %v9873_v2 = vld [vmem:[%s13739_s1 + $0x1404] ss:$16 sps:$4 sm:$0xff]  }
 0x247   :  { %6788 = vmatpush1.bf16.msra.mxu0 %v9781_v3  ;;  %7444 = vmatpush1.bf16.msra.mxu1 %v9784_v4  ;;  %v9876_v3 = vld [vmem:[%s13739_s1 + $0x140c] ss:$16 sps:$4 sm:$0xff]   ;;  %v1182_v4 = vcombine.high %v12501_v0, %v12501_v0 }
 0x248   :  { %6789 = vmatprep.subr.bf16.mxu0 %v9789_v60  ;;  %7445 = vmatprep.subr.bf16.mxu1 %v9792_v5  ;;  %v1211_v60 = vcombine.high %v12312_v62, %v12312_v62  ;;  %v9871_v5 = vld [vmem:[%s13739_s1 + $0x1400] ss:$16 sps:$4 sm:$0xff]   ;;  %v9882_v62 = vld [vmem:[%s13739_s1 + $0x142c] ss:$16 sps:$4 sm:$0xff]  }
 0x24b   :  { %6790 = vmatpush1.bf16.msra.mxu0 %v9787_v6  ;;  %7446 = vmatpush1.bf16.msra.mxu1 %v9790_v7  ;;  %v9874_v6 = vld [vmem:[%s13739_s1 + $0x1408] ss:$16 sps:$4 sm:$0xff]   ;;  %v9879_v7 = vld [vmem:[%s13739_s1 + $0x1424] ss:$16 sps:$4 sm:$0xff]  }
 0x24c   :  { %6791 = vmatprep.subr.bf16.mxu0 %v9795_v8  ;;  %7447 = vmatprep.subr.bf16.mxu1 %v9798_v9  ;;  %v12532_v8 = vrot.slane %v1182_v4, %v10608_v49  ;;  %v9877_v9 = vld [vmem:[%s13739_s1 + $0x1420] ss:$16 sps:$4 sm:$0xff]   ;;  %v9963_v4 = vld [vmem:[%s13739_s1 + $0x15e4] ss:$16 sps:$4 sm:$0xff]  }
 0x24f   :  { %6792 = vmatpush1.bf16.msra.mxu0 %v9793_v10  ;;  %7448 = vmatpush1.bf16.msra.mxu1 %v9796_v11  ;;  %v9880_v10 = vld [vmem:[%s13739_s1 + $0x1428] ss:$16 sps:$4 sm:$0xff]   ;;  %v9885_v11 = vld [vmem:[%s13739_s1 + $0x1444] ss:$16 sps:$4 sm:$0xff]  }
 0x250   :  { %6793 = vmatprep.subr.bf16.mxu0 %v9801_v12  ;;  %7449 = vmatprep.subr.bf16.mxu1 %v9804_v52  ;;  %v9888_v12 = vld [vmem:[%s13739_s1 + $0x144c] ss:$16 sps:$4 sm:$0xff]   ;;  %v9883_v52 = vld [vmem:[%s13739_s1 + $0x1440] ss:$16 sps:$4 sm:$0xff]  }
 0x253   :  { %6794 = vmatpush1.bf16.msra.mxu0 %v9799_v15  ;;  %7450 = vmatpush1.bf16.msra.mxu1 %v9802_v16  ;;  %v9886_v15 = vld [vmem:[%s13739_s1 + $0x1448] ss:$16 sps:$4 sm:$0xff]   ;;  %v9891_v16 = vld [vmem:[%s13739_s1 + $0x1464] ss:$16 sps:$4 sm:$0xff]  }
 0x254   :  { %6795 = vmatprep.subr.bf16.mxu0 %v9807_v17  ;;  %7451 = vmatprep.subr.bf16.mxu1 %v9810_v18  ;;  %v9894_v17 = vld [vmem:[%s13739_s1 + $0x146c] ss:$16 sps:$4 sm:$0xff]   ;;  %v9889_v18 = vld [vmem:[%s13739_s1 + $0x1460] ss:$16 sps:$4 sm:$0xff]  }
 0x257   :  { %6796 = vmatpush1.bf16.msra.mxu0 %v9805_v19  ;;  %7452 = vmatpush1.bf16.msra.mxu1 %v9808_v20  ;;  %v9892_v19 = vld [vmem:[%s13739_s1 + $0x1468] ss:$16 sps:$4 sm:$0xff]   ;;  %v9897_v20 = vld [vmem:[%s13739_s1 + $0x1484] ss:$16 sps:$4 sm:$0xff]  }
 0x258   :  { %6797 = vmatprep.subr.bf16.mxu0 %v9813_v22  ;;  %7453 = vmatprep.subr.bf16.mxu1 %v9816_v23  ;;  %v9900_v22 = vld [vmem:[%s13739_s1 + $0x148c] ss:$16 sps:$4 sm:$0xff]   ;;  %v9895_v23 = vld [vmem:[%s13739_s1 + $0x1480] ss:$16 sps:$4 sm:$0xff]  }
 0x25b   :  { %6798 = vmatpush1.bf16.msra.mxu0 %v9811_v24  ;;  %7454 = vmatpush1.bf16.msra.mxu1 %v9814_v13  ;;  %v9898_v24 = vld [vmem:[%s13739_s1 + $0x1488] ss:$16 sps:$4 sm:$0xff]   ;;  %v9903_v13 = vld [vmem:[%s13739_s1 + $0x14a4] ss:$16 sps:$4 sm:$0xff]  }
 0x25c   :  { %6799 = vmatprep.subr.bf16.mxu0 %v9819_v27  ;;  %7455 = vmatprep.subr.bf16.mxu1 %v9822_v28  ;;  %v9906_v27 = vld [vmem:[%s13739_s1 + $0x14ac] ss:$16 sps:$4 sm:$0xff]   ;;  %v9901_v28 = vld [vmem:[%s13739_s1 + $0x14a0] ss:$16 sps:$4 sm:$0xff]  }
 0x25f   :  { %6800 = vmatpush1.bf16.msra.mxu0 %v9817_v29  ;;  %7456 = vmatpush1.bf16.msra.mxu1 %v9820_v14  ;;  %v9904_v29 = vld [vmem:[%s13739_s1 + $0x14a8] ss:$16 sps:$4 sm:$0xff]   ;;  %v9909_v14 = vld [vmem:[%s13739_s1 + $0x14c4] ss:$16 sps:$4 sm:$0xff]  }
 0x260   :  { %6801 = vmatprep.subr.bf16.mxu0 %v9825_v30  ;;  %7457 = vmatprep.subr.bf16.mxu1 %v9828_v31  ;;  %v9912_v30 = vld [vmem:[%s13739_s1 + $0x14cc] ss:$16 sps:$4 sm:$0xff]   ;;  %v9907_v31 = vld [vmem:[%s13739_s1 + $0x14c0] ss:$16 sps:$4 sm:$0xff]  }
 0x263   :  { %6802 = vmatpush1.bf16.msra.mxu0 %v9823_v25  ;;  %7458 = vmatpush1.bf16.msra.mxu1 %v9826_v32  ;;  %v9910_v25 = vld [vmem:[%s13739_s1 + $0x14c8] ss:$16 sps:$4 sm:$0xff]   ;;  %v9915_v32 = vld [vmem:[%s13739_s1 + $0x14e4] ss:$16 sps:$4 sm:$0xff]  }
 0x264   :  { %6803 = vmatprep.subr.bf16.mxu0 %v9831_v33  ;;  %7459 = vmatprep.subr.bf16.mxu1 %v9834_v26  ;;  %v9918_v33 = vld [vmem:[%s13739_s1 + $0x14ec] ss:$16 sps:$4 sm:$0xff]   ;;  %v9913_v26 = vld [vmem:[%s13739_s1 + $0x14e0] ss:$16 sps:$4 sm:$0xff]  }
 0x267   :  { %6804 = vmatpush1.bf16.msra.mxu0 %v9829_v36  ;;  %7460 = vmatpush1.bf16.msra.mxu1 %v9832_v37  ;;  %v9916_v36 = vld [vmem:[%s13739_s1 + $0x14e8] ss:$16 sps:$4 sm:$0xff]   ;;  %v9921_v37 = vld [vmem:[%s13739_s1 + $0x1504] ss:$16 sps:$4 sm:$0xff]  }
 0x268   :  { %6805 = vmatprep.subr.bf16.mxu0 %v9837_v21  ;;  %7461 = vmatprep.subr.bf16.mxu1 %v9840_v39  ;;  %v9924_v21 = vld [vmem:[%s13739_s1 + $0x150c] ss:$16 sps:$4 sm:$0xff]   ;;  %v9919_v39 = vld [vmem:[%s13739_s1 + $0x1500] ss:$16 sps:$4 sm:$0xff]  }
 0x26b   :  { %6806 = vmatpush1.bf16.msra.mxu0 %v9835_v40  ;;  %7462 = vmatpush1.bf16.msra.mxu1 %v9838_v41  ;;  %v9922_v40 = vld [vmem:[%s13739_s1 + $0x1508] ss:$16 sps:$4 sm:$0xff]   ;;  %v9927_v41 = vld [vmem:[%s13739_s1 + $0x1524] ss:$16 sps:$4 sm:$0xff]  }
 0x26c   :  { %6807 = vmatprep.subr.bf16.mxu0 %v9843_v34  ;;  %7463 = vmatprep.subr.bf16.mxu1 %v9846_v43  ;;  %v9930_v34 = vld [vmem:[%s13739_s1 + $0x152c] ss:$16 sps:$4 sm:$0xff]   ;;  %v9925_v43 = vld [vmem:[%s13739_s1 + $0x1520] ss:$16 sps:$4 sm:$0xff]  }
 0x26f   :  { %6808 = vmatpush1.bf16.msra.mxu0 %v9841_v45  ;;  %7464 = vmatpush1.bf16.msra.mxu1 %v9844_v46  ;;  %v9928_v45 = vld [vmem:[%s13739_s1 + $0x1528] ss:$16 sps:$4 sm:$0xff]   ;;  %v9933_v46 = vld [vmem:[%s13739_s1 + $0x1544] ss:$16 sps:$4 sm:$0xff]  }
 0x270   :  { %6809 = vmatprep.subr.bf16.mxu0 %v9849_v35  ;;  %7465 = vmatprep.subr.bf16.mxu1 %v9852_v50  ;;  %v9936_v35 = vld [vmem:[%s13739_s1 + $0x154c] ss:$16 sps:$4 sm:$0xff]   ;;  %v9931_v50 = vld [vmem:[%s13739_s1 + $0x1540] ss:$16 sps:$4 sm:$0xff]  }
 0x273   :  { %6810 = vmatpush1.bf16.msra.mxu0 %v9847_v53  ;;  %7466 = vmatpush1.bf16.msra.mxu1 %v9850_v38  ;;  %v9934_v53 = vld [vmem:[%s13739_s1 + $0x1548] ss:$16 sps:$4 sm:$0xff]   ;;  %v9939_v38 = vld [vmem:[%s13739_s1 + $0x1564] ss:$16 sps:$4 sm:$0xff]  }
 0x274   :  { %6811 = vmatprep.subr.bf16.mxu0 %v9855_v54  ;;  %7467 = vmatprep.subr.bf16.mxu1 %v9858_v55  ;;  %v9942_v54 = vld [vmem:[%s13739_s1 + $0x156c] ss:$16 sps:$4 sm:$0xff]   ;;  %v9937_v55 = vld [vmem:[%s13739_s1 + $0x1560] ss:$16 sps:$4 sm:$0xff]  }
 0x277   :  { %6812 = vmatpush1.bf16.msra.mxu0 %v9853_v56  ;;  %7468 = vmatpush1.bf16.msra.mxu1 %v9856_v47  ;;  %v9940_v56 = vld [vmem:[%s13739_s1 + $0x1568] ss:$16 sps:$4 sm:$0xff]   ;;  %v9945_v47 = vld [vmem:[%s13739_s1 + $0x1584] ss:$16 sps:$4 sm:$0xff]  }
 0x278   :  { %6813 = vmatprep.subr.bf16.mxu0 %v9861_v57  ;;  %7469 = vmatprep.subr.bf16.mxu1 %v9864_v58  ;;  %v9948_v57 = vld [vmem:[%s13739_s1 + $0x158c] ss:$16 sps:$4 sm:$0xff]   ;;  %v9943_v58 = vld [vmem:[%s13739_s1 + $0x1580] ss:$16 sps:$4 sm:$0xff]  }
 0x27b   :  { %6814 = vmatpush1.bf16.msra.mxu0 %v9859_v48  ;;  %7470 = vmatpush1.bf16.msra.mxu1 %v9862_v61  ;;  %v9951_v48 = vld [vmem:[%s13739_s1 + $0x15a4] ss:$16 sps:$4 sm:$0xff]   ;;  %v9954_v61 = vld [vmem:[%s13739_s1 + $0x15ac] ss:$16 sps:$4 sm:$0xff]  }
 0x27c   :  { %6815 = vmatprep.subr.bf16.mxu0 %v9867_v63  ;;  %7471 = vmatprep.subr.bf16.mxu1 %v9870_v44  ;;  %v9949_v63 = vld [vmem:[%s13739_s1 + $0x15a0] ss:$16 sps:$4 sm:$0xff]   ;;  %v9952_v44 = vld [vmem:[%s13739_s1 + $0x15a8] ss:$16 sps:$4 sm:$0xff]  }
 0x27f   :  { %6816 = vmatpush1.bf16.msra.mxu0 %v9865_v1  ;;  %7472 = vmatpush1.bf16.msra.mxu1 %v9868_v51  ;;  %v9957_v1 = vld [vmem:[%s13739_s1 + $0x15c4] ss:$16 sps:$4 sm:$0xff]   ;;  %v9960_v51 = vld [vmem:[%s13739_s1 + $0x15cc] ss:$16 sps:$4 sm:$0xff]  }
 0x280   :  { %6826 = vmatprep.subr.bf16.mxu0 %v9873_v2  ;;  %7482 = vmatprep.subr.bf16.mxu1 %v9876_v3  ;;  %v9955_v2 = vld [vmem:[%s13739_s1 + $0x15c0] ss:$16 sps:$4 sm:$0xff]   ;;  %v9958_v3 = vld [vmem:[%s13739_s1 + $0x15c8] ss:$16 sps:$4 sm:$0xff]  }
 0x282   :  { %6818 = vmatmul.mubr.bf16.vlgmr.msra.gmra.mrb[0].mxu0 %v1211_v60  ;;  %7474 = vmatmul.mubr.bf16.vlgmr.msra.gmra.mrb[0].mxu1 %v1211_v60  ;;  %v9966_v60 = vld [vmem:[%s13739_s1 + $0x15ec] ss:$16 sps:$4 sm:$0xff]  }
 0x283   :  { %6827 = vmatpush1.bf16.msra.mxu0 %v9871_v5  ;;  %7483 = vmatpush1.bf16.msra.mxu1 %v9874_v6  ;;  %v9961_v5 = vld [vmem:[%s13739_s1 + $0x15e0] ss:$16 sps:$4 sm:$0xff]   ;;  %v9964_v6 = vld [vmem:[%s13739_s1 + $0x15e8] ss:$16 sps:$4 sm:$0xff]  }
 0x284   :  { %6828 = vmatprep.subr.bf16.mxu0 %v9879_v7  ;;  %7484 = vmatprep.subr.bf16.mxu1 %v9882_v62  ;;  %v9970_v7 = vld [vmem:[%s13739_s1 + $0x1604] ss:$16 sps:$4 sm:$0xff]   ;;  %v9973_v62 = vld [vmem:[%s13739_s1 + $0x160c] ss:$16 sps:$4 sm:$0xff]  }
 0x285   :  { %6858 = vmatprep.mubr.bf16.mxu0 %v12532_v8  ;;  %7514 = vmatprep.mubr.bf16.mxu1 %v12532_v8 }
 0x287   :  { %6829 = vmatpush1.bf16.msra.mxu0 %v9877_v9  ;;  %7485 = vmatpush1.bf16.msra.mxu1 %v9880_v10  ;;  %v12718_v9 = vrot.slane %v12501_v0, %v10608_v49  ;;  %v9968_v10 = vld [vmem:[%s13739_s1 + $0x1600] ss:$16 sps:$4 sm:$0xff]   ;;  %v9979_v0 = vld [vmem:[%s13739_s1 + $0x162c] ss:$16 sps:$4 sm:$0xff]  }
 0x288   :  { %6830 = vmatprep.subr.bf16.mxu0 %v9885_v11  ;;  %7486 = vmatprep.subr.bf16.mxu1 %v9888_v12  ;;  %v9971_v11 = vld [vmem:[%s13739_s1 + $0x1608] ss:$16 sps:$4 sm:$0xff]   ;;  %v9976_v12 = vld [vmem:[%s13739_s1 + $0x1624] ss:$16 sps:$4 sm:$0xff]  }
 0x28b   :  { %6831 = vmatpush1.bf16.msra.mxu0 %v9883_v52  ;;  %7487 = vmatpush1.bf16.msra.mxu1 %v9886_v15  ;;  %v1214_v52 = vcombine.high %v12532_v8, %v12532_v8  ;;  %v9974_v15 = vld [vmem:[%s13739_s1 + $0x1620] ss:$16 sps:$4 sm:$0xff]   ;;  %v9982_v8 = vld [vmem:[%s13739_s1 + $0x1644] ss:$16 sps:$4 sm:$0xff]  }
 0x28c   :  { %6832 = vmatprep.subr.bf16.mxu0 %v9891_v16  ;;  %7488 = vmatprep.subr.bf16.mxu1 %v9894_v17  ;;  %v9977_v16 = vld [vmem:[%s13739_s1 + $0x1628] ss:$16 sps:$4 sm:$0xff]   ;;  %v9985_v17 = vld [vmem:[%s13739_s1 + $0x164c] ss:$16 sps:$4 sm:$0xff]  }
 0x28f   :  { %6833 = vmatpush1.bf16.msra.mxu0 %v9889_v18  ;;  %7489 = vmatpush1.bf16.msra.mxu1 %v9892_v19  ;;  %v9980_v18 = vld [vmem:[%s13739_s1 + $0x1640] ss:$16 sps:$4 sm:$0xff]   ;;  %v9983_v19 = vld [vmem:[%s13739_s1 + $0x1648] ss:$16 sps:$4 sm:$0xff]  }
 0x290   :  { %6834 = vmatprep.subr.bf16.mxu0 %v9897_v20  ;;  %7490 = vmatprep.subr.bf16.mxu1 %v9900_v22  ;;  %v9988_v20 = vld [vmem:[%s13739_s1 + $0x1664] ss:$16 sps:$4 sm:$0xff]   ;;  %v9991_v22 = vld [vmem:[%s13739_s1 + $0x166c] ss:$16 sps:$4 sm:$0xff]  }
 0x293   :  { %6835 = vmatpush1.bf16.msra.mxu0 %v9895_v23  ;;  %7491 = vmatpush1.bf16.msra.mxu1 %v9898_v24  ;;  %v9986_v23 = vld [vmem:[%s13739_s1 + $0x1660] ss:$16 sps:$4 sm:$0xff]   ;;  %v9989_v24 = vld [vmem:[%s13739_s1 + $0x1668] ss:$16 sps:$4 sm:$0xff]  }
 0x294   :  { %6836 = vmatprep.subr.bf16.mxu0 %v9903_v13  ;;  %7492 = vmatprep.subr.bf16.mxu1 %v9906_v27  ;;  %v9994_v13 = vld [vmem:[%s13739_s1 + $0x1684] ss:$16 sps:$4 sm:$0xff]   ;;  %v9997_v27 = vld [vmem:[%s13739_s1 + $0x168c] ss:$16 sps:$4 sm:$0xff]  }
 0x297   :  { %6837 = vmatpush1.bf16.msra.mxu0 %v9901_v28  ;;  %7493 = vmatpush1.bf16.msra.mxu1 %v9904_v29  ;;  %v9992_v28 = vld [vmem:[%s13739_s1 + $0x1680] ss:$16 sps:$4 sm:$0xff]   ;;  %v9995_v29 = vld [vmem:[%s13739_s1 + $0x1688] ss:$16 sps:$4 sm:$0xff]  }
 0x298   :  { %6838 = vmatprep.subr.bf16.mxu0 %v9909_v14  ;;  %7494 = vmatprep.subr.bf16.mxu1 %v9912_v30  ;;  %v10000_v14 = vld [vmem:[%s13739_s1 + $0x16a4] ss:$16 sps:$4 sm:$0xff]   ;;  %v10003_v30 = vld [vmem:[%s13739_s1 + $0x16ac] ss:$16 sps:$4 sm:$0xff]  }
 0x29b   :  { %6839 = vmatpush1.bf16.msra.mxu0 %v9907_v31  ;;  %7495 = vmatpush1.bf16.msra.mxu1 %v9910_v25  ;;  %v9998_v31 = vld [vmem:[%s13739_s1 + $0x16a0] ss:$16 sps:$4 sm:$0xff]   ;;  %v10001_v25 = vld [vmem:[%s13739_s1 + $0x16a8] ss:$16 sps:$4 sm:$0xff]  }
 0x29c   :  { %6840 = vmatprep.subr.bf16.mxu0 %v9915_v32  ;;  %7496 = vmatprep.subr.bf16.mxu1 %v9918_v33  ;;  %v10006_v32 = vld [vmem:[%s13739_s1 + $0x16c4] ss:$16 sps:$4 sm:$0xff]   ;;  %v10009_v33 = vld [vmem:[%s13739_s1 + $0x16cc] ss:$16 sps:$4 sm:$0xff]  }
 0x29f   :  { %6841 = vmatpush1.bf16.msra.mxu0 %v9913_v26  ;;  %7497 = vmatpush1.bf16.msra.mxu1 %v9916_v36  ;;  %v10004_v26 = vld [vmem:[%s13739_s1 + $0x16c0] ss:$16 sps:$4 sm:$0xff]   ;;  %v10007_v36 = vld [vmem:[%s13739_s1 + $0x16c8] ss:$16 sps:$4 sm:$0xff]  }
 0x2a0   :  { %6842 = vmatprep.subr.bf16.mxu0 %v9921_v37  ;;  %7498 = vmatprep.subr.bf16.mxu1 %v9924_v21  ;;  %v10012_v37 = vld [vmem:[%s13739_s1 + $0x16e4] ss:$16 sps:$4 sm:$0xff]   ;;  %v10015_v21 = vld [vmem:[%s13739_s1 + $0x16ec] ss:$16 sps:$4 sm:$0xff]  }
 0x2a3   :  { %6843 = vmatpush1.bf16.msra.mxu0 %v9919_v39  ;;  %7499 = vmatpush1.bf16.msra.mxu1 %v9922_v40  ;;  %v10010_v39 = vld [vmem:[%s13739_s1 + $0x16e0] ss:$16 sps:$4 sm:$0xff]   ;;  %v10013_v40 = vld [vmem:[%s13739_s1 + $0x16e8] ss:$16 sps:$4 sm:$0xff]  }
 0x2a4   :  { %6844 = vmatprep.subr.bf16.mxu0 %v9927_v41  ;;  %7500 = vmatprep.subr.bf16.mxu1 %v9930_v34  ;;  %v10018_v41 = vld [vmem:[%s13739_s1 + $0x1704] ss:$16 sps:$4 sm:$0xff]   ;;  %v10021_v34 = vld [vmem:[%s13739_s1 + $0x170c] ss:$16 sps:$4 sm:$0xff]  }
 0x2a7   :  { %6845 = vmatpush1.bf16.msra.mxu0 %v9925_v43  ;;  %7501 = vmatpush1.bf16.msra.mxu1 %v9928_v45  ;;  %v10016_v43 = vld [vmem:[%s13739_s1 + $0x1700] ss:$16 sps:$4 sm:$0xff]   ;;  %v10019_v45 = vld [vmem:[%s13739_s1 + $0x1708] ss:$16 sps:$4 sm:$0xff]  }
 0x2a8   :  { %6846 = vmatprep.subr.bf16.mxu0 %v9933_v46  ;;  %7502 = vmatprep.subr.bf16.mxu1 %v9936_v35  ;;  %v10024_v46 = vld [vmem:[%s13739_s1 + $0x1724] ss:$16 sps:$4 sm:$0xff]   ;;  %v10027_v35 = vld [vmem:[%s13739_s1 + $0x172c] ss:$16 sps:$4 sm:$0xff]  }
 0x2ab   :  { %6847 = vmatpush1.bf16.msra.mxu0 %v9931_v50  ;;  %7503 = vmatpush1.bf16.msra.mxu1 %v9934_v53  ;;  %v10022_v50 = vld [vmem:[%s13739_s1 + $0x1720] ss:$16 sps:$4 sm:$0xff]   ;;  %v10025_v53 = vld [vmem:[%s13739_s1 + $0x1728] ss:$16 sps:$4 sm:$0xff]  }
 0x2ac   :  { %6848 = vmatprep.subr.bf16.mxu0 %v9939_v38  ;;  %7504 = vmatprep.subr.bf16.mxu1 %v9942_v54  ;;  %v10030_v38 = vld [vmem:[%s13739_s1 + $0x1744] ss:$16 sps:$4 sm:$0xff]   ;;  %v10033_v54 = vld [vmem:[%s13739_s1 + $0x174c] ss:$16 sps:$4 sm:$0xff]  }
 0x2af   :  { %6849 = vmatpush1.bf16.msra.mxu0 %v9937_v55  ;;  %7505 = vmatpush1.bf16.msra.mxu1 %v9940_v56  ;;  %v10028_v55 = vld [vmem:[%s13739_s1 + $0x1740] ss:$16 sps:$4 sm:$0xff]   ;;  %v10031_v56 = vld [vmem:[%s13739_s1 + $0x1748] ss:$16 sps:$4 sm:$0xff]  }
 0x2b0   :  { %6850 = vmatprep.subr.bf16.mxu0 %v9945_v47  ;;  %7506 = vmatprep.subr.bf16.mxu1 %v9948_v57  ;;  %v10036_v47 = vld [vmem:[%s13739_s1 + $0x1764] ss:$16 sps:$4 sm:$0xff]   ;;  %v10039_v57 = vld [vmem:[%s13739_s1 + $0x176c] ss:$16 sps:$4 sm:$0xff]  }
 0x2b3   :  { %6851 = vmatpush1.bf16.msra.mxu0 %v9943_v58  ;;  %7507 = vmatpush1.bf16.msra.mxu1 %v9946_v59  ;;  %v10034_v58 = vld [vmem:[%s13739_s1 + $0x1760] ss:$16 sps:$4 sm:$0xff]   ;;  %v10037_v59 = vld [vmem:[%s13739_s1 + $0x1768] ss:$16 sps:$4 sm:$0xff]  }
 0x2b4   :  { %6852 = vmatprep.subr.bf16.mxu0 %v9951_v48  ;;  %7508 = vmatprep.subr.bf16.mxu1 %v9954_v61  ;;  %v10042_v48 = vld [vmem:[%s13739_s1 + $0x1784] ss:$16 sps:$4 sm:$0xff]   ;;  %v10045_v61 = vld [vmem:[%s13739_s1 + $0x178c] ss:$16 sps:$4 sm:$0xff]  }
 0x2b7   :  { %6853 = vmatpush1.bf16.msra.mxu0 %v9949_v63  ;;  %7509 = vmatpush1.bf16.msra.mxu1 %v9952_v44  ;;  %v10040_v63 = vld [vmem:[%s13739_s1 + $0x1780] ss:$16 sps:$4 sm:$0xff]   ;;  %v10043_v44 = vld [vmem:[%s13739_s1 + $0x1788] ss:$16 sps:$4 sm:$0xff]  }
 0x2b8   :  { %6854 = vmatprep.subr.bf16.mxu0 %v9957_v1  ;;  %7510 = vmatprep.subr.bf16.mxu1 %v9960_v51  ;;  %v10048_v1 = vld [vmem:[%s13739_s1 + $0x17a4] ss:$16 sps:$4 sm:$0xff]   ;;  %v10051_v51 = vld [vmem:[%s13739_s1 + $0x17ac] ss:$16 sps:$4 sm:$0xff]  }
 0x2bb   :  { %6855 = vmatpush1.bf16.msra.mxu0 %v9955_v2  ;;  %7511 = vmatpush1.bf16.msra.mxu1 %v9958_v3  ;;  %v10046_v2 = vld [vmem:[%s13739_s1 + $0x17a0] ss:$16 sps:$4 sm:$0xff]   ;;  %v10049_v3 = vld [vmem:[%s13739_s1 + $0x17a8] ss:$16 sps:$4 sm:$0xff]  }
 0x2bc   :  { %6856 = vmatprep.subr.bf16.mxu0 %v9963_v4  ;;  %7512 = vmatprep.subr.bf16.mxu1 %v9966_v60  ;;  %v10054_v4 = vld [vmem:[%s13739_s1 + $0x17c4] ss:$16 sps:$4 sm:$0xff]   ;;  %v10057_v60 = vld [vmem:[%s13739_s1 + $0x17cc] ss:$16 sps:$4 sm:$0xff]  }
 0x2bf   :  { %6857 = vmatpush1.bf16.msra.mxu0 %v9961_v5  ;;  %7513 = vmatpush1.bf16.msra.mxu1 %v9964_v6  ;;  %v12895_v5 = vld [vmem:[%s13740_s0 + $0x18] sm:$0xff]  ;;  %v10052_v6 = vld [vmem:[%s13739_s1 + $0x17c0] ss:$16 sps:$4 sm:$0xff]  }
 0x2c0   :  { %6867 = vmatprep.subr.bf16.mxu0 %v9970_v7  ;;  %7523 = vmatprep.subr.bf16.mxu1 %v9973_v62  ;;  %v10055_v7 = vld [vmem:[%s13739_s1 + $0x17c8] ss:$16 sps:$4 sm:$0xff]   ;;  %v10060_v62 = vld [vmem:[%s13739_s1 + $0x17e4] ss:$16 sps:$4 sm:$0xff]  }
 0x2c2   :  { %6859 = vmatmul.mubr.bf16.vlgmr.msra.gmra.mrb[0].mxu0 %v12718_v9  ;;  %7515 = vmatmul.mubr.bf16.vlgmr.msra.gmra.mrb[0].mxu1 %v12718_v9 }
 0x2c3   :  { %6868 = vmatpush1.bf16.msra.mxu0 %v9968_v10  ;;  %7524 = vmatpush1.bf16.msra.mxu1 %v9971_v11  ;;  %v10063_v10 = vld [vmem:[%s13739_s1 + $0x17ec] ss:$16 sps:$4 sm:$0xff]   ;;  %v12911_v11 = vrot.slane %v12895_v5, %v10608_v49 }
 0x2c4   :  { %6869 = vmatprep.subr.bf16.mxu0 %v9976_v12  ;;  %7525 = vmatprep.subr.bf16.mxu1 %v9979_v0  ;;  %v10058_v12 = vld [vmem:[%s13739_s1 + $0x17e0] ss:$16 sps:$4 sm:$0xff]   ;;  %v10061_v0 = vld [vmem:[%s13739_s1 + $0x17e8] ss:$16 sps:$4 sm:$0xff]  }
 0x2c5   :  { %6899 = vmatprep.mubr.bf16.mxu0 %v1214_v52  ;;  %7555 = vmatprep.mubr.bf16.mxu1 %v1214_v52  ;;  %v10066_v52 = vld [vmem:[%s13739_s1 + $0x1804] ss:$16 sps:$4 sm:$0xff]  }
 0x2c7   :  { %6870 = vmatpush1.bf16.msra.mxu0 %v9974_v15  ;;  %7526 = vmatpush1.bf16.msra.mxu1 %v9977_v16  ;;  %v10069_v15 = vld [vmem:[%s13739_s1 + $0x180c] ss:$16 sps:$4 sm:$0xff]   ;;  %v1230_v16 = vcombine.high %v12911_v11, %v12911_v11 }
 0x2c8   :  { %6871 = vmatprep.subr.bf16.mxu0 %v9982_v8  ;;  %7527 = vmatprep.subr.bf16.mxu1 %v9985_v17  ;;  %v1212_v8 = vcombine.high %v12718_v9, %v12718_v9  ;;  %v10064_v17 = vld [vmem:[%s13739_s1 + $0x1800] ss:$16 sps:$4 sm:$0xff]   ;;  %v10075_v9 = vld [vmem:[%s13739_s1 + $0x182c] ss:$16 sps:$4 sm:$0xff]  }
 0x2cb   :  { %6872 = vmatpush1.bf16.msra.mxu0 %v9980_v18  ;;  %7528 = vmatpush1.bf16.msra.mxu1 %v9983_v19  ;;  %v10067_v18 = vld [vmem:[%s13739_s1 + $0x1808] ss:$16 sps:$4 sm:$0xff]   ;;  %v10072_v19 = vld [vmem:[%s13739_s1 + $0x1824] ss:$16 sps:$4 sm:$0xff]  }
 0x2cc   :  { %6873 = vmatprep.subr.bf16.mxu0 %v9988_v20  ;;  %7529 = vmatprep.subr.bf16.mxu1 %v9991_v22  ;;  %v12942_v20 = vrot.slane %v1230_v16, %v10608_v49  ;;  %v10070_v22 = vld [vmem:[%s13739_s1 + $0x1820] ss:$16 sps:$4 sm:$0xff]   ;;  %v10151_v16 = vld [vmem:[%s13739_s1 + $0x19c8] ss:$16 sps:$4 sm:$0xff]  }
 0x2cf   :  { %6874 = vmatpush1.bf16.msra.mxu0 %v9986_v23  ;;  %7530 = vmatpush1.bf16.msra.mxu1 %v9989_v24  ;;  %v10073_v23 = vld [vmem:[%s13739_s1 + $0x1828] ss:$16 sps:$4 sm:$0xff]   ;;  %v10078_v24 = vld [vmem:[%s13739_s1 + $0x1844] ss:$16 sps:$4 sm:$0xff]  }
 0x2d0   :  { %6875 = vmatprep.subr.bf16.mxu0 %v9994_v13  ;;  %7531 = vmatprep.subr.bf16.mxu1 %v9997_v27  ;;  %v10081_v13 = vld [vmem:[%s13739_s1 + $0x184c] ss:$16 sps:$4 sm:$0xff]   ;;  %v10076_v27 = vld [vmem:[%s13739_s1 + $0x1840] ss:$16 sps:$4 sm:$0xff]  }
 0x2d3   :  { %6876 = vmatpush1.bf16.msra.mxu0 %v9992_v28  ;;  %7532 = vmatpush1.bf16.msra.mxu1 %v9995_v29  ;;  %v10079_v28 = vld [vmem:[%s13739_s1 + $0x1848] ss:$16 sps:$4 sm:$0xff]   ;;  %v10084_v29 = vld [vmem:[%s13739_s1 + $0x1864] ss:$16 sps:$4 sm:$0xff]  }
 0x2d4   :  { %6877 = vmatprep.subr.bf16.mxu0 %v10000_v14  ;;  %7533 = vmatprep.subr.bf16.mxu1 %v10003_v30  ;;  %v10087_v14 = vld [vmem:[%s13739_s1 + $0x186c] ss:$16 sps:$4 sm:$0xff]   ;;  %v10082_v30 = vld [vmem:[%s13739_s1 + $0x1860] ss:$16 sps:$4 sm:$0xff]  }
 0x2d7   :  { %6878 = vmatpush1.bf16.msra.mxu0 %v9998_v31  ;;  %7534 = vmatpush1.bf16.msra.mxu1 %v10001_v25  ;;  %v10085_v31 = vld [vmem:[%s13739_s1 + $0x1868] ss:$16 sps:$4 sm:$0xff]   ;;  %v10090_v25 = vld [vmem:[%s13739_s1 + $0x1884] ss:$16 sps:$4 sm:$0xff]  }
 0x2d8   :  { %6879 = vmatprep.subr.bf16.mxu0 %v10006_v32  ;;  %7535 = vmatprep.subr.bf16.mxu1 %v10009_v33  ;;  %v10093_v32 = vld [vmem:[%s13739_s1 + $0x188c] ss:$16 sps:$4 sm:$0xff]   ;;  %v10088_v33 = vld [vmem:[%s13739_s1 + $0x1880] ss:$16 sps:$4 sm:$0xff]  }
 0x2db   :  { %6880 = vmatpush1.bf16.msra.mxu0 %v10004_v26  ;;  %7536 = vmatpush1.bf16.msra.mxu1 %v10007_v36  ;;  %v10091_v26 = vld [vmem:[%s13739_s1 + $0x1888] ss:$16 sps:$4 sm:$0xff]   ;;  %v10096_v36 = vld [vmem:[%s13739_s1 + $0x18a4] ss:$16 sps:$4 sm:$0xff]  }
 0x2dc   :  { %6881 = vmatprep.subr.bf16.mxu0 %v10012_v37  ;;  %7537 = vmatprep.subr.bf16.mxu1 %v10015_v21  ;;  %v10099_v37 = vld [vmem:[%s13739_s1 + $0x18ac] ss:$16 sps:$4 sm:$0xff]   ;;  %v10094_v21 = vld [vmem:[%s13739_s1 + $0x18a0] ss:$16 sps:$4 sm:$0xff]  }
 0x2df   :  { %6882 = vmatpush1.bf16.msra.mxu0 %v10010_v39  ;;  %7538 = vmatpush1.bf16.msra.mxu1 %v10013_v40  ;;  %v10097_v39 = vld [vmem:[%s13739_s1 + $0x18a8] ss:$16 sps:$4 sm:$0xff]   ;;  %v10102_v40 = vld [vmem:[%s13739_s1 + $0x18c4] ss:$16 sps:$4 sm:$0xff]  }
 0x2e0   :  { %6883 = vmatprep.subr.bf16.mxu0 %v10018_v41  ;;  %7539 = vmatprep.subr.bf16.mxu1 %v10021_v34  ;;  %v10105_v41 = vld [vmem:[%s13739_s1 + $0x18cc] ss:$16 sps:$4 sm:$0xff]   ;;  %v10100_v34 = vld [vmem:[%s13739_s1 + $0x18c0] ss:$16 sps:$4 sm:$0xff]  }
 0x2e3   :  { %6884 = vmatpush1.bf16.msra.mxu0 %v10016_v43  ;;  %7540 = vmatpush1.bf16.msra.mxu1 %v10019_v45  ;;  %v10103_v43 = vld [vmem:[%s13739_s1 + $0x18c8] ss:$16 sps:$4 sm:$0xff]   ;;  %v10108_v45 = vld [vmem:[%s13739_s1 + $0x18e4] ss:$16 sps:$4 sm:$0xff]  }
 0x2e4   :  { %6885 = vmatprep.subr.bf16.mxu0 %v10024_v46  ;;  %7541 = vmatprep.subr.bf16.mxu1 %v10027_v35  ;;  %v10111_v46 = vld [vmem:[%s13739_s1 + $0x18ec] ss:$16 sps:$4 sm:$0xff]   ;;  %v10106_v35 = vld [vmem:[%s13739_s1 + $0x18e0] ss:$16 sps:$4 sm:$0xff]  }
 0x2e7   :  { %6886 = vmatpush1.bf16.msra.mxu0 %v10022_v50  ;;  %7542 = vmatpush1.bf16.msra.mxu1 %v10025_v53  ;;  %v10109_v50 = vld [vmem:[%s13739_s1 + $0x18e8] ss:$16 sps:$4 sm:$0xff]   ;;  %v10114_v53 = vld [vmem:[%s13739_s1 + $0x1904] ss:$16 sps:$4 sm:$0xff]  }
 0x2e8   :  { %6887 = vmatprep.subr.bf16.mxu0 %v10030_v38  ;;  %7543 = vmatprep.subr.bf16.mxu1 %v10033_v54  ;;  %v10117_v38 = vld [vmem:[%s13739_s1 + $0x190c] ss:$16 sps:$4 sm:$0xff]   ;;  %v10112_v54 = vld [vmem:[%s13739_s1 + $0x1900] ss:$16 sps:$4 sm:$0xff]  }
 0x2eb   :  { %6888 = vmatpush1.bf16.msra.mxu0 %v10028_v55  ;;  %7544 = vmatpush1.bf16.msra.mxu1 %v10031_v56  ;;  %v10115_v55 = vld [vmem:[%s13739_s1 + $0x1908] ss:$16 sps:$4 sm:$0xff]   ;;  %v10120_v56 = vld [vmem:[%s13739_s1 + $0x1924] ss:$16 sps:$4 sm:$0xff]  }
 0x2ec   :  { %6889 = vmatprep.subr.bf16.mxu0 %v10036_v47  ;;  %7545 = vmatprep.subr.bf16.mxu1 %v10039_v57  ;;  %v10123_v47 = vld [vmem:[%s13739_s1 + $0x192c] ss:$16 sps:$4 sm:$0xff]   ;;  %v10118_v57 = vld [vmem:[%s13739_s1 + $0x1920] ss:$16 sps:$4 sm:$0xff]  }
 0x2ef   :  { %6890 = vmatpush1.bf16.msra.mxu0 %v10034_v58  ;;  %7546 = vmatpush1.bf16.msra.mxu1 %v10037_v59  ;;  %v10121_v58 = vld [vmem:[%s13739_s1 + $0x1928] ss:$16 sps:$4 sm:$0xff]   ;;  %v10126_v59 = vld [vmem:[%s13739_s1 + $0x1944] ss:$16 sps:$4 sm:$0xff]  }
 0x2f0   :  { %6891 = vmatprep.subr.bf16.mxu0 %v10042_v48  ;;  %7547 = vmatprep.subr.bf16.mxu1 %v10045_v61  ;;  %v10129_v48 = vld [vmem:[%s13739_s1 + $0x194c] ss:$16 sps:$4 sm:$0xff]   ;;  %v10124_v61 = vld [vmem:[%s13739_s1 + $0x1940] ss:$16 sps:$4 sm:$0xff]  }
 0x2f3   :  { %6892 = vmatpush1.bf16.msra.mxu0 %v10040_v63  ;;  %7548 = vmatpush1.bf16.msra.mxu1 %v10043_v44  ;;  %v10127_v63 = vld [vmem:[%s13739_s1 + $0x1948] ss:$16 sps:$4 sm:$0xff]   ;;  %v10132_v44 = vld [vmem:[%s13739_s1 + $0x1964] ss:$16 sps:$4 sm:$0xff]  }
 0x2f4   :  { %6893 = vmatprep.subr.bf16.mxu0 %v10048_v1  ;;  %7549 = vmatprep.subr.bf16.mxu1 %v10051_v51  ;;  %v10135_v1 = vld [vmem:[%s13739_s1 + $0x196c] ss:$16 sps:$4 sm:$0xff]   ;;  %v10130_v51 = vld [vmem:[%s13739_s1 + $0x1960] ss:$16 sps:$4 sm:$0xff]  }
 0x2f7   :  { %6894 = vmatpush1.bf16.msra.mxu0 %v10046_v2  ;;  %7550 = vmatpush1.bf16.msra.mxu1 %v10049_v3  ;;  %v10133_v2 = vld [vmem:[%s13739_s1 + $0x1968] ss:$16 sps:$4 sm:$0xff]   ;;  %v10138_v3 = vld [vmem:[%s13739_s1 + $0x1984] ss:$16 sps:$4 sm:$0xff]  }
 0x2f8   :  { %6895 = vmatprep.subr.bf16.mxu0 %v10054_v4  ;;  %7551 = vmatprep.subr.bf16.mxu1 %v10057_v60  ;;  %v10141_v4 = vld [vmem:[%s13739_s1 + $0x198c] ss:$16 sps:$4 sm:$0xff]   ;;  %v10136_v60 = vld [vmem:[%s13739_s1 + $0x1980] ss:$16 sps:$4 sm:$0xff]  }
 0x2fb   :  { %6896 = vmatpush1.bf16.msra.mxu0 %v10052_v6  ;;  %7552 = vmatpush1.bf16.msra.mxu1 %v10055_v7  ;;  %v10139_v6 = vld [vmem:[%s13739_s1 + $0x1988] ss:$16 sps:$4 sm:$0xff]   ;;  %v10144_v7 = vld [vmem:[%s13739_s1 + $0x19a4] ss:$16 sps:$4 sm:$0xff]  }
 0x2fc   :  { %6897 = vmatprep.subr.bf16.mxu0 %v10060_v62  ;;  %7553 = vmatprep.subr.bf16.mxu1 %v10063_v10  ;;  %v10147_v62 = vld [vmem:[%s13739_s1 + $0x19ac] ss:$16 sps:$4 sm:$0xff]   ;;  %v10142_v10 = vld [vmem:[%s13739_s1 + $0x19a0] ss:$16 sps:$4 sm:$0xff]  }
 0x2ff   :  { %6898 = vmatpush1.bf16.msra.mxu0 %v10058_v12  ;;  %7554 = vmatpush1.bf16.msra.mxu1 %v10061_v0  ;;  %v10145_v12 = vld [vmem:[%s13739_s1 + $0x19a8] ss:$16 sps:$4 sm:$0xff]   ;;  %v10150_v0 = vld [vmem:[%s13739_s1 + $0x19c4] ss:$16 sps:$4 sm:$0xff]  }
 0x300   :  { %6908 = vmatprep.subr.bf16.mxu0 %v10066_v52  ;;  %7564 = vmatprep.subr.bf16.mxu1 %v10069_v15  ;;  %v10153_v52 = vld [vmem:[%s13739_s1 + $0x19cc] ss:$16 sps:$4 sm:$0xff]   ;;  %v10148_v15 = vld [vmem:[%s13739_s1 + $0x19c0] ss:$16 sps:$4 sm:$0xff]  }
 0x302   :  { %6900 = vmatmul.mubr.bf16.vlgmr.msra.gmra.mrb[0].mxu0 %v1212_v8  ;;  %7556 = vmatmul.mubr.bf16.vlgmr.msra.gmra.mrb[0].mxu1 %v1212_v8  ;;  %v10156_v8 = vld [vmem:[%s13739_s1 + $0x19e4] ss:$16 sps:$4 sm:$0xff]  }
 0x303   :  { %6909 = vmatpush1.bf16.msra.mxu0 %v10064_v17  ;;  %7565 = vmatpush1.bf16.msra.mxu1 %v10067_v18  ;;  %v10159_v17 = vld [vmem:[%s13739_s1 + $0x19ec] ss:$16 sps:$4 sm:$0xff]   ;;  %v10154_v18 = vld [vmem:[%s13739_s1 + $0x19e0] ss:$16 sps:$4 sm:$0xff]  }
 0x304   :  { %6910 = vmatprep.subr.bf16.mxu0 %v10072_v19  ;;  %7566 = vmatprep.subr.bf16.mxu1 %v10075_v9  ;;  %v10157_v19 = vld [vmem:[%s13739_s1 + $0x19e8] ss:$16 sps:$4 sm:$0xff]   ;;  %v10162_v9 = vld [vmem:[%s13739_s1 + $0x1a04] ss:$16 sps:$4 sm:$0xff]  }
 0x305   :  { %6940 = vmatprep.mubr.bf16.mxu0 %v12942_v20  ;;  %7596 = vmatprep.mubr.bf16.mxu1 %v12942_v20 }
 0x307   :  { %6911 = vmatpush1.bf16.msra.mxu0 %v10070_v22  ;;  %7567 = vmatpush1.bf16.msra.mxu1 %v10073_v23  ;;  %v10165_v22 = vld [vmem:[%s13739_s1 + $0x1a0c] ss:$16 sps:$4 sm:$0xff]   ;;  %v13128_v23 = vrot.slane %v12911_v11, %v10608_v49 }
 0x308   :  { %6912 = vmatprep.subr.bf16.mxu0 %v10078_v24  ;;  %7568 = vmatprep.subr.bf16.mxu1 %v10081_v13  ;;  %v10160_v24 = vld [vmem:[%s13739_s1 + $0x1a00] ss:$16 sps:$4 sm:$0xff]   ;;  %v10163_v13 = vld [vmem:[%s13739_s1 + $0x1a08] ss:$16 sps:$4 sm:$0xff]   ;;  %v10171_v11 = vld [vmem:[%s13739_s1 + $0x1a2c] ss:$16 sps:$4 sm:$0xff]  }
 0x30b   :  { %6913 = vmatpush1.bf16.msra.mxu0 %v10076_v27  ;;  %7569 = vmatpush1.bf16.msra.mxu1 %v10079_v28  ;;  %v10168_v27 = vld [vmem:[%s13739_s1 + $0x1a24] ss:$16 sps:$4 sm:$0xff]   ;;  %v1262_v28 = vcombine.high %v12942_v20, %v12942_v20 }
 0x30c   :  { %6914 = vmatprep.subr.bf16.mxu0 %v10084_v29  ;;  %7570 = vmatprep.subr.bf16.mxu1 %v10087_v14  ;;  %v10166_v29 = vld [vmem:[%s13739_s1 + $0x1a20] ss:$16 sps:$4 sm:$0xff]   ;;  %v10169_v14 = vld [vmem:[%s13739_s1 + $0x1a28] ss:$16 sps:$4 sm:$0xff]   ;;  %v10174_v20 = vld [vmem:[%s13739_s1 + $0x1a44] ss:$16 sps:$4 sm:$0xff]  }
 0x30f   :  { %6915 = vmatpush1.bf16.msra.mxu0 %v10082_v30  ;;  %7571 = vmatpush1.bf16.msra.mxu1 %v10085_v31  ;;  %v10177_v30 = vld [vmem:[%s13739_s1 + $0x1a4c] ss:$16 sps:$4 sm:$0xff]   ;;  %v10172_v31 = vld [vmem:[%s13739_s1 + $0x1a40] ss:$16 sps:$4 sm:$0xff]  }
 0x310   :  { %6916 = vmatprep.subr.bf16.mxu0 %v10090_v25  ;;  %7572 = vmatprep.subr.bf16.mxu1 %v10093_v32  ;;  %v10175_v25 = vld [vmem:[%s13739_s1 + $0x1a48] ss:$16 sps:$4 sm:$0xff]   ;;  %v10180_v32 = vld [vmem:[%s13739_s1 + $0x1a64] ss:$16 sps:$4 sm:$0xff]  }
 0x313   :  { %6917 = vmatpush1.bf16.msra.mxu0 %v10088_v33  ;;  %7573 = vmatpush1.bf16.msra.mxu1 %v10091_v26  ;;  %v10183_v33 = vld [vmem:[%s13739_s1 + $0x1a6c] ss:$16 sps:$4 sm:$0xff]   ;;  %v10178_v26 = vld [vmem:[%s13739_s1 + $0x1a60] ss:$16 sps:$4 sm:$0xff]  }
 0x314   :  { %6918 = vmatprep.subr.bf16.mxu0 %v10096_v36  ;;  %7574 = vmatprep.subr.bf16.mxu1 %v10099_v37  ;;  %v10181_v36 = vld [vmem:[%s13739_s1 + $0x1a68] ss:$16 sps:$4 sm:$0xff]   ;;  %v10186_v37 = vld [vmem:[%s13739_s1 + $0x1a84] ss:$16 sps:$4 sm:$0xff]  }
 0x317   :  { %6919 = vmatpush1.bf16.msra.mxu0 %v10094_v21  ;;  %7575 = vmatpush1.bf16.msra.mxu1 %v10097_v39  ;;  %v10189_v21 = vld [vmem:[%s13739_s1 + $0x1a8c] ss:$16 sps:$4 sm:$0xff]   ;;  %v10184_v39 = vld [vmem:[%s13739_s1 + $0x1a80] ss:$16 sps:$4 sm:$0xff]  }
 0x318   :  { %6920 = vmatprep.subr.bf16.mxu0 %v10102_v40  ;;  %7576 = vmatprep.subr.bf16.mxu1 %v10105_v41  ;;  %v10187_v40 = vld [vmem:[%s13739_s1 + $0x1a88] ss:$16 sps:$4 sm:$0xff]   ;;  %v10192_v41 = vld [vmem:[%s13739_s1 + $0x1aa4] ss:$16 sps:$4 sm:$0xff]  }
 0x31b   :  { %6921 = vmatpush1.bf16.msra.mxu0 %v10100_v34  ;;  %7577 = vmatpush1.bf16.msra.mxu1 %v10103_v43  ;;  %v10195_v34 = vld [vmem:[%s13739_s1 + $0x1aac] ss:$16 sps:$4 sm:$0xff]   ;;  %v10190_v43 = vld [vmem:[%s13739_s1 + $0x1aa0] ss:$16 sps:$4 sm:$0xff]  }
 0x31c   :  { %6922 = vmatprep.subr.bf16.mxu0 %v10108_v45  ;;  %7578 = vmatprep.subr.bf16.mxu1 %v10111_v46  ;;  %v10193_v45 = vld [vmem:[%s13739_s1 + $0x1aa8] ss:$16 sps:$4 sm:$0xff]   ;;  %v10198_v46 = vld [vmem:[%s13739_s1 + $0x1ac4] ss:$16 sps:$4 sm:$0xff]  }
 0x31f   :  { %6923 = vmatpush1.bf16.msra.mxu0 %v10106_v35  ;;  %7579 = vmatpush1.bf16.msra.mxu1 %v10109_v50  ;;  %v10201_v35 = vld [vmem:[%s13739_s1 + $0x1acc] ss:$16 sps:$4 sm:$0xff]   ;;  %v10196_v50 = vld [vmem:[%s13739_s1 + $0x1ac0] ss:$16 sps:$4 sm:$0xff]  }
 0x320   :  { %6924 = vmatprep.subr.bf16.mxu0 %v10114_v53  ;;  %7580 = vmatprep.subr.bf16.mxu1 %v10117_v38  ;;  %v10199_v53 = vld [vmem:[%s13739_s1 + $0x1ac8] ss:$16 sps:$4 sm:$0xff]   ;;  %v10204_v38 = vld [vmem:[%s13739_s1 + $0x1ae4] ss:$16 sps:$4 sm:$0xff]  }
 0x323   :  { %6925 = vmatpush1.bf16.msra.mxu0 %v10112_v54  ;;  %7581 = vmatpush1.bf16.msra.mxu1 %v10115_v55  ;;  %v10207_v54 = vld [vmem:[%s13739_s1 + $0x1aec] ss:$16 sps:$4 sm:$0xff]   ;;  %v10202_v55 = vld [vmem:[%s13739_s1 + $0x1ae0] ss:$16 sps:$4 sm:$0xff]  }
 0x324   :  { %6926 = vmatprep.subr.bf16.mxu0 %v10120_v56  ;;  %7582 = vmatprep.subr.bf16.mxu1 %v10123_v47  ;;  %v10205_v56 = vld [vmem:[%s13739_s1 + $0x1ae8] ss:$16 sps:$4 sm:$0xff]   ;;  %v10210_v47 = vld [vmem:[%s13739_s1 + $0x1b04] ss:$16 sps:$4 sm:$0xff]  }
 0x327   :  { %6927 = vmatpush1.bf16.msra.mxu0 %v10118_v57  ;;  %7583 = vmatpush1.bf16.msra.mxu1 %v10121_v58  ;;  %v10213_v57 = vld [vmem:[%s13739_s1 + $0x1b0c] ss:$16 sps:$4 sm:$0xff]   ;;  %v10208_v58 = vld [vmem:[%s13739_s1 + $0x1b00] ss:$16 sps:$4 sm:$0xff]  }
 0x328   :  { %6928 = vmatprep.subr.bf16.mxu0 %v10126_v59  ;;  %7584 = vmatprep.subr.bf16.mxu1 %v10129_v48  ;;  %v10211_v59 = vld [vmem:[%s13739_s1 + $0x1b08] ss:$16 sps:$4 sm:$0xff]   ;;  %v10216_v48 = vld [vmem:[%s13739_s1 + $0x1b24] ss:$16 sps:$4 sm:$0xff]  }
 0x32b   :  { %6929 = vmatpush1.bf16.msra.mxu0 %v10124_v61  ;;  %7585 = vmatpush1.bf16.msra.mxu1 %v10127_v63  ;;  %v10219_v61 = vld [vmem:[%s13739_s1 + $0x1b2c] ss:$16 sps:$4 sm:$0xff]   ;;  %v10214_v63 = vld [vmem:[%s13739_s1 + $0x1b20] ss:$16 sps:$4 sm:$0xff]  }
 0x32c   :  { %6930 = vmatprep.subr.bf16.mxu0 %v10132_v44  ;;  %7586 = vmatprep.subr.bf16.mxu1 %v10135_v1  ;;  %v10217_v44 = vld [vmem:[%s13739_s1 + $0x1b28] ss:$16 sps:$4 sm:$0xff]   ;;  %v10222_v1 = vld [vmem:[%s13739_s1 + $0x1b44] ss:$16 sps:$4 sm:$0xff]  }
 0x32f   :  { %6931 = vmatpush1.bf16.msra.mxu0 %v10130_v51  ;;  %7587 = vmatpush1.bf16.msra.mxu1 %v10133_v2  ;;  %v10225_v51 = vld [vmem:[%s13739_s1 + $0x1b4c] ss:$16 sps:$4 sm:$0xff]   ;;  %v10220_v2 = vld [vmem:[%s13739_s1 + $0x1b40] ss:$16 sps:$4 sm:$0xff]  }
 0x330   :  { %6932 = vmatprep.subr.bf16.mxu0 %v10138_v3  ;;  %7588 = vmatprep.subr.bf16.mxu1 %v10141_v4  ;;  %v10223_v3 = vld [vmem:[%s13739_s1 + $0x1b48] ss:$16 sps:$4 sm:$0xff]   ;;  %v10228_v4 = vld [vmem:[%s13739_s1 + $0x1b64] ss:$16 sps:$4 sm:$0xff]  }
 0x333   :  { %6933 = vmatpush1.bf16.msra.mxu0 %v10136_v60  ;;  %7589 = vmatpush1.bf16.msra.mxu1 %v10139_v6  ;;  %v10231_v60 = vld [vmem:[%s13739_s1 + $0x1b6c] ss:$16 sps:$4 sm:$0xff]   ;;  %v10226_v6 = vld [vmem:[%s13739_s1 + $0x1b60] ss:$16 sps:$4 sm:$0xff]  }
 0x334   :  { %6934 = vmatprep.subr.bf16.mxu0 %v10144_v7  ;;  %7590 = vmatprep.subr.bf16.mxu1 %v10147_v62  ;;  %v10229_v7 = vld [vmem:[%s13739_s1 + $0x1b68] ss:$16 sps:$4 sm:$0xff]   ;;  %v10234_v62 = vld [vmem:[%s13739_s1 + $0x1b84] ss:$16 sps:$4 sm:$0xff]  }
 0x337   :  { %6935 = vmatpush1.bf16.msra.mxu0 %v10142_v10  ;;  %7591 = vmatpush1.bf16.msra.mxu1 %v10145_v12  ;;  %v10237_v10 = vld [vmem:[%s13739_s1 + $0x1b8c] ss:$16 sps:$4 sm:$0xff]   ;;  %v10232_v12 = vld [vmem:[%s13739_s1 + $0x1b80] ss:$16 sps:$4 sm:$0xff]  }
 0x338   :  { %6936 = vmatprep.subr.bf16.mxu0 %v10150_v0  ;;  %7592 = vmatprep.subr.bf16.mxu1 %v10153_v52  ;;  %v10235_v0 = vld [vmem:[%s13739_s1 + $0x1b88] ss:$16 sps:$4 sm:$0xff]   ;;  %v10240_v52 = vld [vmem:[%s13739_s1 + $0x1ba4] ss:$16 sps:$4 sm:$0xff]  }
 0x33b   :  { %6937 = vmatpush1.bf16.msra.mxu0 %v10148_v15  ;;  %7593 = vmatpush1.bf16.msra.mxu1 %v10151_v16  ;;  %v10243_v15 = vld [vmem:[%s13739_s1 + $0x1bac] ss:$16 sps:$4 sm:$0xff]   ;;  %v10238_v16 = vld [vmem:[%s13739_s1 + $0x1ba0] ss:$16 sps:$4 sm:$0xff]  }
 0x33c   :  { %6938 = vmatprep.subr.bf16.mxu0 %v10156_v8  ;;  %7594 = vmatprep.subr.bf16.mxu1 %v10159_v17  ;;  %v10241_v8 = vld [vmem:[%s13739_s1 + $0x1ba8] ss:$16 sps:$4 sm:$0xff]   ;;  %v10246_v17 = vld [vmem:[%s13739_s1 + $0x1bc4] ss:$16 sps:$4 sm:$0xff]  }
 0x33f   :  { %6939 = vmatpush1.bf16.msra.mxu0 %v10154_v18  ;;  %7595 = vmatpush1.bf16.msra.mxu1 %v10157_v19  ;;  %v10249_v18 = vld [vmem:[%s13739_s1 + $0x1bcc] ss:$16 sps:$4 sm:$0xff]   ;;  %v1215_v19 = vcombine.high %v12895_v5, %v12895_v5 }
 0x340   :  { %6949 = vmatprep.subr.bf16.mxu0 %v10162_v9  ;;  %7605 = vmatprep.subr.bf16.mxu1 %v10165_v22  ;;  %v10244_v9 = vld [vmem:[%s13739_s1 + $0x1bc0] ss:$16 sps:$4 sm:$0xff]   ;;  %v10247_v22 = vld [vmem:[%s13739_s1 + $0x1bc8] ss:$16 sps:$4 sm:$0xff]   ;;  %v10255_v5 = vld [vmem:[%s13739_s1 + $0x1bec] ss:$16 sps:$4 sm:$0xff]  }
 0x342   :  { %6941 = vmatmul.mubr.bf16.vlgmr.msra.gmra.mrb[0].mxu0 %v13128_v23  ;;  %7597 = vmatmul.mubr.bf16.vlgmr.msra.gmra.mrb[0].mxu1 %v13128_v23 }
 0x343   :  { %6950 = vmatpush1.bf16.msra.mxu0 %v10160_v24  ;;  %7606 = vmatpush1.bf16.msra.mxu1 %v10163_v13  ;;  %v10252_v24 = vld [vmem:[%s13739_s1 + $0x1be4] ss:$16 sps:$4 sm:$0xff]   ;;  %v13317_v13 = vrot.slane %v1215_v19, %v10608_v49  ;;  %v10331_v19 = vld [vmem:[%s13739_s1 + $0x1d88] ss:$16 sps:$4 sm:$0xff]  }
 0x344   :  { %6951 = vmatprep.subr.bf16.mxu0 %v10168_v27  ;;  %7607 = vmatprep.subr.bf16.mxu1 %v10171_v11  ;;  %v10250_v27 = vld [vmem:[%s13739_s1 + $0x1be0] ss:$16 sps:$4 sm:$0xff]   ;;  %v10253_v11 = vld [vmem:[%s13739_s1 + $0x1be8] ss:$16 sps:$4 sm:$0xff]  }
 0x345   :  { %6981 = vmatprep.mubr.bf16.mxu0 %v1262_v28  ;;  %7637 = vmatprep.mubr.bf16.mxu1 %v1262_v28  ;;  %v10258_v28 = vld [vmem:[%s13739_s1 + $0x1c04] ss:$16 sps:$4 sm:$0xff]  }
 0x347   :  { %6952 = vmatpush1.bf16.msra.mxu0 %v10166_v29  ;;  %7608 = vmatpush1.bf16.msra.mxu1 %v10169_v14  ;;  %v10261_v29 = vld [vmem:[%s13739_s1 + $0x1c0c] ss:$16 sps:$4 sm:$0xff]   ;;  %v1231_v14 = vcombine.high %v13317_v13, %v13317_v13 }
 0x348   :  { %6953 = vmatprep.subr.bf16.mxu0 %v10174_v20  ;;  %7609 = vmatprep.subr.bf16.mxu1 %v10177_v30  ;;  %v1260_v20 = vcombine.high %v13128_v23, %v13128_v23  ;;  %v10256_v30 = vld [vmem:[%s13739_s1 + $0x1c00] ss:$16 sps:$4 sm:$0xff]   ;;  %v10267_v23 = vld [vmem:[%s13739_s1 + $0x1c2c] ss:$16 sps:$4 sm:$0xff]  }
 0x34b   :  { %6954 = vmatpush1.bf16.msra.mxu0 %v10172_v31  ;;  %7610 = vmatpush1.bf16.msra.mxu1 %v10175_v25  ;;  %v10259_v31 = vld [vmem:[%s13739_s1 + $0x1c08] ss:$16 sps:$4 sm:$0xff]   ;;  %v10264_v25 = vld [vmem:[%s13739_s1 + $0x1c24] ss:$16 sps:$4 sm:$0xff]  }
 0x34c   :  { %6955 = vmatprep.subr.bf16.mxu0 %v10180_v32  ;;  %7611 = vmatprep.subr.bf16.mxu1 %v10183_v33  ;;  %v13348_v32 = vrot.slane %v1231_v14, %v10608_v49  ;;  %v10262_v33 = vld [vmem:[%s13739_s1 + $0x1c20] ss:$16 sps:$4 sm:$0xff]   ;;  %v10348_v14 = vld [vmem:[%s13739_s1 + $0x1de4] ss:$16 sps:$4 sm:$0xff]  }
 0x34f   :  { %6956 = vmatpush1.bf16.msra.mxu0 %v10178_v26  ;;  %7612 = vmatpush1.bf16.msra.mxu1 %v10181_v36  ;;  %v10265_v26 = vld [vmem:[%s13739_s1 + $0x1c28] ss:$16 sps:$4 sm:$0xff]   ;;  %v10270_v36 = vld [vmem:[%s13739_s1 + $0x1c44] ss:$16 sps:$4 sm:$0xff]  }
 0x350   :  { %6957 = vmatprep.subr.bf16.mxu0 %v10186_v37  ;;  %7613 = vmatprep.subr.bf16.mxu1 %v10189_v21  ;;  %v10273_v37 = vld [vmem:[%s13739_s1 + $0x1c4c] ss:$16 sps:$4 sm:$0xff]   ;;  %v10268_v21 = vld [vmem:[%s13739_s1 + $0x1c40] ss:$16 sps:$4 sm:$0xff]  }
 0x353   :  { %6958 = vmatpush1.bf16.msra.mxu0 %v10184_v39  ;;  %7614 = vmatpush1.bf16.msra.mxu1 %v10187_v40  ;;  %v10271_v39 = vld [vmem:[%s13739_s1 + $0x1c48] ss:$16 sps:$4 sm:$0xff]   ;;  %v10276_v40 = vld [vmem:[%s13739_s1 + $0x1c64] ss:$16 sps:$4 sm:$0xff]  }
 0x354   :  { %6959 = vmatprep.subr.bf16.mxu0 %v10192_v41  ;;  %7615 = vmatprep.subr.bf16.mxu1 %v10195_v34  ;;  %v10279_v41 = vld [vmem:[%s13739_s1 + $0x1c6c] ss:$16 sps:$4 sm:$0xff]   ;;  %v10274_v34 = vld [vmem:[%s13739_s1 + $0x1c60] ss:$16 sps:$4 sm:$0xff]  }
 0x357   :  { %6960 = vmatpush1.bf16.msra.mxu0 %v10190_v43  ;;  %7616 = vmatpush1.bf16.msra.mxu1 %v10193_v45  ;;  %v10277_v43 = vld [vmem:[%s13739_s1 + $0x1c68] ss:$16 sps:$4 sm:$0xff]   ;;  %v10282_v45 = vld [vmem:[%s13739_s1 + $0x1c84] ss:$16 sps:$4 sm:$0xff]  }
 0x358   :  { %6961 = vmatprep.subr.bf16.mxu0 %v10198_v46  ;;  %7617 = vmatprep.subr.bf16.mxu1 %v10201_v35  ;;  %v10285_v46 = vld [vmem:[%s13739_s1 + $0x1c8c] ss:$16 sps:$4 sm:$0xff]   ;;  %v10280_v35 = vld [vmem:[%s13739_s1 + $0x1c80] ss:$16 sps:$4 sm:$0xff]  }
 0x35b   :  { %6962 = vmatpush1.bf16.msra.mxu0 %v10196_v50  ;;  %7618 = vmatpush1.bf16.msra.mxu1 %v10199_v53  ;;  %v10283_v50 = vld [vmem:[%s13739_s1 + $0x1c88] ss:$16 sps:$4 sm:$0xff]   ;;  %v10288_v53 = vld [vmem:[%s13739_s1 + $0x1ca4] ss:$16 sps:$4 sm:$0xff]  }
 0x35c   :  { %6963 = vmatprep.subr.bf16.mxu0 %v10204_v38  ;;  %7619 = vmatprep.subr.bf16.mxu1 %v10207_v54  ;;  %v10291_v38 = vld [vmem:[%s13739_s1 + $0x1cac] ss:$16 sps:$4 sm:$0xff]   ;;  %v10286_v54 = vld [vmem:[%s13739_s1 + $0x1ca0] ss:$16 sps:$4 sm:$0xff]  }
 0x35f   :  { %6964 = vmatpush1.bf16.msra.mxu0 %v10202_v55  ;;  %7620 = vmatpush1.bf16.msra.mxu1 %v10205_v56  ;;  %v10289_v55 = vld [vmem:[%s13739_s1 + $0x1ca8] ss:$16 sps:$4 sm:$0xff]   ;;  %v10294_v56 = vld [vmem:[%s13739_s1 + $0x1cc4] ss:$16 sps:$4 sm:$0xff]  }
 0x360   :  { %6965 = vmatprep.subr.bf16.mxu0 %v10210_v47  ;;  %7621 = vmatprep.subr.bf16.mxu1 %v10213_v57  ;;  %v10297_v47 = vld [vmem:[%s13739_s1 + $0x1ccc] ss:$16 sps:$4 sm:$0xff]   ;;  %v10292_v57 = vld [vmem:[%s13739_s1 + $0x1cc0] ss:$16 sps:$4 sm:$0xff]  }
 0x363   :  { %6966 = vmatpush1.bf16.msra.mxu0 %v10208_v58  ;;  %7622 = vmatpush1.bf16.msra.mxu1 %v10211_v59  ;;  %v10295_v58 = vld [vmem:[%s13739_s1 + $0x1cc8] ss:$16 sps:$4 sm:$0xff]   ;;  %v10300_v59 = vld [vmem:[%s13739_s1 + $0x1ce4] ss:$16 sps:$4 sm:$0xff]  }
 0x364   :  { %6967 = vmatprep.subr.bf16.mxu0 %v10216_v48  ;;  %7623 = vmatprep.subr.bf16.mxu1 %v10219_v61  ;;  %v10303_v48 = vld [vmem:[%s13739_s1 + $0x1cec] ss:$16 sps:$4 sm:$0xff]   ;;  %v10298_v61 = vld [vmem:[%s13739_s1 + $0x1ce0] ss:$16 sps:$4 sm:$0xff]  }
 0x367   :  { %6968 = vmatpush1.bf16.msra.mxu0 %v10214_v63  ;;  %7624 = vmatpush1.bf16.msra.mxu1 %v10217_v44  ;;  %v10301_v63 = vld [vmem:[%s13739_s1 + $0x1ce8] ss:$16 sps:$4 sm:$0xff]   ;;  %v10306_v44 = vld [vmem:[%s13739_s1 + $0x1d04] ss:$16 sps:$4 sm:$0xff]  }
 0x368   :  { %6969 = vmatprep.subr.bf16.mxu0 %v10222_v1  ;;  %7625 = vmatprep.subr.bf16.mxu1 %v10225_v51  ;;  %v10309_v1 = vld [vmem:[%s13739_s1 + $0x1d0c] ss:$16 sps:$4 sm:$0xff]   ;;  %v10304_v51 = vld [vmem:[%s13739_s1 + $0x1d00] ss:$16 sps:$4 sm:$0xff]  }
 0x36b   :  { %6970 = vmatpush1.bf16.msra.mxu0 %v10220_v2  ;;  %7626 = vmatpush1.bf16.msra.mxu1 %v10223_v3  ;;  %v10307_v2 = vld [vmem:[%s13739_s1 + $0x1d08] ss:$16 sps:$4 sm:$0xff]   ;;  %v10312_v3 = vld [vmem:[%s13739_s1 + $0x1d24] ss:$16 sps:$4 sm:$0xff]  }
 0x36c   :  { %6971 = vmatprep.subr.bf16.mxu0 %v10228_v4  ;;  %7627 = vmatprep.subr.bf16.mxu1 %v10231_v60  ;;  %v10315_v4 = vld [vmem:[%s13739_s1 + $0x1d2c] ss:$16 sps:$4 sm:$0xff]   ;;  %v10310_v60 = vld [vmem:[%s13739_s1 + $0x1d20] ss:$16 sps:$4 sm:$0xff]  }
 0x36f   :  { %6972 = vmatpush1.bf16.msra.mxu0 %v10226_v6  ;;  %7628 = vmatpush1.bf16.msra.mxu1 %v10229_v7  ;;  %v10313_v6 = vld [vmem:[%s13739_s1 + $0x1d28] ss:$16 sps:$4 sm:$0xff]   ;;  %v10318_v7 = vld [vmem:[%s13739_s1 + $0x1d44] ss:$16 sps:$4 sm:$0xff]  }
 0x370   :  { %6973 = vmatprep.subr.bf16.mxu0 %v10234_v62  ;;  %7629 = vmatprep.subr.bf16.mxu1 %v10237_v10  ;;  %v10321_v62 = vld [vmem:[%s13739_s1 + $0x1d4c] ss:$16 sps:$4 sm:$0xff]   ;;  %v10316_v10 = vld [vmem:[%s13739_s1 + $0x1d40] ss:$16 sps:$4 sm:$0xff]  }
 0x373   :  { %6974 = vmatpush1.bf16.msra.mxu0 %v10232_v12  ;;  %7630 = vmatpush1.bf16.msra.mxu1 %v10235_v0  ;;  %v10319_v12 = vld [vmem:[%s13739_s1 + $0x1d48] ss:$16 sps:$4 sm:$0xff]   ;;  %v10324_v0 = vld [vmem:[%s13739_s1 + $0x1d64] ss:$16 sps:$4 sm:$0xff]  }
 0x374   :  { %6975 = vmatprep.subr.bf16.mxu0 %v10240_v52  ;;  %7631 = vmatprep.subr.bf16.mxu1 %v10243_v15  ;;  %v10327_v52 = vld [vmem:[%s13739_s1 + $0x1d6c] ss:$16 sps:$4 sm:$0xff]   ;;  %v10322_v15 = vld [vmem:[%s13739_s1 + $0x1d60] ss:$16 sps:$4 sm:$0xff]  }
 0x377   :  { %6976 = vmatpush1.bf16.msra.mxu0 %v10238_v16  ;;  %7632 = vmatpush1.bf16.msra.mxu1 %v10241_v8  ;;  %v10325_v16 = vld [vmem:[%s13739_s1 + $0x1d68] ss:$16 sps:$4 sm:$0xff]   ;;  %v10330_v8 = vld [vmem:[%s13739_s1 + $0x1d84] ss:$16 sps:$4 sm:$0xff]  }
 0x378   :  { %6977 = vmatprep.subr.bf16.mxu0 %v10246_v17  ;;  %7633 = vmatprep.subr.bf16.mxu1 %v10249_v18  ;;  %v10333_v17 = vld [vmem:[%s13739_s1 + $0x1d8c] ss:$16 sps:$4 sm:$0xff]   ;;  %v10328_v18 = vld [vmem:[%s13739_s1 + $0x1d80] ss:$16 sps:$4 sm:$0xff]  }
 0x37b   :  { %6978 = vmatpush1.bf16.msra.mxu0 %v10244_v9  ;;  %7634 = vmatpush1.bf16.msra.mxu1 %v10247_v22  ;;  %v10336_v9 = vld [vmem:[%s13739_s1 + $0x1da4] ss:$16 sps:$4 sm:$0xff]   ;;  %v10339_v22 = vld [vmem:[%s13739_s1 + $0x1dac] ss:$16 sps:$4 sm:$0xff]  }
 0x37c   :  { %6979 = vmatprep.subr.bf16.mxu0 %v10252_v24  ;;  %7635 = vmatprep.subr.bf16.mxu1 %v10255_v5  ;;  %v10334_v24 = vld [vmem:[%s13739_s1 + $0x1da0] ss:$16 sps:$4 sm:$0xff]   ;;  %v10337_v5 = vld [vmem:[%s13739_s1 + $0x1da8] ss:$16 sps:$4 sm:$0xff]  }
 0x37f   :  { %6980 = vmatpush1.bf16.msra.mxu0 %v10250_v27  ;;  %7636 = vmatpush1.bf16.msra.mxu1 %v10253_v11  ;;  %v10342_v27 = vld [vmem:[%s13739_s1 + $0x1dc4] ss:$16 sps:$4 sm:$0xff]   ;;  %v10345_v11 = vld [vmem:[%s13739_s1 + $0x1dcc] ss:$16 sps:$4 sm:$0xff]  }
 0x380   :  { %6990 = vmatprep.subr.bf16.mxu0 %v10258_v28  ;;  %7646 = vmatprep.subr.bf16.mxu1 %v10261_v29  ;;  %v10340_v28 = vld [vmem:[%s13739_s1 + $0x1dc0] ss:$16 sps:$4 sm:$0xff]   ;;  %v10343_v29 = vld [vmem:[%s13739_s1 + $0x1dc8] ss:$16 sps:$4 sm:$0xff]  }
 0x382   :  { %6982 = vmatmul.mubr.bf16.vlgmr.msra.gmra.mrb[0].mxu0 %v1260_v20  ;;  %7638 = vmatmul.mubr.bf16.vlgmr.msra.gmra.mrb[0].mxu1 %v1260_v20  ;;  %v10351_v20 = vld [vmem:[%s13739_s1 + $0x1dec] ss:$16 sps:$4 sm:$0xff]  }
 0x383   :  { %6991 = vmatpush1.bf16.msra.mxu0 %v10256_v30  ;;  %7647 = vmatpush1.bf16.msra.mxu1 %v10259_v31  ;;  %v10346_v30 = vld [vmem:[%s13739_s1 + $0x1de0] ss:$16 sps:$4 sm:$0xff]   ;;  %v10349_v31 = vld [vmem:[%s13739_s1 + $0x1de8] ss:$16 sps:$4 sm:$0xff]  }
 0x384   :  { %6992 = vmatprep.subr.bf16.mxu0 %v10264_v25  ;;  %7648 = vmatprep.subr.bf16.mxu1 %v10267_v23  ;;  %v10355_v25 = vld [vmem:[%s13739_s1 + $0x1e04] ss:$16 sps:$4 sm:$0xff]   ;;  %v10358_v23 = vld [vmem:[%s13739_s1 + $0x1e0c] ss:$16 sps:$4 sm:$0xff]  }
 0x385   :  { %7022 = vmatprep.mubr.bf16.mxu0 %v13348_v32  ;;  %7678 = vmatprep.mubr.bf16.mxu1 %v13348_v32 }
 0x387   :  { %6993 = vmatpush1.bf16.msra.mxu0 %v10262_v33  ;;  %7649 = vmatpush1.bf16.msra.mxu1 %v10265_v26  ;;  %v13534_v33 = vrot.slane %v13317_v13, %v10608_v49  ;;  %v10353_v26 = vld [vmem:[%s13739_s1 + $0x1e00] ss:$16 sps:$4 sm:$0xff]   ;;  %v10364_v49 = vld [vmem:[%s13739_s1 + $0x1e2c] ss:$16 sps:$4 sm:$0xff]   ;;  %v1263_v13 = vcombine.high %v13348_v32, %v13348_v32  ;;  %v10367_v32 = vld [vmem:[%s13739_s1 + $0x1e44] ss:$16 sps:$4 sm:$0xff]  }
 0x388   :  { %6994 = vmatprep.subr.bf16.mxu0 %v10270_v36  ;;  %7650 = vmatprep.subr.bf16.mxu1 %v10273_v37  ;;  %v10356_v36 = vld [vmem:[%s13739_s1 + $0x1e08] ss:$16 sps:$4 sm:$0xff]   ;;  %v10361_v37 = vld [vmem:[%s13739_s1 + $0x1e24] ss:$16 sps:$4 sm:$0xff]  }
 0x38b   :  { %6995 = vmatpush1.bf16.msra.mxu0 %v10268_v21  ;;  %7651 = vmatpush1.bf16.msra.mxu1 %v10271_v39  ;;  %v10359_v21 = vld [vmem:[%s13739_s1 + $0x1e20] ss:$16 sps:$4 sm:$0xff]   ;;  %v10362_v39 = vld [vmem:[%s13739_s1 + $0x1e28] ss:$16 sps:$4 sm:$0xff]  }
 0x38c   :  { %6996 = vmatprep.subr.bf16.mxu0 %v10276_v40  ;;  %7652 = vmatprep.subr.bf16.mxu1 %v10279_v41  ;;  %v10370_v40 = vld [vmem:[%s13739_s1 + $0x1e4c] ss:$16 sps:$4 sm:$0xff]   ;;  %v10365_v41 = vld [vmem:[%s13739_s1 + $0x1e40] ss:$16 sps:$4 sm:$0xff]  }
 0x38f   :  { %6997 = vmatpush1.bf16.msra.mxu0 %v10274_v34  ;;  %7653 = vmatpush1.bf16.msra.mxu1 %v10277_v43  ;;  %v10368_v34 = vld [vmem:[%s13739_s1 + $0x1e48] ss:$16 sps:$4 sm:$0xff]   ;;  %v10373_v43 = vld [vmem:[%s13739_s1 + $0x1e64] ss:$16 sps:$4 sm:$0xff]  }
 0x390   :  { %6998 = vmatprep.subr.bf16.mxu0 %v10282_v45  ;;  %7654 = vmatprep.subr.bf16.mxu1 %v10285_v46  ;;  %v10376_v45 = vld [vmem:[%s13739_s1 + $0x1e6c] ss:$16 sps:$4 sm:$0xff]   ;;  %v10371_v46 = vld [vmem:[%s13739_s1 + $0x1e60] ss:$16 sps:$4 sm:$0xff]  }
 0x393   :  { %6999 = vmatpush1.bf16.msra.mxu0 %v10280_v35  ;;  %7655 = vmatpush1.bf16.msra.mxu1 %v10283_v50  ;;  %v10374_v35 = vld [vmem:[%s13739_s1 + $0x1e68] ss:$16 sps:$4 sm:$0xff]   ;;  %v10379_v50 = vld [vmem:[%s13739_s1 + $0x1e84] ss:$16 sps:$4 sm:$0xff]  }
 0x394   :  { %7000 = vmatprep.subr.bf16.mxu0 %v10288_v53  ;;  %7656 = vmatprep.subr.bf16.mxu1 %v10291_v38  ;;  %v10382_v53 = vld [vmem:[%s13739_s1 + $0x1e8c] ss:$16 sps:$4 sm:$0xff]   ;;  %v10377_v38 = vld [vmem:[%s13739_s1 + $0x1e80] ss:$16 sps:$4 sm:$0xff]  }
 0x397   :  { %7001 = vmatpush1.bf16.msra.mxu0 %v10286_v54  ;;  %7657 = vmatpush1.bf16.msra.mxu1 %v10289_v55  ;;  %v10380_v54 = vld [vmem:[%s13739_s1 + $0x1e88] ss:$16 sps:$4 sm:$0xff]   ;;  %v10385_v55 = vld [vmem:[%s13739_s1 + $0x1ea4] ss:$16 sps:$4 sm:$0xff]  }
 0x398   :  { %7002 = vmatprep.subr.bf16.mxu0 %v10294_v56  ;;  %7658 = vmatprep.subr.bf16.mxu1 %v10297_v47  ;;  %v10388_v56 = vld [vmem:[%s13739_s1 + $0x1eac] ss:$16 sps:$4 sm:$0xff]   ;;  %v10383_v47 = vld [vmem:[%s13739_s1 + $0x1ea0] ss:$16 sps:$4 sm:$0xff]  }
 0x39b   :  { %7003 = vmatpush1.bf16.msra.mxu0 %v10292_v57  ;;  %7659 = vmatpush1.bf16.msra.mxu1 %v10295_v58  ;;  %v10386_v57 = vld [vmem:[%s13739_s1 + $0x1ea8] ss:$16 sps:$4 sm:$0xff]   ;;  %v10391_v58 = vld [vmem:[%s13739_s1 + $0x1ec4] ss:$16 sps:$4 sm:$0xff]  }
 0x39c   :  { %7004 = vmatprep.subr.bf16.mxu0 %v10300_v59  ;;  %7660 = vmatprep.subr.bf16.mxu1 %v10303_v48  ;;  %v10394_v59 = vld [vmem:[%s13739_s1 + $0x1ecc] ss:$16 sps:$4 sm:$0xff]   ;;  %v10389_v48 = vld [vmem:[%s13739_s1 + $0x1ec0] ss:$16 sps:$4 sm:$0xff]  }
 0x39f   :  { %7005 = vmatpush1.bf16.msra.mxu0 %v10298_v61  ;;  %7661 = vmatpush1.bf16.msra.mxu1 %v10301_v63  ;;  %v10392_v61 = vld [vmem:[%s13739_s1 + $0x1ec8] ss:$16 sps:$4 sm:$0xff]   ;;  %v10397_v63 = vld [vmem:[%s13739_s1 + $0x1ee4] ss:$16 sps:$4 sm:$0xff]  }
 0x3a0   :  { %7006 = vmatprep.subr.bf16.mxu0 %v10306_v44  ;;  %7662 = vmatprep.subr.bf16.mxu1 %v10309_v1  ;;  %v10400_v44 = vld [vmem:[%s13739_s1 + $0x1eec] ss:$16 sps:$4 sm:$0xff]   ;;  %v10395_v1 = vld [vmem:[%s13739_s1 + $0x1ee0] ss:$16 sps:$4 sm:$0xff]  }
 0x3a3   :  { %7007 = vmatpush1.bf16.msra.mxu0 %v10304_v51  ;;  %7663 = vmatpush1.bf16.msra.mxu1 %v10307_v2  ;;  %v10398_v51 = vld [vmem:[%s13739_s1 + $0x1ee8] ss:$16 sps:$4 sm:$0xff]   ;;  %v10403_v2 = vld [vmem:[%s13739_s1 + $0x1f04] ss:$16 sps:$4 sm:$0xff]  }
 0x3a4   :  { %7008 = vmatprep.subr.bf16.mxu0 %v10312_v3  ;;  %7664 = vmatprep.subr.bf16.mxu1 %v10315_v4  ;;  %v10406_v3 = vld [vmem:[%s13739_s1 + $0x1f0c] ss:$16 sps:$4 sm:$0xff]   ;;  %v10401_v4 = vld [vmem:[%s13739_s1 + $0x1f00] ss:$16 sps:$4 sm:$0xff]  }
 0x3a7   :  { %7009 = vmatpush1.bf16.msra.mxu0 %v10310_v60  ;;  %7665 = vmatpush1.bf16.msra.mxu1 %v10313_v6  ;;  %v10404_v60 = vld [vmem:[%s13739_s1 + $0x1f08] ss:$16 sps:$4 sm:$0xff]   ;;  %v10409_v6 = vld [vmem:[%s13739_s1 + $0x1f24] ss:$16 sps:$4 sm:$0xff]  }
 0x3a8   :  { %7010 = vmatprep.subr.bf16.mxu0 %v10318_v7  ;;  %7666 = vmatprep.subr.bf16.mxu1 %v10321_v62  ;;  %v10412_v7 = vld [vmem:[%s13739_s1 + $0x1f2c] ss:$16 sps:$4 sm:$0xff]   ;;  %v10407_v62 = vld [vmem:[%s13739_s1 + $0x1f20] ss:$16 sps:$4 sm:$0xff]  }
 0x3ab   :  { %7011 = vmatpush1.bf16.msra.mxu0 %v10316_v10  ;;  %7667 = vmatpush1.bf16.msra.mxu1 %v10319_v12  ;;  %v10410_v10 = vld [vmem:[%s13739_s1 + $0x1f28] ss:$16 sps:$4 sm:$0xff]   ;;  %v10415_v12 = vld [vmem:[%s13739_s1 + $0x1f44] ss:$16 sps:$4 sm:$0xff]  }
 0x3ac   :  { %7012 = vmatprep.subr.bf16.mxu0 %v10324_v0  ;;  %7668 = vmatprep.subr.bf16.mxu1 %v10327_v52  ;;  %v10418_v0 = vld [vmem:[%s13739_s1 + $0x1f4c] ss:$16 sps:$4 sm:$0xff]   ;;  %v10413_v52 = vld [vmem:[%s13739_s1 + $0x1f40] ss:$16 sps:$4 sm:$0xff]  }
 0x3af   :  { %7013 = vmatpush1.bf16.msra.mxu0 %v10322_v15  ;;  %7669 = vmatpush1.bf16.msra.mxu1 %v10325_v16  ;;  %v10416_v15 = vld [vmem:[%s13739_s1 + $0x1f48] ss:$16 sps:$4 sm:$0xff]   ;;  %v10421_v16 = vld [vmem:[%s13739_s1 + $0x1f64] ss:$16 sps:$4 sm:$0xff]  }
 0x3b0   :  { %7014 = vmatprep.subr.bf16.mxu0 %v10330_v8  ;;  %7670 = vmatprep.subr.bf16.mxu1 %v10333_v17  ;;  %v10424_v8 = vld [vmem:[%s13739_s1 + $0x1f6c] ss:$16 sps:$4 sm:$0xff]   ;;  %v10419_v17 = vld [vmem:[%s13739_s1 + $0x1f60] ss:$16 sps:$4 sm:$0xff]  }
 0x3b3   :  { %7015 = vmatpush1.bf16.msra.mxu0 %v10328_v18  ;;  %7671 = vmatpush1.bf16.msra.mxu1 %v10331_v19  ;;  %v10422_v18 = vld [vmem:[%s13739_s1 + $0x1f68] ss:$16 sps:$4 sm:$0xff]   ;;  %v10427_v19 = vld [vmem:[%s13739_s1 + $0x1f84] ss:$16 sps:$4 sm:$0xff]  }
 0x3b4   :  { %7016 = vmatprep.subr.bf16.mxu0 %v10336_v9  ;;  %7672 = vmatprep.subr.bf16.mxu1 %v10339_v22  ;;  %v10430_v9 = vld [vmem:[%s13739_s1 + $0x1f8c] ss:$16 sps:$4 sm:$0xff]   ;;  %v10425_v22 = vld [vmem:[%s13739_s1 + $0x1f80] ss:$16 sps:$4 sm:$0xff]  }
 0x3b7   :  { %7017 = vmatpush1.bf16.msra.mxu0 %v10334_v24  ;;  %7673 = vmatpush1.bf16.msra.mxu1 %v10337_v5  ;;  %v10428_v24 = vld [vmem:[%s13739_s1 + $0x1f88] ss:$16 sps:$4 sm:$0xff]   ;;  %v10433_v5 = vld [vmem:[%s13739_s1 + $0x1fa4] ss:$16 sps:$4 sm:$0xff]  }
 0x3b8   :  { %7018 = vmatprep.subr.bf16.mxu0 %v10342_v27  ;;  %7674 = vmatprep.subr.bf16.mxu1 %v10345_v11  ;;  %v10436_v27 = vld [vmem:[%s13739_s1 + $0x1fac] ss:$16 sps:$4 sm:$0xff]   ;;  %v10431_v11 = vld [vmem:[%s13739_s1 + $0x1fa0] ss:$16 sps:$4 sm:$0xff]  }
 0x3bb   :  { %7019 = vmatpush1.bf16.msra.mxu0 %v10340_v28  ;;  %7675 = vmatpush1.bf16.msra.mxu1 %v10343_v29  ;;  %v10434_v28 = vld [vmem:[%s13739_s1 + $0x1fa8] ss:$16 sps:$4 sm:$0xff]   ;;  %v10439_v29 = vld [vmem:[%s13739_s1 + $0x1fc4] ss:$16 sps:$4 sm:$0xff]  }
 0x3bc   :  { %7020 = vmatprep.subr.bf16.mxu0 %v10348_v14  ;;  %7676 = vmatprep.subr.bf16.mxu1 %v10351_v20  ;;  %v10442_v14 = vld [vmem:[%s13739_s1 + $0x1fcc] ss:$16 sps:$4 sm:$0xff]   ;;  %v10437_v20 = vld [vmem:[%s13739_s1 + $0x1fc0] ss:$16 sps:$4 sm:$0xff]  }
 0x3bf   :  { %7021 = vmatpush1.bf16.msra.mxu0 %v10346_v30  ;;  %7677 = vmatpush1.bf16.msra.mxu1 %v10349_v31  ;;  %v10440_v30 = vld [vmem:[%s13739_s1 + $0x1fc8] ss:$16 sps:$4 sm:$0xff]   ;;  %v10445_v31 = vld [vmem:[%s13739_s1 + $0x1fe4] ss:$16 sps:$4 sm:$0xff]  }
 0x3c0   :  { %7031 = vmatprep.subr.bf16.mxu0 %v10355_v25  ;;  %7687 = vmatprep.subr.bf16.mxu1 %v10358_v23  ;;  %v10448_v25 = vld [vmem:[%s13739_s1 + $0x1fec] ss:$16 sps:$4 sm:$0xff]   ;;  %v10443_v23 = vld [vmem:[%s13739_s1 + $0x1fe0] ss:$16 sps:$4 sm:$0xff]  }
 0x3c2   :  { %7023 = vmatmul.mubr.bf16.vlgmr.msra.gmra.mrb[0].mxu0 %v13534_v33  ;;  %7679 = vmatmul.mubr.bf16.vlgmr.msra.gmra.mrb[0].mxu1 %v13534_v33 }
 0x3c3   :  { %7032 = vmatpush1.bf16.msra.mxu0 %v10353_v26  ;;  %7688 = vmatpush1.bf16.msra.mxu1 %v10356_v36  ;;  %v10446_v26 = vld [vmem:[%s13739_s1 + $0x1fe8] ss:$16 sps:$4 sm:$0xff]   ;;  %v1261_v36 = vcombine.high %v13534_v33, %v13534_v33 }
 0x3c4   :  { %7033 = vmatprep.subr.bf16.mxu0 %v10361_v37  ;;  %7689 = vmatprep.subr.bf16.mxu1 %v10364_v49  ;;  %v1046_v37 = vsub.s32 0, %v10590_v42  ;;  %v1054_v49 = vsub.s32 2, %v10590_v42 }
 0x3c5   :  { %7063 = vmatprep.mubr.bf16.mxu0 %v1263_v13  ;;  %7719 = vmatprep.mubr.bf16.mxu1 %v1263_v13  ;;  %v1042_v13 = vld [vmem:[%s13741_s2] sm:$0xf] }
 0x3c6   :  { %v1055_v33 = vrot.slane %v1042_v13, %v1054_v49 }
 0x3c7   :  { %7034 = vmatpush1.bf16.msra.mxu0 %v10359_v21  ;;  %7690 = vmatpush1.bf16.msra.mxu1 %v10362_v39  ;;  %v1050_v21 = vsub.s32 1, %v10590_v42  ;;  %v1058_v39 = vsub.s32 3, %v10590_v42 }
 0x3c8   :  { %7035 = vmatprep.subr.bf16.mxu0 %v10367_v32  ;;  %7691 = vmatprep.subr.bf16.mxu1 %v10370_v40  ;;  %v10452_v32 = vmov 1983009808  }
 0x3c9   :  { %v7739_v40 = vunpack.c.l.s4 %v10452_v32 }
 0x3cb   :  { %7036 = vmatpush1.bf16.msra.mxu0 %v10365_v41  ;;  %7692 = vmatpush1.bf16.msra.mxu1 %v10368_v34  ;;  %v1047_v41 = vrot.slane %v1042_v13, %v1046_v37  ;;  %v1051_v34 = vrot.slane %v1042_v13, %v1050_v21 }
 0x3cc   :  { %7037 = vmatprep.subr.bf16.mxu0 %v10373_v43  ;;  %7693 = vmatprep.subr.bf16.mxu1 %v10376_v45  ;;  %v1059_v43 = vrot.slane %v1042_v13, %v1058_v39 }
 0x3cf   :  { %7038 = vmatpush1.bf16.msra.mxu0 %v10371_v46  ;;  %7694 = vmatpush1.bf16.msra.mxu1 %v10374_v35  ;;  %v7740_v35 = vunpack.c.0.s8 %v7739_v40 }
 0x3d0   :  { %7039 = vmatprep.subr.bf16.mxu0 %v10379_v50  ;;  %7695 = vmatprep.subr.bf16.mxu1 %v10382_v53 }
 0x3d3   :  { %7040 = vmatpush1.bf16.msra.mxu0 %v10377_v38  ;;  %7696 = vmatpush1.bf16.msra.mxu1 %v10380_v54 }
 0x3d4   :  { %7041 = vmatprep.subr.bf16.mxu0 %v10385_v55  ;;  %7697 = vmatprep.subr.bf16.mxu1 %v10388_v56 }
 0x3d7   :  { %7042 = vmatpush1.bf16.msra.mxu0 %v10383_v47  ;;  %7698 = vmatpush1.bf16.msra.mxu1 %v10386_v57 }
 0x3d8   :  { %7043 = vmatprep.subr.bf16.mxu0 %v10391_v58  ;;  %7699 = vmatprep.subr.bf16.mxu1 %v10394_v59 }
 0x3db   :  { %7044 = vmatpush1.bf16.msra.mxu0 %v10389_v48  ;;  %7700 = vmatpush1.bf16.msra.mxu1 %v10392_v61 }
 0x3dc   :  { %7045 = vmatprep.subr.bf16.mxu0 %v10397_v63  ;;  %7701 = vmatprep.subr.bf16.mxu1 %v10400_v44  ;;  %v7743_v44 = vsub.s32 %v7740_v35, %v10590_v42 }
 0x3df   :  { %7046 = vmatpush1.bf16.msra.mxu0 %v10395_v1  ;;  %7702 = vmatpush1.bf16.msra.mxu1 %v10398_v51 }
 0x3e0   :  { %7047 = vmatprep.subr.bf16.mxu0 %v10403_v2  ;;  %7703 = vmatprep.subr.bf16.mxu1 %v10406_v3 }
 0x3e3   :  { %7048 = vmatpush1.bf16.msra.mxu0 %v10401_v4  ;;  %7704 = vmatpush1.bf16.msra.mxu1 %v10404_v60 }
 0x3e4   :  { %7049 = vmatprep.subr.bf16.mxu0 %v10409_v6  ;;  %7705 = vmatprep.subr.bf16.mxu1 %v10412_v7 }
 0x3e7   :  { %7050 = vmatpush1.bf16.msra.mxu0 %v10407_v62  ;;  %7706 = vmatpush1.bf16.msra.mxu1 %v10410_v10 }
 0x3e8   :  { %7051 = vmatprep.subr.bf16.mxu0 %v10415_v12  ;;  %7707 = vmatprep.subr.bf16.mxu1 %v10418_v0 }
 0x3eb   :  { %7052 = vmatpush1.bf16.msra.mxu0 %v10413_v52  ;;  %7708 = vmatpush1.bf16.msra.mxu1 %v10416_v15 }
 0x3ec   :  { %7053 = vmatprep.subr.bf16.mxu0 %v10421_v16  ;;  %7709 = vmatprep.subr.bf16.mxu1 %v10424_v8 }
 0x3ef   :  { %7054 = vmatpush1.bf16.msra.mxu0 %v10419_v17  ;;  %7710 = vmatpush1.bf16.msra.mxu1 %v10422_v18 }
 0x3f0   :  { %7055 = vmatprep.subr.bf16.mxu0 %v10427_v19  ;;  %7711 = vmatprep.subr.bf16.mxu1 %v10430_v9 }
 0x3f3   :  { %7056 = vmatpush1.bf16.msra.mxu0 %v10425_v22  ;;  %7712 = vmatpush1.bf16.msra.mxu1 %v10428_v24 }
 0x3f4   :  { %7057 = vmatprep.subr.bf16.mxu0 %v10433_v5  ;;  %7713 = vmatprep.subr.bf16.mxu1 %v10436_v27 }
 0x3f7   :  { %7058 = vmatpush1.bf16.msra.mxu0 %v10431_v11  ;;  %7714 = vmatpush1.bf16.msra.mxu1 %v10434_v28 }
 0x3f8   :  { %7059 = vmatprep.subr.bf16.mxu0 %v10439_v29  ;;  %7715 = vmatprep.subr.bf16.mxu1 %v10442_v14 }
 0x3fb   :  { %7060 = vmatpush1.bf16.msra.mxu0 %v10437_v20  ;;  %7716 = vmatpush1.bf16.msra.mxu1 %v10440_v30 }
 0x3fc   :  { %7061 = vmatprep.subr.bf16.mxu0 %v10445_v31  ;;  %7717 = vmatprep.subr.bf16.mxu1 %v10448_v25 }
 0x3ff   :  { %7062 = vmatpush1.bf16.msra.mxu0 %v10443_v23  ;;  %7718 = vmatpush1.bf16.msra.mxu1 %v10446_v26 }
 0x402   :  { %7064 = vmatmul.mubr.bf16.vlgmr.msra.gmra.mrb[0].mxu0 %v1261_v36  ;;  %7720 = vmatmul.mubr.bf16.vlgmr.msra.gmra.mrb[0].mxu1 %v1261_v36 }
 0x4d5   :  { %v7065_v45 = vpop.f32.mrb[0].mxu0  ;;  %v7721_v46 = vpop.f32.mrb[0].mxu1 }
 0x4d6   :  { %v8783_v50 = vadd.f32 %v7065_v45, %v1047_v41  ;;  %v8785_v53 = vadd.f32 %v7721_v46, %v1055_v33  ;;  %v7067_v38 = vpop.f32.mrb[1].mxu0  ;;  %v7723_v54 = vpop.f32.mrb[1].mxu1 }
 0x4d7   :  { %v8784_v55 = vadd.f32 %v7067_v38, %v1051_v34  ;;  %v8786_v56 = vadd.f32 %v7723_v54, %v1059_v43  ;;  %v7069_v47 = vpop.f32.mrb[2].mxu0  ;;  %v7725_v57 = vpop.f32.mrb[2].mxu1 }
 0x4d8   :  { %v7728_v58 = vmax.f32 %v8783_v50, 0.0  ;;  %v7730_v59 = vmax.f32 %v8785_v53, 0.0  ;;  %v7070_v48 = vpop.f32.mrb[3].mxu0  ;;  %v7726_v61 = vpop.f32.mrb[3].mxu1 }
 0x4d9   :  { %v7729_v63 = vmax.f32 %v8784_v55, 0.0  ;;  %v7731_v1 = vmax.f32 %v8786_v56, 0.0 }
 0x4db   :  { %v7736_v51 = vcombine.low %v7728_v58, %v7729_v63  ;;  %v7737_v2 = vcombine.low %v7730_v59, %v7731_v1 }
 0x4dd   :  { %v7744_v3 = vrot.slane %v7736_v51, %v7743_v44  ;;  %v7751_v4 = vrot.slane %v7737_v2, %v7743_v44 }
 0x4df   :  { %v7752_v60 = vcombine.low %v7744_v3, %v7751_v4 }
 0x4e1   :  { %7754 = vst [vmem:[%s13742_s3] sm:$0xff] %v7752_v60 }

</bundles_post_ra>
